<compile_context>
chip_gen: v7x
topology: tpu7x:2x2x1
jax: 0.10.0
libtpu: 0.0.40
codegen_flags: <defaults>
</compile_context>

<pallas_src>
import jax
import jax.numpy as jnp
from jax.experimental import pallas as pl
from jax.experimental.pallas import tpu as pltpu

NUM_CLASSES = (5, 5)          # cfg.num_classes
NUM_FEATURES = 32             # synthetic backbone num_features (densenet-style)
LANE = 128                    # TPU lane width; output padded to a multiple of it


def _fused_classifier_kernel(feat_ref, wp_ref, b_ref, logit_ref):
    """Single-step, fully VMEM-resident fused head.

    feat_ref  : (N, C*HW)     backbone feature map, flattened (lane-dense)
    wp_ref    : (C*HW, Kpad)  pool-folded, concatenated, zero-padded weights
    b_ref     : (1, Kpad)     concatenated, zero-padded biases
    logit_ref : (N, Kpad)     padded logits (sliced to Ktot in the wrapper)
    """
    # GlobalPool 'AVG' + both 1x1-conv heads folded into one MXU matmul.
    # fc_bn = False, dropout(p=fc_drop) is identity in eval mode.
    logit_ref[...] = (
        jnp.dot(
            feat_ref[...],
            wp_ref[...],
            preferred_element_type=jnp.float32,
            precision=jax.lax.Precision.HIGHEST,
        )
        + b_ref[...]
    )


def fused_classifier_heads(feat_map, w_pool, b_pad, ktot):
    """Runs every classifier head for the whole batch in a single pallas_call.

    feat_map : (N, C, H, W)   float32 backbone feature map
    w_pool   : (C*HW, Kpad)   precomputed pool-folded weights (from __init__)
    b_pad    : (1, Kpad)      precomputed padded biases        (from __init__)
    returns  : (N, Ktot)      concatenated logits
    """
    N, C, H, W = feat_map.shape
    chw = C * H * W
    kpad = w_pool.shape[1]
    assert w_pool.shape[0] == chw, "w_pool was built for a different H*W"

    feat2d = feat_map.reshape(N, chw)     # lane-dense LHS (chw multiple of 128)

    vmem = pltpu.MemorySpace.VMEM
    logit_pad = pl.pallas_call(
        _fused_classifier_kernel,
        out_shape=jax.ShapeDtypeStruct((N, kpad), jnp.float32),
        in_specs=[
            pl.BlockSpec(memory_space=vmem),
            pl.BlockSpec(memory_space=vmem),
            pl.BlockSpec(memory_space=vmem),
        ],
        out_specs=pl.BlockSpec(memory_space=vmem),
        cost_estimate=pl.CostEstimate(
            flops=2 * N * chw * kpad,
            transcendentals=0,
            bytes_accessed=4 * (N * chw + chw * kpad + kpad + N * kpad),
        ),
    )(feat2d, w_pool, b_pad)

    return logit_pad[:, :ktot]            # drop the lane padding


class Classifier:
    """JAX/Pallas port of the CheXpert Classifier head (forward path only)."""

    def __init__(self, num_features, num_classes, feat_hw, key):
        self.num_classes = tuple(num_classes)
        self.ktot = int(sum(self.num_classes))
        self.kpad = LANE * pl.cdiv(self.ktot, LANE)
        H, W = feat_hw
        self.hw = H * W

        keys = jax.random.split(key, len(self.num_classes))
        self.params = []
        for k_i, num_class in zip(keys, self.num_classes):
            # PyTorch init: weight ~ N(0, 0.01), bias = 0
            w = jax.random.normal(k_i, (num_class, num_features),
                                  dtype=jnp.float32) * 0.01
            b = jnp.zeros((num_class,), dtype=jnp.float32)
            self.params.append((w, b))

        # --- all parameter prep hoisted out of the call path -----------------
        w_cat = jnp.concatenate([w for w, _ in self.params], axis=0)   # (Ktot, C)
        b_cat = jnp.concatenate([b for _, b in self.params], axis=0)   # (Ktot,)

        wt = w_cat.T                                                   # (C, Ktot)
        wt = jnp.pad(wt, ((0, 0), (0, self.kpad - self.ktot)))         # (C, Kpad)
        # Fold the AVG pool into the matmul: W'[c*HW + s, k] = W[k, c] / HW.
        self.w_pool = (jnp.repeat(wt, self.hw, axis=0)
                       / jnp.float32(self.hw))                         # (C*HW, Kpad)
        self.b_pad = jnp.pad(b_cat,
                             (0, self.kpad - self.ktot)).reshape(1, self.kpad)

    def __call__(self, feat_map):
        # TODO(synk): self.backbone(x) not implemented; feat_map is the kernel input.
        # cfg.attention_map == 'None' -> no attention map.
        # logit_map is computed in the reference forward but never returned
        # (args.chexpert_dataset_type != 'pos' -> return the list of logits),
        # so it is dead work and omitted from the kernel.
        logit_cat = fused_classifier_heads(
            feat_map, self.w_pool, self.b_pad, self.ktot)              # (N, Ktot)
        logits = []
        off = 0
        for num_class in self.num_classes:
            logits.append(logit_cat[:, off:off + num_class])           # (N, K_i)
            off += num_class
        return logits


if __name__ == "__main__":
    key = jax.random.PRNGKey(0)
    k_feat, k_params = jax.random.split(key)

    N, C, H, W = 2, NUM_FEATURES, 8, 8
    feat_map = jax.random.normal(k_feat, (N, C, H, W), dtype=jnp.float32)

    model = Classifier(num_features=C, num_classes=NUM_CLASSES,
                       feat_hw=(H, W), key=k_params)
    logits = model(feat_map)
    logits = [jax.block_until_ready(l) for l in logits]

    # Pure-JAX reference check of the head math (AVG pool -> 1x1 conv heads).
    ok = True
    pooled = jnp.mean(feat_map, axis=(2, 3))                           # (N, C)
    for (w, b), logit in zip(model.params, logits):
        ref = jnp.dot(pooled, w.T,
                      precision=jax.lax.Precision.HIGHEST) + b[None, :]
        ok = ok and bool(jnp.allclose(logit, ref, atol=1e-5, rtol=1e-5))
        ok = ok and (logit.shape == (N, w.shape[0]))

    if ok:
        print("KERNEL_OK")
    else:
        print("MISMATCH")
</pallas_src>

<mosaic_0001>
module attributes {stable_mosaic.version = 11 : i64} {
  func.func @_fused_classifier_kernel(%arg0: memref<2x2048xf32, #tpu.memory_space<vmem>>, %arg1: memref<2048x128xf32, #tpu.memory_space<vmem>>, %arg2: memref<1x128xf32, #tpu.memory_space<vmem>>, %arg3: memref<2x128xf32, #tpu.memory_space<vmem>>) attributes {dimension_semantics = [], scalar_prefetch = 0 : i64, scratch_operands = 0 : i64, tpu.core_type = #tpu.core_type<tc>} {
    %c0 = arith.constant 0 : index
    %c0_0 = arith.constant 0 : index
    %0 = vector.load %arg0[%c0, %c0_0] : memref<2x2048xf32, #tpu.memory_space<vmem>>, vector<2x2048xf32>
    %c0_1 = arith.constant 0 : index
    %c0_2 = arith.constant 0 : index
    %1 = vector.load %arg1[%c0_1, %c0_2] : memref<2048x128xf32, #tpu.memory_space<vmem>>, vector<2048x128xf32>
    %cst = arith.constant dense<0.000000e+00> : vector<2x128xf32>
    %2 = tpu.matmul %0, %1, %cst {dimension_numbers = #tpu.dot_dimension_numbers<[1], [0], [0], [1], [0, 0, 1, 1], [], []>, precision = #tpu.contract_precision<fp32>} : vector<2x2048xf32>, vector<2048x128xf32>, vector<2x128xf32> -> vector<2x128xf32>
    %c0_3 = arith.constant 0 : index
    %c0_4 = arith.constant 0 : index
    %3 = vector.load %arg2[%c0_3, %c0_4] : memref<1x128xf32, #tpu.memory_space<vmem>>, vector<1x128xf32>
    %4 = vector.broadcast %3 : vector<1x128xf32> to vector<2x128xf32>
    %5 = arith.addf %2, %4 : vector<2x128xf32>
    %c0_5 = arith.constant 0 : index
    %c0_6 = arith.constant 0 : index
    %6 = vector.load %arg3[%c0_5, %c0_6] : memref<2x128xf32, #tpu.memory_space<vmem>>, vector<2x128xf32>
    tpu.vector_store %arg3[%c0_5, %c0_6], %5 {strides = array<i32>} : memref<2x128xf32, #tpu.memory_space<vmem>>, vector<2x128xf32>,
    return
  }
}

</mosaic_0001>

<bundles_post_ra>
// kernel: tpu_custom_call.1
= control target key start
LH: loop header
LB: loop body
LE: loop exit
PB: predicated region body
PF: predicated region fallthrough
CT: control target
= control target key end

     0   :  { %8 = vsyncpa [#allocation3], 0  ;;  %s16220_s0 = inlined_call_operand.hbm [shape: f32[2,2048], index: 0, kind: input, shape index: {}]   ;;  %s16221_s1 = inlined_call_operand.hbm [shape: f32[2048,128], index: 1, kind: input, shape index: {}]   ;;  %s16222_s2 = inlined_call_operand.vmem [shape: f32[1,128], index: 2, kind: input, shape index: {}]   ;;  %s16223_s3 = inlined_call_operand.hbm [shape: f32[2,128], index: 3, kind: output, shape index: {}]  }
   0x1   :  { %9 = vsyncpa [#allocation6], 0 }
   0x2   :  { %10 = vsyncpa [#allocation4], 0  ;;  %s10608_s12 = smov [#allocation2]   ;;  %s10609_s14 = smov [#allocation5]  }
   0x3   :  { %s17_s13 = sshll.u32 %s10608_s12, 4  ;;  %s26_s15 = sshll.u32 %s10609_s14, 4  ;;  %s18_s13 = int_to_ptr.vmem [resolvable:$true] %s17_s13  ;;  %s10634_s15 = int_to_ptr.vmem [resolvable:$true] %s26_s15 }
   0x4   :  { %s10536_s18 = scalar_lea.hbm %s16220_s0, 512 }
   0x5   :  { %p10537_p0 = scmp.ne.s32.totalorder %s16220_s0, %s10536_s18  ;;  %p10540_p1 = scmp.lt.u32.totalorder %s10536_s18, %s16220_s0 }
   0x7   :  { %p10542_p2 = pnand %p10540_p1, %p10537_p0 }
   0x9   :  { %10545 = shalt.err (!%p10542_p2)
}
   0xa   :  { %s10546_s23 = scalar_lea.vmem %s18_s13, 512  ;;  %p10551_p4 = scmp.lt.s32.totalorder %s18_s13, %s18_s13 }
   0xb   :  { %p10547_p3 = scmp.ne.s32.totalorder %s18_s13, %s10546_s23  ;;  %p10552_p5 = scmp.lt.s32.totalorder %s10546_s23, %s10546_s23 }
   0xd   :  { %p10553_p6 = por %p10552_p5, %p10551_p4 }
   0xf   :  { %p10554_p7 = pnand %p10553_p6, %p10547_p3 }
  0x11   :  { %10557 = shalt.err (!%p10554_p7)
}
  0x12   :  { %20 = dma.hbm_to_vmem [thread:$0]  %s16220_s0, 512, %s18_s13, [#allocation3]  }
  0x13   :  { %s10558_s28 = scalar_lea.hbm %s16221_s1, 32768 }
  0x14   :  { %p10559_p8 = scmp.ne.s32.totalorder %s16221_s1, %s10558_s28  ;;  %p10562_p9 = scmp.lt.u32.totalorder %s10558_s28, %s16221_s1 }
  0x16   :  { %p10564_p10 = pnand %p10562_p9, %p10559_p8 }
  0x18   :  { %10567 = shalt.err (!%p10564_p10)
}
  0x19   :  { %s10568_s6 = scalar_lea.vmem %s10634_s15, 32768  ;;  %p10573_p12 = scmp.lt.s32.totalorder %s10634_s15, %s10634_s15 }
  0x1a   :  { %p10569_p11 = scmp.ne.s32.totalorder %s10634_s15, %s10568_s6  ;;  %p10574_p13 = scmp.lt.s32.totalorder %s10568_s6, %s10568_s6 }
  0x1c   :  { %p10575_p0 = por %p10574_p13, %p10573_p12 }
  0x1e   :  { %p10576_p1 = pnand %p10575_p0, %p10569_p11 }
  0x20   :  { %10579 = shalt.err (!%p10576_p1)
}
  0x21   :  { %s10610_s0 = smov 128   ;;  %s10611_s7 = smov 8  }
  0x22   :  { %32 = dma.hbm_to_vmem [thread:$0]  %s16221_s1, 32768, %s10634_s15, [#allocation6], %s10610_s0, %s10610_s0, %s10611_s7  }
  0x23   :  { %10602 = dma.done.wait [#allocation3], 512  }
  0x24   :  { %10603 = vsyncadd [#allocation3], 4294966784 }
  0x25   :  { %10604 = dma.done.wait [#allocation6], 32768  }
  0x26   :  { %10605 = vsyncadd [#allocation6], 4294934528  ;;  %v316_v0 = vlaneseq  ;;  %v10612_v1 = vmov 1983009808   ;;  %v61_v3 = vld [vmem:[#allocation5 + $0x80] sm:$0xff]  ;;  %v62_v4 = vld [vmem:[#allocation5 + $0x88] sm:$0xff] }
  0x27   :  { %v314_v2 = vunpack.c.l.s4 %v10612_v1  ;;  %v45_v5 = vld [vmem:[#allocation5] sm:$0xff]  ;;  %v445_v7 = vand.u32 4294901760, %v61_v3  ;;  %v448_v8 = vand.u32 4294901760, %v62_v4  ;;  %v46_v9 = vld [vmem:[#allocation5 + $0x8] sm:$0xff]  ;;  %v63_v11 = vld [vmem:[#allocation5 + $0x90] sm:$0xff] }
  0x28   :  { %v317_v6 = vshrl.u32 %v316_v0, 7  ;;  %v397_v10 = vand.u32 4294901760, %v45_v5  ;;  %v64_v12 = vld [vmem:[#allocation5 + $0x98] sm:$0xff]  ;;  %v400_v14 = vand.u32 4294901760, %v46_v9  ;;  %v451_v15 = vand.u32 4294901760, %v63_v11  ;;  %v47_v17 = vld [vmem:[#allocation5 + $0x10] sm:$0xff] }
  0x29   :  { %v315_v13 = vunpack.c.0.s8 %v314_v2  ;;  %v454_v16 = vand.u32 4294901760, %v64_v12  ;;  %v48_v18 = vld [vmem:[#allocation5 + $0x18] sm:$0xff]  ;;  %v10665_v19 = vpack.c.bf16 %v448_v8, %v445_v7  ;;  %v403_v21 = vand.u32 4294901760, %v47_v17  ;;  %v65_v23 = vld [vmem:[#allocation5 + $0xa0] sm:$0xff]  ;;  %v66_v24 = vld [vmem:[#allocation5 + $0xa8] sm:$0xff] }
  0x2a   :  { %v10667_v20 = vsub.f32 %v45_v5, %v397_v10  ;;  %v406_v22 = vand.u32 4294901760, %v48_v18  ;;  %v10669_v25 = vpack.c.bf16 %v400_v14, %v397_v10  ;;  %v10671_v26 = vsub.f32 %v46_v9, %v400_v14  ;;  %v49_v28 = vld [vmem:[#allocation5 + $0x20] sm:$0xff]  ;;  %v50_v29 = vld [vmem:[#allocation5 + $0x28] sm:$0xff]  ;;  %v67_v42 = vld [vmem:[#allocation5 + $0xb0] sm:$0xff] }
  0x2b   :  { %v10673_v27 = vpack.c.bf16 %v454_v16, %v451_v15  ;;  %8991 = vmatprep.subr.bf16.mxu0 %v10665_v19  ;;  %v10676_v30 = vsub.f32 %v63_v11, %v451_v15  ;;  %v10678_v31 = vsub.f32 %v64_v12, %v454_v16  ;;  %v10682_v33 = vsub.s32 %v315_v13, %v317_v6  ;;  %v68_v47 = vld [vmem:[#allocation5 + $0xb8] sm:$0xff]  ;;  %v51_v60 = vld [vmem:[#allocation5 + $0x30] sm:$0xff]  ;;  %v69_v10 = vld [vmem:[#allocation5 + $0xc0] sm:$0xff] }
  0x2c   :  { %v10680_v32 = vpack.c.bf16 %v406_v22, %v403_v21  ;;  %8993 = vmatpush3.bf16.msra.mxu0 %v10669_v25  ;;  %v457_v34 = vand.u32 4294901760, %v65_v23  ;;  %v460_v35 = vand.u32 4294901760, %v66_v24  ;;  %v10685_v36 = vsub.f32 %v61_v3, %v445_v7  ;;  %v52_v61 = vld [vmem:[#allocation5 + $0x38] sm:$0xff]  ;;  %v70_v11 = vld [vmem:[#allocation5 + $0xc8] sm:$0xff]  ;;  %v53_v16 = vld [vmem:[#allocation5 + $0x40] sm:$0xff] }
  0x2d   :  { %16795 = vst [vmem:[#allocation11_spill] sm:$0xff] %v10682_v33  ;;  %v10687_v37 = vsub.f32 %v62_v4, %v448_v8  ;;  %8995 = vmatprep.subr.bf16.mxu0 %v10673_v27  ;;  %v409_v38 = vand.u32 4294901760, %v49_v28  ;;  %v412_v39 = vand.u32 4294901760, %v50_v29  ;;  %v16238_v40 = vand.u32 4294901760, %v10667_v20 }
  0x2e   :  { %v16236_v41 = vand.u32 4294901760, %v10671_v26  ;;  %v10692_v43 = vsub.f32 %v47_v17, %v403_v21  ;;  %v10694_v44 = vsub.f32 %v48_v18, %v406_v22  ;;  %v10696_v45 = vpack.c.bf16 %v460_v35, %v457_v34 }
  0x2f   :  { %v16241_v46 = vand.u32 4294901760, %v10685_v36  ;;  %v10699_v48 = vsub.f32 %v65_v23, %v457_v34  ;;  %v10701_v49 = vsub.f32 %v66_v24, %v460_v35  ;;  %v16240_v50 = vand.u32 4294901760, %v10687_v37  ;;  %v54_v34 = vld [vmem:[#allocation5 + $0x48] sm:$0xff] }
  0x30   :  { %v10704_v51 = vpack.c.bf16 %v412_v39, %v409_v38  ;;  %8997 = vmatpush3.bf16.msra.mxu0 %v10680_v32  ;;  %v512_v53 = vsub.f32 %v10667_v20, %v16238_v40  ;;  %v519_v54 = vsub.f32 %v10671_v26, %v16236_v41  ;;  %v463_v55 = vand.u32 4294901760, %v67_v42  ;;  %v76_v41 = vld [vmem:[#allocation5 + $0xf8] sm:$0xff] }
  0x31   :  { %v624_v52 = vsub.f32 %v10685_v36, %v16241_v46  ;;  %8999 = vmatprep.subr.bf16.mxu0 %v10696_v45  ;;  %v631_v56 = vsub.f32 %v10687_v37, %v16240_v50  ;;  %v466_v57 = vand.u32 4294901760, %v68_v47  ;;  %v16235_v58 = vand.u32 4294901760, %v10676_v30 }
  0x32   :  { %v16233_v59 = vand.u32 4294901760, %v10678_v31  ;;  %v10722_v63 = vsub.f32 %v49_v28, %v409_v38  ;;  %v513_v0 = vand.u32 4294901760, %v512_v53  ;;  %v520_v1 = vand.u32 4294901760, %v519_v54 }
  0x33   :  { %v625_v62 = vand.u32 4294901760, %v624_v52  ;;  %v632_v2 = vand.u32 4294901760, %v631_v56  ;;  %v10724_v3 = vsub.f32 %v50_v29, %v412_v39  ;;  %v10726_v4 = vpack.c.bf16 %v466_v57, %v463_v55 }
  0x34   :  { %v638_v5 = vsub.f32 %v10676_v30, %v16235_v58  ;;  %9001 = vmatpush3.bf16.msra.mxu0 %v10704_v51  ;;  %v9024_v6 = vpack.c.bf16 %v520_v1, %v513_v0  ;;  %v645_v7 = vsub.f32 %v10678_v31, %v16233_v59  ;;  %v415_v8 = vand.u32 4294901760, %v51_v60  ;;  %v71_v0 = vld [vmem:[#allocation5 + $0xd0] sm:$0xff]  ;;  %v72_v1 = vld [vmem:[#allocation5 + $0xd8] sm:$0xff] }
  0x35   :  { %v418_v9 = vand.u32 4294901760, %v52_v61  ;;  %v9022_v12 = vpack.c.bf16 %v632_v2, %v625_v62  ;;  %9003 = vmatprep.subr.bf16.mxu0 %v10726_v4  ;;  %v16231_v14 = vand.u32 4294901760, %v10692_v43  ;;  %v16230_v15 = vand.u32 4294901760, %v10694_v44  ;;  %v75_v58 = vld [vmem:[#allocation5 + $0xf0] sm:$0xff] }
  0x36   :  { %v639_v13 = vand.u32 4294901760, %v638_v5  ;;  %v10738_v17 = vsub.f32 %v67_v42, %v463_v55  ;;  %v10740_v18 = vsub.f32 %v68_v47, %v466_v57  ;;  %v646_v21 = vand.u32 4294901760, %v645_v7 }
  0x37   :  { %v10742_v22 = vpack.c.bf16 %v418_v9, %v415_v8  ;;  %9023 = vmatprep.subr.bf16.mxu1 %v9022_v12  ;;  %v526_v23 = vsub.f32 %v10692_v43, %v16231_v14  ;;  %v533_v24 = vsub.f32 %v10694_v44, %v16230_v15  ;;  %v469_v28 = vand.u32 4294901760, %v69_v10 }
  0x38   :  { %v472_v29 = vand.u32 4294901760, %v70_v11  ;;  %9025 = vmatpush3.bf16.msra.mxu1 %v9024_v6  ;;  %v9026_v35 = vpack.c.bf16 %v646_v21, %v639_v13  ;;  %v16228_v38 = vand.u32 4294901760, %v10699_v48  ;;  %v16226_v39 = vand.u32 4294901760, %v10701_v49  ;;  %v55_v6 = vld [vmem:[#allocation5 + $0x50] sm:$0xff] }
  0x39   :  { %9005 = vmatpush3.bf16.msra.mxu0 %v10742_v22  ;;  %v421_v42 = vand.u32 4294901760, %v53_v16  ;;  %v10753_v47 = vsub.f32 %v51_v60, %v415_v8  ;;  %v527_v52 = vand.u32 4294901760, %v526_v23  ;;  %v534_v53 = vand.u32 4294901760, %v533_v24  ;;  %v56_v24 = vld [vmem:[#allocation5 + $0x58] sm:$0xff] }
  0x3a   :  { %v10755_v54 = vpack.c.bf16 %v472_v29, %v469_v28  ;;  %9027 = vmatprep.subr.bf16.mxu1 %v9026_v35  ;;  %v10757_v55 = vsub.f32 %v52_v61, %v418_v9  ;;  %v652_v56 = vsub.f32 %v10699_v48, %v16228_v38  ;;  %v659_v57 = vsub.f32 %v10701_v49, %v16226_v39  ;;  %v74_v39 = vld [vmem:[#allocation5 + $0xe8] sm:$0xff] }
  0x3b   :  { %v424_v62 = vand.u32 4294901760, %v54_v34  ;;  %v9028_v60 = vpack.c.bf16 %v534_v53, %v527_v52  ;;  %v10766_v2 = vsub.f32 %v69_v10, %v469_v28  ;;  %v16225_v5 = vand.u32 4294901760, %v10722_v63 }
  0x3c   :  { %9007 = vmatprep.subr.bf16.mxu0 %v10755_v54  ;;  %v16224_v61 = vand.u32 4294901760, %v10724_v3  ;;  %v10770_v7 = vsub.f32 %v70_v11, %v472_v29  ;;  %v653_v8 = vand.u32 4294901760, %v652_v56  ;;  %v660_v9 = vand.u32 4294901760, %v659_v57 }
  0x3d   :  { %v10772_v12 = vpack.c.bf16 %v424_v62, %v421_v42  ;;  %9029 = vmatpush3.bf16.msra.mxu1 %v9028_v60  ;;  %v540_v13 = vsub.f32 %v10722_v63, %v16225_v5  ;;  %v475_v21 = vand.u32 4294901760, %v71_v0  ;;  %v478_v23 = vand.u32 4294901760, %v72_v1  ;;  %v73_v5 = vld [vmem:[#allocation5 + $0xe0] sm:$0xff] }
  0x3e   :  { %v547_v10 = vsub.f32 %v10724_v3, %v16224_v61  ;;  %v9030_v28 = vpack.c.bf16 %v660_v9, %v653_v8  ;;  %v16227_v11 = vand.u32 4294901760, %v10738_v17  ;;  %v16229_v29 = vand.u32 4294901760, %v10740_v18 }
  0x3f   :  { %9009 = vmatpush3.bf16.msra.mxu0 %v10772_v12  ;;  %v427_v35 = vand.u32 4294901760, %v55_v6  ;;  %v10783_v52 = vsub.f32 %v53_v16, %v421_v42  ;;  %v541_v53 = vand.u32 4294901760, %v540_v13  ;;  %v10785_v57 = vpack.c.bf16 %v478_v23, %v475_v21 }
  0x40   :  { %v548_v56 = vand.u32 4294901760, %v547_v10  ;;  %9031 = vmatprep.subr.bf16.mxu1 %v9030_v28  ;;  %v10787_v60 = vsub.f32 %v54_v34, %v424_v62  ;;  %v666_v8 = vsub.f32 %v10738_v17, %v16227_v11  ;;  %v673_v9 = vsub.f32 %v10740_v18, %v16229_v29  ;;  %v57_v62 = vld [vmem:[#allocation5 + $0x60] sm:$0xff]  ;;  %v58_v29 = vld [vmem:[#allocation5 + $0x68] sm:$0xff] }
  0x41   :  { %16796 = vst [vmem:[#allocation12_spill] sm:$0xff] %v10785_v57  ;;  %v430_v61 = vand.u32 4294901760, %v56_v24  ;;  %9011 = vmatprep.subr.bf16.mxu0 %v10785_v57  ;;  %v10796_v42 = vsub.f32 %v71_v0, %v475_v21  ;;  %v16232_v13 = vand.u32 4294901760, %v10753_v47  ;;  %v16234_v34 = vand.u32 4294901760, %v10757_v55 }
  0x42   :  { %v9032_v16 = vpack.c.bf16 %v548_v56, %v541_v53  ;;  %v10800_v10 = vsub.f32 %v72_v1, %v478_v23  ;;  %v667_v28 = vand.u32 4294901760, %v666_v8  ;;  %v674_v11 = vand.u32 4294901760, %v673_v9 }
  0x43   :  { %v10802_v38 = vpack.c.bf16 %v430_v61, %v427_v35  ;;  %v554_v53 = vsub.f32 %v10753_v47, %v16232_v13  ;;  %v561_v0 = vsub.f32 %v10757_v55, %v16234_v34  ;;  %v481_v21 = vand.u32 4294901760, %v73_v5 }
  0x44   :  { %9033 = vmatpush3.bf16.msra.mxu1 %v9032_v16  ;;  %v484_v56 = vand.u32 4294901760, %v74_v39  ;;  %v9034_v15 = vpack.c.bf16 %v674_v11, %v667_v28  ;;  %v16237_v1 = vand.u32 4294901760, %v10766_v2  ;;  %v16239_v23 = vand.u32 4294901760, %v10770_v7 }
  0x45   :  { %16797 = vst [vmem:[#allocation13_spill] sm:$0xff] %v10802_v38  ;;  %9013 = vmatpush3.bf16.msra.mxu0 %v10802_v38  ;;  %v433_v8 = vand.u32 4294901760, %v57_v62  ;;  %v10813_v9 = vsub.f32 %v55_v6, %v427_v35  ;;  %v555_v16 = vand.u32 4294901760, %v554_v53  ;;  %v562_v14 = vand.u32 4294901760, %v561_v0 }
  0x46   :  { %v10815_v13 = vpack.c.bf16 %v484_v56, %v481_v21  ;;  %9035 = vmatprep.subr.bf16.mxu1 %v9034_v15  ;;  %v10817_v59 = vsub.f32 %v56_v24, %v430_v61  ;;  %v680_v11 = vsub.f32 %v10766_v2, %v16237_v1  ;;  %v687_v28 = vsub.f32 %v10770_v7, %v16239_v23  ;;  %v59_v24 = vld [vmem:[#allocation5 + $0x70] sm:$0xff]  ;;  %v60_v23 = vld [vmem:[#allocation5 + $0x78] sm:$0xff] }
  0x47   :  { %v436_v34 = vand.u32 4294901760, %v58_v29  ;;  %v9036_v6 = vpack.c.bf16 %v562_v14, %v555_v16  ;;  %v10826_v35 = vsub.f32 %v73_v5, %v481_v21  ;;  %v16242_v15 = vand.u32 4294901760, %v10783_v52 }
  0x48   :  { %16798 = vst [vmem:[#allocation14_spill] sm:$0xff] %v10815_v13  ;;  %9015 = vmatprep.subr.bf16.mxu0 %v10815_v13  ;;  %v16245_v61 = vand.u32 4294901760, %v10787_v60  ;;  %v10830_v53 = vsub.f32 %v74_v39, %v484_v56  ;;  %v681_v0 = vand.u32 4294901760, %v680_v11  ;;  %v688_v1 = vand.u32 4294901760, %v687_v28 }
  0x49   :  { %v10832_v40 = vpack.c.bf16 %v436_v34, %v433_v8  ;;  %9037 = vmatpush3.bf16.msra.mxu1 %v9036_v6  ;;  %v568_v14 = vsub.f32 %v10783_v52, %v16242_v15  ;;  %v487_v21 = vand.u32 4294901760, %v75_v58  ;;  %v490_v16 = vand.u32 4294901760, %v76_v41 }
  0x4a   :  { %v575_v5 = vsub.f32 %v10787_v60, %v16245_v61  ;;  %v9038_v50 = vpack.c.bf16 %v688_v1, %v681_v0  ;;  %v16248_v39 = vand.u32 4294901760, %v10796_v42  ;;  %v16249_v56 = vand.u32 4294901760, %v10800_v10 }
  0x4b   :  { %16799 = vst [vmem:[#allocation15_spill] sm:$0xff] %v10832_v40  ;;  %9017 = vmatpush3.bf16.msra.mxu0 %v10832_v40  ;;  %v439_v11 = vand.u32 4294901760, %v59_v24  ;;  %v10843_v28 = vsub.f32 %v57_v62, %v433_v8  ;;  %v569_v6 = vand.u32 4294901760, %v568_v14  ;;  %v10845_v15 = vpack.c.bf16 %v490_v16, %v487_v21  ;;  %v10855_v40 = vld [vmem:[#allocation2] sm:$0xff] }
  0x4c   :  { %v576_v46 = vand.u32 4294901760, %v575_v5  ;;  %9039 = vmatprep.subr.bf16.mxu1 %v9038_v50  ;;  %v10847_v13 = vsub.f32 %v58_v29, %v436_v34  ;;  %v694_v1 = vsub.f32 %v10796_v42, %v16248_v39  ;;  %v701_v0 = vsub.f32 %v10800_v10, %v16249_v56  ;;  %16801 = vst [vmem:[#allocation17_spill] sm:$0xff] %v10855_v40 }
  0x4d   :  { %16800 = vst [vmem:[#allocation16_spill] sm:$0xff] %v10845_v15  ;;  %v442_v61 = vand.u32 4294901760, %v60_v23  ;;  %9019 = vmatprep.subr.bf16.mxu0 %v10845_v15  ;;  %v10858_v8 = vsub.f32 %v75_v58, %v487_v21  ;;  %v16251_v50 = vand.u32 4294901760, %v10813_v9  ;;  %v16250_v29 = vand.u32 4294901760, %v10817_v59 }
  0x4e   :  { %v9040_v62 = vpack.c.bf16 %v576_v46, %v569_v6  ;;  %v10862_v34 = vsub.f32 %v76_v41, %v490_v16  ;;  %v695_v14 = vand.u32 4294901760, %v694_v1  ;;  %v702_v5 = vand.u32 4294901760, %v701_v0 }
  0x4f   :  { %v10864_v39 = vpack.c.bf16 %v442_v61, %v439_v11  ;;  %v10866_v56 = vsub.f32 %v59_v24, %v439_v11  ;;  %v582_v46 = vsub.f32 %v10813_v9, %v16251_v50  ;;  %v589_v58 = vsub.f32 %v10817_v59, %v16250_v29 }
  0x50   :  { %16802 = vst [vmem:[#allocation18_spill] sm:$0xff] %v10862_v34  ;;  %9041 = vmatpush3.bf16.msra.mxu1 %v9040_v62  ;;  %v319_v21 = vrot.slane %v10855_v40, %v10682_v33  ;;  %v9042_v41 = vpack.c.bf16 %v702_v5, %v695_v14  ;;  %v16258_v16 = vand.u32 4294901760, %v10826_v35  ;;  %v16261_v6 = vand.u32 4294901760, %v10830_v53 }
  0x51   :  { %16803 = vst [vmem:[#allocation19_spill] sm:$0xff] %v10864_v39  ;;  %9021 = vmatpush3.bf16.msra.mxu0 %v10864_v39  ;;  %v9054_v24 = vpack.c.bf16 %v10687_v37, %v10685_v36  ;;  %v583_v11 = vand.u32 4294901760, %v582_v46  ;;  %v590_v1 = vand.u32 4294901760, %v589_v58  ;;  %v16259_v5 = vand.u32 4294901760, %v10843_v28 }
  0x52   :  { %v327_v0 = vcombine.high %v319_v21, %v319_v21  ;;  %v10881_v62 = vand.u32 4294901760, %v319_v21  ;;  %9043 = vmatprep.subr.bf16.mxu1 %v9042_v41  ;;  %v708_v29 = vsub.f32 %v10826_v35, %v16258_v16  ;;  %v715_v14 = vsub.f32 %v10830_v53, %v16261_v6 }
  0x53   :  { %9055 = vmatprep.subr.bf16.mxu0 %v9054_v24  ;;  %v16260_v50 = vand.u32 4294901760, %v10847_v13  ;;  %v10891_v33 = vsub.f32 %v60_v23, %v442_v61  ;;  %v9044_v46 = vpack.c.bf16 %v590_v1, %v583_v11  ;;  %v596_v16 = vsub.f32 %v10843_v28, %v16259_v5 }
  0x54   :  { %v10893_v58 = vand.u32 4294901760, %v327_v0  ;;  %v10896_v41 = vsub.f32 %v319_v21, %v10881_v62  ;;  %v709_v39 = vand.u32 4294901760, %v708_v29  ;;  %v716_v15 = vand.u32 4294901760, %v715_v14 }
  0x55   :  { %v603_v24 = vsub.f32 %v10847_v13, %v16260_v50  ;;  %9045 = vmatpush3.bf16.msra.mxu1 %v9044_v46  ;;  %v721_v11 = vand.u32 4294901760, %v10858_v8  ;;  %v728_v21 = vand.u32 4294901760, %v10862_v34  ;;  %v597_v1 = vand.u32 4294901760, %v596_v16 }
  0x56   :  { %16804 = vst [vmem:[#allocation20_spill] sm:$0xff] %v10893_v58  ;;  %16805 = vst [vmem:[#allocation21_spill] sm:$0xff] %v10896_v41  ;;  %v10905_v23 = vsub.f32 %v327_v0, %v10893_v58  ;;  %v16268_v61 = vand.u32 4294901760, %v10896_v41  ;;  %733 = vmatprep.mubr.f32.mxu1 %v10893_v58  ;;  %v9046_v29 = vpack.c.bf16 %v716_v15, %v709_v39  ;;  %v609_v40 = vand.u32 4294901760, %v10866_v56 }
  0x57   :  { %v604_v14 = vand.u32 4294901760, %v603_v24  ;;  %v722_v0 = vsub.f32 %v10858_v8, %v721_v11  ;;  %v729_v50 = vsub.f32 %v10862_v34, %v728_v21  ;;  %v616_v38 = vand.u32 4294901760, %v10891_v33 }
  0x58   :  { %v494_v5 = vand.u32 4294901760, %v10905_v23  ;;  %v501_v46 = vsub.f32 %v10896_v41, %v16268_v61  ;;  %9047 = vmatprep.subr.bf16.mxu1 %v9046_v29  ;;  %v610_v58 = vsub.f32 %v10866_v56, %v609_v40  ;;  %v9056_v57 = vpack.c.bf16 %v10671_v26, %v10667_v20 }
  0x59   :  { %v9048_v6 = vpack.c.bf16 %v604_v14, %v597_v1  ;;  %v723_v39 = vand.u32 4294901760, %v722_v0  ;;  %v730_v16 = vand.u32 4294901760, %v729_v50  ;;  %v617_v61 = vsub.f32 %v10891_v33, %v616_v38 }
  0x5a   :  { %v495_v15 = vsub.f32 %v10905_v23, %v494_v5  ;;  %v502_v24 = vand.u32 4294901760, %v501_v46  ;;  %v9058_v1 = vpack.c.bf16 %v10678_v31, %v10676_v30  ;;  %v611_v14 = vand.u32 4294901760, %v610_v58 }
  0x5b   :  { %9049 = vmatpush3.bf16.msra.mxu1 %v9048_v6  ;;  %v9050_v29 = vpack.c.bf16 %v730_v16, %v723_v39  ;;  %v618_v34 = vand.u32 4294901760, %v617_v61  ;;  %v9060_v6 = vpack.c.bf16 %v10694_v44, %v10692_v43  ;;  %v9062_v46 = vpack.c.bf16 %v10701_v49, %v10699_v48 }
  0x5c   :  { %v496_v41 = vand.u32 4294901760, %v495_v15  ;;  %v16806_v0 = vand.u32 4294901760, %v10685_v36  ;;  %v16807_v15 = vand.u32 4294901760, %v10687_v37  ;;  %v16808_v58 = vand.u32 4294901760, %v10667_v20 }
  0x5d   :  { %9051 = vmatprep.subr.bf16.mxu1 %v9050_v29  ;;  %v9052_v50 = vpack.c.bf16 %v618_v34, %v611_v14  ;;  %v16810_v61 = vand.u32 4294901760, %v10676_v30  ;;  %v16811_v16 = vand.u32 4294901760, %v10678_v31  ;;  %v16812_v36 = vand.u32 4294901760, %v10692_v43 }
  0x5e   :  { %497 = vmatprep.mubr.f32.mxu0 %v496_v41  ;;  %v10935_v39 = vpack.c.bf16 %v16807_v15, %v16806_v0  ;;  %v16809_v41 = vand.u32 4294901760, %v10671_v26  ;;  %v16813_v37 = vand.u32 4294901760, %v10694_v44  ;;  %v16814_v20 = vand.u32 4294901760, %v10699_v48 }
  0x5f   :  { %503 = vmatmul.mubr.f32.vlgmr.msra.gmra.mrb[0].mxu0 %v502_v24  ;;  %v10947_v24 = vpack.c.bf16 %v16811_v16, %v16810_v61  ;;  %9053 = vmatpush3.bf16.msra.mxu1 %v9052_v50  ;;  %v16815_v26 = vand.u32 4294901760, %v10701_v49  ;;  %v16816_v30 = vand.u32 4294901760, %v10722_v63  ;;  %v16817_v31 = vand.u32 4294901760, %v10724_v3 }
  0x60   :  { %9057 = vmatpush3.bf16.msra.mxu0 %v9056_v57  ;;  %870 = vmatprep.mubr.f32.mxu0 %v10905_v23  ;;  %v10941_v34 = vpack.c.bf16 %v16809_v41, %v16808_v58  ;;  %v10953_v57 = vpack.c.bf16 %v16813_v37, %v16812_v36  ;;  %v16818_v43 = vand.u32 4294901760, %v10738_v17  ;;  %v16819_v44 = vand.u32 4294901760, %v10740_v18 }
  0x61   :  { %9059 = vmatprep.subr.bf16.mxu0 %v9058_v1  ;;  %v10959_v23 = vpack.c.bf16 %v16815_v26, %v16814_v20  ;;  %v10965_v29 = vpack.c.bf16 %v16817_v31, %v16816_v30  ;;  %9087 = vmatprep.subr.bf16.mxu1 %v10665_v19  ;;  %v16820_v48 = vand.u32 4294901760, %v10753_v47  ;;  %v16821_v49 = vand.u32 4294901760, %v10757_v55 }
  0x62   :  { %v10972_v1 = vpack.c.bf16 %v16819_v44, %v16818_v43  ;;  %v16822_v50 = vand.u32 4294901760, %v10766_v2  ;;  %v16823_v0 = vand.u32 4294901760, %v10770_v7  ;;  %v16824_v58 = vand.u32 4294901760, %v10783_v52  ;;  %735 = vmatmul.mubr.f32.vlgmr.msra.gmra.mrb[0].mxu1 %v10881_v62 }
  0x63   :  { %v10978_v14 = vpack.c.bf16 %v16821_v49, %v16820_v48  ;;  %v16825_v41 = vand.u32 4294901760, %v10787_v60  ;;  %v16826_v16 = vand.u32 4294901760, %v10796_v42  ;;  %v16827_v36 = vand.u32 4294901760, %v10800_v10  ;;  %9089 = vmatpush3.bf16.msra.mxu1 %v10669_v25  ;;  %977 = vmatprep.mubr.f32.mxu1 %v494_v5  ;;  %v96_v5 = vld [vmem:[#allocation5 + $0x198] sm:$0xff] }
  0x64   :  { %v10984_v15 = vpack.c.bf16 %v16823_v0, %v16822_v50  ;;  %v16828_v20 = vand.u32 4294901760, %v10813_v9  ;;  %v16829_v26 = vand.u32 4294901760, %v10817_v59  ;;  %v16830_v31 = vand.u32 4294901760, %v10826_v35  ;;  %9061 = vmatpush3.bf16.msra.mxu0 %v9060_v6  ;;  %9091 = vmatprep.subr.bf16.mxu1 %v10673_v27 }
  0x65   :  { %v10990_v61 = vpack.c.bf16 %v16825_v41, %v16824_v58  ;;  %v10996_v37 = vpack.c.bf16 %v16827_v36, %v16826_v16  ;;  %v16831_v43 = vand.u32 4294901760, %v10830_v53  ;;  %v16832_v48 = vand.u32 4294901760, %v10843_v28  ;;  %9063 = vmatprep.subr.bf16.mxu0 %v9062_v46 }
  0x66   :  { %v11002_v30 = vpack.c.bf16 %v16829_v26, %v16828_v20  ;;  %v16833_v49 = vand.u32 4294901760, %v10847_v13  ;;  %v9064_v0 = vpack.c.bf16 %v10724_v3, %v10722_v63  ;;  %v11019_v58 = vpack.c.bf16 %v728_v21, %v721_v11  ;;  %v16837_v11 = vld [vmem:[#allocation14_spill] sm:$0xff] }
  0x67   :  { %v11008_v44 = vpack.c.bf16 %v16831_v43, %v16830_v31  ;;  %v11021_v41 = vpack.c.bf16 %v616_v38, %v609_v40  ;;  %v9066_v16 = vpack.c.bf16 %v10740_v18, %v10738_v17  ;;  %v9068_v6 = vpack.c.bf16 %v10757_v55, %v10753_v47  ;;  %9093 = vmatpush3.bf16.msra.mxu1 %v10680_v32  ;;  %v93_v18 = vld [vmem:[#allocation5 + $0x180] sm:$0xff]  ;;  %v94_v38 = vld [vmem:[#allocation5 + $0x188] sm:$0xff]  ;;  %v11061_v31 = vld [vmem:[#allocation5 + $0x110] sm:$0xff] }
  0x68   :  { %v11014_v50 = vpack.c.bf16 %v16833_v49, %v16832_v48  ;;  %9065 = vmatpush3.bf16.msra.mxu0 %v9064_v0  ;;  %v9070_v40 = vpack.c.bf16 %v10770_v7, %v10766_v2  ;;  %9095 = vmatprep.subr.bf16.mxu1 %v10696_v45  ;;  %v9072_v63 = vpack.c.bf16 %v10787_v60, %v10783_v52  ;;  %v1307_v55 = vand.u32 4294901760, %v93_v18  ;;  %v16835_v60 = vld [vmem:[#allocation12_spill] sm:$0xff]  ;;  %v11067_v43 = vld [vmem:[#allocation5 + $0x1a0] sm:$0xff]  ;;  %v16840_v48 = vld [vmem:[#allocation17_spill] sm:$0xff] }
  0x69   :  { %9067 = vmatprep.subr.bf16.mxu0 %v9066_v16  ;;  %v9074_v3 = vpack.c.bf16 %v10800_v10, %v10796_v42  ;;  %v9076_v17 = vpack.c.bf16 %v10817_v59, %v10813_v9  ;;  %v9078_v47 = vpack.c.bf16 %v10830_v53, %v10826_v35  ;;  %v1310_v2 = vand.u32 4294901760, %v94_v38  ;;  %v16834_v59 = vld [vmem:[#allocation18_spill] sm:$0xff]  ;;  %v78_v35 = vld [vmem:[#allocation5 + $0x108] sm:$0xff] }
  0x6a   :  { %v9080_v7 = vpack.c.bf16 %v10847_v13, %v10843_v28  ;;  %v9082_v52 = vpack.c.bf16 %v16834_v59, %v10858_v8  ;;  %v11051_v42 = vsub.f32 %v93_v18, %v1307_v55  ;;  %v77_v9 = vld [vmem:[#allocation5 + $0x100] sm:$0xff]  ;;  %v9084_v53 = vpack.c.bf16 %v10891_v33, %v10866_v56  ;;  %v16836_v13 = vld [vmem:[#allocation13_spill] sm:$0xff]  ;;  %16839 = vst [vmem:[#allocation18_spill] sm:$0xff] %v11067_v43  ;;  %v16841_v0 = vld [vmem:[#allocation16_spill] sm:$0xff] }
  0x6b   :  { %9097 = vmatpush3.bf16.msra.mxu1 %v10704_v51  ;;  %v11053_v10 = vsub.f32 %v94_v38, %v1310_v2  ;;  %v95_v28 = vld [vmem:[#allocation5 + $0x190] sm:$0xff]  ;;  %v1259_v8 = vand.u32 4294901760, %v77_v9  ;;  %v1262_v21 = vand.u32 4294901760, %v78_v35  ;;  %v1316_v26 = vand.u32 4294901760, %v96_v5  ;;  %v16838_v33 = vld [vmem:[#allocation15_spill] sm:$0xff]  ;;  %v11065_v56 = vld [vmem:[#allocation5 + $0x118] sm:$0xff] }
  0x6c   :  { %9069 = vmatpush3.bf16.msra.mxu0 %v9068_v6  ;;  %9099 = vmatprep.subr.bf16.mxu1 %v10726_v4  ;;  %v16275_v46 = vand.u32 4294901760, %v11051_v42  ;;  %v1313_v20 = vand.u32 4294901760, %v95_v28  ;;  %v16276_v18 = vand.u32 4294901760, %v11061_v31  ;;  %v16848_v59 = vld [vmem:[#allocation20_spill] sm:$0xff] }
  0x6d   :  { %9071 = vmatprep.subr.bf16.mxu0 %v9070_v40  ;;  %v16274_v36 = vand.u32 4294901760, %v11053_v10  ;;  %v11072_v16 = vsub.f32 %v77_v9, %v1259_v8  ;;  %v11074_v6 = vsub.f32 %v78_v35, %v1262_v21  ;;  %v11076_v40 = vld [vmem:[#allocation5 + $0x1a8] sm:$0xff]  ;;  %v11102_v35 = vld [vmem:[#allocation5 + $0x1b8] sm:$0xff] }
  0x6e   :  { %16842 = vst [vmem:[#allocation12_spill] sm:$0xff] %v11076_v40  ;;  %v1486_v38 = vsub.f32 %v11051_v42, %v16275_v46  ;;  %16849 = vst [vmem:[#allocation16_spill] sm:$0xff] %v11102_v35  ;;  %v16283_v46 = vand.u32 4294901760, %v11102_v35 }
  0x6f   :  { %9101 = vmatpush3.bf16.msra.mxu1 %v10742_v22  ;;  %v16279_v49 = vand.u32 4294901760, %v11072_v16  ;;  %v16280_v9 = vand.u32 4294901760, %v11074_v6 }
  0x70   :  { %9073 = vmatpush3.bf16.msra.mxu0 %v9072_v63  ;;  %9103 = vmatprep.subr.bf16.mxu1 %v10755_v54  ;;  %v11078_v63 = vld [vmem:[#allocation5 + $0x120] sm:$0xff] }
  0x71   :  { %9075 = vmatprep.subr.bf16.mxu0 %v9074_v3  ;;  %16843 = vst [vmem:[#allocation13_spill] sm:$0xff] %v11078_v63  ;;  %v16845_v3 = vld [vmem:[#allocation21_spill] sm:$0xff] }
  0x73   :  { %9105 = vmatpush3.bf16.msra.mxu1 %v10772_v12 }
  0x74   :  { %9077 = vmatpush3.bf16.msra.mxu0 %v9076_v17  ;;  %9107 = vmatprep.subr.bf16.mxu1 %v16835_v60  ;;  %v11083_v17 = vpack.c.bf16 %v1310_v2, %v1307_v55  ;;  %v11098_v55 = vsub.f32 %v96_v5, %v1316_v26  ;;  %v16277_v2 = vand.u32 4294901760, %v11065_v56  ;;  %v11112_v5 = vpack.c.bf16 %v1316_v26, %v1313_v20 }
  0x75   :  { %9079 = vmatprep.subr.bf16.mxu0 %v9078_v47  ;;  %v1493_v47 = vsub.f32 %v11053_v10, %v16274_v36  ;;  %v11106_v36 = vpack.c.bf16 %v1262_v21, %v1259_v8  ;;  %v11120_v8 = vsub.f32 %v11061_v31, %v16276_v18  ;;  %v1487_v21 = vand.u32 4294901760, %v1486_v38  ;;  %v11138_v18 = vld [vmem:[#allocation5 + $0x130] sm:$0xff] }
  0x76   :  { %16846 = vst [vmem:[#allocation15_spill] sm:$0xff] %v11083_v17  ;;  %16852 = vst [vmem:[#allocation20_spill] sm:$0xff] %v11112_v5  ;;  %v16854_v26 = vand.u32 4294901760, %v11067_v43 }
  0x77   :  { %9109 = vmatpush3.bf16.msra.mxu1 %v16836_v13  ;;  %16851 = vst [vmem:[#allocation21_spill] sm:$0xff] %v11106_v36  ;;  %v16878_v38 = vand.u32 4294901760, %v11120_v8 }
  0x78   :  { %9081 = vmatpush3.bf16.msra.mxu0 %v9080_v7  ;;  %9111 = vmatprep.subr.bf16.mxu1 %v16837_v11  ;;  %v11092_v7 = vld [vmem:[#allocation5 + $0x1b0] sm:$0xff] }
  0x79   :  { %9083 = vmatprep.subr.bf16.mxu0 %v9082_v52  ;;  %16847 = vst [vmem:[#allocation17_spill] sm:$0xff] %v11092_v7  ;;  %v11096_v52 = vsub.f32 %v95_v28, %v1313_v20  ;;  %v11129_v20 = vsub.f32 %v11065_v56, %v16277_v2 }
  0x7b   :  { %9113 = vmatpush3.bf16.msra.mxu1 %v16838_v33 }
  0x7c   :  { %9085 = vmatpush3.bf16.msra.mxu0 %v9084_v53  ;;  %9115 = vmatprep.subr.bf16.mxu1 %v16841_v0  ;;  %v16850_v53 = vld [vmem:[#allocation19_spill] sm:$0xff] }
  0x7d   :  { %9119 = vmatprep.subr.bf16.mxu0 %v10935_v39  ;;  %v11080_v39 = vld [vmem:[#allocation5 + $0x128] sm:$0xff]  ;;  %16855 = vst [vmem:[#allocation19_spill] sm:$0xff] %v11138_v18 }
  0x7e   :  { %16844 = vst [vmem:[#allocation14_spill] sm:$0xff] %v11080_v39  ;;  %v16278_v28 = vand.u32 4294901760, %v11080_v39 }
  0x7f   :  { %873 = vmatmul.mubr.f32.vlgmr.msra.gmra.mrb[2].mxu0 %v16845_v3  ;;  %9117 = vmatpush3.bf16.msra.mxu1 %v16850_v53 }
  0x80   :  { %9121 = vmatpush3.bf16.msra.mxu0 %v10941_v34  ;;  %1147 = vmatprep.mubr.f32.mxu0 %v16848_v59  ;;  %v1494_v34 = vand.u32 4294901760, %v1493_v47  ;;  %v11157_v47 = vsub.f32 %v11080_v39, %v16278_v28  ;;  %v11176_v28 = vld [vmem:[#allocation5 + $0x1c0] sm:$0xff] }
  0x81   :  { %9123 = vmatprep.subr.bf16.mxu0 %v10947_v24  ;;  %9151 = vmatprep.subr.bf16.mxu1 %v10665_v19  ;;  %v16853_v19 = vand.u32 4294901760, %v16845_v3  ;;  %v11134_v24 = vsub.f32 %v11067_v43, %v16854_v26  ;;  %v16857_v3 = vand.u32 4294901760, %v11076_v40  ;;  %v16858_v26 = vand.u32 4294901760, %v11078_v63  ;;  %16863 = vst [vmem:[#allocation26_spill] sm:$0xff] %v11176_v28  ;;  %v11189_v39 = vld [vmem:[#allocation5 + $0x140] sm:$0xff] }
  0x82   :  { %16866 = vst [vmem:[#allocation29_spill] sm:$0xff] %v11189_v39 }
  0x83   :  { %981 = vmatmul.mubr.f32.vlgmr.msra.gmra.mrb[2].mxu1 %v16853_v19  ;;  %v11147_v19 = vsub.f32 %v11076_v40, %v16857_v3  ;;  %v11152_v2 = vsub.f32 %v11078_v63, %v16858_v26  ;;  %v16861_v3 = vand.u32 4294901760, %v11092_v7 }
  0x84   :  { %9125 = vmatpush3.bf16.msra.mxu0 %v10953_v57  ;;  %v11140_v57 = vld [vmem:[#allocation5 + $0x138] sm:$0xff]  ;;  %9153 = vmatpush3.bf16.msra.mxu1 %v10669_v25  ;;  %v11164_v25 = vsub.f32 %v11072_v16, %v16279_v49  ;;  %v11185_v49 = vsub.f32 %v11102_v35, %v16283_v46  ;;  %v11204_v35 = vld [vmem:[#allocation5 + $0x148] sm:$0xff]  ;;  %v16874_v46 = vcombine.high %v16840_v48, %v16840_v48 }
  0x85   :  { %16856 = vst [vmem:[#allocation22_spill] sm:$0xff] %v11140_v57  ;;  %9127 = vmatprep.subr.bf16.mxu0 %v10959_v23  ;;  %9155 = vmatprep.subr.bf16.mxu1 %v10673_v27  ;;  %v11169_v23 = vsub.f32 %v11074_v6, %v16280_v9  ;;  %v11174_v26 = vsub.f32 %v11092_v7, %v16861_v3  ;;  %v11178_v27 = vld [vmem:[#allocation5 + $0x1c8] sm:$0xff]  ;;  %v16867_v3 = vand.u32 4294901760, %v11096_v52  ;;  %16871 = vst [vmem:[#allocation32_spill] sm:$0xff] %v11204_v35  ;;  %v11206_v9 = vld [vmem:[#allocation5 + $0x1d0] sm:$0xff] }
  0x86   :  { %1251 = vmatprep.mubr.f32.mxu1 %v16848_v59  ;;  %16859 = vst [vmem:[#allocation23_spill] sm:$0xff] %v11164_v25  ;;  %16864 = vst [vmem:[#allocation27_spill] sm:$0xff] %v11178_v27  ;;  %v11180_v59 = vpack.c.bf16 %v1494_v34, %v1487_v21  ;;  %v16869_v34 = vand.u32 4294901760, %v11098_v55  ;;  %v16877_v40 = vand.u32 4294901760, %v11140_v57  ;;  %v16881_v48 = vand.u32 4294901760, %v11178_v27  ;;  %v11312_v25 = vld [vmem:[#allocation5 + $0x170] sm:$0xff] }
  0x87   :  { %16860 = vst [vmem:[#allocation24_spill] sm:$0xff] %v11169_v23  ;;  %16862 = vst [vmem:[#allocation25_spill] sm:$0xff] %v11174_v26  ;;  %v11195_v7 = vsub.f32 %v11096_v52, %v16867_v3  ;;  %v16876_v3 = vand.u32 4294901760, %v11138_v18  ;;  %v11310_v23 = vld [vmem:[#allocation5 + $0x1f8] sm:$0xff] }
  0x88   :  { %16865 = vst [vmem:[#allocation28_spill] sm:$0xff] %v11180_v59  ;;  %9129 = vmatpush3.bf16.msra.mxu0 %v10965_v29  ;;  %v11200_v21 = vsub.f32 %v11098_v55, %v16869_v34  ;;  %16872 = vst [vmem:[#allocation33_spill] sm:$0xff] %v11206_v9  ;;  %9157 = vmatpush3.bf16.msra.mxu1 %v10680_v32  ;;  %v16873_v34 = vld [vmem:[#allocation11_spill] sm:$0xff]  ;;  %v11241_v29 = vsub.f32 %v11120_v8, %v16878_v38 }
  0x89   :  { %16868 = vst [vmem:[#allocation30_spill] sm:$0xff] %v11195_v7  ;;  %9131 = vmatprep.subr.bf16.mxu0 %v10972_v1  ;;  %v11217_v59 = vrot.slane %v16874_v46, %v16873_v34  ;;  %9159 = vmatprep.subr.bf16.mxu1 %v10696_v45  ;;  %v11227_v63 = vsub.f32 %v11138_v18, %v16876_v3  ;;  %v16879_v3 = vand.u32 4294901760, %v11129_v20  ;;  %v16880_v1 = vand.u32 4294901760, %v11176_v28  ;;  %v11290_v18 = vld [vmem:[#allocation5 + $0x160] sm:$0xff] }
  0x8a   :  { %16870 = vst [vmem:[#allocation31_spill] sm:$0xff] %v11200_v21  ;;  %v11232_v46 = vsub.f32 %v11140_v57, %v16877_v40  ;;  %v11248_v40 = vld [vmem:[#allocation5 + $0x1d8] sm:$0xff]  ;;  %v16882_v34 = vand.u32 4294901760, %v11134_v24  ;;  %v11288_v57 = vld [vmem:[#allocation5 + $0x1e8] sm:$0xff]  ;;  %16888 = vst [vmem:[#allocation38_spill] sm:$0xff] %v11290_v18 }
  0x8b   :  { %16875 = vst [vmem:[#allocation34_spill] sm:$0xff] %v11217_v59  ;;  %v11246_v32 = vsub.f32 %v11129_v20, %v16879_v3  ;;  %v328_v45 = vcombine.high %v11217_v59, %v11217_v59  ;;  %v11258_v38 = vsub.f32 %v11176_v28, %v16880_v1  ;;  %v11263_v3 = vsub.f32 %v11178_v27, %v16881_v48  ;;  %v11292_v21 = vld [vmem:[#allocation5 + $0x168] sm:$0xff] }
  0x8c   :  { %9133 = vmatpush3.bf16.msra.mxu0 %v10978_v14  ;;  %9161 = vmatpush3.bf16.msra.mxu1 %v10704_v51  ;;  %v11268_v59 = vsub.f32 %v11134_v24, %v16882_v34  ;;  %v11272_v51 = vld [vmem:[#allocation5 + $0x158] sm:$0xff]  ;;  %v11274_v14 = vld [vmem:[#allocation5 + $0x1e0] sm:$0xff]  ;;  %v16884_v1 = vand.u32 4294901760, %v11147_v19  ;;  %v16886_v48 = vand.u32 4294901760, %v11189_v39  ;;  %16887 = vst [vmem:[#allocation37_spill] sm:$0xff] %v11288_v57  ;;  %16889 = vst [vmem:[#allocation39_spill] sm:$0xff] %v11292_v21 }
  0x8d   :  { %9135 = vmatprep.subr.bf16.mxu0 %v10984_v15  ;;  %v11270_v15 = vld [vmem:[#allocation5 + $0x150] sm:$0xff]  ;;  %9163 = vmatprep.subr.bf16.mxu1 %v10726_v4  ;;  %v11294_v7 = vand.u32 4294901760, %v328_v45  ;;  %v16891_v4 = vand.u32 4294901760, %v11204_v35  ;;  %16895 = vst [vmem:[#allocation43_spill] sm:$0xff] %v11310_v23  ;;  %16896 = vst [vmem:[#allocation44_spill] sm:$0xff] %v11312_v25 }
  0x8e   :  { %16883 = vst [vmem:[#allocation35_spill] sm:$0xff] %v11268_v59  ;;  %v11280_v28 = vsub.f32 %v11147_v19, %v16884_v1  ;;  %v11285_v27 = vsub.f32 %v11189_v39, %v16886_v48  ;;  %v16893_v39 = vand.u32 4294901760, %v11206_v9  ;;  %v11308_v59 = vld [vmem:[#allocation5 + $0x1f0] sm:$0xff] }
  0x8f   :  { %16890 = vst [vmem:[#allocation40_spill] sm:$0xff] %v11294_v7  ;;  %v11299_v1 = vsub.f32 %v11204_v35, %v16891_v4  ;;  %16894 = vst [vmem:[#allocation42_spill] sm:$0xff] %v11308_v59  ;;  %v11319_v48 = vsub.f32 %v328_v45, %v11294_v7  ;;  %v11327_v4 = vld [vmem:[#allocation5 + $0x178] sm:$0xff] }
  0x90   :  { %16885 = vst [vmem:[#allocation36_spill] sm:$0xff] %v11280_v28  ;;  %v11306_v34 = vsub.f32 %v11206_v9, %v16893_v39  ;;  %9137 = vmatpush3.bf16.msra.mxu0 %v10990_v61  ;;  %9165 = vmatpush3.bf16.msra.mxu1 %v10742_v22  ;;  %v16898_v39 = vand.u32 4294901760, %v11248_v40  ;;  %v16900_v22 = vand.u32 4294901760, %v11272_v51 }
  0x91   :  { %16892 = vst [vmem:[#allocation41_spill] sm:$0xff] %v11299_v1  ;;  %16897 = vst [vmem:[#allocation45_spill] sm:$0xff] %v11319_v48  ;;  %9139 = vmatprep.subr.bf16.mxu0 %v10996_v37  ;;  %9167 = vmatprep.subr.bf16.mxu1 %v10755_v54  ;;  %v16899_v54 = vand.u32 4294901760, %v11270_v15 }
  0x92   :  { %v11337_v9 = vsub.f32 %v11248_v40, %v16898_v39  ;;  %v11351_v37 = vsub.f32 %v11272_v51, %v16900_v22  ;;  %v16901_v39 = vand.u32 4294901760, %v11274_v14  ;;  %v16903_v22 = vand.u32 4294901760, %v11290_v18 }
  0x93   :  { %v11346_v45 = vsub.f32 %v11270_v15, %v16899_v54 }
  0x94   :  { %9141 = vmatpush3.bf16.msra.mxu0 %v11002_v30  ;;  %v11356_v43 = vsub.f32 %v11274_v14, %v16901_v39  ;;  %9169 = vmatpush3.bf16.msra.mxu1 %v10772_v12  ;;  %v16902_v30 = vand.u32 4294901760, %v11288_v57  ;;  %v11370_v28 = vsub.f32 %v11290_v18, %v16903_v22  ;;  %v16904_v39 = vand.u32 4294901760, %v11292_v21 }
  0x95   :  { %9143 = vmatprep.subr.bf16.mxu0 %v11008_v44  ;;  %9171 = vmatprep.subr.bf16.mxu1 %v16835_v60  ;;  %v16905_v12 = vand.u32 4294901760, %v11308_v59  ;;  %v16907_v22 = vand.u32 4294901760, %v11312_v25 }
  0x96   :  { %v11364_v54 = vsub.f32 %v11288_v57, %v16902_v30  ;;  %v11375_v61 = vsub.f32 %v11292_v21, %v16904_v39  ;;  %v16906_v30 = vand.u32 4294901760, %v11310_v23  ;;  %v16909_v39 = vand.u32 4294901760, %v11319_v48 }
  0x97   :  { %v11381_v44 = vsub.f32 %v11308_v59, %v16905_v12  ;;  %v11391_v18 = vsub.f32 %v11312_v25, %v16907_v22  ;;  %v16915_v59 = vand.u32 4294901760, %v11072_v16  ;;  %v16922_v25 = vand.u32 4294901760, %v11129_v20 }
  0x98   :  { %v11386_v35 = vsub.f32 %v11310_v23, %v16906_v30  ;;  %v1357_v21 = vsub.f32 %v11319_v48, %v16909_v39  ;;  %9145 = vmatpush3.bf16.msra.mxu0 %v11014_v50  ;;  %v16910_v23 = vand.u32 4294901760, %v11327_v4  ;;  %9173 = vmatpush3.bf16.msra.mxu1 %v16836_v13  ;;  %v16913_v13 = vand.u32 4294901760, %v11053_v10 }
  0x99   :  { %16908 = vst [vmem:[#allocation46_spill] sm:$0xff] %v11391_v18  ;;  %9147 = vmatprep.subr.bf16.mxu0 %v11019_v58  ;;  %9175 = vmatprep.subr.bf16.mxu1 %v16837_v11  ;;  %v16912_v58 = vand.u32 4294901760, %v11051_v42  ;;  %v16916_v50 = vand.u32 4294901760, %v11074_v6  ;;  %v16918_v11 = vand.u32 4294901760, %v11096_v52  ;;  %v16921_v39 = vand.u32 4294901760, %v11120_v8 }
  0x9a   :  { %v11405_v22 = vsub.f32 %v11327_v4, %v16910_v23  ;;  %v1358_v23 = vand.u32 4294901760, %v1357_v21  ;;  %v16919_v21 = vand.u32 4294901760, %v11098_v55 }
  0x9b   :  { %v11423_v12 = vpack.c.bf16 %v16913_v13, %v16912_v58  ;;  %v11429_v30 = vpack.c.bf16 %v16916_v50, %v16915_v59  ;;  %v11441_v60 = vpack.c.bf16 %v16922_v25, %v16921_v39  ;;  %v16924_v58 = vand.u32 4294901760, %v11134_v24 }
  0x9c   :  { %16911 = vst [vmem:[#allocation47_spill] sm:$0xff] %v11405_v22  ;;  %v11435_v57 = vpack.c.bf16 %v16919_v21, %v16918_v11  ;;  %9149 = vmatpush3.bf16.msra.mxu0 %v11021_v41  ;;  %v16925_v13 = vand.u32 4294901760, %v11147_v19  ;;  %v16927_v50 = vand.u32 4294901760, %v11152_v2  ;;  %v16930_v21 = vand.u32 4294901760, %v11174_v26  ;;  %9177 = vmatpush3.bf16.msra.mxu1 %v16838_v33 }
  0x9d   :  { %16914 = vst [vmem:[#allocation48_spill] sm:$0xff] %v11423_v12  ;;  %16917 = vst [vmem:[#allocation49_spill] sm:$0xff] %v11429_v30  ;;  %v16928_v30 = vand.u32 4294901760, %v11157_v47  ;;  %v16933_v41 = vand.u32 4294901760, %v11227_v63  ;;  %v16934_v39 = vand.u32 4294901760, %v11232_v46  ;;  %9183 = vmatprep.subr.bf16.mxu0 %v11083_v17  ;;  %9179 = vmatprep.subr.bf16.mxu1 %v16841_v0  ;;  %v16945_v33 = vand.u32 4294901760, %v11346_v45 }
  0x9e   :  { %16920 = vst [vmem:[#allocation50_spill] sm:$0xff] %v11435_v57  ;;  %16923 = vst [vmem:[#allocation51_spill] sm:$0xff] %v11441_v60  ;;  %v11448_v59 = vpack.c.bf16 %v16925_v13, %v16924_v58  ;;  %v16931_v57 = vand.u32 4294901760, %v11185_v49  ;;  %v16937_v13 = vand.u32 4294901760, %v11263_v3  ;;  %v16946_v58 = vand.u32 4294901760, %v11351_v37  ;;  %v16975_v12 = vld [vmem:[#allocation36_spill] sm:$0xff] }
  0x9f   :  { %v11454_v11 = vpack.c.bf16 %v16928_v30, %v16927_v50  ;;  %v11466_v60 = vpack.c.bf16 %v16934_v39, %v16933_v41  ;;  %v16936_v30 = vand.u32 4294901760, %v11258_v38  ;;  %v16942_v41 = vand.u32 4294901760, %v11306_v34  ;;  %1149 = vmatmul.mubr.f32.vlgmr.msra.gmra.mrb[4].mxu0 %v10881_v62 }
  0xa0   :  { %16926 = vst [vmem:[#allocation52_spill] sm:$0xff] %v11448_v59  ;;  %v11460_v25 = vpack.c.bf16 %v16931_v57, %v16930_v21  ;;  %v16939_v57 = vand.u32 4294901760, %v11285_v27  ;;  %v16940_v21 = vand.u32 4294901760, %v11299_v1  ;;  %v16943_v39 = vand.u32 4294901760, %v11337_v9  ;;  %9185 = vmatpush3.bf16.msra.mxu0 %v11106_v36  ;;  %1359 = vmatprep.mubr.f32.mxu0 %v1358_v23  ;;  %v16976_v23 = vld [vmem:[#allocation28_spill] sm:$0xff] }
  0xa1   :  { %16929 = vst [vmem:[#allocation53_spill] sm:$0xff] %v11454_v11  ;;  %16935 = vst [vmem:[#allocation55_spill] sm:$0xff] %v11466_v60  ;;  %v11475_v50 = vpack.c.bf16 %v16937_v13, %v16936_v30  ;;  %v11494_v30 = vpack.c.bf16 %v16946_v58, %v16945_v33  ;;  %v16948_v13 = vand.u32 4294901760, %v11356_v43  ;;  %v16954_v0 = vand.u32 4294901760, %v11381_v44  ;;  %9187 = vmatprep.subr.bf16.mxu0 %v11112_v5  ;;  %v16974_v11 = vld [vmem:[#allocation35_spill] sm:$0xff]  ;;  %v16977_v5 = vld [vmem:[#allocation30_spill] sm:$0xff] }
  0xa2   :  { %16932 = vst [vmem:[#allocation54_spill] sm:$0xff] %v11460_v25  ;;  %v11481_v25 = vpack.c.bf16 %v16940_v21, %v16939_v57  ;;  %v11487_v60 = vpack.c.bf16 %v16943_v39, %v16942_v41  ;;  %v16951_v21 = vand.u32 4294901760, %v11370_v28  ;;  %v16955_v39 = vand.u32 4294901760, %v11386_v35  ;;  %9181 = vmatpush3.bf16.msra.mxu1 %v16850_v53  ;;  %v16979_v53 = vld [vmem:[#allocation31_spill] sm:$0xff] }
  0xa3   :  { %16938 = vst [vmem:[#allocation56_spill] sm:$0xff] %v11475_v50  ;;  %16947 = vst [vmem:[#allocation59_spill] sm:$0xff] %v11494_v30  ;;  %v16949_v50 = vand.u32 4294901760, %v11364_v54  ;;  %v16957_v58 = vand.u32 4294901760, %v11061_v31  ;;  %v16958_v33 = vand.u32 4294901760, %v11065_v56  ;;  %v16964_v56 = vand.u32 4294901760, %v11157_v47  ;;  %9215 = vmatprep.subr.bf16.mxu1 %v16976_v23 }
  0xa4   :  { %16941 = vst [vmem:[#allocation57_spill] sm:$0xff] %v11481_v25  ;;  %16944 = vst [vmem:[#allocation58_spill] sm:$0xff] %v11487_v60  ;;  %v16952_v25 = vand.u32 4294901760, %v11375_v61  ;;  %v11512_v60 = vpack.c.bf16 %v16955_v39, %v16954_v0  ;;  %v1396_v0 = vand.u32 4294901760, %v11246_v32  ;;  %v16963_v39 = vand.u32 4294901760, %v11152_v2  ;;  %v16970_v32 = vld [vmem:[#allocation23_spill] sm:$0xff] }
  0xa5   :  { %v11500_v57 = vpack.c.bf16 %v16949_v50, %v16948_v13  ;;  %v11519_v50 = vpack.c.bf16 %v16958_v33, %v16957_v58  ;;  %v16960_v13 = vand.u32 4294901760, %v11391_v18  ;;  %v1409_v58 = vsub.f32 %v11157_v47, %v16964_v56  ;;  %1253 = vmatmul.mubr.f32.vlgmr.msra.gmra.mrb[4].mxu1 %v10881_v62 }
  0xa6   :  { %v11506_v41 = vpack.c.bf16 %v16952_v25, %v16951_v21  ;;  %16956 = vst [vmem:[#allocation62_spill] sm:$0xff] %v11512_v60  ;;  %v1389_v21 = vand.u32 4294901760, %v11241_v29  ;;  %v1402_v31 = vsub.f32 %v11152_v2, %v16963_v39  ;;  %v16971_v60 = vand.u32 4294901760, %v16970_v32  ;;  %1595 = vmatprep.mubr.f32.mxu1 %v11294_v7 }
  0xa7   :  { %16950 = vst [vmem:[#allocation60_spill] sm:$0xff] %v11500_v57  ;;  %16959 = vst [vmem:[#allocation63_spill] sm:$0xff] %v11519_v50  ;;  %v16961_v57 = vand.u32 4294901760, %v11405_v22  ;;  %v1515_v59 = vand.u32 4294901760, %v16974_v11  ;;  %v1522_v56 = vand.u32 4294901760, %v16975_v12  ;;  %v16978_v36 = vand.u32 4294901760, %v16977_v5  ;;  %9189 = vmatpush3.bf16.msra.mxu0 %v11519_v50 }
  0xa8   :  { %16953 = vst [vmem:[#allocation61_spill] sm:$0xff] %v11506_v41  ;;  %v16972_v41 = vld [vmem:[#allocation24_spill] sm:$0xff]  ;;  %v16980_v17 = vand.u32 4294901760, %v16979_v53  ;;  %v16985_v11 = vld [vmem:[#allocation14_spill] sm:$0xff]  ;;  %v16988_v5 = vld [vmem:[#allocation17_spill] sm:$0xff]  ;;  %v1403_v48 = vand.u32 4294901760, %v1402_v31 }
  0xa9   :  { %v11525_v25 = vpack.c.bf16 %v16961_v57, %v16960_v13  ;;  %v16965_v57 = vld [vmem:[#allocation18_spill] sm:$0xff]  ;;  %v16967_v13 = vld [vmem:[#allocation12_spill] sm:$0xff]  ;;  %v16973_v30 = vand.u32 4294901760, %v16972_v41  ;;  %v16986_v32 = vand.u32 4294901760, %v16985_v11  ;;  %v16994_v11 = vand.u32 4294901760, %v11232_v46 }
  0xaa   :  { %v16966_v33 = vand.u32 4294901760, %v16965_v57  ;;  %v9218_v57 = vpack.c.bf16 %v16980_v17, %v16978_v36  ;;  %v16989_v36 = vand.u32 4294901760, %v16988_v5  ;;  %v16990_v17 = vld [vmem:[#allocation16_spill] sm:$0xff]  ;;  %v17006_v7 = vand.u32 4294901760, %v11299_v1 }
  0xab   :  { %16962 = vst [vmem:[#allocation64_spill] sm:$0xff] %v11525_v25  ;;  %v16968_v25 = vand.u32 4294901760, %v16967_v13  ;;  %v9216_v39 = vpack.c.bf16 %v16973_v30, %v16971_v60  ;;  %v16981_v13 = vand.u32 4294901760, %v11174_v26  ;;  %v16983_v60 = vld [vmem:[#allocation13_spill] sm:$0xff]  ;;  %v16991_v23 = vand.u32 4294901760, %v16990_v17  ;;  %v17013_v50 = vld [vmem:[#allocation32_spill] sm:$0xff] }
  0xac   :  { %v16984_v30 = vand.u32 4294901760, %v16983_v60  ;;  %v16993_v60 = vand.u32 4294901760, %v11227_v63  ;;  %v1423_v62 = vsub.f32 %v11232_v46, %v16994_v11 }
  0xad   :  { %v11542_v29 = vpack.c.bf16 %v16968_v25, %v16966_v33  ;;  %v1528_v25 = vsub.f32 %v11174_v26, %v16981_v13  ;;  %v16982_v33 = vand.u32 4294901760, %v11185_v49  ;;  %v11573_v53 = vpack.c.bf16 %v16991_v23, %v16989_v36  ;;  %9217 = vmatpush3.bf16.msra.mxu1 %v9216_v39  ;;  %v16999_v39 = vld [vmem:[#allocation22_spill] sm:$0xff] }
  0xae   :  { %v11565_v12 = vpack.c.bf16 %v16986_v32, %v16984_v30  ;;  %v9220_v13 = vpack.c.bf16 %v1396_v0, %v1389_v21  ;;  %v1410_v26 = vand.u32 4294901760, %v1409_v58  ;;  %v1416_v30 = vsub.f32 %v11227_v63, %v16993_v60  ;;  %9219 = vmatprep.subr.bf16.mxu1 %v9218_v57  ;;  %v17004_v60 = vld [vmem:[#allocation27_spill] sm:$0xff] }
  0xaf   :  { %16969 = vst [vmem:[#allocation18_spill] sm:$0xff] %v11542_v29  ;;  %v1535_v41 = vsub.f32 %v11185_v49, %v16982_v33  ;;  %16992 = vst [vmem:[#allocation23_spill] sm:$0xff] %v11573_v53  ;;  %9191 = vmatprep.subr.bf16.mxu0 %v11542_v29  ;;  %v9222_v33 = vpack.c.bf16 %v1522_v56, %v1515_v59  ;;  %v1529_v32 = vand.u32 4294901760, %v1528_v25  ;;  %v16995_v36 = vand.u32 4294901760, %v11258_v38  ;;  %v16997_v59 = vld [vmem:[#allocation19_spill] sm:$0xff] }
  0xb0   :  { %16987 = vst [vmem:[#allocation12_spill] sm:$0xff] %v11565_v12  ;;  %v16996_v0 = vand.u32 4294901760, %v11263_v3  ;;  %v16998_v58 = vand.u32 4294901760, %v16997_v59  ;;  %v17000_v56 = vand.u32 4294901760, %v16999_v39  ;;  %v17001_v57 = vand.u32 4294901760, %v11285_v27  ;;  %9193 = vmatpush3.bf16.msra.mxu0 %v11565_v12  ;;  %v17007_v39 = vld [vmem:[#allocation34_spill] sm:$0xff] }
  0xb1   :  { %v1536_v5 = vand.u32 4294901760, %v1535_v41  ;;  %v1542_v21 = vsub.f32 %v11258_v38, %v16995_v36  ;;  %v17002_v41 = vld [vmem:[#allocation26_spill] sm:$0xff]  ;;  %v17005_v11 = vand.u32 4294901760, %v17004_v60  ;;  %v1437_v59 = vsub.f32 %v11299_v1, %v17006_v7  ;;  %9195 = vmatprep.subr.bf16.mxu0 %v11573_v53  ;;  %9221 = vmatpush3.bf16.msra.mxu1 %v9220_v13 }
  0xb2   :  { %v1549_v31 = vsub.f32 %v11263_v3, %v16996_v0  ;;  %v11593_v17 = vpack.c.bf16 %v17000_v56, %v16998_v58  ;;  %v1430_v25 = vsub.f32 %v11285_v27, %v17001_v57  ;;  %v17003_v23 = vand.u32 4294901760, %v17002_v41  ;;  %9223 = vmatprep.subr.bf16.mxu1 %v9222_v33 }
  0xb3   :  { %v9224_v0 = vpack.c.bf16 %v1410_v26, %v1403_v48  ;;  %v11609_v58 = vand.u32 4294901760, %v17007_v39  ;;  %v1417_v56 = vand.u32 4294901760, %v1416_v30  ;;  %v1424_v57 = vand.u32 4294901760, %v1423_v62 }
  0xb4   :  { %v11603_v36 = vpack.c.bf16 %v17005_v11, %v17003_v23  ;;  %v17009_v12 = vand.u32 4294901760, %v11306_v34  ;;  %v17010_v23 = vand.u32 4294901760, %v11337_v9  ;;  %v9226_v48 = vpack.c.bf16 %v1536_v5, %v1529_v32  ;;  %v17011_v11 = vld [vmem:[#allocation29_spill] sm:$0xff]  ;;  %9197 = vmatpush3.bf16.msra.mxu0 %v11593_v17 }
  0xb5   :  { %17008 = vst [vmem:[#allocation24_spill] sm:$0xff] %v11609_v58  ;;  %v1543_v60 = vand.u32 4294901760, %v1542_v21  ;;  %v1550_v7 = vand.u32 4294901760, %v1549_v31  ;;  %v17012_v29 = vand.u32 4294901760, %v17011_v11  ;;  %v17014_v1 = vand.u32 4294901760, %v17013_v50  ;;  %9225 = vmatpush3.bf16.msra.mxu1 %v9224_v0 }
  0xb6   :  { %v1556_v41 = vsub.f32 %v11306_v34, %v17009_v12  ;;  %v1563_v26 = vsub.f32 %v11337_v9, %v17010_v23  ;;  %v1431_v13 = vand.u32 4294901760, %v1430_v25  ;;  %v1438_v30 = vand.u32 4294901760, %v1437_v59  ;;  %9199 = vmatprep.subr.bf16.mxu0 %v11603_v36  ;;  %9227 = vmatprep.subr.bf16.mxu1 %v9226_v48 }
  0xb7   :  { %v11622_v53 = vpack.c.bf16 %v17014_v1, %v17012_v29  ;;  %v17015_v12 = vand.u32 4294901760, %v11346_v45  ;;  %v17016_v23 = vand.u32 4294901760, %v11351_v37  ;;  %v11633_v32 = vsub.f32 %v17007_v39, %v11609_v58  ;;  %v17018_v1 = vld [vmem:[#allocation33_spill] sm:$0xff] }
  0xb8   :  { %v17019_v50 = vand.u32 4294901760, %v17018_v1  ;;  %v17020_v29 = vand.u32 4294901760, %v11248_v40  ;;  %v9228_v21 = vpack.c.bf16 %v1424_v57, %v1417_v56  ;;  %v1557_v31 = vand.u32 4294901760, %v1556_v41  ;;  %v17026_v57 = vld [vmem:[#allocation37_spill] sm:$0xff] }
  0xb9   :  { %v1444_v62 = vsub.f32 %v11346_v45, %v17015_v12  ;;  %v1451_v33 = vsub.f32 %v11351_v37, %v17016_v23  ;;  %17017 = vst [vmem:[#allocation35_spill] sm:$0xff] %v11633_v32  ;;  %v1564_v25 = vand.u32 4294901760, %v1563_v26  ;;  %v9230_v59 = vpack.c.bf16 %v1550_v7, %v1543_v60  ;;  %9201 = vmatpush3.bf16.msra.mxu0 %v11622_v53 }
  0xba   :  { %v11640_v5 = vpack.c.bf16 %v17020_v29, %v17019_v50  ;;  %v17021_v11 = vand.u32 4294901760, %v11356_v43  ;;  %v17022_v39 = vand.u32 4294901760, %v11364_v54  ;;  %v17023_v0 = vand.u32 4294901760, %v11270_v15  ;;  %9229 = vmatpush3.bf16.msra.mxu1 %v9228_v21  ;;  %v17032_v21 = vld [vmem:[#allocation38_spill] sm:$0xff] }
  0xbb   :  { %v17024_v1 = vand.u32 4294901760, %v11272_v51  ;;  %v17025_v56 = vand.u32 4294901760, %v11274_v14  ;;  %v17027_v41 = vand.u32 4294901760, %v17026_v57  ;;  %v9232_v48 = vpack.c.bf16 %v1438_v30, %v1431_v13  ;;  %9231 = vmatprep.subr.bf16.mxu1 %v9230_v59  ;;  %v17037_v57 = vld [vmem:[#allocation42_spill] sm:$0xff] }
  0xbc   :  { %v1570_v12 = vsub.f32 %v11356_v43, %v17021_v11  ;;  %v1577_v23 = vsub.f32 %v11364_v54, %v17022_v39  ;;  %v1445_v60 = vand.u32 4294901760, %v1444_v62  ;;  %v1452_v7 = vand.u32 4294901760, %v1451_v33  ;;  %9203 = vmatprep.subr.bf16.mxu0 %v11640_v5 }
  0xbd   :  { %v11652_v40 = vpack.c.bf16 %v17024_v1, %v17023_v0  ;;  %v11658_v26 = vpack.c.bf16 %v17027_v41, %v17025_v56  ;;  %v16329_v50 = vand.u32 4294901760, %v11633_v32  ;;  %v9234_v15 = vpack.c.bf16 %v1564_v25, %v1557_v31  ;;  %v17034_v25 = vld [vmem:[#allocation39_spill] sm:$0xff] }
  0xbe   :  { %v17028_v51 = vand.u32 4294901760, %v11370_v28  ;;  %v17029_v14 = vand.u32 4294901760, %v11375_v61  ;;  %v1571_v39 = vand.u32 4294901760, %v1570_v12  ;;  %v1578_v0 = vand.u32 4294901760, %v1577_v23  ;;  %v17039_v12 = vld [vmem:[#allocation43_spill] sm:$0xff]  ;;  %9233 = vmatpush3.bf16.msra.mxu1 %v9232_v48 }
  0xbf   :  { %v17030_v13 = vand.u32 4294901760, %v11381_v44  ;;  %v17031_v62 = vand.u32 4294901760, %v11386_v35  ;;  %9205 = vmatpush3.bf16.msra.mxu0 %v11652_v40  ;;  %v17033_v31 = vand.u32 4294901760, %v17032_v21  ;;  %v17035_v1 = vand.u32 4294901760, %v17034_v25  ;;  %9235 = vmatprep.subr.bf16.mxu1 %v9234_v15 }
  0xc0   :  { %v1458_v29 = vsub.f32 %v11370_v28, %v17028_v51  ;;  %v1465_v11 = vsub.f32 %v11375_v61, %v17029_v14  ;;  %v17038_v59 = vand.u32 4294901760, %v17037_v57  ;;  %v17040_v23 = vand.u32 4294901760, %v17039_v12  ;;  %9207 = vmatprep.subr.bf16.mxu0 %v11658_v26 }
  0xc1   :  { %v1584_v30 = vsub.f32 %v11381_v44, %v17030_v13  ;;  %v1591_v33 = vsub.f32 %v11386_v35, %v17031_v62  ;;  %v11680_v56 = vpack.c.bf16 %v17035_v1, %v17033_v31  ;;  %v9236_v51 = vpack.c.bf16 %v1452_v7, %v1445_v60 }
  0xc2   :  { %v11686_v41 = vpack.c.bf16 %v17040_v23, %v17038_v59  ;;  %v1363_v14 = vsub.f32 %v11633_v32, %v16329_v50  ;;  %v1459_v13 = vand.u32 4294901760, %v1458_v29  ;;  %v1466_v62 = vand.u32 4294901760, %v1465_v11  ;;  %v17044_v59 = vld [vmem:[#allocation44_spill] sm:$0xff]  ;;  %v11746_v50 = vld [vmem:[#allocation5 + $0x218] sm:$0xff] }
  0xc3   :  { %17036 = vst [vmem:[#allocation36_spill] sm:$0xff] %v11680_v56  ;;  %v17042_v21 = vand.u32 4294901760, %v11391_v18  ;;  %v17043_v25 = vand.u32 4294901760, %v11405_v22  ;;  %v9238_v57 = vpack.c.bf16 %v1578_v0, %v1571_v39  ;;  %v1585_v60 = vand.u32 4294901760, %v1584_v30  ;;  %9209 = vmatpush3.bf16.msra.mxu0 %v11680_v56  ;;  %v11711_v39 = vld [vmem:[#allocation5 + $0x280] sm:$0xff]  ;;  %9237 = vmatpush3.bf16.msra.mxu1 %v9236_v51  ;;  %v11728_v51 = vld [vmem:[#allocation5 + $0x298] sm:$0xff] }
  0xc4   :  { %17041 = vst [vmem:[#allocation28_spill] sm:$0xff] %v11686_v41  ;;  %v1592_v7 = vand.u32 4294901760, %v1591_v33  ;;  %v17045_v12 = vand.u32 4294901760, %v17044_v59  ;;  %v17046_v48 = vand.u32 4294901760, %v11327_v4  ;;  %v9246_v11 = vpack.c.bf16 %v11053_v10, %v11051_v42  ;;  %17048 = vst [vmem:[#allocation31_spill] sm:$0xff] %v11711_v39  ;;  %9211 = vmatprep.subr.bf16.mxu0 %v11686_v41  ;;  %v11773_v10 = vld [vmem:[#allocation5 + $0x228] sm:$0xff] }
  0xc5   :  { %v1472_v31 = vsub.f32 %v11391_v18, %v17042_v21  ;;  %v1479_v1 = vsub.f32 %v11405_v22, %v17043_v25  ;;  %v9248_v23 = vpack.c.bf16 %v11074_v6, %v11072_v16  ;;  %v9250_v15 = vpack.c.bf16 %v11098_v55, %v11096_v52  ;;  %v11714_v21 = vld [vmem:[#allocation5 + $0x288] sm:$0xff]  ;;  %v11716_v25 = vld [vmem:[#allocation5 + $0x200] sm:$0xff]  ;;  %9239 = vmatprep.subr.bf16.mxu1 %v9238_v57  ;;  %v11726_v55 = vld [vmem:[#allocation5 + $0x290] sm:$0xff] }
  0xc6   :  { %v11703_v29 = vpack.c.bf16 %v17046_v48, %v17045_v12  ;;  %v1364_v0 = vand.u32 4294901760, %v1363_v14  ;;  %v9240_v30 = vpack.c.bf16 %v1466_v62, %v1459_v13  ;;  %17049 = vst [vmem:[#allocation13_spill] sm:$0xff] %v11714_v21  ;;  %17050 = vst [vmem:[#allocation14_spill] sm:$0xff] %v11716_v25  ;;  %v9242_v42 = vpack.c.bf16 %v1592_v7, %v1585_v60  ;;  %v11724_v52 = vld [vmem:[#allocation5 + $0x208] sm:$0xff]  ;;  %v17054_v14 = vld [vmem:[#allocation25_spill] sm:$0xff] }
  0xc7   :  { %v1473_v33 = vand.u32 4294901760, %v1472_v31  ;;  %v1480_v4 = vand.u32 4294901760, %v1479_v1  ;;  %17051 = vst [vmem:[#allocation17_spill] sm:$0xff] %v11724_v52  ;;  %17052 = vst [vmem:[#allocation16_spill] sm:$0xff] %v11726_v55  ;;  %v16330_v1 = vand.u32 4294901760, %v11711_v39  ;;  %v11737_v57 = vld [vmem:[#allocation5 + $0x210] sm:$0xff] }
  0xc8   :  { %17047 = vst [vmem:[#allocation30_spill] sm:$0xff] %v11703_v29  ;;  %17053 = vst [vmem:[#allocation19_spill] sm:$0xff] %v11728_v51  ;;  %9213 = vmatpush3.bf16.msra.mxu0 %v11703_v29  ;;  %v17056_v60 = vld [vmem:[#allocation41_spill] sm:$0xff]  ;;  %v16331_v12 = vand.u32 4294901760, %v11714_v21  ;;  %v16332_v48 = vand.u32 4294901760, %v11716_v25  ;;  %v11748_v62 = vld [vmem:[#allocation5 + $0x2a0] sm:$0xff]  ;;  %9241 = vmatpush3.bf16.msra.mxu1 %v9240_v30  ;;  %v17084_v29 = vpack.c.bf16 %v11147_v19, %v11134_v24 }
  0xc9   :  { %17055 = vst [vmem:[#allocation22_spill] sm:$0xff] %v11737_v57  ;;  %17057 = vst [vmem:[#allocation26_spill] sm:$0xff] %v11746_v50  ;;  %9247 = vmatprep.subr.bf16.mxu0 %v9246_v11  ;;  %v9244_v31 = vpack.c.bf16 %v1480_v4, %v1473_v33  ;;  %v16334_v13 = vand.u32 4294901760, %v11724_v52  ;;  %v16336_v6 = vand.u32 4294901760, %v11726_v55  ;;  %v11753_v16 = vld [vmem:[#allocation5 + $0x2a8] sm:$0xff]  ;;  %9243 = vmatprep.subr.bf16.mxu1 %v9242_v42  ;;  %v11771_v7 = vld [vmem:[#allocation5 + $0x220] sm:$0xff] }
  0xca   :  { %17058 = vst [vmem:[#allocation27_spill] sm:$0xff] %v11748_v62  ;;  %17059 = vst [vmem:[#allocation34_spill] sm:$0xff] %v11753_v16  ;;  %v11767_v4 = vsub.f32 %v11711_v39, %v16330_v1  ;;  %v11775_v11 = vld [vmem:[#allocation5 + $0x2b0] sm:$0xff]  ;;  %v11783_v1 = vsub.f32 %v11714_v21, %v16331_v12  ;;  %v11788_v59 = vsub.f32 %v11716_v25, %v16332_v48  ;;  %v11791_v30 = vld [vmem:[#allocation5 + $0x2b8] sm:$0xff]  ;;  %v17089_v19 = vand.u32 4294901760, %v11773_v10 }
  0xcb   :  { %1365 = vmatmul.mubr.f32.vlgmr.msra.gmra.mrb[6].mxu0 %v1364_v0  ;;  %17060 = vst [vmem:[#allocation29_spill] sm:$0xff] %v11771_v7  ;;  %17061 = vst [vmem:[#allocation32_spill] sm:$0xff] %v11773_v10  ;;  %v17063_v33 = vld [vmem:[#allocation45_spill] sm:$0xff]  ;;  %v11801_v12 = vsub.f32 %v11726_v55, %v16336_v6  ;;  %v17067_v0 = vand.u32 4294901760, %v11728_v51  ;;  %v11821_v21 = vld [vmem:[#allocation5 + $0x2c0] sm:$0xff]  ;;  %v17081_v55 = vpack.c.bf16 %v11129_v20, %v11120_v8 }
  0xcc   :  { %17062 = vst [vmem:[#allocation33_spill] sm:$0xff] %v11775_v11  ;;  %9249 = vmatpush3.bf16.msra.mxu0 %v9248_v23  ;;  %1732 = vmatprep.mubr.f32.mxu0 %v17063_v33  ;;  %17064 = vst [vmem:[#allocation37_spill] sm:$0xff] %v11791_v30  ;;  %v11796_v23 = vsub.f32 %v11724_v52, %v16334_v13  ;;  %v11808_v42 = vld [vmem:[#allocation5 + $0x230] sm:$0xff]  ;;  %v11810_v25 = vld [vmem:[#allocation5 + $0x238] sm:$0xff]  ;;  %v17087_v52 = vand.u32 4294901760, %v17063_v33  ;;  %v17091_v33 = vand.u32 4294901760, %v11791_v30 }
  0xcd   :  { %9251 = vmatprep.subr.bf16.mxu0 %v9250_v15  ;;  %9245 = vmatpush3.bf16.msra.mxu1 %v9244_v31  ;;  %17066 = vst [vmem:[#allocation39_spill] sm:$0xff] %v11801_v12  ;;  %v11806_v48 = vsub.f32 %v11728_v51, %v17067_v0  ;;  %17069 = vst [vmem:[#allocation43_spill] sm:$0xff] %v11808_v42  ;;  %v17071_v15 = vld [vmem:[#allocation15_spill] sm:$0xff]  ;;  %v17072_v31 = vand.u32 4294901760, %v11737_v57  ;;  %v17076_v51 = vand.u32 4294901760, %v11746_v50  ;;  %v17085_v8 = vld [vmem:[#allocation21_spill] sm:$0xff] }
  0xce   :  { %17065 = vst [vmem:[#allocation38_spill] sm:$0xff] %v11796_v23  ;;  %17070 = vst [vmem:[#allocation44_spill] sm:$0xff] %v11810_v25  ;;  %9279 = vmatprep.subr.bf16.mxu1 %v17071_v15  ;;  %v11823_v0 = vld [vmem:[#allocation5 + $0x2c8] sm:$0xff]  ;;  %v17078_v15 = vand.u32 4294901760, %v11748_v62  ;;  %v11950_v32 = vld [vmem:[#allocation5 + $0x278] sm:$0xff] }
  0xcf   :  { %17068 = vst [vmem:[#allocation42_spill] sm:$0xff] %v11806_v48  ;;  %v11816_v13 = vsub.f32 %v11737_v57, %v17072_v31  ;;  %17074 = vst [vmem:[#allocation41_spill] sm:$0xff] %v11821_v21  ;;  %v11828_v39 = vsub.f32 %v11746_v50, %v17076_v51  ;;  %v11837_v57 = vld [vmem:[#allocation5 + $0x240] sm:$0xff]  ;;  %v17082_v51 = vand.u32 4294901760, %v11753_v16  ;;  %v11851_v6 = vld [vmem:[#allocation5 + $0x248] sm:$0xff] }
  0xd0   :  { %17075 = vst [vmem:[#allocation45_spill] sm:$0xff] %v11823_v0  ;;  %v11833_v31 = vsub.f32 %v11748_v62, %v17078_v15  ;;  %17080 = vst [vmem:[#allocation67_spill] sm:$0xff] %v11837_v57  ;;  %9253 = vmatpush3.bf16.msra.mxu0 %v17081_v55  ;;  %1597 = vmatmul.mubr.f32.vlgmr.msra.gmra.mrb[6].mxu1 %v11609_v58  ;;  %v17088_v62 = vand.u32 4294901760, %v11771_v7  ;;  %v17090_v55 = vand.u32 4294901760, %v11775_v11  ;;  %v11892_v58 = vld [vmem:[#allocation5 + $0x250] sm:$0xff]  ;;  %v17094_v15 = vand.u32 4294901760, %v11808_v42 }
  0xd1   :  { %17073 = vst [vmem:[#allocation25_spill] sm:$0xff] %v11816_v13  ;;  %17077 = vst [vmem:[#allocation65_spill] sm:$0xff] %v11828_v39  ;;  %v11846_v50 = vsub.f32 %v11753_v16, %v17082_v51  ;;  %9255 = vmatprep.subr.bf16.mxu0 %v17084_v29  ;;  %9281 = vmatpush3.bf16.msra.mxu1 %v17085_v8  ;;  %v17086_v16 = vld [vmem:[#allocation20_spill] sm:$0xff]  ;;  %v11872_v29 = vsub.f32 %v11773_v10, %v17089_v19  ;;  %v11890_v10 = vld [vmem:[#allocation5 + $0x2d8] sm:$0xff]  ;;  %v17107_v41 = vand.u32 4294901760, %v11851_v6 }
  0xd2   :  { %17079 = vst [vmem:[#allocation66_spill] sm:$0xff] %v11833_v31  ;;  %9283 = vmatprep.subr.bf16.mxu1 %v17086_v16  ;;  %1839 = vmatprep.mubr.f32.mxu1 %v17087_v52  ;;  %v11867_v24 = vsub.f32 %v11771_v7, %v17088_v62  ;;  %v11877_v20 = vsub.f32 %v11775_v11, %v17090_v55  ;;  %v11888_v19 = vld [vmem:[#allocation5 + $0x2d0] sm:$0xff]  ;;  %17092 = vst [vmem:[#allocation69_spill] sm:$0xff] %v11892_v58  ;;  %v17095_v62 = vand.u32 4294901760, %v11810_v25  ;;  %v11909_v11 = vld [vmem:[#allocation5 + $0x258] sm:$0xff] }
  0xd3   :  { %17083 = vst [vmem:[#allocation68_spill] sm:$0xff] %v11846_v50  ;;  %v11883_v52 = vsub.f32 %v11791_v30, %v17091_v33  ;;  %v17093_v55 = vpack.c.bf16 %v11157_v47, %v11152_v2  ;;  %v11900_v33 = vsub.f32 %v11808_v42, %v17094_v15  ;;  %17096 = vst [vmem:[#allocation70_spill] sm:$0xff] %v11909_v11  ;;  %v11911_v16 = vld [vmem:[#allocation5 + $0x2e0] sm:$0xff]  ;;  %v11913_v2 = vld [vmem:[#allocation5 + $0x2e8] sm:$0xff]  ;;  %v17100_v7 = vand.u32 4294901760, %v11823_v0 }
  0xd4   :  { %v11905_v51 = vsub.f32 %v11810_v25, %v17095_v62  ;;  %v17097_v47 = vpack.c.bf16 %v11185_v49, %v17054_v14  ;;  %v17098_v15 = vld [vmem:[#allocation63_spill] sm:$0xff]  ;;  %v11935_v14 = vld [vmem:[#allocation5 + $0x2f0] sm:$0xff]  ;;  %v11946_v42 = vld [vmem:[#allocation5 + $0x2f8] sm:$0xff]  ;;  %v17108_v25 = vpack.c.bf16 %v11232_v46, %v11227_v63  ;;  %v17112_v18 = vand.u32 4294901760, %v11888_v19 }
  0xd5   :  { %9257 = vmatpush3.bf16.msra.mxu0 %v17093_v55  ;;  %9285 = vmatpush3.bf16.msra.mxu1 %v17098_v15  ;;  %v17099_v55 = vand.u32 4294901760, %v11821_v21  ;;  %v11927_v30 = vsub.f32 %v11823_v0, %v17100_v7  ;;  %v11931_v8 = vld [vmem:[#allocation5 + $0x260] sm:$0xff]  ;;  %v11933_v49 = vld [vmem:[#allocation5 + $0x268] sm:$0xff]  ;;  %17102 = vst [vmem:[#allocation72_spill] sm:$0xff] %v11935_v14  ;;  %17105 = vst [vmem:[#allocation73_spill] sm:$0xff] %v11946_v42  ;;  %v17115_v63 = vand.u32 4294901760, %v11892_v58 }
  0xd6   :  { %9259 = vmatprep.subr.bf16.mxu0 %v17097_v47  ;;  %17101 = vst [vmem:[#allocation71_spill] sm:$0xff] %v11933_v49  ;;  %v17103_v47 = vld [vmem:[#allocation18_spill] sm:$0xff]  ;;  %v11948_v15 = vld [vmem:[#allocation5 + $0x270] sm:$0xff]  ;;  %v11979_v22 = vsub.f32 %v11888_v19, %v17112_v18  ;;  %v17117_v0 = vand.u32 4294901760, %v11911_v16  ;;  %v17118_v7 = vpack.c.bf16 %v17056_v60, %v11285_v27  ;;  %v17121_v18 = vand.u32 4294901760, %v11933_v49 }
  0xd7   :  { %v11922_v62 = vsub.f32 %v11821_v21, %v17099_v55  ;;  %9287 = vmatprep.subr.bf16.mxu1 %v17103_v47  ;;  %v17104_v55 = vand.u32 4294901760, %v11837_v57  ;;  %17106 = vst [vmem:[#allocation74_spill] sm:$0xff] %v11948_v15  ;;  %v11955_v47 = vsub.f32 %v11851_v6, %v17107_v41  ;;  %v17109_v41 = vpack.c.bf16 %v11263_v3, %v11258_v38 }
  0xd8   :  { %v17114_v38 = vand.u32 4294901760, %v11890_v10  ;;  %v11991_v46 = vsub.f32 %v11892_v58, %v17115_v63  ;;  %v17120_v58 = vand.u32 4294901760, %v11931_v8  ;;  %v17124_v60 = vpack.c.bf16 %v11337_v9, %v11306_v34 }
  0xd9   :  { %v11941_v21 = vsub.f32 %v11837_v57, %v17104_v55  ;;  %9261 = vmatpush3.bf16.msra.mxu0 %v17108_v25  ;;  %v17110_v55 = vld [vmem:[#allocation12_spill] sm:$0xff]  ;;  %v17111_v25 = vld [vmem:[#allocation23_spill] sm:$0xff]  ;;  %v17116_v57 = vand.u32 4294901760, %v11909_v11  ;;  %v17143_v34 = vand.u32 4294901760, %v11828_v39 }
  0xda   :  { %9263 = vmatprep.subr.bf16.mxu0 %v17109_v41  ;;  %9289 = vmatpush3.bf16.msra.mxu1 %v17110_v55  ;;  %17113 = vst [vmem:[#allocation12_spill] sm:$0xff] %v11979_v22  ;;  %v11984_v3 = vsub.f32 %v11890_v10, %v17114_v38  ;;  %v12002_v38 = vsub.f32 %v11911_v16, %v17117_v0  ;;  %v17119_v41 = vand.u32 4294901760, %v11913_v2  ;;  %v17122_v0 = vand.u32 4294901760, %v11935_v14 }
  0xdb   :  { %9291 = vmatprep.subr.bf16.mxu1 %v17111_v25  ;;  %v11996_v56 = vsub.f32 %v11909_v11, %v17116_v57  ;;  %v12015_v57 = vsub.f32 %v11931_v8, %v17120_v58  ;;  %v12020_v11 = vsub.f32 %v11933_v49, %v17121_v18  ;;  %v17125_v58 = vand.u32 4294901760, %v11946_v42 }
  0xdc   :  { %v12010_v63 = vsub.f32 %v11913_v2, %v17119_v41  ;;  %v12025_v27 = vsub.f32 %v11935_v14, %v17122_v0  ;;  %v17127_v18 = vand.u32 4294901760, %v11948_v15  ;;  %v17129_v0 = vand.u32 4294901760, %v11950_v32 }
  0xdd   :  { %9265 = vmatpush3.bf16.msra.mxu0 %v17118_v7  ;;  %v12035_v41 = vsub.f32 %v11946_v42, %v17125_v58  ;;  %v17132_v7 = vpack.c.bf16 %v11364_v54, %v11356_v43  ;;  %v17134_v58 = vand.u32 4294901760, %v11783_v1  ;;  %v17136_v43 = vand.u32 4294901760, %v11788_v59 }
  0xde   :  { %17123 = vst [vmem:[#allocation23_spill] sm:$0xff] %v12025_v27  ;;  %9267 = vmatprep.subr.bf16.mxu0 %v17124_v60  ;;  %9293 = vmatpush3.bf16.msra.mxu1 %v11593_v17  ;;  %v12040_v49 = vsub.f32 %v11948_v15, %v17127_v18  ;;  %v12045_v14 = vsub.f32 %v11950_v32, %v17129_v0  ;;  %v17137_v54 = vand.u32 4294901760, %v11796_v23  ;;  %v17139_v15 = vand.u32 4294901760, %v11801_v12 }
  0xdf   :  { %17126 = vst [vmem:[#allocation75_spill] sm:$0xff] %v12035_v41  ;;  %9295 = vmatprep.subr.bf16.mxu1 %v11603_v36  ;;  %v17131_v0 = vpack.c.bf16 %v11351_v37, %v11346_v45  ;;  %v17140_v45 = vand.u32 4294901760, %v11806_v48  ;;  %v17142_v37 = vand.u32 4294901760, %v11816_v13 }
  0xe0   :  { %17128 = vst [vmem:[#allocation76_spill] sm:$0xff] %v12040_v49  ;;  %17130 = vst [vmem:[#allocation77_spill] sm:$0xff] %v12045_v14 }
  0xe1   :  { %9269 = vmatpush3.bf16.msra.mxu0 %v17131_v0  ;;  %v17133_v0 = vand.u32 4294901760, %v11767_v4  ;;  %v12088_v42 = vpack.c.bf16 %v17140_v45, %v17139_v15  ;;  %v12094_v9 = vpack.c.bf16 %v17143_v34, %v17142_v37  ;;  %v17151_v15 = vand.u32 4294901760, %v11877_v20 }
  0xe2   :  { %9271 = vmatprep.subr.bf16.mxu0 %v17132_v7  ;;  %9297 = vmatpush3.bf16.msra.mxu1 %v11622_v53  ;;  %v12082_v7 = vpack.c.bf16 %v17137_v54, %v17136_v43  ;;  %v17148_v43 = vand.u32 4294901760, %v11867_v24  ;;  %v17149_v54 = vand.u32 4294901760, %v11872_v29  ;;  %v17152_v45 = vand.u32 4294901760, %v11883_v52 }
  0xe3   :  { %9299 = vmatprep.subr.bf16.mxu1 %v11640_v5  ;;  %v12076_v60 = vpack.c.bf16 %v17134_v58, %v17133_v0  ;;  %17141 = vst [vmem:[#allocation80_spill] sm:$0xff] %v12088_v42  ;;  %17144 = vst [vmem:[#allocation81_spill] sm:$0xff] %v12094_v9  ;;  %v17145_v58 = vand.u32 4294901760, %v11833_v31  ;;  %v17146_v0 = vand.u32 4294901760, %v11846_v50  ;;  %v17154_v34 = vand.u32 4294901760, %v11900_v33 }
  0xe4   :  { %17138 = vst [vmem:[#allocation79_spill] sm:$0xff] %v12082_v7  ;;  %v12106_v7 = vpack.c.bf16 %v17149_v54, %v17148_v43  ;;  %v12112_v42 = vpack.c.bf16 %v17152_v45, %v17151_v15  ;;  %v17155_v37 = vand.u32 4294901760, %v11905_v51  ;;  %v17159_v43 = vand.u32 4294901760, %v11927_v30 }
  0xe5   :  { %17135 = vst [vmem:[#allocation78_spill] sm:$0xff] %v12076_v60  ;;  %v12100_v18 = vpack.c.bf16 %v17146_v0, %v17145_v58  ;;  %v17157_v58 = vpack.c.bf16 %v11375_v61, %v11370_v28  ;;  %v17158_v0 = vand.u32 4294901760, %v11922_v62  ;;  %v17162_v15 = vand.u32 4294901760, %v11955_v47  ;;  %v17233_v60 = vld [vmem:[#allocation17_spill] sm:$0xff] }
  0xe6   :  { %17150 = vst [vmem:[#allocation83_spill] sm:$0xff] %v12106_v7  ;;  %17153 = vst [vmem:[#allocation84_spill] sm:$0xff] %v12112_v42  ;;  %v12118_v9 = vpack.c.bf16 %v17155_v37, %v17154_v34  ;;  %v17161_v7 = vand.u32 4294901760, %v11941_v21  ;;  %v17164_v42 = vand.u32 4294901760, %v11979_v22  ;;  %v17165_v34 = vand.u32 4294901760, %v11984_v3  ;;  %9301 = vmatpush3.bf16.msra.mxu1 %v11652_v40 }
  0xe7   :  { %17147 = vst [vmem:[#allocation82_spill] sm:$0xff] %v12100_v18  ;;  %9273 = vmatpush3.bf16.msra.mxu0 %v17157_v58  ;;  %v12127_v54 = vpack.c.bf16 %v17159_v43, %v17158_v0  ;;  %v17167_v28 = vand.u32 4294901760, %v11991_v46  ;;  %v17168_v61 = vand.u32 4294901760, %v11996_v56  ;;  %v17170_v0 = vpack.c.bf16 %v11386_v35, %v11381_v44  ;;  %9303 = vmatprep.subr.bf16.mxu1 %v11658_v26  ;;  %v17206_v18 = vld [vmem:[#allocation55_spill] sm:$0xff] }
  0xe8   :  { %17156 = vst [vmem:[#allocation85_spill] sm:$0xff] %v12118_v9  ;;  %v12133_v45 = vpack.c.bf16 %v17162_v15, %v17161_v7  ;;  %v12139_v37 = vpack.c.bf16 %v17165_v34, %v17164_v42  ;;  %v17171_v7 = vand.u32 4294901760, %v12002_v38  ;;  %v17172_v43 = vand.u32 4294901760, %v12010_v63  ;;  %v17202_v9 = vld [vmem:[#allocation53_spill] sm:$0xff] }
  0xe9   :  { %17160 = vst [vmem:[#allocation86_spill] sm:$0xff] %v12127_v54  ;;  %v12145_v58 = vpack.c.bf16 %v17168_v61, %v17167_v28  ;;  %9275 = vmatprep.subr.bf16.mxu0 %v17170_v0  ;;  %v17174_v42 = vand.u32 4294901760, %v12015_v57  ;;  %v17175_v34 = vand.u32 4294901760, %v12020_v11  ;;  %v17177_v28 = vand.u32 4294901760, %v12025_v27  ;;  %v17200_v54 = vld [vmem:[#allocation21_spill] sm:$0xff] }
  0xea   :  { %17163 = vst [vmem:[#allocation87_spill] sm:$0xff] %v12133_v45  ;;  %17166 = vst [vmem:[#allocation88_spill] sm:$0xff] %v12139_v37  ;;  %v12155_v15 = vpack.c.bf16 %v17172_v43, %v17171_v7  ;;  %v17178_v61 = vand.u32 4294901760, %v12035_v41  ;;  %v17180_v44 = vand.u32 4294901760, %v12040_v49  ;;  %v17181_v0 = vand.u32 4294901760, %v12045_v14  ;;  %v17183_v43 = vld [vmem:[#allocation47_spill] sm:$0xff] }
  0xeb   :  { %17169 = vst [vmem:[#allocation89_spill] sm:$0xff] %v12145_v58  ;;  %v12161_v37 = vpack.c.bf16 %v17175_v34, %v17174_v42  ;;  %v17186_v42 = vld [vmem:[#allocation48_spill] sm:$0xff]  ;;  %v17192_v45 = vld [vmem:[#allocation50_spill] sm:$0xff] }
  0xec   :  { %17173 = vst [vmem:[#allocation90_spill] sm:$0xff] %v12155_v15  ;;  %v12167_v35 = vpack.c.bf16 %v17178_v61, %v17177_v28  ;;  %v12174_v7 = vpack.c.bf16 %v17181_v0, %v17180_v44  ;;  %v17184_v15 = vld [vmem:[#allocation46_spill] sm:$0xff]  ;;  %v17187_v34 = vld [vmem:[#allocation36_spill] sm:$0xff]  ;;  %v17189_v28 = vld [vmem:[#allocation35_spill] sm:$0xff] }
  0xed   :  { %17176 = vst [vmem:[#allocation91_spill] sm:$0xff] %v12161_v37  ;;  %v17185_v58 = vpack.c.bf16 %v17183_v43, %v17184_v15  ;;  %9305 = vmatpush3.bf16.msra.mxu1 %v17187_v34  ;;  %v17188_v37 = vld [vmem:[#allocation28_spill] sm:$0xff]  ;;  %v17190_v61 = vld [vmem:[#allocation49_spill] sm:$0xff]  ;;  %v17193_v44 = vld [vmem:[#allocation30_spill] sm:$0xff]  ;;  %v17197_v43 = vand.u32 4294901760, %v17189_v28 }
  0xee   :  { %17179 = vst [vmem:[#allocation92_spill] sm:$0xff] %v12167_v35  ;;  %17182 = vst [vmem:[#allocation93_spill] sm:$0xff] %v12174_v7  ;;  %9307 = vmatprep.subr.bf16.mxu1 %v17188_v37  ;;  %v17191_v35 = vld [vmem:[#allocation40_spill] sm:$0xff]  ;;  %v17195_v15 = vld [vmem:[#allocation15_spill] sm:$0xff] }
  0xef   :  { %9277 = vmatpush3.bf16.msra.mxu0 %v17185_v58  ;;  %v12187_v0 = vld [vmem:[#allocation2 + $0x8] sm:$0xff] }
  0xf0   :  { %9311 = vmatprep.subr.bf16.mxu0 %v17186_v42  ;;  %17194 = vst [vmem:[#allocation47_spill] sm:$0xff] %v12187_v0  ;;  %v17196_v58 = vld [vmem:[#allocation51_spill] sm:$0xff]  ;;  %v17242_v14 = vld [vmem:[#allocation24_spill] sm:$0xff] }
  0xf1   :  { %9309 = vmatpush3.bf16.msra.mxu1 %v17193_v44  ;;  %v17198_v42 = vld [vmem:[#allocation11_spill] sm:$0xff] }
  0xf2   :  { %1735 = vmatmul.mubr.f32.vlgmr.msra.gmra.mrb[8].mxu0 %v17189_v28  ;;  %9343 = vmatprep.subr.bf16.mxu1 %v17195_v15  ;;  %v12195_v7 = vrot.slane %v12187_v0, %v17198_v42  ;;  %v17204_v28 = vld [vmem:[#allocation63_spill] sm:$0xff]  ;;  %v17228_v42 = vand.u32 4294901760, %v11828_v39  ;;  %v17231_v0 = vld [vmem:[#allocation14_spill] sm:$0xff] }
  0xf3   :  { %9313 = vmatpush3.bf16.msra.mxu0 %v17190_v61  ;;  %2009 = vmatprep.mubr.f32.mxu0 %v17191_v35  ;;  %v17199_v61 = vld [vmem:[#allocation52_spill] sm:$0xff] }
  0xf4   :  { %9315 = vmatprep.subr.bf16.mxu0 %v17192_v45  ;;  %1843 = vmatmul.mubr.f32.vlgmr.msra.gmra.mrb[8].mxu1 %v17197_v43  ;;  %v17201_v45 = vld [vmem:[#allocation20_spill] sm:$0xff]  ;;  %v344_v15 = vcombine.high %v12195_v7, %v12195_v7  ;;  %v17205_v43 = vld [vmem:[#allocation18_spill] sm:$0xff] }
  0xf5   :  { %9345 = vmatpush3.bf16.msra.mxu1 %v17200_v54  ;;  %2113 = vmatprep.mubr.f32.mxu1 %v17191_v35  ;;  %v17208_v54 = vld [vmem:[#allocation56_spill] sm:$0xff] }
  0xf6   :  { %9347 = vmatprep.subr.bf16.mxu1 %v17201_v45  ;;  %v17211_v45 = vld [vmem:[#allocation58_spill] sm:$0xff] }
  0xf7   :  { %9317 = vmatpush3.bf16.msra.mxu0 %v17196_v58  ;;  %v17203_v58 = vld [vmem:[#allocation54_spill] sm:$0xff] }
  0xf8   :  { %9319 = vmatprep.subr.bf16.mxu0 %v17199_v61  ;;  %v12208_v61 = vand.u32 4294901760, %v344_v15 }
  0xf9   :  { %9349 = vmatpush3.bf16.msra.mxu1 %v17204_v28  ;;  %v17213_v28 = vld [vmem:[#allocation60_spill] sm:$0xff] }
  0xfa   :  { %9351 = vmatprep.subr.bf16.mxu1 %v17205_v43  ;;  %17207 = vst [vmem:[#allocation46_spill] sm:$0xff] %v12208_v61  ;;  %v12215_v35 = vsub.f32 %v344_v15, %v12208_v61  ;;  %v17215_v15 = vand.u32 4294901760, %v11783_v1  ;;  %v17216_v43 = vld [vmem:[#allocation61_spill] sm:$0xff] }
  0xfb   :  { %9321 = vmatpush3.bf16.msra.mxu0 %v17202_v9  ;;  %v17209_v9 = vld [vmem:[#allocation57_spill] sm:$0xff] }
  0xfc   :  { %9323 = vmatprep.subr.bf16.mxu0 %v17203_v58  ;;  %17210 = vst [vmem:[#allocation48_spill] sm:$0xff] %v12215_v35  ;;  %v16372_v58 = vand.u32 4294901760, %v12215_v35 }
  0xfd   :  { %9353 = vmatpush3.bf16.msra.mxu1 %v17110_v55  ;;  %v17214_v55 = vand.u32 4294901760, %v11767_v4 }
  0xfe   :  { %9355 = vmatprep.subr.bf16.mxu1 %v17111_v25 }
  0xff   :  { %9325 = vmatpush3.bf16.msra.mxu0 %v17206_v18  ;;  %v17212_v18 = vld [vmem:[#allocation59_spill] sm:$0xff]  ;;  %v2348_v25 = vsub.f32 %v11767_v4, %v17214_v55 }
 0x100   :  { %9327 = vmatprep.subr.bf16.mxu0 %v17208_v54  ;;  %v17217_v54 = vld [vmem:[#allocation62_spill] sm:$0xff] }
 0x101   :  { %9357 = vmatpush3.bf16.msra.mxu1 %v11593_v17  ;;  %v2355_v17 = vsub.f32 %v11783_v1, %v17215_v15  ;;  %v17224_v15 = vand.u32 4294901760, %v11796_v23 }
 0x102   :  { %9359 = vmatprep.subr.bf16.mxu1 %v11603_v36  ;;  %v2219_v36 = vsub.f32 %v12215_v35, %v16372_v58  ;;  %v2349_v58 = vand.u32 4294901760, %v2348_v25  ;;  %v17234_v35 = vand.u32 4294901760, %v17233_v60 }
 0x103   :  { %9329 = vmatpush3.bf16.msra.mxu0 %v17209_v9  ;;  %v17220_v9 = vld [vmem:[#allocation13_spill] sm:$0xff] }
 0x104   :  { %9331 = vmatprep.subr.bf16.mxu0 %v17211_v45  ;;  %v17221_v45 = vand.u32 4294901760, %v17220_v9  ;;  %v17226_v9 = vand.u32 4294901760, %v11806_v48 }
 0x105   :  { %9361 = vmatpush3.bf16.msra.mxu1 %v11622_v53  ;;  %v17218_v53 = vld [vmem:[#allocation31_spill] sm:$0xff] }
 0x106   :  { %9363 = vmatprep.subr.bf16.mxu1 %v11640_v5  ;;  %v17219_v5 = vand.u32 4294901760, %v17218_v53 }
 0x107   :  { %9333 = vmatpush3.bf16.msra.mxu0 %v17212_v18 }
 0x108   :  { %9335 = vmatprep.subr.bf16.mxu0 %v17213_v28  ;;  %v12241_v18 = vpack.c.bf16 %v17221_v45, %v17219_v5  ;;  %v17223_v28 = vand.u32 4294901760, %v11788_v59  ;;  %v2369_v5 = vsub.f32 %v11806_v48, %v17226_v9  ;;  %v17227_v45 = vand.u32 4294901760, %v11816_v13 }
 0x109   :  { %9365 = vmatpush3.bf16.msra.mxu1 %v11652_v40  ;;  %v17225_v40 = vand.u32 4294901760, %v11801_v12  ;;  %v17236_v9 = vand.u32 4294901760, %v11846_v50 }
 0x10a   :  { %17222 = vst [vmem:[#allocation36_spill] sm:$0xff] %v12241_v18  ;;  %v2236_v55 = vsub.f32 %v11788_v59, %v17223_v28  ;;  %9367 = vmatprep.subr.bf16.mxu1 %v11658_v26  ;;  %v2250_v28 = vsub.f32 %v11816_v13, %v17227_v45  ;;  %v17229_v26 = vand.u32 4294901760, %v11833_v31  ;;  %v2220_v13 = vand.u32 4294901760, %v2219_v36  ;;  %v17243_v36 = vld [vmem:[#allocation22_spill] sm:$0xff] }
 0x10b   :  { %9337 = vmatpush3.bf16.msra.mxu0 %v17216_v43  ;;  %v2243_v43 = vsub.f32 %v11796_v23, %v17224_v15  ;;  %v2362_v53 = vsub.f32 %v11801_v12, %v17225_v40  ;;  %v2257_v15 = vsub.f32 %v11828_v39, %v17228_v42  ;;  %v17232_v40 = vand.u32 4294901760, %v17231_v0  ;;  %v17237_v42 = vld [vmem:[#allocation16_spill] sm:$0xff] }
 0x10c   :  { %9339 = vmatprep.subr.bf16.mxu0 %v17217_v54  ;;  %v2356_v54 = vand.u32 4294901760, %v2355_v17  ;;  %v2376_v25 = vsub.f32 %v11833_v31, %v17229_v26  ;;  %v17230_v17 = vld [vmem:[#allocation64_spill] sm:$0xff]  ;;  %v2383_v45 = vsub.f32 %v11846_v50, %v17236_v9  ;;  %v17238_v39 = vand.u32 4294901760, %v17237_v42  ;;  %v17239_v26 = vld [vmem:[#allocation19_spill] sm:$0xff] }
 0x10d   :  { %v12270_v12 = vpack.c.bf16 %v17234_v35, %v17232_v40  ;;  %9369 = vmatpush3.bf16.msra.mxu1 %v17187_v34  ;;  %v17240_v31 = vand.u32 4294901760, %v17239_v26  ;;  %v2237_v0 = vand.u32 4294901760, %v2236_v55  ;;  %v2244_v48 = vand.u32 4294901760, %v2243_v43 }
 0x10e   :  { %9371 = vmatprep.subr.bf16.mxu1 %v17188_v37  ;;  %v9406_v60 = vpack.c.bf16 %v2356_v54, %v2349_v58  ;;  %v2363_v35 = vand.u32 4294901760, %v2362_v53  ;;  %v2370_v40 = vand.u32 4294901760, %v2369_v5  ;;  %v17244_v9 = vand.u32 4294901760, %v17243_v36  ;;  %v17252_v53 = vld [vmem:[#allocation34_spill] sm:$0xff] }
 0x10f   :  { %9341 = vmatpush3.bf16.msra.mxu0 %v17230_v17  ;;  %17235 = vst [vmem:[#allocation28_spill] sm:$0xff] %v12270_v12  ;;  %v12281_v17 = vpack.c.bf16 %v17240_v31, %v17238_v39  ;;  %v2251_v42 = vand.u32 4294901760, %v2250_v28  ;;  %v2258_v23 = vand.u32 4294901760, %v2257_v15  ;;  %v2377_v26 = vand.u32 4294901760, %v2376_v25 }
 0x110   :  { %9375 = vmatprep.subr.bf16.mxu0 %v12241_v18  ;;  %v17245_v18 = vld [vmem:[#allocation26_spill] sm:$0xff]  ;;  %v2384_v39 = vand.u32 4294901760, %v2383_v45  ;;  %v17247_v31 = vand.u32 4294901760, %v11867_v24  ;;  %v17248_v58 = vand.u32 4294901760, %v11872_v29  ;;  %v17249_v43 = vand.u32 4294901760, %v11877_v20 }
 0x111   :  { %17241 = vst [vmem:[#allocation35_spill] sm:$0xff] %v12281_v17  ;;  %v17246_v50 = vand.u32 4294901760, %v17245_v18  ;;  %9373 = vmatpush3.bf16.msra.mxu1 %v17193_v44  ;;  %v17253_v5 = vand.u32 4294901760, %v17252_v53  ;;  %v9408_v15 = vpack.c.bf16 %v2244_v48, %v2237_v0  ;;  %v17254_v25 = vand.u32 4294901760, %v11883_v52  ;;  %v17259_v44 = vld [vmem:[#allocation33_spill] sm:$0xff] }
 0x112   :  { %2011 = vmatmul.mubr.f32.vlgmr.msra.gmra.mrb[10].mxu0 %v17242_v14  ;;  %v2264_v37 = vsub.f32 %v11867_v24, %v17247_v31  ;;  %v2271_v55 = vsub.f32 %v11872_v29, %v17248_v58  ;;  %v2390_v18 = vsub.f32 %v11877_v20, %v17249_v43  ;;  %9407 = vmatprep.subr.bf16.mxu1 %v9406_v60 }
 0x113   :  { %v12289_v34 = vpack.c.bf16 %v17246_v50, %v17244_v9  ;;  %9377 = vmatpush3.bf16.msra.mxu0 %v12270_v12  ;;  %2221 = vmatprep.mubr.f32.mxu0 %v2220_v13  ;;  %v17250_v50 = vld [vmem:[#allocation27_spill] sm:$0xff]  ;;  %v2397_v45 = vsub.f32 %v11883_v52, %v17254_v25  ;;  %v9410_v36 = vpack.c.bf16 %v2370_v40, %v2363_v35  ;;  %v17255_v9 = vld [vmem:[#allocation29_spill] sm:$0xff]  ;;  %v17257_v13 = vld [vmem:[#allocation32_spill] sm:$0xff] }
 0x114   :  { %9379 = vmatprep.subr.bf16.mxu0 %v12281_v17  ;;  %v17251_v54 = vand.u32 4294901760, %v17250_v50  ;;  %v17256_v31 = vand.u32 4294901760, %v17255_v9  ;;  %v17258_v58 = vand.u32 4294901760, %v17257_v13  ;;  %v17260_v17 = vand.u32 4294901760, %v17259_v44  ;;  %v17261_v50 = vld [vmem:[#allocation37_spill] sm:$0xff]  ;;  %2115 = vmatmul.mubr.f32.vlgmr.msra.gmra.mrb[10].mxu1 %v17242_v14  ;;  %v17272_v9 = vld [vmem:[#allocation44_spill] sm:$0xff] }
 0x115   :  { %v17262_v12 = vand.u32 4294901760, %v17261_v50  ;;  %v9414_v48 = vpack.c.bf16 %v2384_v39, %v2377_v26  ;;  %v2265_v0 = vand.u32 4294901760, %v2264_v37  ;;  %v2272_v60 = vand.u32 4294901760, %v2271_v55  ;;  %9409 = vmatpush3.bf16.msra.mxu1 %v9408_v15  ;;  %2457 = vmatprep.mubr.f32.mxu1 %v12208_v61  ;;  %v17270_v15 = vld [vmem:[#allocation43_spill] sm:$0xff]  ;;  %v17276_v50 = vld [vmem:[#allocation45_spill] sm:$0xff] }
 0x116   :  { %v12307_v28 = vpack.c.bf16 %v17253_v5, %v17251_v54  ;;  %v12316_v43 = vpack.c.bf16 %v17258_v58, %v17256_v31  ;;  %v9412_v54 = vpack.c.bf16 %v2258_v23, %v2251_v42  ;;  %v2391_v35 = vand.u32 4294901760, %v2390_v18  ;;  %9411 = vmatprep.subr.bf16.mxu1 %v9410_v36  ;;  %v17274_v58 = vld [vmem:[#allocation41_spill] sm:$0xff] }
 0x117   :  { %v12322_v53 = vpack.c.bf16 %v17262_v12, %v17260_v17  ;;  %9381 = vmatpush3.bf16.msra.mxu0 %v12289_v34  ;;  %v2398_v40 = vand.u32 4294901760, %v2397_v45  ;;  %v17264_v5 = vand.u32 4294901760, %v11900_v33  ;;  %v17265_v12 = vand.u32 4294901760, %v11905_v51 }
 0x118   :  { %9383 = vmatprep.subr.bf16.mxu0 %v12307_v28  ;;  %v17266_v17 = vand.u32 4294901760, %v11922_v62  ;;  %v17267_v42 = vand.u32 4294901760, %v11927_v30  ;;  %v17268_v39 = vand.u32 4294901760, %v11941_v21  ;;  %v17269_v55 = vand.u32 4294901760, %v11955_v47 }
 0x119   :  { %17263 = vst [vmem:[#allocation49_spill] sm:$0xff] %v12322_v53  ;;  %v2278_v25 = vsub.f32 %v11900_v33, %v17264_v5  ;;  %v2285_v23 = vsub.f32 %v11905_v51, %v17265_v12  ;;  %v17271_v45 = vand.u32 4294901760, %v17270_v15  ;;  %v17273_v31 = vand.u32 4294901760, %v17272_v9  ;;  %9413 = vmatpush3.bf16.msra.mxu1 %v9412_v54 }
 0x11a   :  { %v2404_v14 = vsub.f32 %v11922_v62, %v17266_v17  ;;  %v2411_v26 = vsub.f32 %v11927_v30, %v17267_v42  ;;  %v2292_v37 = vsub.f32 %v11941_v21, %v17268_v39  ;;  %v2299_v18 = vsub.f32 %v11955_v47, %v17269_v55  ;;  %v17278_v17 = vld [vmem:[#allocation67_spill] sm:$0xff]  ;;  %9415 = vmatprep.subr.bf16.mxu1 %v9414_v48 }
 0x11b   :  { %v12350_v13 = vpack.c.bf16 %v17273_v31, %v17271_v45  ;;  %v12353_v36 = vand.u32 4294901760, %v12195_v7  ;;  %9385 = vmatpush3.bf16.msra.mxu0 %v12316_v43  ;;  %v17275_v44 = vand.u32 4294901760, %v17274_v58  ;;  %v17277_v5 = vand.u32 4294901760, %v17276_v50 }
 0x11c   :  { %v17279_v42 = vand.u32 4294901760, %v17278_v17  ;;  %v17280_v39 = vand.u32 4294901760, %v11851_v6  ;;  %v17282_v15 = vand.u32 4294901760, %v11979_v22  ;;  %v17283_v9 = vand.u32 4294901760, %v11984_v3  ;;  %9387 = vmatprep.subr.bf16.mxu0 %v12322_v53 }
 0x11d   :  { %v12360_v12 = vpack.c.bf16 %v17277_v5, %v17275_v44  ;;  %v9416_v58 = vpack.c.bf16 %v2272_v60, %v2265_v0  ;;  %v9418_v44 = vpack.c.bf16 %v2398_v40, %v2391_v35  ;;  %v2279_v50 = vand.u32 4294901760, %v2278_v25  ;;  %v17290_v60 = vld [vmem:[#allocation69_spill] sm:$0xff]  ;;  %v17292_v35 = vld [vmem:[#allocation70_spill] sm:$0xff] }
 0x11e   :  { %v12366_v55 = vpack.c.bf16 %v17280_v39, %v17279_v42  ;;  %v2418_v45 = vsub.f32 %v11979_v22, %v17282_v15  ;;  %v2425_v31 = vsub.f32 %v11984_v3, %v17283_v9  ;;  %v2286_v5 = vand.u32 4294901760, %v2285_v23 }
 0x11f   :  { %v2405_v17 = vand.u32 4294901760, %v2404_v14  ;;  %v2412_v6 = vand.u32 4294901760, %v2411_v26  ;;  %v2293_v42 = vand.u32 4294901760, %v2292_v37  ;;  %v2300_v39 = vand.u32 4294901760, %v2299_v18  ;;  %9389 = vmatpush3.bf16.msra.mxu0 %v12350_v13  ;;  %9417 = vmatpush3.bf16.msra.mxu1 %v9416_v58 }
 0x120   :  { %17281 = vst [vmem:[#allocation40_spill] sm:$0xff] %v12366_v55  ;;  %v17284_v61 = vand.u32 4294901760, %v11888_v19  ;;  %v17285_v15 = vand.u32 4294901760, %v11890_v10  ;;  %v17287_v9 = vand.u32 4294901760, %v11991_v46  ;;  %v17288_v54 = vand.u32 4294901760, %v11996_v56  ;;  %9391 = vmatprep.subr.bf16.mxu0 %v12360_v12  ;;  %9419 = vmatprep.subr.bf16.mxu1 %v9418_v44 }
 0x121   :  { %v12389_v48 = vsub.f32 %v12195_v7, %v12353_v36  ;;  %v17291_v19 = vand.u32 4294901760, %v17290_v60  ;;  %v17293_v10 = vand.u32 4294901760, %v17292_v35  ;;  %v2419_v40 = vand.u32 4294901760, %v2418_v45 }
 0x122   :  { %v12379_v22 = vpack.c.bf16 %v17285_v15, %v17284_v61  ;;  %v2306_v53 = vsub.f32 %v11991_v46, %v17287_v9  ;;  %v2313_v0 = vsub.f32 %v11996_v56, %v17288_v54  ;;  %v2426_v25 = vand.u32 4294901760, %v2425_v31  ;;  %v17300_v54 = vld [vmem:[#allocation71_spill] sm:$0xff] }
 0x123   :  { %17289 = vst [vmem:[#allocation30_spill] sm:$0xff] %v12389_v48  ;;  %v12396_v61 = vpack.c.bf16 %v17293_v10, %v17291_v19  ;;  %v17295_v23 = vand.u32 4294901760, %v12002_v38  ;;  %v9420_v26 = vpack.c.bf16 %v2286_v5, %v2279_v50  ;;  %v17296_v7 = vand.u32 4294901760, %v11911_v16  ;;  %v17302_v50 = vld [vmem:[#allocation72_spill] sm:$0xff]  ;;  %v17304_v16 = vld [vmem:[#allocation73_spill] sm:$0xff]  ;;  %9393 = vmatpush3.bf16.msra.mxu0 %v12366_v55 }
 0x124   :  { %17286 = vst [vmem:[#allocation50_spill] sm:$0xff] %v12379_v22  ;;  %v17297_v37 = vand.u32 4294901760, %v11913_v2  ;;  %v17298_v15 = vand.u32 4294901760, %v12010_v63  ;;  %v9422_v45 = vpack.c.bf16 %v2412_v6, %v2405_v17  ;;  %v17299_v31 = vand.u32 4294901760, %v11931_v8  ;;  %v12427_v8 = vld [vmem:[#allocation5 + $0x380] sm:$0xff]  ;;  %9395 = vmatprep.subr.bf16.mxu0 %v12379_v22  ;;  %v12492_v55 = vld [vmem:[#allocation5 + $0x3a8] sm:$0xff] }
 0x125   :  { %17294 = vst [vmem:[#allocation15_spill] sm:$0xff] %v12396_v61  ;;  %v2432_v14 = vsub.f32 %v12002_v38, %v17295_v23  ;;  %v17301_v60 = vand.u32 4294901760, %v17300_v54  ;;  %v9424_v58 = vpack.c.bf16 %v2300_v39, %v2293_v42  ;;  %v17303_v5 = vand.u32 4294901760, %v17302_v50  ;;  %17307 = vst [vmem:[#allocation51_spill] sm:$0xff] %v12427_v8  ;;  %v17308_v42 = vld [vmem:[#allocation74_spill] sm:$0xff]  ;;  %v12439_v54 = vld [vmem:[#allocation5 + $0x388] sm:$0xff]  ;;  %9421 = vmatpush3.bf16.msra.mxu1 %v9420_v26 }
 0x126   :  { %v12406_v18 = vpack.c.bf16 %v17297_v37, %v17296_v7  ;;  %v2439_v9 = vsub.f32 %v12010_v63, %v17298_v15  ;;  %v17305_v35 = vand.u32 4294901760, %v17304_v16  ;;  %v2307_v10 = vand.u32 4294901760, %v2306_v53  ;;  %17312 = vst [vmem:[#allocation52_spill] sm:$0xff] %v12439_v54  ;;  %v12451_v16 = vld [vmem:[#allocation5 + $0x300] sm:$0xff]  ;;  %9423 = vmatprep.subr.bf16.mxu1 %v9422_v45  ;;  %v12471_v26 = vld [vmem:[#allocation5 + $0x398] sm:$0xff]  ;;  %17328 = vst [vmem:[#allocation55_spill] sm:$0xff] %v12492_v55 }
 0x127   :  { %v12415_v19 = vpack.c.bf16 %v17301_v60, %v17299_v31  ;;  %v2314_v23 = vand.u32 4294901760, %v2313_v0  ;;  %v16403_v7 = vand.u32 4294901760, %v12389_v48  ;;  %v17306_v44 = vand.u32 4294901760, %v12015_v57  ;;  %17316 = vst [vmem:[#allocation21_spill] sm:$0xff] %v12451_v16  ;;  %17321 = vst [vmem:[#allocation53_spill] sm:$0xff] %v12471_v26  ;;  %9397 = vmatpush3.bf16.msra.mxu0 %v12396_v61  ;;  %v17322_v22 = vld [vmem:[#allocation39_spill] sm:$0xff] }
 0x128   :  { %v12421_v2 = vpack.c.bf16 %v17305_v35, %v17303_v5  ;;  %v9426_v6 = vpack.c.bf16 %v2426_v25, %v2419_v40  ;;  %v17309_v39 = vand.u32 4294901760, %v17308_v42  ;;  %v17310_v37 = vand.u32 4294901760, %v11950_v32  ;;  %v12453_v35 = vld [vmem:[#allocation5 + $0x308] sm:$0xff]  ;;  %v17319_v42 = vld [vmem:[#allocation77_spill] sm:$0xff]  ;;  %9399 = vmatprep.subr.bf16.mxu0 %v12406_v18  ;;  %v12483_v61 = vld [vmem:[#allocation5 + $0x3a0] sm:$0xff] }
 0x129   :  { %v2320_v17 = vsub.f32 %v12015_v57, %v17306_v44  ;;  %v2433_v31 = vand.u32 4294901760, %v2432_v14  ;;  %v17311_v53 = vand.u32 4294901760, %v12020_v11  ;;  %v2440_v60 = vand.u32 4294901760, %v2439_v9  ;;  %17317 = vst [vmem:[#allocation20_spill] sm:$0xff] %v12453_v35  ;;  %v17318_v9 = vld [vmem:[#allocation38_spill] sm:$0xff]  ;;  %9425 = vmatpush3.bf16.msra.mxu1 %v9424_v58  ;;  %17326 = vst [vmem:[#allocation18_spill] sm:$0xff] %v12483_v61 }
 0x12a   :  { %v12434_v15 = vpack.c.bf16 %v17310_v37, %v17309_v39  ;;  %v17313_v50 = vand.u32 4294901760, %v12025_v27  ;;  %v17314_v25 = vand.u32 4294901760, %v12035_v41  ;;  %v17315_v14 = vand.u32 4294901760, %v12040_v49  ;;  %9427 = vmatprep.subr.bf16.mxu1 %v9426_v6  ;;  %v12494_v58 = vld [vmem:[#allocation5 + $0x320] sm:$0xff] }
 0x12b   :  { %v2327_v0 = vsub.f32 %v12020_v11, %v17311_v53  ;;  %v17320_v39 = vand.u32 4294901760, %v17319_v42  ;;  %v12478_v53 = vld [vmem:[#allocation5 + $0x310] sm:$0xff]  ;;  %17329 = vst [vmem:[#allocation56_spill] sm:$0xff] %v12494_v58  ;;  %9401 = vmatpush3.bf16.msra.mxu0 %v12415_v19 }
 0x12c   :  { %v2446_v40 = vsub.f32 %v12025_v27, %v17313_v50  ;;  %v2453_v32 = vsub.f32 %v12035_v41, %v17314_v25  ;;  %v2334_v5 = vsub.f32 %v12040_v49, %v17315_v14  ;;  %v9428_v50 = vpack.c.bf16 %v2314_v23, %v2307_v10  ;;  %v12469_v49 = vld [vmem:[#allocation5 + $0x390] sm:$0xff]  ;;  %17324 = vst [vmem:[#allocation54_spill] sm:$0xff] %v12478_v53  ;;  %v12516_v23 = vld [vmem:[#allocation5 + $0x328] sm:$0xff] }
 0x12d   :  { %v2341_v37 = vsub.f32 %v17319_v42, %v17320_v39  ;;  %v12466_v25 = vsub.f32 %v12389_v48, %v16403_v7  ;;  %v2321_v14 = vand.u32 4294901760, %v2320_v17  ;;  %v2328_v44 = vand.u32 4294901760, %v2327_v0  ;;  %v17323_v39 = vld [vmem:[#allocation42_spill] sm:$0xff]  ;;  %17333 = vst [vmem:[#allocation57_spill] sm:$0xff] %v12516_v23  ;;  %9403 = vmatprep.subr.bf16.mxu0 %v12421_v2 }
 0x12e   :  { %v12480_v7 = vld [vmem:[#allocation5 + $0x318] sm:$0xff]  ;;  %v9430_v17 = vpack.c.bf16 %v2440_v60, %v2433_v31  ;;  %v2447_v45 = vand.u32 4294901760, %v2446_v40  ;;  %v2454_v48 = vand.u32 4294901760, %v2453_v32  ;;  %v2335_v41 = vand.u32 4294901760, %v2334_v5  ;;  %9429 = vmatpush3.bf16.msra.mxu1 %v9428_v50 }
 0x12f   :  { %17325 = vst [vmem:[#allocation63_spill] sm:$0xff] %v12480_v7  ;;  %v2342_v0 = vand.u32 4294901760, %v2341_v37  ;;  %v17327_v42 = vand.u32 4294901760, %v12427_v8  ;;  %v2226_v31 = vand.u32 4294901760, %v12466_v25  ;;  %v17330_v60 = vand.u32 4294901760, %v12439_v54  ;;  %v17334_v40 = vld [vmem:[#allocation25_spill] sm:$0xff]  ;;  %9405 = vmatpush3.bf16.msra.mxu0 %v12434_v15 }
 0x130   :  { %v9432_v5 = vpack.c.bf16 %v2328_v44, %v2321_v14  ;;  %v17332_v27 = vand.u32 4294901760, %v12453_v35  ;;  %v9434_v32 = vpack.c.bf16 %v2454_v48, %v2447_v45  ;;  %v17335_v44 = vld [vmem:[#allocation65_spill] sm:$0xff]  ;;  %9431 = vmatprep.subr.bf16.mxu1 %v9430_v17  ;;  %v17343_v50 = vand.u32 4294901760, %v12483_v61 }
 0x131   :  { %v12488_v10 = vsub.f32 %v12427_v8, %v17327_v42  ;;  %v12500_v6 = vsub.f32 %v12439_v54, %v17330_v60  ;;  %v17331_v42 = vand.u32 4294901760, %v12451_v16  ;;  %v9444_v14 = vpack.c.bf16 %v17335_v44, %v17334_v40  ;;  %v12536_v45 = vld [vmem:[#allocation5 + $0x3b8] sm:$0xff] }
 0x132   :  { %v12513_v25 = vsub.f32 %v12453_v35, %v17332_v27  ;;  %v9436_v27 = vpack.c.bf16 %v2342_v0, %v2335_v41  ;;  %v17337_v35 = vand.u32 4294901760, %v12469_v49  ;;  %v17338_v8 = vand.u32 4294901760, %v12471_v26  ;;  %17339 = vst [vmem:[#allocation59_spill] sm:$0xff] %v12536_v45  ;;  %9433 = vmatpush3.bf16.msra.mxu1 %v9432_v5  ;;  %2227 = vmatmul.mubr.f32.vlgmr.msra.gmra.mrb[12].mxu0 %v2226_v31 }
 0x133   :  { %v12508_v37 = vsub.f32 %v12451_v16, %v17331_v42  ;;  %v12523_v16 = vld [vmem:[#allocation5 + $0x3b0] sm:$0xff]  ;;  %v17340_v40 = vand.u32 4294901760, %v12478_v53  ;;  %v17341_v41 = vand.u32 4294901760, %v12480_v7  ;;  %v12556_v42 = vsub.f32 %v12483_v61, %v17343_v50  ;;  %9435 = vmatprep.subr.bf16.mxu1 %v9434_v32 }
 0x134   :  { %17336 = vst [vmem:[#allocation58_spill] sm:$0xff] %v12523_v16  ;;  %v12528_v60 = vsub.f32 %v12469_v49, %v17337_v35  ;;  %v12533_v48 = vsub.f32 %v12471_v26, %v17338_v8  ;;  %v12550_v8 = vld [vmem:[#allocation5 + $0x330] sm:$0xff]  ;;  %v17345_v0 = vpack.c.bf16 %v11783_v1, %v11767_v4  ;;  %v17346_v35 = vand.u32 4294901760, %v12492_v55  ;;  %v12604_v1 = vld [vmem:[#allocation5 + $0x340] sm:$0xff] }
 0x135   :  { %v12541_v44 = vsub.f32 %v12478_v53, %v17340_v40  ;;  %v12546_v17 = vsub.f32 %v12480_v7, %v17341_v41  ;;  %17342 = vst [vmem:[#allocation60_spill] sm:$0xff] %v12550_v8  ;;  %v12561_v7 = vld [vmem:[#allocation5 + $0x338] sm:$0xff]  ;;  %v17347_v50 = vand.u32 4294901760, %v12494_v58  ;;  %v17349_v41 = vand.u32 4294901760, %v12488_v10  ;;  %17358 = vst [vmem:[#allocation17_spill] sm:$0xff] %v12604_v1 }
 0x136   :  { %17344 = vst [vmem:[#allocation61_spill] sm:$0xff] %v12561_v7  ;;  %9439 = vmatprep.subr.bf16.mxu0 %v17345_v0  ;;  %v12569_v53 = vsub.f32 %v12492_v55, %v17346_v35  ;;  %v17350_v61 = vand.u32 4294901760, %v12500_v6  ;;  %v12586_v35 = vld [vmem:[#allocation5 + $0x3c0] sm:$0xff]  ;;  %v12588_v0 = vld [vmem:[#allocation5 + $0x3c8] sm:$0xff]  ;;  %v17355_v54 = vand.u32 4294901760, %v12513_v25  ;;  %v17365_v4 = vand.u32 4294901760, %v12528_v60  ;;  %9437 = vmatpush3.bf16.msra.mxu1 %v9436_v27 }
 0x137   :  { %v12574_v40 = vsub.f32 %v12494_v58, %v17347_v50  ;;  %17352 = vst [vmem:[#allocation13_spill] sm:$0xff] %v12586_v35  ;;  %17353 = vst [vmem:[#allocation64_spill] sm:$0xff] %v12588_v0  ;;  %v17354_v50 = vand.u32 4294901760, %v12508_v37  ;;  %v17366_v5 = vand.u32 4294901760, %v12533_v48  ;;  %v16424_v27 = vand.u32 4294901760, %v12556_v42 }
 0x138   :  { %v12581_v26 = vpack.c.bf16 %v17350_v61, %v17349_v41  ;;  %v17357_v61 = vand.u32 4294901760, %v12516_v23  ;;  %v12617_v41 = vld [vmem:[#allocation5 + $0x348] sm:$0xff] }
 0x139   :  { %17348 = vst [vmem:[#allocation62_spill] sm:$0xff] %v12574_v40  ;;  %v12594_v58 = vpack.c.bf16 %v17355_v54, %v17354_v50  ;;  %v17360_v54 = vld [vmem:[#allocation66_spill] sm:$0xff]  ;;  %v17361_v50 = vld [vmem:[#allocation68_spill] sm:$0xff]  ;;  %17364 = vst [vmem:[#allocation16_spill] sm:$0xff] %v12617_v41  ;;  %v12623_v55 = vpack.c.bf16 %v17366_v5, %v17365_v4  ;;  %2459 = vmatmul.mubr.f32.vlgmr.msra.gmra.mrb[12].mxu1 %v12353_v36 }
 0x13a   :  { %17351 = vst [vmem:[#allocation31_spill] sm:$0xff] %v12581_v26  ;;  %v12599_v32 = vsub.f32 %v12516_v23, %v17357_v61  ;;  %v17359_v26 = vpack.c.bf16 %v17318_v9, %v11788_v59  ;;  %v9446_v31 = vpack.c.bf16 %v17361_v50, %v17360_v54  ;;  %v17363_v61 = vand.u32 4294901760, %v12523_v16  ;;  %v17373_v5 = vld [vmem:[#allocation36_spill] sm:$0xff] }
 0x13b   :  { %17356 = vst [vmem:[#allocation14_spill] sm:$0xff] %v12594_v58  ;;  %v17362_v58 = vld [vmem:[#allocation48_spill] sm:$0xff]  ;;  %17367 = vst [vmem:[#allocation19_spill] sm:$0xff] %v12623_v55  ;;  %v17368_v59 = vpack.c.bf16 %v17323_v39, %v17322_v22  ;;  %9471 = vmatprep.subr.bf16.mxu1 %v17373_v5  ;;  %v17374_v22 = vand.u32 4294901760, %v12550_v8  ;;  %v17375_v50 = vand.u32 4294901760, %v12561_v7 }
 0x13c   :  { %9441 = vmatpush3.bf16.msra.mxu0 %v17359_v26  ;;  %2594 = vmatprep.mubr.f32.mxu0 %v17362_v58  ;;  %v12615_v23 = vsub.f32 %v12523_v16, %v17363_v61  ;;  %v17369_v26 = vand.u32 4294901760, %v12536_v45  ;;  %v17370_v61 = vand.u32 4294901760, %v12541_v44  ;;  %v17371_v16 = vand.u32 4294901760, %v12546_v17  ;;  %v12658_v55 = vld [vmem:[#allocation5 + $0x3d0] sm:$0xff] }
 0x13d   :  { %9443 = vmatprep.subr.bf16.mxu0 %v17368_v59  ;;  %v12645_v39 = vsub.f32 %v12550_v8, %v17374_v22  ;;  %v12653_v54 = vsub.f32 %v12561_v7, %v17375_v50  ;;  %17376 = vst [vmem:[#allocation22_spill] sm:$0xff] %v12658_v55  ;;  %v9448_v22 = vpack.c.bf16 %v11872_v29, %v11867_v24  ;;  %v12665_v59 = vld [vmem:[#allocation5 + $0x3d8] sm:$0xff]  ;;  %v17378_v50 = vand.u32 4294901760, %v12569_v53  ;;  %v12684_v29 = vld [vmem:[#allocation5 + $0x350] sm:$0xff] }
 0x13e   :  { %v12631_v9 = vsub.f32 %v12536_v45, %v17369_v26  ;;  %v12639_v4 = vpack.c.bf16 %v17371_v16, %v17370_v61  ;;  %v9450_v26 = vpack.c.bf16 %v11883_v52, %v11877_v20  ;;  %17377 = vst [vmem:[#allocation26_spill] sm:$0xff] %v12665_v59  ;;  %v17383_v24 = vand.u32 4294901760, %v12588_v0  ;;  %17385 = vst [vmem:[#allocation32_spill] sm:$0xff] %v12684_v29  ;;  %v12686_v52 = vld [vmem:[#allocation5 + $0x358] sm:$0xff]  ;;  %v12705_v45 = vld [vmem:[#allocation5 + $0x3e0] sm:$0xff] }
 0x13f   :  { %v12671_v16 = vpack.c.bf16 %v17378_v50, %v16424_v27  ;;  %17386 = vst [vmem:[#allocation33_spill] sm:$0xff] %v12686_v52  ;;  %v17387_v50 = vand.u32 4294901760, %v12574_v40  ;;  %v9452_v8 = vpack.c.bf16 %v11905_v51, %v11900_v33  ;;  %v12735_v33 = vld [vmem:[#allocation5 + $0x368] sm:$0xff]  ;;  %v12760_v51 = vld [vmem:[#allocation5 + $0x3f0] sm:$0xff] }
 0x140   :  { %17372 = vst [vmem:[#allocation24_spill] sm:$0xff] %v12639_v4  ;;  %9445 = vmatpush3.bf16.msra.mxu0 %v9444_v14  ;;  %v17380_v4 = vld [vmem:[#allocation28_spill] sm:$0xff]  ;;  %v17381_v14 = vand.u32 4294901760, %v12586_v35  ;;  %v12682_v20 = vsub.f32 %v12588_v0, %v17383_v24  ;;  %v12717_v0 = vld [vmem:[#allocation5 + $0x360] sm:$0xff]  ;;  %17401 = vst [vmem:[#allocation69_spill] sm:$0xff] %v12735_v33 }
 0x141   :  { %17379 = vst [vmem:[#allocation27_spill] sm:$0xff] %v12671_v16  ;;  %9447 = vmatprep.subr.bf16.mxu0 %v9446_v31  ;;  %9473 = vmatpush3.bf16.msra.mxu1 %v17380_v4  ;;  %v17388_v31 = vand.u32 4294901760, %v12599_v32  ;;  %v17390_v16 = vld [vmem:[#allocation35_spill] sm:$0xff]  ;;  %17397 = vst [vmem:[#allocation45_spill] sm:$0xff] %v12717_v0 }
 0x142   :  { %v12677_v61 = vsub.f32 %v12586_v35, %v17381_v14  ;;  %17384 = vst [vmem:[#allocation29_spill] sm:$0xff] %v12682_v20  ;;  %9475 = vmatprep.subr.bf16.mxu1 %v17390_v16  ;;  %v17391_v14 = vand.u32 4294901760, %v17362_v58  ;;  %v17392_v35 = vand.u32 4294901760, %v12604_v1  ;;  %v17399_v58 = vand.u32 4294901760, %v12631_v9  ;;  %17406 = vst [vmem:[#allocation71_spill] sm:$0xff] %v12760_v51 }
 0x143   :  { %v12692_v27 = vpack.c.bf16 %v17388_v31, %v17387_v50  ;;  %v17394_v50 = vand.u32 4294901760, %v12617_v41 }
 0x144   :  { %17382 = vst [vmem:[#allocation34_spill] sm:$0xff] %v12677_v61  ;;  %2701 = vmatprep.mubr.f32.mxu1 %v17391_v14  ;;  %v12700_v24 = vsub.f32 %v12604_v1, %v17392_v35  ;;  %v16432_v14 = vand.u32 4294901760, %v12645_v39  ;;  %9449 = vmatpush3.bf16.msra.mxu0 %v9448_v22  ;;  %v9454_v35 = vpack.c.bf16 %v11927_v30, %v11922_v62  ;;  %v17402_v1 = vand.u32 4294901760, %v12653_v54 }
 0x145   :  { %17389 = vst [vmem:[#allocation37_spill] sm:$0xff] %v12692_v27  ;;  %v12710_v31 = vsub.f32 %v12617_v41, %v17394_v50  ;;  %v12715_v27 = vld [vmem:[#allocation5 + $0x3e8] sm:$0xff]  ;;  %v17398_v50 = vand.u32 4294901760, %v12615_v23  ;;  %9451 = vmatprep.subr.bf16.mxu0 %v9450_v26  ;;  %9477 = vmatpush3.bf16.msra.mxu1 %v12289_v34  ;;  %v9456_v22 = vpack.c.bf16 %v11955_v47, %v11941_v21  ;;  %v17404_v62 = vand.u32 4294901760, %v12658_v55 }
 0x146   :  { %17393 = vst [vmem:[#allocation43_spill] sm:$0xff] %v12700_v24  ;;  %17396 = vst [vmem:[#allocation41_spill] sm:$0xff] %v12715_v27  ;;  %v12741_v7 = vpack.c.bf16 %v17402_v1, %v16432_v14  ;;  %9479 = vmatprep.subr.bf16.mxu1 %v12307_v28  ;;  %v17407_v30 = vand.u32 4294901760, %v12684_v29  ;;  %v12775_v14 = vld [vmem:[#allocation5 + $0x370] sm:$0xff]  ;;  %v17412_v26 = vand.u32 4294901760, %v12677_v61 }
 0x147   :  { %17395 = vst [vmem:[#allocation44_spill] sm:$0xff] %v12710_v31  ;;  %v12727_v41 = vpack.c.bf16 %v17399_v58, %v17398_v50  ;;  %v12751_v47 = vsub.f32 %v12658_v55, %v17404_v62  ;;  %v17405_v50 = vand.u32 4294901760, %v12665_v59  ;;  %v17408_v62 = vand.u32 4294901760, %v12686_v52  ;;  %17411 = vst [vmem:[#allocation74_spill] sm:$0xff] %v12775_v14 }
 0x148   :  { %17403 = vst [vmem:[#allocation70_spill] sm:$0xff] %v12741_v7  ;;  %9453 = vmatpush3.bf16.msra.mxu0 %v9452_v8  ;;  %v12765_v21 = vsub.f32 %v12684_v29, %v17407_v30  ;;  %v12773_v7 = vld [vmem:[#allocation5 + $0x3f8] sm:$0xff]  ;;  %v17413_v8 = vand.u32 4294901760, %v12682_v20  ;;  %v17415_v30 = vld [vmem:[#allocation12_spill] sm:$0xff] }
 0x149   :  { %17400 = vst [vmem:[#allocation67_spill] sm:$0xff] %v12727_v41  ;;  %v12756_v1 = vsub.f32 %v12665_v59, %v17405_v50  ;;  %v12770_v58 = vsub.f32 %v12686_v52, %v17408_v62  ;;  %17410 = vst [vmem:[#allocation73_spill] sm:$0xff] %v12773_v7  ;;  %9455 = vmatprep.subr.bf16.mxu0 %v9454_v35  ;;  %9481 = vmatpush3.bf16.msra.mxu1 %v12316_v43  ;;  %v12788_v50 = vld [vmem:[#allocation5 + $0x378] sm:$0xff]  ;;  %v17417_v52 = vand.u32 4294901760, %v12700_v24 }
 0x14a   :  { %v12781_v41 = vpack.c.bf16 %v17413_v8, %v17412_v26  ;;  %v9458_v29 = vpack.c.bf16 %v11984_v3, %v17415_v30  ;;  %v9460_v62 = vpack.c.bf16 %v11996_v56, %v11991_v46  ;;  %17416 = vst [vmem:[#allocation39_spill] sm:$0xff] %v12788_v50  ;;  %v17418_v59 = vand.u32 4294901760, %v12710_v31  ;;  %v17420_v20 = vld [vmem:[#allocation49_spill] sm:$0xff] }
 0x14b   :  { %17409 = vst [vmem:[#allocation72_spill] sm:$0xff] %v12770_v58  ;;  %9483 = vmatprep.subr.bf16.mxu1 %v17420_v20  ;;  %v17421_v35 = vand.u32 4294901760, %v12705_v45  ;;  %v17423_v3 = vand.u32 4294901760, %v12715_v27  ;;  %v17425_v56 = vand.u32 4294901760, %v12717_v0  ;;  %v16441_v30 = vand.u32 4294901760, %v12751_v47 }
 0x14c   :  { %17414 = vst [vmem:[#allocation38_spill] sm:$0xff] %v12781_v41  ;;  %v12794_v55 = vpack.c.bf16 %v17418_v59, %v17417_v52  ;;  %9457 = vmatpush3.bf16.msra.mxu0 %v9456_v22  ;;  %v17427_v41 = vand.u32 4294901760, %v12735_v33  ;;  %v16442_v59 = vand.u32 4294901760, %v12770_v58  ;;  %v9462_v52 = vpack.c.bf16 %v12010_v63, %v12002_v38 }
 0x14d   :  { %v12800_v26 = vsub.f32 %v12705_v45, %v17421_v35  ;;  %v12805_v8 = vsub.f32 %v12715_v27, %v17423_v3  ;;  %v12810_v46 = vsub.f32 %v12717_v0, %v17425_v56  ;;  %v16443_v56 = vand.u32 4294901760, %v12765_v21  ;;  %9459 = vmatprep.subr.bf16.mxu0 %v9458_v29  ;;  %9485 = vmatpush3.bf16.msra.mxu1 %v12350_v13 }
 0x14e   :  { %17419 = vst [vmem:[#allocation42_spill] sm:$0xff] %v12794_v55  ;;  %v16440_v55 = vand.u32 4294901760, %v12756_v1  ;;  %v12820_v3 = vsub.f32 %v12735_v33, %v17427_v41  ;;  %9487 = vmatprep.subr.bf16.mxu1 %v12360_v12  ;;  %v7342_v41 = vpop.f32.mrb[0].mxu0  ;;  %v9464_v27 = vpack.c.bf16 %v12020_v11, %v12015_v57  ;;  %v17430_v35 = vand.u32 4294901760, %v12760_v51  ;;  %v17440_v57 = vld [vmem:[#allocation23_spill] sm:$0xff] }
 0x14f   :  { %17422 = vst [vmem:[#allocation25_spill] sm:$0xff] %v12800_v26  ;;  %17424 = vst [vmem:[#allocation65_spill] sm:$0xff] %v12805_v8  ;;  %v12846_v38 = vpack.c.bf16 %v16442_v59, %v16443_v56  ;;  %v7343_v63 = vpop.f32.mrb[1].mxu0  ;;  %v7309_v59 = vld [vmem:[%s16222_s2] ss:$0 sm:$0xff]  ;;  %v17443_v33 = vand.u32 4294901760, %v12805_v8 }
 0x150   :  { %17426 = vst [vmem:[#allocation66_spill] sm:$0xff] %v12810_v46  ;;  %17428 = vst [vmem:[#allocation68_spill] sm:$0xff] %v12820_v3  ;;  %v12832_v22 = vpack.c.bf16 %v16440_v55, %v16441_v30  ;;  %v12840_v29 = vsub.f32 %v12760_v51, %v17430_v35  ;;  %v17433_v55 = vand.u32 4294901760, %v12773_v7  ;;  %9461 = vmatpush3.bf16.msra.mxu0 %v9460_v62  ;;  %v17441_v35 = vld [vmem:[#allocation75_spill] sm:$0xff]  ;;  %v17442_v51 = vand.u32 4294901760, %v12800_v26  ;;  %v17447_v26 = vld [vmem:[#allocation76_spill] sm:$0xff] }
 0x151   :  { %17432 = vst [vmem:[#allocation28_spill] sm:$0xff] %v12846_v38  ;;  %v7344_v56 = vadd.f32 %v7343_v63, %v7342_v41  ;;  %v17437_v38 = vand.u32 4294901760, %v12788_v50  ;;  %9463 = vmatprep.subr.bf16.mxu0 %v9462_v52  ;;  %v9466_v62 = vpack.c.bf16 %v17441_v35, %v17440_v57  ;;  %v17445_v63 = vld [vmem:[#allocation50_spill] sm:$0xff]  ;;  %v17448_v8 = vld [vmem:[#allocation77_spill] sm:$0xff]  ;;  %s10613_s2 = smov [#allocation7]  }
 0x152   :  { %17429 = vst [vmem:[#allocation48_spill] sm:$0xff] %v12832_v22  ;;  %17431 = vst [vmem:[#allocation36_spill] sm:$0xff] %v12840_v29  ;;  %v12851_v30 = vsub.f32 %v12773_v7, %v17433_v55  ;;  %v17435_v22 = vand.u32 4294901760, %v12775_v14  ;;  %v16464_v7 = vand.u32 4294901760, %v12810_v46  ;;  %v12877_v41 = vpack.c.bf16 %v17443_v33, %v17442_v51  ;;  %s7299_s11 = sshll.u32 %s10613_s2, 4  ;;  %s7300_s11 = int_to_ptr.vmem [resolvable:$true] %s7299_s11 }
 0x153   :  { %v12866_v55 = vsub.f32 %v12788_v50, %v17437_v38  ;;  %v505_v52 = vadd.f32 %v7344_v56, %v7309_v59  ;;  %v7377_v50 = vpop.f32.mrb[0].mxu1  ;;  %v16459_v0 = vand.u32 4294901760, %v12840_v29  ;;  %v9468_v51 = vpack.c.bf16 %v17448_v8, %v17447_v26  ;;  %v17453_v8 = vld [vmem:[#allocation30_spill] sm:$0xff]  ;;  %v17454_v56 = vld [vmem:[#allocation79_spill] sm:$0xff]  ;;  %s10580_s12 = scalar_lea.vmem %s7300_s11, 32  ;;  %p10585_p3 = scmp.lt.s32.totalorder %s7300_s11, %s7300_s11 }
 0x154   :  { %17434 = vst [vmem:[#allocation35_spill] sm:$0xff] %v12851_v30  ;;  %v12856_v11 = vsub.f32 %v12775_v14, %v17435_v22  ;;  %v16463_v22 = vand.u32 4294901760, %v12820_v3  ;;  %v17439_v14 = vld [vmem:[#allocation40_spill] sm:$0xff]  ;;  %v16458_v57 = vand.u32 4294901760, %v12851_v30  ;;  %9465 = vmatpush3.bf16.msra.mxu0 %v9464_v27  ;;  %v7378_v35 = vpop.f32.mrb[1].mxu1  ;;  %v17449_v3 = vld [vmem:[#allocation15_spill] sm:$0xff]  ;;  %p10581_p2 = scmp.ne.s32.totalorder %s7300_s11, %s10580_s12  ;;  %p10586_p4 = scmp.lt.s32.totalorder %s10580_s12, %s10580_s12 }
 0x155   :  { %17438 = vst [vmem:[#allocation49_spill] sm:$0xff] %v12866_v55  ;;  %9489 = vmatpush3.bf16.msra.mxu1 %v17439_v14  ;;  %17444 = vst [vmem:[#allocation40_spill] sm:$0xff] %v12877_v41  ;;  %v16461_v41 = vand.u32 4294901760, %v12866_v55  ;;  %v7379_v46 = vadd.f32 %v7378_v35, %v7377_v50  ;;  %9467 = vmatprep.subr.bf16.mxu0 %v9466_v62  ;;  %v17452_v50 = vld [vmem:[#allocation78_spill] sm:$0xff]  ;;  %v17456_v35 = vld [vmem:[#allocation47_spill] sm:$0xff] }
 0x156   :  { %17436 = vst [vmem:[#allocation12_spill] sm:$0xff] %v12856_v11  ;;  %9491 = vmatprep.subr.bf16.mxu1 %v17445_v63  ;;  %v12884_v38 = vpack.c.bf16 %v16463_v22, %v16464_v7  ;;  %v16462_v33 = vand.u32 4294901760, %v12856_v11  ;;  %v12897_v59 = vpack.c.bf16 %v16458_v57, %v16459_v0  ;;  %v17455_v62 = vld [vmem:[#allocation46_spill] sm:$0xff]  ;;  %v329_v57 = vcombine.high %v17456_v35, %v17456_v35  ;;  %v17457_v0 = vld [vmem:[#allocation80_spill] sm:$0xff]  ;;  %p10587_p5 = por %p10586_p4, %p10585_p3 }
 0x157   :  { %v737_v26 = vadd.f32 %v7379_v46, %v505_v52  ;;  %v17458_v46 = vld [vmem:[#allocation81_spill] sm:$0xff]  ;;  %v17459_v52 = vand.u32 4294901760, %v17453_v8  ;;  %v17463_v35 = vld [vmem:[#allocation84_spill] sm:$0xff] }
 0x158   :  { %17446 = vst [vmem:[#allocation23_spill] sm:$0xff] %v12884_v38  ;;  %17450 = vst [vmem:[#allocation75_spill] sm:$0xff] %v12897_v59  ;;  %v12904_v27 = vpack.c.bf16 %v16461_v41, %v16462_v33  ;;  %9469 = vmatpush3.bf16.msra.mxu0 %v9468_v51  ;;  %v17460_v51 = vld [vmem:[#allocation11_spill] sm:$0xff]  ;;  %v17488_v41 = vld [vmem:[#allocation20_spill] sm:$0xff]  ;;  %p10588_p6 = pnand %p10587_p5, %p10581_p2 }
 0x159   :  { %9493 = vmatpush3.bf16.msra.mxu1 %v17449_v3  ;;  %9503 = vmatprep.subr.bf16.mxu0 %v17452_v50  ;;  %v12921_v50 = vrot.slane %v329_v57, %v17460_v51  ;;  %v17464_v57 = vld [vmem:[#allocation85_spill] sm:$0xff]  ;;  %v17507_v59 = vld [vmem:[#allocation56_spill] sm:$0xff] }
 0x15a   :  { %9495 = vmatprep.subr.bf16.mxu1 %v12406_v18  ;;  %17451 = vst [vmem:[#allocation50_spill] sm:$0xff] %v12904_v27  ;;  %v17509_v38 = vld [vmem:[#allocation57_spill] sm:$0xff] }
 0x15b   :  { %2597 = vmatmul.mubr.f32.vlgmr.msra.gmra.mrb[14].mxu0 %v17453_v8  ;;  %v17510_v51 = vand.u32 4294901760, %v17509_v38  ;;  %v17515_v38 = vld [vmem:[#allocation59_spill] sm:$0xff] }
 0x15c   :  { %9505 = vmatpush3.bf16.msra.mxu0 %v17454_v56  ;;  %2871 = vmatprep.mubr.f32.mxu0 %v17455_v62  ;;  %v17461_v56 = vld [vmem:[#allocation82_spill] sm:$0xff] }
 0x15d   :  { %9497 = vmatpush3.bf16.msra.mxu1 %v12415_v19  ;;  %9507 = vmatprep.subr.bf16.mxu0 %v17457_v0  ;;  %v17462_v0 = vld [vmem:[#allocation83_spill] sm:$0xff] }
 0x15e   :  { %9499 = vmatprep.subr.bf16.mxu1 %v12421_v2 }
 0x160   :  { %9509 = vmatpush3.bf16.msra.mxu0 %v17458_v46  ;;  %v17468_v46 = vld [vmem:[#allocation88_spill] sm:$0xff] }
 0x161   :  { %9501 = vmatpush3.bf16.msra.mxu1 %v12434_v15  ;;  %9511 = vmatprep.subr.bf16.mxu0 %v17461_v56  ;;  %v17469_v56 = vld [vmem:[#allocation89_spill] sm:$0xff] }
 0x162   :  { %9535 = vmatprep.subr.bf16.mxu1 %v17373_v5  ;;  %v345_v5 = vcombine.high %v12921_v50, %v12921_v50 }
 0x164   :  { %2705 = vmatmul.mubr.f32.vlgmr.msra.gmra.mrb[14].mxu1 %v17459_v52  ;;  %9513 = vmatpush3.bf16.msra.mxu0 %v17462_v0  ;;  %v12934_v8 = vand.u32 4294901760, %v345_v5  ;;  %v17470_v0 = vld [vmem:[#allocation90_spill] sm:$0xff] }
 0x165   :  { %9537 = vmatpush3.bf16.msra.mxu1 %v17380_v4  ;;  %2975 = vmatprep.mubr.f32.mxu1 %v17455_v62  ;;  %v17466_v4 = vld [vmem:[#allocation86_spill] sm:$0xff] }
 0x166   :  { %9539 = vmatprep.subr.bf16.mxu1 %v17390_v16  ;;  %9515 = vmatprep.subr.bf16.mxu0 %v17463_v35  ;;  %17465 = vst [vmem:[#allocation76_spill] sm:$0xff] %v12934_v8  ;;  %v17467_v16 = vld [vmem:[#allocation87_spill] sm:$0xff]  ;;  %v12941_v62 = vsub.f32 %v345_v5, %v12934_v8  ;;  %v17472_v35 = vand.u32 4294901760, %v12500_v6 }
 0x168   :  { %9517 = vmatpush3.bf16.msra.mxu0 %v17464_v57 }
 0x169   :  { %9541 = vmatpush3.bf16.msra.mxu1 %v12289_v34  ;;  %9519 = vmatprep.subr.bf16.mxu0 %v17466_v4  ;;  %v7412_v34 = vpop.f32.mrb[2].mxu0  ;;  %v17473_v4 = vld [vmem:[#allocation91_spill] sm:$0xff] }
 0x16a   :  { %9543 = vmatprep.subr.bf16.mxu1 %v12307_v28  ;;  %v7413_v28 = vpop.f32.mrb[3].mxu0 }
 0x16b   :  { %v7414_v52 = vadd.f32 %v7413_v28, %v7412_v34  ;;  %v17476_v28 = vld [vmem:[#allocation52_spill] sm:$0xff] }
 0x16c   :  { %9521 = vmatpush3.bf16.msra.mxu0 %v17467_v16 }
 0x16d   :  { %9545 = vmatpush3.bf16.msra.mxu1 %v12316_v43  ;;  %9523 = vmatprep.subr.bf16.mxu0 %v17468_v46  ;;  %v16460_v43 = vand.u32 4294901760, %v12941_v62  ;;  %v875_v57 = vadd.f32 %v7414_v52, %v737_v26  ;;  %v17474_v46 = vld [vmem:[#allocation51_spill] sm:$0xff] }
 0x16e   :  { %9547 = vmatprep.subr.bf16.mxu1 %v17420_v20  ;;  %v17471_v20 = vand.u32 4294901760, %v12488_v10  ;;  %v17475_v34 = vand.u32 4294901760, %v17474_v46  ;;  %v17480_v46 = vand.u32 4294901760, %v12513_v25 }
 0x16f   :  { %v3081_v26 = vsub.f32 %v12941_v62, %v16460_v43 }
 0x170   :  { %9525 = vmatpush3.bf16.msra.mxu0 %v17469_v56  ;;  %v3210_v5 = vsub.f32 %v12488_v10, %v17471_v20  ;;  %v17477_v56 = vand.u32 4294901760, %v17476_v28  ;;  %v17481_v28 = vand.u32 4294901760, %v12528_v60 }
 0x171   :  { %9549 = vmatpush3.bf16.msra.mxu1 %v12350_v13  ;;  %9527 = vmatprep.subr.bf16.mxu0 %v17470_v0  ;;  %v3217_v13 = vsub.f32 %v12500_v6, %v17472_v35  ;;  %v17478_v0 = vand.u32 4294901760, %v12508_v37  ;;  %v3082_v22 = vand.u32 4294901760, %v3081_v26 }
 0x172   :  { %9551 = vmatprep.subr.bf16.mxu1 %v12360_v12  ;;  %v7447_v12 = vpop.f32.mrb[2].mxu1  ;;  %v3211_v35 = vand.u32 4294901760, %v3210_v5 }
 0x173   :  { %v7448_v16 = vpop.f32.mrb[3].mxu1  ;;  %v3098_v20 = vsub.f32 %v12508_v37, %v17478_v0  ;;  %v17482_v0 = vand.u32 4294901760, %v12533_v48 }
 0x174   :  { %9529 = vmatpush3.bf16.msra.mxu0 %v17473_v4  ;;  %v7449_v52 = vadd.f32 %v7448_v16, %v7447_v12  ;;  %v3218_v4 = vand.u32 4294901760, %v3217_v13  ;;  %v17484_v13 = vand.u32 4294901760, %v12546_v17 }
 0x175   :  { %9553 = vmatpush3.bf16.msra.mxu1 %v17439_v14  ;;  %v12962_v14 = vpack.c.bf16 %v17477_v56, %v17475_v34  ;;  %v3105_v34 = vsub.f32 %v12513_v25, %v17480_v46  ;;  %v3224_v56 = vsub.f32 %v12528_v60, %v17481_v28  ;;  %v3231_v12 = vsub.f32 %v12533_v48, %v17482_v0  ;;  %v17485_v46 = vld [vmem:[#allocation93_spill] sm:$0xff] }
 0x176   :  { %9555 = vmatprep.subr.bf16.mxu1 %v17445_v63  ;;  %v17479_v63 = vld [vmem:[#allocation92_spill] sm:$0xff]  ;;  %v12982_v16 = vadd.f32 %v7449_v52, %v875_v57  ;;  %v17489_v28 = vand.u32 4294901760, %v17488_v41  ;;  %v17490_v57 = vand.u32 4294901760, %v12469_v49  ;;  %v17491_v52 = vld [vmem:[#allocation53_spill] sm:$0xff]  ;;  %v3099_v7 = vand.u32 4294901760, %v3098_v20 }
 0x177   :  { %9531 = vmatprep.subr.bf16.mxu0 %v17479_v63  ;;  %v3119_v63 = vsub.f32 %v12546_v17, %v17484_v13  ;;  %v17492_v0 = vand.u32 4294901760, %v17491_v52  ;;  %v9598_v13 = vpack.c.bf16 %v3218_v4, %v3211_v35  ;;  %v3232_v41 = vand.u32 4294901760, %v3231_v12  ;;  %v17499_v12 = vld [vmem:[#allocation63_spill] sm:$0xff] }
 0x178   :  { %9533 = vmatpush3.bf16.msra.mxu0 %v17485_v46  ;;  %v3106_v46 = vand.u32 4294901760, %v3105_v34  ;;  %v17495_v35 = vand.u32 4294901760, %v12574_v40  ;;  %v17497_v34 = vld [vmem:[#allocation54_spill] sm:$0xff]  ;;  %v17500_v52 = vand.u32 4294901760, %v17499_v12  ;;  %v17512_v12 = vand.u32 4294901760, %v12631_v9 }
 0x179   :  { %9557 = vmatpush3.bf16.msra.mxu1 %v17449_v3  ;;  %v17483_v3 = vand.u32 4294901760, %v12541_v44  ;;  %9567 = vmatprep.subr.bf16.mxu0 %v12962_v14 }
 0x17a   :  { %9559 = vmatprep.subr.bf16.mxu1 %v12406_v18  ;;  %v17486_v18 = vld [vmem:[#allocation21_spill] sm:$0xff]  ;;  %v3126_v20 = vsub.f32 %v12574_v40, %v17495_v35  ;;  %v17508_v35 = vand.u32 4294901760, %v17507_v59  ;;  %v17513_v59 = vld [vmem:[#allocation58_spill] sm:$0xff] }
 0x17b   :  { %v3112_v5 = vsub.f32 %v12541_v44, %v17483_v3  ;;  %v17487_v43 = vand.u32 4294901760, %v17486_v18  ;;  %v13003_v3 = vpack.c.bf16 %v17492_v0, %v17490_v57  ;;  %v3225_v18 = vand.u32 4294901760, %v3224_v56  ;;  %2873 = vmatmul.mubr.f32.vlgmr.msra.gmra.mrb[16].mxu0 %v12353_v36 }
 0x17c   :  { %v3120_v57 = vand.u32 4294901760, %v3119_v63  ;;  %v17498_v56 = vand.u32 4294901760, %v17497_v34  ;;  %v13036_v40 = vpack.c.bf16 %v17510_v51, %v17508_v35  ;;  %3083 = vmatprep.mubr.f32.mxu0 %v3082_v22  ;;  %v17511_v34 = vand.u32 4294901760, %v12615_v23 }
 0x17d   :  { %v12995_v33 = vpack.c.bf16 %v17489_v28, %v17487_v43  ;;  %9561 = vmatpush3.bf16.msra.mxu1 %v12415_v19  ;;  %v17493_v43 = vand.u32 4294901760, %v12556_v42  ;;  %v17494_v28 = vand.u32 4294901760, %v12569_v53  ;;  %v3113_v49 = vand.u32 4294901760, %v3112_v5  ;;  %v17504_v5 = vld [vmem:[#allocation55_spill] sm:$0xff] }
 0x17e   :  { %9563 = vmatprep.subr.bf16.mxu1 %v12421_v2  ;;  %v17496_v2 = vand.u32 4294901760, %v12599_v32  ;;  %v13024_v0 = vpack.c.bf16 %v17500_v52, %v17498_v56  ;;  %v17505_v63 = vand.u32 4294901760, %v17504_v5  ;;  %v3252_v56 = vsub.f32 %v12615_v23, %v17511_v34 }
 0x17f   :  { %v3238_v26 = vsub.f32 %v12556_v42, %v17493_v43  ;;  %v3245_v19 = vsub.f32 %v12569_v53, %v17494_v28  ;;  %9569 = vmatpush3.bf16.msra.mxu0 %v12995_v33  ;;  %v17502_v43 = vld [vmem:[#allocation18_spill] sm:$0xff]  ;;  %v3259_v52 = vsub.f32 %v12631_v9, %v17512_v12  ;;  %v17516_v51 = vand.u32 4294901760, %v17515_v38  ;;  %v17525_v38 = vld [vmem:[#allocation60_spill] sm:$0xff] }
 0x180   :  { %v3133_v4 = vsub.f32 %v12599_v32, %v17496_v2  ;;  %17501 = vst [vmem:[#allocation77_spill] sm:$0xff] %v13024_v0  ;;  %v17503_v28 = vand.u32 4294901760, %v17502_v43  ;;  %9571 = vmatprep.subr.bf16.mxu0 %v13003_v3  ;;  %v9600_v2 = vpack.c.bf16 %v3106_v46, %v3099_v7  ;;  %v17514_v43 = vand.u32 4294901760, %v17513_v59 }
 0x181   :  { %9565 = vmatpush3.bf16.msra.mxu1 %v12434_v15  ;;  %v9602_v22 = vpack.c.bf16 %v3232_v41, %v3225_v18  ;;  %v3239_v5 = vand.u32 4294901760, %v3238_v26  ;;  %v9604_v15 = vpack.c.bf16 %v3120_v57, %v3113_v49  ;;  %v3127_v7 = vand.u32 4294901760, %v3126_v20  ;;  %v17521_v41 = vld [vmem:[#allocation29_spill] sm:$0xff] }
 0x182   :  { %v13030_v27 = vpack.c.bf16 %v17505_v63, %v17503_v28  ;;  %9599 = vmatprep.subr.bf16.mxu1 %v9598_v13  ;;  %v13050_v28 = vpack.c.bf16 %v17516_v51, %v17514_v43  ;;  %v3246_v63 = vand.u32 4294901760, %v3245_v19  ;;  %v3134_v46 = vand.u32 4294901760, %v3133_v4 }
 0x183   :  { %v17518_v35 = vand.u32 4294901760, %v12645_v39  ;;  %9573 = vmatpush3.bf16.msra.mxu0 %v13024_v0  ;;  %v17519_v13 = vand.u32 4294901760, %v12653_v54  ;;  %v17520_v59 = vand.u32 4294901760, %v12677_v61  ;;  %v17522_v26 = vand.u32 4294901760, %v17521_v41 }
 0x184   :  { %17506 = vst [vmem:[#allocation15_spill] sm:$0xff] %v13030_v27  ;;  %17517 = vst [vmem:[#allocation78_spill] sm:$0xff] %v13050_v28  ;;  %2977 = vmatmul.mubr.f32.vlgmr.msra.gmra.mrb[16].mxu1 %v12353_v36  ;;  %9575 = vmatprep.subr.bf16.mxu0 %v13030_v27  ;;  %v3253_v49 = vand.u32 4294901760, %v3252_v56  ;;  %v3260_v57 = vand.u32 4294901760, %v3259_v52  ;;  %v17523_v20 = vand.u32 4294901760, %v12700_v24  ;;  %v17524_v4 = vand.u32 4294901760, %v12710_v31 }
 0x185   :  { %v3140_v34 = vsub.f32 %v12645_v39, %v17518_v35  ;;  %v3147_v12 = vsub.f32 %v12653_v54, %v17519_v13  ;;  %v3266_v18 = vsub.f32 %v12677_v61, %v17520_v59  ;;  %v3273_v19 = vsub.f32 %v17521_v41, %v17522_v26  ;;  %9601 = vmatpush3.bf16.msra.mxu1 %v9600_v2  ;;  %v17527_v35 = vld [vmem:[#allocation61_spill] sm:$0xff]  ;;  %v17532_v2 = vld [vmem:[#allocation64_spill] sm:$0xff] }
 0x186   :  { %v3154_v36 = vsub.f32 %v12700_v24, %v17523_v20  ;;  %v3161_v43 = vsub.f32 %v12710_v31, %v17524_v4  ;;  %9603 = vmatprep.subr.bf16.mxu1 %v9602_v22  ;;  %v17526_v51 = vand.u32 4294901760, %v17525_v38  ;;  %v17528_v13 = vand.u32 4294901760, %v17527_v35  ;;  %v17530_v26 = vld [vmem:[#allocation13_spill] sm:$0xff]  ;;  %3319 = vmatprep.mubr.f32.mxu1 %v12934_v8  ;;  %v17536_v61 = vld [vmem:[#allocation16_spill] sm:$0xff]  ;;  %v17539_v31 = vld [vmem:[#allocation22_spill] sm:$0xff] }
 0x187   :  { %v17531_v27 = vand.u32 4294901760, %v17530_v26  ;;  %v17533_v56 = vand.u32 4294901760, %v17532_v2  ;;  %v9606_v41 = vpack.c.bf16 %v3246_v63, %v3239_v5  ;;  %v17534_v20 = vld [vmem:[#allocation17_spill] sm:$0xff]  ;;  %v17537_v4 = vand.u32 4294901760, %v17536_v61  ;;  %9577 = vmatpush3.bf16.msra.mxu0 %v13036_v40 }
 0x188   :  { %v13077_v59 = vpack.c.bf16 %v17528_v13, %v17526_v51  ;;  %v17535_v24 = vand.u32 4294901760, %v17534_v20  ;;  %v9608_v38 = vpack.c.bf16 %v3134_v46, %v3127_v7  ;;  %v17540_v35 = vand.u32 4294901760, %v17539_v31  ;;  %v17541_v51 = vld [vmem:[#allocation26_spill] sm:$0xff]  ;;  %9579 = vmatprep.subr.bf16.mxu0 %v13050_v28  ;;  %v17546_v31 = vld [vmem:[#allocation33_spill] sm:$0xff] }
 0x189   :  { %v13083_v52 = vpack.c.bf16 %v17533_v56, %v17531_v27  ;;  %v17542_v13 = vand.u32 4294901760, %v17541_v51  ;;  %v13099_v26 = vand.u32 4294901760, %v12921_v50  ;;  %v3141_v27 = vand.u32 4294901760, %v3140_v34  ;;  %9605 = vmatpush3.bf16.msra.mxu1 %v9604_v15 }
 0x18a   :  { %17529 = vst [vmem:[#allocation30_spill] sm:$0xff] %v13077_v59  ;;  %v13090_v22 = vpack.c.bf16 %v17537_v4, %v17535_v24  ;;  %v3148_v5 = vand.u32 4294901760, %v3147_v12  ;;  %v3267_v63 = vand.u32 4294901760, %v3266_v18  ;;  %v3274_v2 = vand.u32 4294901760, %v3273_v19  ;;  %v17544_v24 = vld [vmem:[#allocation32_spill] sm:$0xff]  ;;  %9607 = vmatprep.subr.bf16.mxu1 %v9606_v41 }
 0x18b   :  { %v13096_v0 = vpack.c.bf16 %v17542_v13, %v17540_v35  ;;  %v9610_v61 = vpack.c.bf16 %v3260_v57, %v3253_v49  ;;  %v17545_v7 = vand.u32 4294901760, %v17544_v24  ;;  %v17547_v46 = vand.u32 4294901760, %v17546_v31  ;;  %v17555_v24 = vld [vmem:[#allocation25_spill] sm:$0xff]  ;;  %9581 = vmatpush3.bf16.msra.mxu0 %v13077_v59 }
 0x18c   :  { %17538 = vst [vmem:[#allocation79_spill] sm:$0xff] %v13090_v22  ;;  %v3155_v20 = vand.u32 4294901760, %v3154_v36  ;;  %v3162_v4 = vand.u32 4294901760, %v3161_v43  ;;  %v17548_v35 = vand.u32 4294901760, %v12751_v47  ;;  %v17549_v12 = vand.u32 4294901760, %v12756_v1  ;;  %v17553_v43 = vld [vmem:[#allocation41_spill] sm:$0xff]  ;;  %9583 = vmatprep.subr.bf16.mxu0 %v13083_v52 }
 0x18d   :  { %17543 = vst [vmem:[#allocation46_spill] sm:$0xff] %v13096_v0  ;;  %v13107_v56 = vpack.c.bf16 %v17547_v46, %v17545_v7  ;;  %v17550_v15 = vand.u32 4294901760, %v12765_v21  ;;  %v17551_v49 = vand.u32 4294901760, %v12770_v58  ;;  %v17552_v36 = vand.u32 4294901760, %v12705_v45  ;;  %v17557_v46 = vld [vmem:[#allocation65_spill] sm:$0xff]  ;;  %9609 = vmatpush3.bf16.msra.mxu1 %v9608_v38 }
 0x18e   :  { %v3280_v34 = vsub.f32 %v12751_v47, %v17548_v35  ;;  %v3287_v18 = vsub.f32 %v12756_v1, %v17549_v12  ;;  %v17554_v41 = vand.u32 4294901760, %v17553_v43  ;;  %v13129_v13 = vsub.f32 %v12921_v50, %v13099_v26  ;;  %v17563_v50 = vld [vmem:[#allocation66_spill] sm:$0xff]  ;;  %9611 = vmatprep.subr.bf16.mxu1 %v9610_v61 }
 0x18f   :  { %v3168_v19 = vsub.f32 %v12765_v21, %v17550_v15  ;;  %v3175_v57 = vsub.f32 %v12770_v58, %v17551_v49  ;;  %v17556_v7 = vand.u32 4294901760, %v17555_v24  ;;  %v17558_v35 = vand.u32 4294901760, %v17557_v46  ;;  %v17559_v49 = vld [vmem:[#allocation45_spill] sm:$0xff]  ;;  %9585 = vmatpush3.bf16.msra.mxu0 %v13090_v22 }
 0x190   :  { %v13125_v51 = vpack.c.bf16 %v17554_v41, %v17552_v36  ;;  %v9612_v15 = vpack.c.bf16 %v3148_v5, %v3141_v27  ;;  %v9614_v45 = vpack.c.bf16 %v3274_v2, %v3267_v63  ;;  %v17560_v43 = vand.u32 4294901760, %v17559_v49  ;;  %v17561_v36 = vld [vmem:[#allocation69_spill] sm:$0xff]  ;;  %v17569_v5 = vld [vmem:[#allocation68_spill] sm:$0xff]  ;;  %9587 = vmatprep.subr.bf16.mxu0 %v13096_v0 }
 0x191   :  { %v3294_v31 = vsub.f32 %v17555_v24, %v17556_v7  ;;  %v3301_v12 = vsub.f32 %v17557_v46, %v17558_v35  ;;  %v17562_v41 = vand.u32 4294901760, %v17561_v36  ;;  %v17564_v28 = vand.u32 4294901760, %v17563_v50  ;;  %v17565_v24 = vld [vmem:[#allocation71_spill] sm:$0xff]  ;;  %v17567_v46 = vld [vmem:[#allocation73_spill] sm:$0xff] }
 0x192   :  { %v9616_v7 = vpack.c.bf16 %v3162_v4, %v3155_v20  ;;  %v17566_v35 = vand.u32 4294901760, %v17565_v24  ;;  %v17568_v59 = vand.u32 4294901760, %v17567_v46  ;;  %v17570_v63 = vand.u32 4294901760, %v17569_v5  ;;  %v13163_v46 = vld [vmem:[#allocation5 + $0x488] sm:$0xff]  ;;  %9613 = vmatpush3.bf16.msra.mxu1 %v9612_v15  ;;  %v13199_v22 = vld [vmem:[#allocation5 + $0x490] sm:$0xff] }
 0x193   :  { %v13142_v8 = vpack.c.bf16 %v17562_v41, %v17560_v43  ;;  %v3182_v58 = vsub.f32 %v17563_v50, %v17564_v28  ;;  %v3281_v49 = vand.u32 4294901760, %v3280_v34  ;;  %v3288_v43 = vand.u32 4294901760, %v3287_v18  ;;  %v13157_v28 = vld [vmem:[#allocation5 + $0x480] sm:$0xff]  ;;  %17573 = vst [vmem:[#allocation80_spill] sm:$0xff] %v13163_v46  ;;  %9615 = vmatprep.subr.bf16.mxu1 %v9614_v45  ;;  %17583 = vst [vmem:[#allocation82_spill] sm:$0xff] %v13199_v22  ;;  %v13201_v45 = vld [vmem:[#allocation5 + $0x498] sm:$0xff] }
 0x194   :  { %v13152_v27 = vpack.c.bf16 %v17568_v59, %v17566_v35  ;;  %v3189_v2 = vsub.f32 %v17569_v5, %v17570_v63  ;;  %v3169_v36 = vand.u32 4294901760, %v3168_v19  ;;  %v3176_v41 = vand.u32 4294901760, %v3175_v57  ;;  %17571 = vst [vmem:[#allocation47_spill] sm:$0xff] %v13157_v28  ;;  %v17574_v35 = vld [vmem:[#allocation74_spill] sm:$0xff]  ;;  %v17576_v34 = vld [vmem:[#allocation39_spill] sm:$0xff]  ;;  %17584 = vst [vmem:[#allocation83_spill] sm:$0xff] %v13201_v45  ;;  %9589 = vmatpush3.bf16.msra.mxu0 %v13107_v56 }
 0x195   :  { %v3295_v20 = vand.u32 4294901760, %v3294_v31  ;;  %v3302_v4 = vand.u32 4294901760, %v3301_v12  ;;  %v17572_v24 = vand.u32 4294901760, %v12840_v29  ;;  %v17575_v61 = vand.u32 4294901760, %v17574_v35  ;;  %v13185_v57 = vld [vmem:[#allocation5 + $0x400] sm:$0xff]  ;;  %v13206_v15 = vld [vmem:[#allocation5 + $0x410] sm:$0xff]  ;;  %9591 = vmatprep.subr.bf16.mxu0 %v13125_v51 }
 0x196   :  { %v17577_v18 = vand.u32 4294901760, %v17576_v34  ;;  %v3183_v63 = vand.u32 4294901760, %v3182_v58  ;;  %v17578_v31 = vand.u32 4294901760, %v12851_v30  ;;  %v17579_v38 = vand.u32 4294901760, %v12856_v11  ;;  %17581 = vst [vmem:[#allocation81_spill] sm:$0xff] %v13185_v57  ;;  %v13187_v58 = vld [vmem:[#allocation5 + $0x408] sm:$0xff]  ;;  %9617 = vmatpush3.bf16.msra.mxu1 %v9616_v7 }
 0x197   :  { %v3308_v59 = vsub.f32 %v12840_v29, %v17572_v24  ;;  %v3190_v24 = vand.u32 4294901760, %v3189_v2  ;;  %v17580_v34 = vand.u32 4294901760, %v12866_v55  ;;  %v7482_v29 = vpop.f32.mrb[4].mxu0  ;;  %v9620_v0 = vpack.c.bf16 %v3176_v41, %v3169_v36  ;;  %17585 = vst [vmem:[#allocation84_spill] sm:$0xff] %v13206_v15 }
 0x198   :  { %v13170_v19 = vpack.c.bf16 %v17577_v18, %v17575_v61  ;;  %v3315_v12 = vsub.f32 %v12851_v30, %v17578_v31  ;;  %v3196_v35 = vsub.f32 %v12856_v11, %v17579_v38  ;;  %v9618_v31 = vpack.c.bf16 %v3288_v43, %v3281_v49  ;;  %v7483_v38 = vpop.f32.mrb[5].mxu0  ;;  %9593 = vmatpush3.bf16.msra.mxu0 %v13142_v8 }
 0x199   :  { %v3203_v61 = vsub.f32 %v12866_v55, %v17580_v34  ;;  %v16491_v2 = vand.u32 4294901760, %v13163_v46  ;;  %v17582_v11 = vand.u32 4294901760, %v13129_v13  ;;  %v9622_v18 = vpack.c.bf16 %v3302_v4, %v3295_v20  ;;  %9595 = vmatprep.subr.bf16.mxu0 %v13152_v27 }
 0x19a   :  { %v3309_v55 = vand.u32 4294901760, %v3308_v59  ;;  %v7484_v49 = vadd.f32 %v7483_v38, %v7482_v29  ;;  %v3316_v43 = vand.u32 4294901760, %v3315_v12  ;;  %v16494_v36 = vand.u32 4294901760, %v13185_v57  ;;  %v13216_v12 = vld [vmem:[#allocation5 + $0x4a0] sm:$0xff]  ;;  %9619 = vmatprep.subr.bf16.mxu1 %v9618_v31 }
 0x19b   :  { %v13195_v34 = vsub.f32 %v13129_v13, %v17582_v11  ;;  %v13208_v11 = vld [vmem:[#allocation5 + $0x418] sm:$0xff]  ;;  %v9624_v20 = vpack.c.bf16 %v3190_v24, %v3183_v63  ;;  %v3197_v4 = vand.u32 4294901760, %v3196_v35  ;;  %v3204_v59 = vand.u32 4294901760, %v3203_v61  ;;  %17588 = vst [vmem:[#allocation86_spill] sm:$0xff] %v13216_v12  ;;  %v13226_v24 = vld [vmem:[#allocation5 + $0x4a8] sm:$0xff]  ;;  %v13228_v35 = vld [vmem:[#allocation5 + $0x420] sm:$0xff]  ;;  %9621 = vmatpush3.bf16.msra.mxu1 %v9620_v0 }
 0x19c   :  { %17586 = vst [vmem:[#allocation85_spill] sm:$0xff] %v13208_v11  ;;  %v17587_v30 = vand.u32 4294901760, %v13157_v28  ;;  %v1151_v38 = vadd.f32 %v7484_v49, %v12982_v16  ;;  %v13222_v41 = vsub.f32 %v13163_v46, %v16491_v2  ;;  %17589 = vst [vmem:[#allocation87_spill] sm:$0xff] %v13228_v35  ;;  %v9626_v7 = vpack.c.bf16 %v3316_v43, %v3309_v55 }
 0x19d   :  { %v3088_v61 = vand.u32 4294901760, %v13195_v34  ;;  %v13239_v63 = vsub.f32 %v13185_v57, %v16494_v36  ;;  %v17590_v46 = vand.u32 4294901760, %v13187_v58  ;;  %v9628_v49 = vpack.c.bf16 %v3204_v59, %v3197_v4  ;;  %v13252_v36 = vld [vmem:[#allocation5 + $0x4b0] sm:$0xff]  ;;  %9623 = vmatprep.subr.bf16.mxu1 %v9622_v18  ;;  %v13266_v59 = vld [vmem:[#allocation5 + $0x4b8] sm:$0xff]  ;;  %9597 = vmatpush3.bf16.msra.mxu0 %v13170_v19 }
 0x19e   :  { %v13214_v29 = vsub.f32 %v13157_v28, %v17587_v30  ;;  %v7517_v30 = vpop.f32.mrb[4].mxu1  ;;  %v13247_v28 = vld [vmem:[#allocation5 + $0x428] sm:$0xff]  ;;  %17592 = vst [vmem:[#allocation89_spill] sm:$0xff] %v13252_v36  ;;  %v17593_v57 = vand.u32 4294901760, %v13199_v22  ;;  %v17594_v16 = vand.u32 4294901760, %v13201_v45  ;;  %17595 = vst [vmem:[#allocation90_spill] sm:$0xff] %v13266_v59 }
 0x19f   :  { %v7518_v2 = vpop.f32.mrb[5].mxu1  ;;  %v13244_v34 = vsub.f32 %v13187_v58, %v17590_v46  ;;  %17591 = vst [vmem:[#allocation88_spill] sm:$0xff] %v13247_v28  ;;  %v17596_v18 = vand.u32 4294901760, %v13206_v15  ;;  %v17599_v4 = vand.u32 4294901760, %v13216_v12  ;;  %9625 = vmatpush3.bf16.msra.mxu1 %v9624_v20 }
 0x1a0   :  { %v7519_v31 = vadd.f32 %v7518_v2, %v7517_v30  ;;  %v13257_v46 = vsub.f32 %v13199_v22, %v17593_v57  ;;  %v13262_v2 = vsub.f32 %v13201_v45, %v17594_v16  ;;  %v17597_v57 = vand.u32 4294901760, %v13208_v11  ;;  %v13281_v45 = vld [vmem:[#allocation5 + $0x430] sm:$0xff]  ;;  %9627 = vmatprep.subr.bf16.mxu1 %v9626_v7  ;;  %3089 = vmatmul.mubr.f32.vlgmr.msra.gmra.mrb[18].mxu0 %v3088_v61 }
 0x1a1   :  { %v13273_v43 = vsub.f32 %v13206_v15, %v17596_v18  ;;  %17598 = vst [vmem:[#allocation91_spill] sm:$0xff] %v13281_v45  ;;  %v13292_v15 = vld [vmem:[#allocation5 + $0x438] sm:$0xff]  ;;  %v17602_v16 = vand.u32 4294901760, %v13226_v24  ;;  %v17604_v0 = vand.u32 4294901760, %v13214_v29  ;;  %v17610_v18 = vand.u32 4294901760, %v13244_v34  ;;  %3456 = vmatprep.mubr.f32.mxu0 %v12941_v62 }
 0x1a2   :  { %v13268_v30 = vadd.f32 %v7519_v31, %v1151_v38  ;;  %v13278_v55 = vsub.f32 %v13208_v11, %v17597_v57  ;;  %v13287_v38 = vsub.f32 %v13216_v12, %v17599_v4  ;;  %17600 = vst [vmem:[#allocation51_spill] sm:$0xff] %v13292_v15  ;;  %v17601_v57 = vpack.c.bf16 %v12500_v6, %v12488_v10  ;;  %v13335_v10 = vld [vmem:[#allocation5 + $0x440] sm:$0xff] }
 0x1a3   :  { %v13300_v11 = vsub.f32 %v13226_v24, %v17602_v16  ;;  %v17603_v4 = vand.u32 4294901760, %v13228_v35  ;;  %v17605_v12 = vand.u32 4294901760, %v13222_v41  ;;  %v13317_v16 = vld [vmem:[#allocation5 + $0x4c0] sm:$0xff]  ;;  %17613 = vst [vmem:[#allocation20_spill] sm:$0xff] %v13335_v10  ;;  %v9638_v61 = vpack.c.bf16 %v12569_v53, %v12556_v42  ;;  %9629 = vmatpush3.bf16.msra.mxu1 %v9628_v49  ;;  %v13399_v49 = vld [vmem:[#allocation5 + $0x4d8] sm:$0xff] }
 0x1a4   :  { %9631 = vmatprep.subr.bf16.mxu0 %v17601_v57  ;;  %17607 = vst [vmem:[#allocation92_spill] sm:$0xff] %v13317_v16  ;;  %v13319_v57 = vld [vmem:[#allocation5 + $0x4c8] sm:$0xff]  ;;  %v17618_v6 = vand.u32 4294901760, %v13262_v2  ;;  %v17621_v53 = vand.u32 4294901760, %v13266_v59  ;;  %9663 = vmatprep.subr.bf16.mxu1 %v12962_v14  ;;  %17631 = vst [vmem:[#allocation56_spill] sm:$0xff] %v13399_v49 }
 0x1a5   :  { %v13305_v31 = vsub.f32 %v13228_v35, %v17603_v4  ;;  %v13312_v22 = vpack.c.bf16 %v17605_v12, %v17604_v0  ;;  %17608 = vst [vmem:[#allocation93_spill] sm:$0xff] %v13319_v57  ;;  %v17609_v4 = vand.u32 4294901760, %v13239_v63  ;;  %v17612_v12 = vand.u32 4294901760, %v13247_v28 }
 0x1a6   :  { %v17617_v0 = vand.u32 4294901760, %v13257_v46  ;;  %3321 = vmatmul.mubr.f32.vlgmr.msra.gmra.mrb[18].mxu1 %v13099_v26  ;;  %v17633_v42 = vand.u32 4294901760, %v13300_v11 }
 0x1a7   :  { %17606 = vst [vmem:[#allocation52_spill] sm:$0xff] %v13312_v22  ;;  %v13325_v35 = vpack.c.bf16 %v17610_v18, %v17609_v4  ;;  %v13330_v7 = vsub.f32 %v13247_v28, %v17612_v12  ;;  %v17614_v22 = vpack.c.bf16 %v12513_v25, %v12508_v37  ;;  %v17615_v18 = vand.u32 4294901760, %v13252_v36  ;;  %v13348_v12 = vld [vmem:[#allocation5 + $0x448] sm:$0xff]  ;;  %9665 = vmatpush3.bf16.msra.mxu1 %v12995_v33 }
 0x1a8   :  { %17616 = vst [vmem:[#allocation53_spill] sm:$0xff] %v13348_v12  ;;  %v13354_v20 = vpack.c.bf16 %v17618_v6, %v17617_v0  ;;  %v17620_v37 = vpack.c.bf16 %v12533_v48, %v12528_v60  ;;  %v13362_v25 = vsub.f32 %v13266_v59, %v17621_v53  ;;  %v17626_v60 = vand.u32 4294901760, %v13281_v45  ;;  %9667 = vmatprep.subr.bf16.mxu1 %v13003_v3  ;;  %v17657_v59 = vld [vmem:[#allocation44_spill] sm:$0xff] }
 0x1a9   :  { %17611 = vst [vmem:[#allocation21_spill] sm:$0xff] %v13325_v35  ;;  %9633 = vmatpush3.bf16.msra.mxu0 %v17614_v22  ;;  %v13346_v4 = vsub.f32 %v13252_v36, %v17615_v18  ;;  %v17623_v18 = vand.u32 4294901760, %v13273_v43  ;;  %v17624_v35 = vand.u32 4294901760, %v13278_v55  ;;  %v17627_v53 = vand.u32 4294901760, %v13292_v15 }
 0x1aa   :  { %17619 = vst [vmem:[#allocation54_spill] sm:$0xff] %v13354_v20  ;;  %9635 = vmatprep.subr.bf16.mxu0 %v17620_v37  ;;  %17622 = vst [vmem:[#allocation63_spill] sm:$0xff] %v13362_v25  ;;  %v13376_v48 = vsub.f32 %v13281_v45, %v17626_v60  ;;  %v17629_v60 = vpack.c.bf16 %v12546_v17, %v12541_v44  ;;  %v17630_v37 = vld [vmem:[#allocation62_spill] sm:$0xff]  ;;  %v17635_v44 = vand.u32 4294901760, %v13317_v16 }
 0x1ab   :  { %v13370_v6 = vpack.c.bf16 %v17624_v35, %v17623_v18  ;;  %v13384_v22 = vsub.f32 %v13292_v15, %v17627_v53  ;;  %v9640_v0 = vpack.c.bf16 %v12599_v32, %v17630_v37  ;;  %v9642_v53 = vpack.c.bf16 %v12631_v9, %v12615_v23  ;;  %v13418_v9 = vld [vmem:[#allocation5 + $0x450] sm:$0xff]  ;;  %v13420_v37 = vld [vmem:[#allocation5 + $0x458] sm:$0xff] }
 0x1ac   :  { %v17632_v35 = vand.u32 4294901760, %v13287_v38  ;;  %v13411_v17 = vsub.f32 %v13317_v16, %v17635_v44  ;;  %v17637_v32 = vand.u32 4294901760, %v13319_v57  ;;  %17639 = vst [vmem:[#allocation60_spill] sm:$0xff] %v13418_v9  ;;  %17640 = vst [vmem:[#allocation61_spill] sm:$0xff] %v13420_v37  ;;  %v17645_v44 = vand.u32 4294901760, %v13335_v10  ;;  %v13439_v16 = vld [vmem:[#allocation5 + $0x4e0] sm:$0xff] }
 0x1ad   :  { %17625 = vst [vmem:[#allocation18_spill] sm:$0xff] %v13370_v6  ;;  %v13389_v6 = vld [vmem:[#allocation5 + $0x4d0] sm:$0xff]  ;;  %9637 = vmatpush3.bf16.msra.mxu0 %v17629_v60  ;;  %v17644_v60 = vand.u32 4294901760, %v12941_v62  ;;  %17646 = vst [vmem:[#allocation64_spill] sm:$0xff] %v13439_v16  ;;  %v17651_v62 = vand.u32 4294901760, %v13362_v25  ;;  %v17660_v20 = vand.u32 4294901760, %v13384_v22 }
 0x1ae   :  { %17628 = vst [vmem:[#allocation55_spill] sm:$0xff] %v13389_v6  ;;  %v13405_v18 = vpack.c.bf16 %v17633_v42, %v17632_v35  ;;  %9639 = vmatprep.subr.bf16.mxu0 %v9638_v61  ;;  %17636 = vst [vmem:[#allocation58_spill] sm:$0xff] %v13411_v17  ;;  %v13416_v23 = vsub.f32 %v13319_v57, %v17637_v32  ;;  %v17641_v42 = vand.u32 4294901760, %v13305_v31  ;;  %v17642_v61 = vand.u32 4294901760, %v13330_v7  ;;  %v17655_v15 = vld [vmem:[#allocation29_spill] sm:$0xff] }
 0x1af   :  { %3563 = vmatprep.mubr.f32.mxu1 %v17644_v60  ;;  %v13434_v32 = vsub.f32 %v13335_v10, %v17645_v44  ;;  %v9644_v57 = vpack.c.bf16 %v12653_v54, %v12645_v39  ;;  %v17653_v44 = vld [vmem:[#allocation77_spill] sm:$0xff]  ;;  %v17654_v60 = vld [vmem:[#allocation34_spill] sm:$0xff]  ;;  %v13469_v39 = vld [vmem:[#allocation5 + $0x468] sm:$0xff]  ;;  %v17659_v10 = vand.u32 4294901760, %v13376_v48  ;;  %v17665_v54 = vand.u32 4294901760, %v13399_v49 }
 0x1b0   :  { %17634 = vst [vmem:[#allocation57_spill] sm:$0xff] %v13405_v18  ;;  %17638 = vst [vmem:[#allocation59_spill] sm:$0xff] %v13416_v23  ;;  %v13426_v35 = vpack.c.bf16 %v17642_v61, %v17641_v42  ;;  %v17647_v42 = vand.u32 4294901760, %v13348_v12  ;;  %v13451_v18 = vld [vmem:[#allocation5 + $0x460] sm:$0xff]  ;;  %9669 = vmatpush3.bf16.msra.mxu1 %v17653_v44  ;;  %v9646_v45 = vpack.c.bf16 %v17655_v15, %v17654_v60  ;;  %v17663_v60 = vand.u32 4294901760, %v13389_v6 }
 0x1b1   :  { %17649 = vst [vmem:[#allocation16_spill] sm:$0xff] %v13451_v18  ;;  %9641 = vmatpush3.bf16.msra.mxu0 %v9640_v0  ;;  %v17656_v0 = vld [vmem:[#allocation43_spill] sm:$0xff]  ;;  %17658 = vst [vmem:[#allocation26_spill] sm:$0xff] %v13469_v39  ;;  %v13475_v28 = vpack.c.bf16 %v17660_v20, %v17659_v10  ;;  %v13490_v10 = vsub.f32 %v13399_v49, %v17665_v54  ;;  %v17668_v15 = vand.u32 4294901760, %v13418_v9  ;;  %v13509_v20 = vld [vmem:[#allocation5 + $0x470] sm:$0xff] }
 0x1b2   :  { %17643 = vst [vmem:[#allocation13_spill] sm:$0xff] %v13426_v35  ;;  %v13444_v61 = vsub.f32 %v13348_v12, %v17647_v42  ;;  %v13449_v35 = vld [vmem:[#allocation5 + $0x4e8] sm:$0xff]  ;;  %v17650_v42 = vand.u32 4294901760, %v13346_v4  ;;  %9643 = vmatprep.subr.bf16.mxu0 %v9642_v53  ;;  %v9648_v36 = vpack.c.bf16 %v17657_v59, %v17656_v0  ;;  %v13485_v0 = vsub.f32 %v13389_v6, %v17663_v60  ;;  %v13522_v54 = vld [vmem:[#allocation5 + $0x478] sm:$0xff] }
 0x1b3   :  { %17648 = vst [vmem:[#allocation17_spill] sm:$0xff] %v13449_v35  ;;  %17661 = vst [vmem:[#allocation32_spill] sm:$0xff] %v13475_v28  ;;  %v13494_v28 = vld [vmem:[#allocation5 + $0x4f0] sm:$0xff]  ;;  %v13499_v59 = vsub.f32 %v13418_v9, %v17668_v15  ;;  %v17670_v60 = vand.u32 4294901760, %v13420_v37  ;;  %v17674_v53 = vand.u32 4294901760, %v13411_v17  ;;  %v9650_v15 = vpack.c.bf16 %v12756_v1, %v12751_v47 }
 0x1b4   :  { %v13461_v12 = vpack.c.bf16 %v17651_v62, %v17650_v42  ;;  %v17662_v62 = vld [vmem:[#allocation15_spill] sm:$0xff]  ;;  %17664 = vst [vmem:[#allocation33_spill] sm:$0xff] %v13485_v0  ;;  %17666 = vst [vmem:[#allocation41_spill] sm:$0xff] %v13490_v10  ;;  %v17679_v9 = vand.u32 4294901760, %v13434_v32  ;;  %v17680_v6 = vand.u32 4294901760, %v13444_v61  ;;  %v17685_v47 = vand.u32 4294901760, %v13449_v35 }
 0x1b5   :  { %9671 = vmatprep.subr.bf16.mxu1 %v17662_v62  ;;  %17667 = vst [vmem:[#allocation45_spill] sm:$0xff] %v13494_v28  ;;  %9645 = vmatpush3.bf16.msra.mxu0 %v9644_v57  ;;  %17669 = vst [vmem:[#allocation69_spill] sm:$0xff] %v13499_v59  ;;  %v13504_v42 = vsub.f32 %v13420_v37, %v17670_v60  ;;  %v17675_v57 = vand.u32 4294901760, %v13416_v23  ;;  %v17677_v60 = vld [vmem:[#allocation72_spill] sm:$0xff]  ;;  %v17682_v23 = vld [vmem:[#allocation78_spill] sm:$0xff] }
 0x1b6   :  { %17652 = vst [vmem:[#allocation22_spill] sm:$0xff] %v13461_v12  ;;  %v13507_v12 = vld [vmem:[#allocation5 + $0x4f8] sm:$0xff]  ;;  %17673 = vst [vmem:[#allocation73_spill] sm:$0xff] %v13509_v20  ;;  %9647 = vmatprep.subr.bf16.mxu0 %v9646_v45  ;;  %9673 = vmatpush3.bf16.msra.mxu1 %v13036_v40  ;;  %v9652_v37 = vpack.c.bf16 %v17677_v60, %v12765_v21  ;;  %v13528_v17 = vpack.c.bf16 %v17680_v6, %v17679_v9  ;;  %v17683_v45 = vand.u32 4294901760, %v13439_v16 }
 0x1b7   :  { %17671 = vst [vmem:[#allocation66_spill] sm:$0xff] %v13504_v42  ;;  %17672 = vst [vmem:[#allocation71_spill] sm:$0xff] %v13507_v12  ;;  %v13515_v49 = vpack.c.bf16 %v17675_v57, %v17674_v53  ;;  %9675 = vmatprep.subr.bf16.mxu1 %v17682_v23  ;;  %v13539_v1 = vsub.f32 %v13449_v35, %v17685_v47  ;;  %v17687_v21 = vand.u32 4294901760, %v13451_v18  ;;  %v17689_v9 = vld [vmem:[#allocation30_spill] sm:$0xff]  ;;  %v17690_v60 = vld [vmem:[#allocation25_spill] sm:$0xff]  ;;  %v17695_v6 = vand.u32 4294901760, %v13494_v28 }
 0x1b8   :  { %17678 = vst [vmem:[#allocation74_spill] sm:$0xff] %v13522_v54  ;;  %17681 = vst [vmem:[#allocation39_spill] sm:$0xff] %v13528_v17  ;;  %v13534_v53 = vsub.f32 %v13439_v16, %v17683_v45  ;;  %v17692_v45 = vand.u32 4294901760, %v13485_v0  ;;  %v9656_v35 = vpack.c.bf16 %v17569_v5, %v17563_v50 }
 0x1b9   :  { %17676 = vst [vmem:[#allocation68_spill] sm:$0xff] %v13515_v49  ;;  %17686 = vst [vmem:[#allocation77_spill] sm:$0xff] %v13539_v1  ;;  %v13544_v57 = vsub.f32 %v13451_v18, %v17687_v21  ;;  %9649 = vmatpush3.bf16.msra.mxu0 %v9648_v36  ;;  %v17688_v49 = vand.u32 4294901760, %v13469_v39  ;;  %v16524_v21 = vand.u32 4294901760, %v13499_v59  ;;  %v17691_v18 = vld [vmem:[#allocation65_spill] sm:$0xff]  ;;  %v17693_v36 = vand.u32 4294901760, %v13490_v10 }
 0x1ba   :  { %17684 = vst [vmem:[#allocation62_spill] sm:$0xff] %v13534_v53  ;;  %9651 = vmatprep.subr.bf16.mxu0 %v9650_v15  ;;  %9677 = vmatpush3.bf16.msra.mxu1 %v17689_v9  ;;  %v9654_v17 = vpack.c.bf16 %v17691_v18, %v17690_v60  ;;  %v13574_v15 = vsub.f32 %v13494_v28, %v17695_v6  ;;  %v17696_v18 = vand.u32 4294901760, %v13504_v42  ;;  %v16533_v5 = vand.u32 4294901760, %v13534_v53 }
 0x1bb   :  { %v13554_v47 = vsub.f32 %v13469_v39, %v17688_v49  ;;  %v13566_v16 = vpack.c.bf16 %v17693_v36, %v17692_v45  ;;  %v7552_v49 = vpop.f32.mrb[6].mxu0  ;;  %9679 = vmatprep.subr.bf16.mxu1 %v13083_v52  ;;  %v17698_v45 = vand.u32 4294901760, %v13507_v12  ;;  %v16532_v6 = vand.u32 4294901760, %v13539_v1  ;;  %v17710_v1 = vld [vmem:[#allocation12_spill] sm:$0xff] }
 0x1bc   :  { %v13580_v60 = vpack.c.bf16 %v17696_v18, %v16524_v21  ;;  %v7553_v39 = vpop.f32.mrb[7].mxu0  ;;  %v17702_v18 = vand.u32 4294901760, %v13522_v54 }
 0x1bd   :  { %17694 = vst [vmem:[#allocation34_spill] sm:$0xff] %v13566_v16  ;;  %v13585_v36 = vsub.f32 %v13507_v12, %v17698_v45  ;;  %v17700_v16 = vand.u32 4294901760, %v13509_v20  ;;  %v7554_v28 = vadd.f32 %v7553_v39, %v7552_v49  ;;  %9653 = vmatpush3.bf16.msra.mxu0 %v9652_v37  ;;  %v16534_v45 = vand.u32 4294901760, %v13554_v47  ;;  %v17704_v12 = vld [vmem:[#allocation79_spill] sm:$0xff]  ;;  %v17708_v49 = vld [vmem:[#allocation46_spill] sm:$0xff] }
 0x1be   :  { %17697 = vst [vmem:[#allocation29_spill] sm:$0xff] %v13580_v60  ;;  %v13597_v21 = vsub.f32 %v13522_v54, %v17702_v18  ;;  %v16540_v60 = vand.u32 4294901760, %v13544_v57  ;;  %9655 = vmatprep.subr.bf16.mxu0 %v9654_v17  ;;  %9681 = vmatpush3.bf16.msra.mxu1 %v17704_v12  ;;  %v13608_v37 = vpack.c.bf16 %v16532_v6, %v16533_v5  ;;  %v7587_v18 = vpop.f32.mrb[6].mxu1  ;;  %v16538_v54 = vand.u32 4294901760, %v13574_v15  ;;  %v17711_v6 = vld [vmem:[#allocation49_spill] sm:$0xff] }
 0x1bf   :  { %17699 = vst [vmem:[#allocation43_spill] sm:$0xff] %v13585_v36  ;;  %v13590_v50 = vsub.f32 %v13509_v20, %v17700_v16  ;;  %v17705_v16 = vld [vmem:[#allocation36_spill] sm:$0xff]  ;;  %v17706_v20 = vld [vmem:[#allocation35_spill] sm:$0xff]  ;;  %v1367_v39 = vadd.f32 %v7554_v28, %v13268_v30  ;;  %9683 = vmatprep.subr.bf16.mxu1 %v17708_v49  ;;  %v9660_v5 = vpack.c.bf16 %v17711_v6, %v17710_v1 }
 0x1c0   :  { %17703 = vst [vmem:[#allocation15_spill] sm:$0xff] %v13597_v21  ;;  %v9658_v42 = vpack.c.bf16 %v17706_v20, %v17705_v16  ;;  %17707 = vst [vmem:[#allocation72_spill] sm:$0xff] %v13608_v37  ;;  %v13616_v17 = vpack.c.bf16 %v16534_v45, %v16540_v60  ;;  %v16537_v20 = vand.u32 4294901760, %v13585_v36  ;;  %v7588_v16 = vpop.f32.mrb[7].mxu1  ;;  %v16535_v30 = vand.u32 4294901760, %v13597_v21  ;;  %v17714_v6 = vld [vmem:[#allocation31_spill] sm:$0xff] }
 0x1c1   :  { %17701 = vst [vmem:[#allocation44_spill] sm:$0xff] %v13590_v50  ;;  %9657 = vmatpush3.bf16.msra.mxu0 %v9656_v35  ;;  %v16536_v28 = vand.u32 4294901760, %v13590_v50  ;;  %v7589_v37 = vadd.f32 %v7588_v16, %v7587_v18  ;;  %v17716_v18 = vld [vmem:[#allocation76_spill] sm:$0xff]  ;;  %v17717_v16 = vld [vmem:[#allocation19_spill] sm:$0xff]  ;;  %v17748_v60 = vld [vmem:[#allocation50_spill] sm:$0xff] }
 0x1c2   :  { %17709 = vst [vmem:[#allocation78_spill] sm:$0xff] %v13616_v17  ;;  %9659 = vmatprep.subr.bf16.mxu0 %v9658_v42  ;;  %9685 = vmatpush3.bf16.msra.mxu1 %v13107_v56  ;;  %v13629_v45 = vpack.c.bf16 %v16537_v20, %v16538_v54  ;;  %v17715_v42 = vld [vmem:[#allocation14_spill] sm:$0xff]  ;;  %v17741_v54 = vld [vmem:[#allocation75_spill] sm:$0xff] }
 0x1c3   :  { %9687 = vmatprep.subr.bf16.mxu1 %v13125_v51  ;;  %v13636_v35 = vpack.c.bf16 %v16535_v30, %v16536_v28  ;;  %v1599_v1 = vadd.f32 %v7589_v37, %v1367_v39  ;;  %v13646_v30 = vld [vmem:[#allocation2 + $0x10] sm:$0xff]  ;;  %v17720_v37 = vand.u32 4294901760, %v13129_v13  ;;  %v17721_v39 = vld [vmem:[#allocation11_spill] sm:$0xff] }
 0x1c4   :  { %17712 = vst [vmem:[#allocation30_spill] sm:$0xff] %v13629_v45  ;;  %17718 = vst [vmem:[#allocation65_spill] sm:$0xff] %v13646_v30 }
 0x1c5   :  { %17713 = vst [vmem:[#allocation25_spill] sm:$0xff] %v13636_v35  ;;  %9661 = vmatpush3.bf16.msra.mxu0 %v9660_v5  ;;  %v17719_v5 = vld [vmem:[#allocation24_spill] sm:$0xff]  ;;  %v17749_v35 = vand.u32 4294901760, %v13273_v43 }
 0x1c6   :  { %9695 = vmatprep.subr.bf16.mxu0 %v17714_v6  ;;  %9689 = vmatpush3.bf16.msra.mxu1 %v13142_v8  ;;  %v13654_v6 = vrot.slane %v13646_v30, %v17721_v39  ;;  %v17782_v39 = vld [vmem:[#allocation51_spill] sm:$0xff] }
 0x1c7   :  { %9691 = vmatprep.subr.bf16.mxu1 %v13152_v27 }
 0x1c8   :  { %3459 = vmatmul.mubr.f32.vlgmr.msra.gmra.mrb[20].mxu0 %v13129_v13  ;;  %v17725_v13 = vld [vmem:[#allocation70_spill] sm:$0xff] }
 0x1c9   :  { %9697 = vmatpush3.bf16.msra.mxu0 %v17715_v42  ;;  %3733 = vmatprep.mubr.f32.mxu0 %v17716_v18  ;;  %v17722_v42 = vld [vmem:[#allocation27_spill] sm:$0xff] }
 0x1ca   :  { %9699 = vmatprep.subr.bf16.mxu0 %v17717_v16  ;;  %9693 = vmatpush3.bf16.msra.mxu1 %v13170_v19  ;;  %v17723_v16 = vld [vmem:[#allocation37_spill] sm:$0xff] }
 0x1cb   :  { %9727 = vmatprep.subr.bf16.mxu1 %v12962_v14  ;;  %v361_v14 = vcombine.high %v13654_v6, %v13654_v6 }
 0x1cd   :  { %9701 = vmatpush3.bf16.msra.mxu0 %v17719_v5  ;;  %3567 = vmatmul.mubr.f32.vlgmr.msra.gmra.mrb[20].mxu1 %v17720_v37  ;;  %v17724_v5 = vld [vmem:[#allocation67_spill] sm:$0xff]  ;;  %v13667_v37 = vand.u32 4294901760, %v361_v14 }
 0x1ce   :  { %9703 = vmatprep.subr.bf16.mxu0 %v17722_v42  ;;  %9729 = vmatpush3.bf16.msra.mxu1 %v12995_v33  ;;  %v17727_v33 = vld [vmem:[#allocation38_spill] sm:$0xff]  ;;  %v17729_v42 = vld [vmem:[#allocation48_spill] sm:$0xff] }
 0x1cf   :  { %9731 = vmatprep.subr.bf16.mxu1 %v13003_v3  ;;  %3837 = vmatprep.mubr.f32.mxu1 %v17716_v18  ;;  %17726 = vst [vmem:[#allocation79_spill] sm:$0xff] %v13667_v37  ;;  %v17728_v3 = vld [vmem:[#allocation42_spill] sm:$0xff]  ;;  %v13674_v18 = vsub.f32 %v361_v14, %v13667_v37  ;;  %v17732_v14 = vand.u32 4294901760, %v13214_v29 }
 0x1d1   :  { %9705 = vmatpush3.bf16.msra.mxu0 %v17723_v16 }
 0x1d2   :  { %9707 = vmatprep.subr.bf16.mxu0 %v17724_v5  ;;  %9733 = vmatpush3.bf16.msra.mxu1 %v17653_v44  ;;  %v7622_v44 = vpop.f32.mrb[8].mxu0  ;;  %v17730_v5 = vld [vmem:[#allocation28_spill] sm:$0xff] }
 0x1d3   :  { %9735 = vmatprep.subr.bf16.mxu1 %v17662_v62  ;;  %v7623_v62 = vpop.f32.mrb[9].mxu0 }
 0x1d4   :  { %v7624_v16 = vadd.f32 %v7623_v62, %v7622_v44  ;;  %v17735_v62 = vld [vmem:[#allocation23_spill] sm:$0xff] }
 0x1d5   :  { %9709 = vmatpush3.bf16.msra.mxu0 %v17725_v13  ;;  %v17731_v13 = vld [vmem:[#allocation40_spill] sm:$0xff] }
 0x1d6   :  { %9711 = vmatprep.subr.bf16.mxu0 %v17727_v33  ;;  %9737 = vmatpush3.bf16.msra.mxu1 %v13036_v40  ;;  %v16539_v40 = vand.u32 4294901760, %v13674_v18  ;;  %v17733_v33 = vand.u32 4294901760, %v13222_v41 }
 0x1d7   :  { %9739 = vmatprep.subr.bf16.mxu1 %v17682_v23  ;;  %v1737_v23 = vadd.f32 %v7624_v16, %v1599_v1  ;;  %v17738_v16 = vld [vmem:[#allocation80_spill] sm:$0xff] }
 0x1d9   :  { %9713 = vmatpush3.bf16.msra.mxu0 %v17728_v3  ;;  %v7657_v3 = vpop.f32.mrb[8].mxu1 }
 0x1da   :  { %9715 = vmatprep.subr.bf16.mxu0 %v17729_v42  ;;  %9741 = vmatpush3.bf16.msra.mxu1 %v17689_v9  ;;  %v4072_v9 = vsub.f32 %v13214_v29, %v17732_v14  ;;  %v17734_v42 = vand.u32 4294901760, %v13239_v63  ;;  %v17740_v14 = vand.u32 4294901760, %v13244_v34 }
 0x1db   :  { %9743 = vmatprep.subr.bf16.mxu1 %v13083_v52  ;;  %v4079_v52 = vsub.f32 %v13222_v41, %v17733_v33  ;;  %v3943_v33 = vsub.f32 %v13674_v18, %v16539_v40  ;;  %v17744_v40 = vld [vmem:[#allocation81_spill] sm:$0xff] }
 0x1dc   :  { %v3960_v44 = vsub.f32 %v13239_v63, %v17734_v42  ;;  %v3967_v28 = vsub.f32 %v13244_v34, %v17740_v14  ;;  %v17742_v42 = vand.u32 4294901760, %v13257_v46 }
 0x1dd   :  { %9717 = vmatpush3.bf16.msra.mxu0 %v17730_v5  ;;  %v7658_v5 = vpop.f32.mrb[9].mxu1 }
 0x1de   :  { %9719 = vmatprep.subr.bf16.mxu0 %v17731_v13  ;;  %9745 = vmatpush3.bf16.msra.mxu1 %v17704_v12  ;;  %v17736_v12 = vld [vmem:[#allocation47_spill] sm:$0xff]  ;;  %v7659_v20 = vadd.f32 %v7658_v5, %v7657_v3  ;;  %v17745_v3 = vand.u32 4294901760, %v17744_v40 }
 0x1df   :  { %9747 = vmatprep.subr.bf16.mxu1 %v17708_v49  ;;  %v17737_v1 = vand.u32 4294901760, %v17736_v12  ;;  %v17739_v49 = vand.u32 4294901760, %v17738_v16  ;;  %v17743_v12 = vand.u32 4294901760, %v13262_v2  ;;  %v4073_v16 = vand.u32 4294901760, %v4072_v9 }
 0x1e0   :  { %v13715_v14 = vadd.f32 %v7659_v20, %v1737_v23  ;;  %v3944_v20 = vand.u32 4294901760, %v3943_v33  ;;  %v17753_v23 = vld [vmem:[#allocation83_spill] sm:$0xff]  ;;  %v17757_v33 = vand.u32 4294901760, %v13300_v11 }
 0x1e1   :  { %9721 = vmatpush3.bf16.msra.mxu0 %v17735_v62  ;;  %v13698_v13 = vpack.c.bf16 %v17739_v49, %v17737_v1  ;;  %v4086_v62 = vsub.f32 %v13257_v46, %v17742_v42  ;;  %v4093_v1 = vsub.f32 %v13262_v2, %v17743_v12  ;;  %v4080_v49 = vand.u32 4294901760, %v4079_v52 }
 0x1e2   :  { %9723 = vmatprep.subr.bf16.mxu0 %v17741_v54  ;;  %9749 = vmatpush3.bf16.msra.mxu1 %v13107_v56  ;;  %v17746_v54 = vand.u32 4294901760, %v13187_v58  ;;  %v3961_v56 = vand.u32 4294901760, %v3960_v44  ;;  %v3968_v42 = vand.u32 4294901760, %v3967_v28  ;;  %v3974_v12 = vsub.f32 %v13273_v43, %v17749_v35  ;;  %v17751_v58 = vld [vmem:[#allocation82_spill] sm:$0xff] }
 0x1e3   :  { %9751 = vmatprep.subr.bf16.mxu1 %v13125_v51  ;;  %v17750_v51 = vand.u32 4294901760, %v13278_v55  ;;  %v17752_v40 = vand.u32 4294901760, %v17751_v58  ;;  %v17754_v52 = vand.u32 4294901760, %v17753_v23  ;;  %v4094_v28 = vand.u32 4294901760, %v4093_v1  ;;  %v17760_v23 = vld [vmem:[#allocation85_spill] sm:$0xff] }
 0x1e4   :  { %v13721_v5 = vpack.c.bf16 %v17746_v54, %v17745_v3  ;;  %v9790_v35 = vpack.c.bf16 %v4080_v49, %v4073_v16  ;;  %v17756_v3 = vand.u32 4294901760, %v13287_v38  ;;  %v17764_v1 = vand.u32 4294901760, %v13226_v24 }
 0x1e5   :  { %9725 = vmatpush3.bf16.msra.mxu0 %v17748_v60  ;;  %v3981_v9 = vsub.f32 %v13278_v55, %v17750_v51  ;;  %v13736_v44 = vpack.c.bf16 %v17754_v52, %v17752_v40  ;;  %v4087_v60 = vand.u32 4294901760, %v4086_v62  ;;  %v4107_v51 = vsub.f32 %v13300_v11, %v17757_v33 }
 0x1e6   :  { %17747 = vst [vmem:[#allocation36_spill] sm:$0xff] %v13721_v5  ;;  %9759 = vmatprep.subr.bf16.mxu0 %v13698_v13  ;;  %9753 = vmatpush3.bf16.msra.mxu1 %v13142_v8  ;;  %v4100_v54 = vsub.f32 %v13287_v38, %v17756_v3  ;;  %v17758_v8 = vld [vmem:[#allocation84_spill] sm:$0xff]  ;;  %v17761_v40 = vand.u32 4294901760, %v17760_v23  ;;  %v9792_v49 = vpack.c.bf16 %v3968_v42, %v3961_v56  ;;  %v3975_v3 = vand.u32 4294901760, %v3974_v12 }
 0x1e7   :  { %17755 = vst [vmem:[#allocation35_spill] sm:$0xff] %v13736_v44  ;;  %9755 = vmatprep.subr.bf16.mxu1 %v13152_v27  ;;  %v17759_v58 = vand.u32 4294901760, %v17758_v8  ;;  %v17762_v27 = vld [vmem:[#allocation86_spill] sm:$0xff]  ;;  %v3982_v45 = vand.u32 4294901760, %v3981_v9  ;;  %v9794_v33 = vpack.c.bf16 %v4094_v28, %v4087_v60  ;;  %v17766_v8 = vand.u32 4294901760, %v13305_v31  ;;  %v17770_v9 = vld [vmem:[#allocation87_spill] sm:$0xff] }
 0x1e8   :  { %3735 = vmatmul.mubr.f32.vlgmr.msra.gmra.mrb[22].mxu0 %v13099_v26  ;;  %v17763_v62 = vand.u32 4294901760, %v17762_v27  ;;  %v17767_v23 = vand.u32 4294901760, %v13330_v7  ;;  %v4101_v24 = vand.u32 4294901760, %v4100_v54  ;;  %v4108_v27 = vand.u32 4294901760, %v4107_v51  ;;  %v17772_v60 = vld [vmem:[#allocation88_spill] sm:$0xff]  ;;  %v17780_v51 = vld [vmem:[#allocation91_spill] sm:$0xff] }
 0x1e9   :  { %v13750_v52 = vpack.c.bf16 %v17761_v40, %v17759_v58  ;;  %9761 = vmatpush3.bf16.msra.mxu0 %v13721_v5  ;;  %3945 = vmatprep.mubr.f32.mxu0 %v3944_v20  ;;  %v3988_v58 = vsub.f32 %v13305_v31, %v17766_v8  ;;  %v17768_v56 = vand.u32 4294901760, %v13346_v4  ;;  %v17769_v12 = vand.u32 4294901760, %v13362_v25  ;;  %v17787_v5 = vld [vmem:[#allocation93_spill] sm:$0xff] }
 0x1ea   :  { %v13757_v16 = vpack.c.bf16 %v17764_v1, %v17763_v62  ;;  %9763 = vmatprep.subr.bf16.mxu0 %v13736_v44  ;;  %9757 = vmatpush3.bf16.msra.mxu1 %v13170_v19  ;;  %v3995_v40 = vsub.f32 %v13330_v7, %v17767_v23  ;;  %v17771_v20 = vand.u32 4294901760, %v17770_v9  ;;  %v17773_v28 = vand.u32 4294901760, %v17772_v60  ;;  %v17775_v1 = vld [vmem:[#allocation89_spill] sm:$0xff]  ;;  %v17777_v23 = vld [vmem:[#allocation90_spill] sm:$0xff]  ;;  %v17785_v44 = vld [vmem:[#allocation92_spill] sm:$0xff] }
 0x1eb   :  { %9791 = vmatprep.subr.bf16.mxu1 %v9790_v35  ;;  %v4114_v42 = vsub.f32 %v13346_v4, %v17768_v56  ;;  %v4121_v19 = vsub.f32 %v13362_v25, %v17769_v12  ;;  %v17776_v8 = vand.u32 4294901760, %v17775_v1  ;;  %v17778_v35 = vand.u32 4294901760, %v17777_v23 }
 0x1ec   :  { %17765 = vst [vmem:[#allocation46_spill] sm:$0xff] %v13757_v16  ;;  %v13777_v62 = vpack.c.bf16 %v17773_v28, %v17771_v20  ;;  %v17781_v17 = vand.u32 4294901760, %v17780_v51  ;;  %v17783_v56 = vand.u32 4294901760, %v17782_v39  ;;  %v17786_v12 = vand.u32 4294901760, %v17785_v44  ;;  %v17791_v44 = vld [vmem:[#allocation58_spill] sm:$0xff]  ;;  %v17795_v51 = vld [vmem:[#allocation20_spill] sm:$0xff] }
 0x1ed   :  { %v13783_v54 = vpack.c.bf16 %v17778_v35, %v17776_v8  ;;  %v17788_v9 = vand.u32 4294901760, %v17787_v5  ;;  %9765 = vmatpush3.bf16.msra.mxu0 %v13750_v52  ;;  %3839 = vmatmul.mubr.f32.vlgmr.msra.gmra.mrb[22].mxu1 %v13099_v26  ;;  %v9796_v20 = vpack.c.bf16 %v3982_v45, %v3975_v3  ;;  %v17789_v60 = vand.u32 4294901760, %v13376_v48  ;;  %v17793_v35 = vld [vmem:[#allocation59_spill] sm:$0xff] }
 0x1ee   :  { %17774 = vst [vmem:[#allocation12_spill] sm:$0xff] %v13777_v62  ;;  %v13789_v30 = vpack.c.bf16 %v17783_v56, %v17781_v17  ;;  %v17790_v1 = vand.u32 4294901760, %v13384_v22  ;;  %9767 = vmatprep.subr.bf16.mxu0 %v13757_v16  ;;  %9793 = vmatpush3.bf16.msra.mxu1 %v9792_v49  ;;  %v3989_v39 = vand.u32 4294901760, %v3988_v58  ;;  %v3996_v5 = vand.u32 4294901760, %v3995_v40  ;;  %v17799_v58 = vld [vmem:[#allocation55_spill] sm:$0xff]  ;;  %v17801_v16 = vld [vmem:[#allocation56_spill] sm:$0xff] }
 0x1ef   :  { %17779 = vst [vmem:[#allocation49_spill] sm:$0xff] %v13783_v54  ;;  %v13795_v25 = vpack.c.bf16 %v17788_v9, %v17786_v12  ;;  %v4002_v28 = vsub.f32 %v13376_v48, %v17789_v60  ;;  %v17792_v8 = vand.u32 4294901760, %v17791_v44  ;;  %v17794_v26 = vand.u32 4294901760, %v17793_v35  ;;  %9795 = vmatprep.subr.bf16.mxu1 %v9794_v33  ;;  %v17797_v12 = vld [vmem:[#allocation53_spill] sm:$0xff]  ;;  %4181 = vmatprep.mubr.f32.mxu1 %v13667_v37 }
 0x1f0   :  { %17784 = vst [vmem:[#allocation31_spill] sm:$0xff] %v13789_v30  ;;  %v4009_v17 = vsub.f32 %v13384_v22, %v17790_v1  ;;  %v9798_v3 = vpack.c.bf16 %v4108_v27, %v4101_v24  ;;  %v17796_v56 = vand.u32 4294901760, %v17795_v51  ;;  %v17798_v9 = vand.u32 4294901760, %v17797_v12 }
 0x1f1   :  { %v4128_v23 = vsub.f32 %v17791_v44, %v17792_v8  ;;  %v4135_v45 = vsub.f32 %v17793_v35, %v17794_v26  ;;  %v4115_v1 = vand.u32 4294901760, %v4114_v42  ;;  %v4122_v49 = vand.u32 4294901760, %v4121_v19  ;;  %9769 = vmatpush3.bf16.msra.mxu0 %v13777_v62 }
 0x1f2   :  { %v13816_v60 = vpack.c.bf16 %v17798_v9, %v17796_v56  ;;  %v17800_v40 = vand.u32 4294901760, %v17799_v58  ;;  %v17802_v8 = vand.u32 4294901760, %v17801_v16  ;;  %v17804_v26 = vand.u32 4294901760, %v13434_v32  ;;  %9771 = vmatprep.subr.bf16.mxu0 %v13783_v54  ;;  %9797 = vmatpush3.bf16.msra.mxu1 %v9796_v20 }
 0x1f3   :  { %v17805_v24 = vand.u32 4294901760, %v13444_v61  ;;  %v13832_v51 = vand.u32 4294901760, %v13654_v6  ;;  %v4003_v42 = vand.u32 4294901760, %v4002_v28  ;;  %v4010_v19 = vand.u32 4294901760, %v4009_v17  ;;  %9799 = vmatprep.subr.bf16.mxu1 %v9798_v3  ;;  %v17809_v17 = vld [vmem:[#allocation66_spill] sm:$0xff] }
 0x1f4   :  { %v13823_v44 = vpack.c.bf16 %v17802_v8, %v17800_v40  ;;  %v4016_v33 = vsub.f32 %v13434_v32, %v17804_v26  ;;  %v17806_v56 = vand.u32 4294901760, %v13485_v0  ;;  %v17807_v12 = vand.u32 4294901760, %v13490_v10 }
 0x1f5   :  { %v4023_v27 = vsub.f32 %v13444_v61, %v17805_v24  ;;  %v9800_v58 = vpack.c.bf16 %v3996_v5, %v3989_v39  ;;  %v4129_v40 = vand.u32 4294901760, %v4128_v23  ;;  %v4136_v8 = vand.u32 4294901760, %v4135_v45  ;;  %v17814_v39 = vld [vmem:[#allocation60_spill] sm:$0xff]  ;;  %v17816_v23 = vld [vmem:[#allocation61_spill] sm:$0xff]  ;;  %9773 = vmatpush3.bf16.msra.mxu0 %v13789_v30 }
 0x1f6   :  { %17803 = vst [vmem:[#allocation14_spill] sm:$0xff] %v13823_v44  ;;  %v4142_v16 = vsub.f32 %v13485_v0, %v17806_v56  ;;  %v4149_v9 = vsub.f32 %v13490_v10, %v17807_v12  ;;  %v17808_v26 = vand.u32 4294901760, %v13499_v59  ;;  %v9802_v28 = vpack.c.bf16 %v4122_v49, %v4115_v1  ;;  %v17812_v10 = vld [vmem:[#allocation77_spill] sm:$0xff]  ;;  %9775 = vmatprep.subr.bf16.mxu0 %v13795_v25 }
 0x1f7   :  { %v17810_v37 = vand.u32 4294901760, %v17809_v17  ;;  %v17811_v0 = vand.u32 4294901760, %v13534_v53  ;;  %v17813_v54 = vand.u32 4294901760, %v17812_v10  ;;  %v17815_v5 = vand.u32 4294901760, %v17814_v39  ;;  %9801 = vmatpush3.bf16.msra.mxu1 %v9800_v58  ;;  %v17827_v30 = vld [vmem:[#allocation45_spill] sm:$0xff] }
 0x1f8   :  { %v4030_v24 = vsub.f32 %v13499_v59, %v17808_v26  ;;  %v17817_v45 = vand.u32 4294901760, %v17816_v23  ;;  %v4017_v3 = vand.u32 4294901760, %v4016_v33  ;;  %v4024_v1 = vand.u32 4294901760, %v4023_v27  ;;  %v17823_v27 = vld [vmem:[#allocation16_spill] sm:$0xff]  ;;  %v17825_v23 = vld [vmem:[#allocation26_spill] sm:$0xff]  ;;  %9803 = vmatprep.subr.bf16.mxu1 %v9802_v28 }
 0x1f9   :  { %v4037_v56 = vsub.f32 %v17809_v17, %v17810_v37  ;;  %v4156_v12 = vsub.f32 %v13534_v53, %v17811_v0  ;;  %v4163_v20 = vsub.f32 %v17812_v10, %v17813_v54  ;;  %v13862_v49 = vsub.f32 %v13654_v6, %v13832_v51  ;;  %v17819_v0 = vld [vmem:[#allocation64_spill] sm:$0xff]  ;;  %v17821_v53 = vld [vmem:[#allocation17_spill] sm:$0xff]  ;;  %9777 = vmatpush3.bf16.msra.mxu0 %v13816_v60 }
 0x1fa   :  { %v13858_v62 = vpack.c.bf16 %v17817_v45, %v17815_v5  ;;  %v9804_v37 = vpack.c.bf16 %v4010_v19, %v4003_v42  ;;  %v17820_v26 = vand.u32 4294901760, %v17819_v0  ;;  %v17822_v17 = vand.u32 4294901760, %v17821_v53  ;;  %v17829_v19 = vld [vmem:[#allocation71_spill] sm:$0xff]  ;;  %9779 = vmatprep.subr.bf16.mxu0 %v13823_v44  ;;  %v13932_v44 = vld [vmem:[#allocation5 + $0x590] sm:$0xff] }
 0x1fb   :  { %17818 = vst [vmem:[#allocation76_spill] sm:$0xff] %v13862_v49  ;;  %v4143_v39 = vand.u32 4294901760, %v4142_v16  ;;  %v4150_v10 = vand.u32 4294901760, %v4149_v9  ;;  %v9806_v33 = vpack.c.bf16 %v4136_v8, %v4129_v40  ;;  %v17824_v5 = vand.u32 4294901760, %v17823_v27  ;;  %v13887_v8 = vld [vmem:[#allocation5 + $0x580] sm:$0xff]  ;;  %v13896_v28 = vld [vmem:[#allocation5 + $0x588] sm:$0xff] }
 0x1fc   :  { %v13869_v54 = vpack.c.bf16 %v17822_v17, %v17820_v26  ;;  %v17826_v6 = vand.u32 4294901760, %v17825_v23  ;;  %v17828_v42 = vand.u32 4294901760, %v17827_v30  ;;  %v17830_v0 = vand.u32 4294901760, %v17829_v19  ;;  %17832 = vst [vmem:[#allocation19_spill] sm:$0xff] %v13887_v8  ;;  %17835 = vst [vmem:[#allocation24_spill] sm:$0xff] %v13896_v28  ;;  %9805 = vmatpush3.bf16.msra.mxu1 %v9804_v37 }
 0x1fd   :  { %v4031_v53 = vand.u32 4294901760, %v4030_v24  ;;  %v4038_v16 = vand.u32 4294901760, %v4037_v56  ;;  %v4157_v9 = vand.u32 4294901760, %v4156_v12  ;;  %v4164_v17 = vand.u32 4294901760, %v4163_v20  ;;  %v17836_v12 = vld [vmem:[#allocation73_spill] sm:$0xff]  ;;  %9807 = vmatprep.subr.bf16.mxu1 %v9806_v33  ;;  %17844 = vst [vmem:[#allocation27_spill] sm:$0xff] %v13932_v44  ;;  %9781 = vmatpush3.bf16.msra.mxu0 %v13858_v62 }
 0x1fe   :  { %v13876_v45 = vpack.c.bf16 %v17826_v6, %v17824_v5  ;;  %v13882_v59 = vpack.c.bf16 %v17830_v0, %v17828_v42  ;;  %v17831_v58 = vand.u32 4294901760, %v13544_v57  ;;  %v9808_v26 = vpack.c.bf16 %v4024_v1, %v4017_v3  ;;  %v17838_v6 = vld [vmem:[#allocation74_spill] sm:$0xff]  ;;  %9783 = vmatprep.subr.bf16.mxu0 %v13869_v54 }
 0x1ff   :  { %v17833_v30 = vand.u32 4294901760, %v13554_v47  ;;  %v17834_v23 = vand.u32 4294901760, %v13574_v15  ;;  %v9810_v56 = vpack.c.bf16 %v4150_v10, %v4143_v39  ;;  %v17837_v20 = vand.u32 4294901760, %v17836_v12 }
 0x200   :  { %v4044_v40 = vsub.f32 %v13544_v57, %v17831_v58  ;;  %v17839_v42 = vand.u32 4294901760, %v17838_v6  ;;  %v17840_v19 = vand.u32 4294901760, %v13585_v36  ;;  %v17841_v10 = vand.u32 4294901760, %v13590_v50  ;;  %v13922_v6 = vld [vmem:[#allocation5 + $0x508] sm:$0xff]  ;;  %9809 = vmatpush3.bf16.msra.mxu1 %v9808_v26 }
 0x201   :  { %v4051_v5 = vsub.f32 %v13554_v47, %v17833_v30  ;;  %v4170_v24 = vsub.f32 %v13574_v15, %v17834_v23  ;;  %v17842_v30 = vand.u32 4294901760, %v13597_v21  ;;  %v9812_v37 = vpack.c.bf16 %v4038_v16, %v4031_v53  ;;  %9811 = vmatprep.subr.bf16.mxu1 %v9810_v56  ;;  %9785 = vmatpush3.bf16.msra.mxu0 %v13876_v45 }
 0x202   :  { %v13903_v3 = vpack.c.bf16 %v17839_v42, %v17837_v20  ;;  %v4177_v0 = vsub.f32 %v13585_v36, %v17840_v19  ;;  %v4058_v39 = vsub.f32 %v13590_v50, %v17841_v10  ;;  %v13920_v20 = vld [vmem:[#allocation5 + $0x500] sm:$0xff]  ;;  %v7692_v42 = vpop.f32.mrb[10].mxu0  ;;  %v9814_v19 = vpack.c.bf16 %v4164_v17, %v4157_v9  ;;  %v13934_v36 = vld [vmem:[#allocation5 + $0x598] sm:$0xff]  ;;  %v13939_v17 = vld [vmem:[#allocation5 + $0x510] sm:$0xff]  ;;  %9787 = vmatprep.subr.bf16.mxu0 %v13882_v59 }
 0x203   :  { %v4065_v23 = vsub.f32 %v13597_v21, %v17842_v30  ;;  %v4045_v1 = vand.u32 4294901760, %v4044_v40  ;;  %v16570_v58 = vand.u32 4294901760, %v13896_v28  ;;  %v7693_v27 = vpop.f32.mrb[11].mxu0  ;;  %v17843_v10 = vand.u32 4294901760, %v13862_v49  ;;  %17845 = vst [vmem:[#allocation37_spill] sm:$0xff] %v13934_v36  ;;  %17846 = vst [vmem:[#allocation67_spill] sm:$0xff] %v13939_v17 }
 0x204   :  { %v4052_v30 = vand.u32 4294901760, %v4051_v5  ;;  %v4171_v21 = vand.u32 4294901760, %v4170_v24  ;;  %v7694_v33 = vadd.f32 %v7693_v27, %v7692_v42  ;;  %v4178_v53 = vand.u32 4294901760, %v4177_v0  ;;  %v13941_v40 = vld [vmem:[#allocation5 + $0x518] sm:$0xff]  ;;  %v13951_v42 = vld [vmem:[#allocation5 + $0x5a0] sm:$0xff]  ;;  %9813 = vmatpush3.bf16.msra.mxu1 %v9812_v37 }
 0x205   :  { %v13928_v50 = vsub.f32 %v13862_v49, %v17843_v10  ;;  %17847 = vst [vmem:[#allocation70_spill] sm:$0xff] %v13941_v40  ;;  %v4059_v5 = vand.u32 4294901760, %v4058_v39  ;;  %v4066_v24 = vand.u32 4294901760, %v4065_v23  ;;  %v17848_v27 = vand.u32 4294901760, %v13887_v8  ;;  %17849 = vst [vmem:[#allocation38_spill] sm:$0xff] %v13951_v42  ;;  %v13961_v23 = vld [vmem:[#allocation5 + $0x5a8] sm:$0xff]  ;;  %9815 = vmatprep.subr.bf16.mxu1 %v9814_v19  ;;  %9789 = vmatpush3.bf16.msra.mxu0 %v13903_v3 }
 0x206   :  { %v2013_v12 = vadd.f32 %v7694_v33, %v13715_v14  ;;  %v13957_v9 = vsub.f32 %v13896_v28, %v16570_v58  ;;  %v13963_v10 = vld [vmem:[#allocation5 + $0x520] sm:$0xff]  ;;  %v9818_v58 = vpack.c.bf16 %v4178_v53, %v4171_v21  ;;  %v17851_v26 = vand.u32 4294901760, %v13920_v20 }
 0x207   :  { %v13949_v0 = vsub.f32 %v13887_v8, %v17848_v27  ;;  %17850 = vst [vmem:[#allocation42_spill] sm:$0xff] %v13963_v10  ;;  %v7727_v27 = vpop.f32.mrb[10].mxu1  ;;  %v3950_v16 = vand.u32 4294901760, %v13928_v50  ;;  %v9816_v8 = vpack.c.bf16 %v4052_v30, %v4045_v1  ;;  %v17852_v28 = vand.u32 4294901760, %v13922_v6  ;;  %v13980_v1 = vld [vmem:[#allocation5 + $0x528] sm:$0xff] }
 0x208   :  { %v7728_v33 = vpop.f32.mrb[11].mxu1  ;;  %v13972_v39 = vsub.f32 %v13920_v20, %v17851_v26  ;;  %v9820_v56 = vpack.c.bf16 %v4066_v24, %v4059_v5  ;;  %v13985_v26 = vld [vmem:[#allocation5 + $0x5b0] sm:$0xff]  ;;  %v17854_v14 = vand.u32 4294901760, %v13932_v44  ;;  %v17855_v50 = vand.u32 4294901760, %v13934_v36  ;;  %v13999_v24 = vld [vmem:[#allocation5 + $0x5b8] sm:$0xff] }
 0x209   :  { %v13977_v49 = vsub.f32 %v13922_v6, %v17852_v28  ;;  %v7729_v30 = vadd.f32 %v7728_v33, %v7727_v27  ;;  %17853 = vst [vmem:[#allocation48_spill] sm:$0xff] %v13985_v26  ;;  %17856 = vst [vmem:[#allocation28_spill] sm:$0xff] %v13999_v24  ;;  %v17857_v19 = vand.u32 4294901760, %v13939_v17  ;;  %v17860_v5 = vand.u32 4294901760, %v13951_v42  ;;  %9817 = vmatpush3.bf16.msra.mxu1 %v9816_v8 }
 0x20a   :  { %v13990_v28 = vsub.f32 %v13932_v44, %v17854_v14  ;;  %v13995_v27 = vsub.f32 %v13934_v36, %v17855_v50  ;;  %v17858_v14 = vand.u32 4294901760, %v13941_v40  ;;  %v14014_v36 = vld [vmem:[#allocation5 + $0x530] sm:$0xff]  ;;  %v17863_v50 = vand.u32 4294901760, %v13961_v23  ;;  %9819 = vmatprep.subr.bf16.mxu1 %v9818_v58  ;;  %3951 = vmatmul.mubr.f32.vlgmr.msra.gmra.mrb[24].mxu0 %v3950_v16 }
 0x20b   :  { %v14001_v33 = vadd.f32 %v7729_v30, %v2013_v12  ;;  %v14006_v53 = vsub.f32 %v13939_v17, %v17857_v19  ;;  %17859 = vst [vmem:[#allocation40_spill] sm:$0xff] %v14014_v36  ;;  %v14020_v12 = vsub.f32 %v13951_v42, %v17860_v5  ;;  %v14025_v17 = vld [vmem:[#allocation5 + $0x538] sm:$0xff]  ;;  %v17864_v5 = vand.u32 4294901760, %v13963_v10  ;;  %4318 = vmatprep.mubr.f32.mxu0 %v13674_v18 }
 0x20c   :  { %v14011_v21 = vsub.f32 %v13941_v40, %v17858_v14  ;;  %17861 = vst [vmem:[#allocation23_spill] sm:$0xff] %v14025_v17  ;;  %v17862_v14 = vpack.c.bf16 %v13222_v41, %v13214_v29  ;;  %v14033_v40 = vsub.f32 %v13961_v23, %v17863_v50  ;;  %v17865_v37 = vand.u32 4294901760, %v13949_v0  ;;  %v14050_v50 = vld [vmem:[#allocation5 + $0x5c0] sm:$0xff] }
 0x20d   :  { %v14038_v30 = vsub.f32 %v13963_v10, %v17864_v5  ;;  %v17866_v42 = vand.u32 4294901760, %v13957_v9  ;;  %17868 = vst [vmem:[#allocation80_spill] sm:$0xff] %v14050_v50  ;;  %v17870_v5 = vand.u32 4294901760, %v13972_v39  ;;  %v17871_v19 = vand.u32 4294901760, %v13977_v49  ;;  %v14068_v41 = vld [vmem:[#allocation5 + $0x540] sm:$0xff]  ;;  %9821 = vmatpush3.bf16.msra.mxu1 %v9820_v56  ;;  %v14132_v56 = vld [vmem:[#allocation5 + $0x5d8] sm:$0xff] }
 0x20e   :  { %9823 = vmatprep.subr.bf16.mxu0 %v17862_v14  ;;  %v14052_v14 = vld [vmem:[#allocation5 + $0x5c8] sm:$0xff]  ;;  %17874 = vst [vmem:[#allocation50_spill] sm:$0xff] %v14068_v41  ;;  %v9830_v16 = vpack.c.bf16 %v13300_v11, %v13287_v38  ;;  %v17879_v29 = vand.u32 4294901760, %v13995_v27  ;;  %v17882_v11 = vand.u32 4294901760, %v13999_v24  ;;  %9855 = vmatprep.subr.bf16.mxu1 %v13698_v13  ;;  %17894 = vst [vmem:[#allocation89_spill] sm:$0xff] %v14132_v56  ;;  %v17896_v38 = vand.u32 4294901760, %v14033_v40 }
 0x20f   :  { %v14045_v44 = vpack.c.bf16 %v17866_v42, %v17865_v37  ;;  %17869 = vst [vmem:[#allocation75_spill] sm:$0xff] %v14052_v14  ;;  %v14058_v10 = vpack.c.bf16 %v17871_v19, %v17870_v5  ;;  %v17873_v42 = vand.u32 4294901760, %v13980_v1  ;;  %v17876_v19 = vand.u32 4294901760, %v13985_v26 }
 0x210   :  { %v17878_v37 = vand.u32 4294901760, %v13990_v28  ;;  %4183 = vmatmul.mubr.f32.vlgmr.msra.gmra.mrb[24].mxu1 %v13832_v51 }
 0x211   :  { %17867 = vst [vmem:[#allocation47_spill] sm:$0xff] %v14045_v44  ;;  %17872 = vst [vmem:[#allocation81_spill] sm:$0xff] %v14058_v10  ;;  %v14063_v58 = vsub.f32 %v13980_v1, %v17873_v42  ;;  %v17875_v44 = vpack.c.bf16 %v13244_v34, %v13239_v63  ;;  %v14079_v5 = vsub.f32 %v13985_v26, %v17876_v19  ;;  %v14081_v42 = vld [vmem:[#allocation5 + $0x548] sm:$0xff]  ;;  %v17884_v19 = vand.u32 4294901760, %v14006_v53 }
 0x212   :  { %17877 = vst [vmem:[#allocation82_spill] sm:$0xff] %v14081_v42  ;;  %v14087_v8 = vpack.c.bf16 %v17879_v29, %v17878_v37  ;;  %v17881_v63 = vpack.c.bf16 %v13262_v2, %v13257_v46  ;;  %v14095_v34 = vsub.f32 %v13999_v24, %v17882_v11  ;;  %v17885_v10 = vand.u32 4294901760, %v14011_v21 }
 0x213   :  { %9825 = vmatpush3.bf16.msra.mxu0 %v17875_v44  ;;  %v17887_v46 = vand.u32 4294901760, %v14014_v36  ;;  %v17889_v11 = vand.u32 4294901760, %v14025_v17 }
 0x214   :  { %17880 = vst [vmem:[#allocation83_spill] sm:$0xff] %v14087_v8  ;;  %9827 = vmatprep.subr.bf16.mxu0 %v17881_v63  ;;  %17883 = vst [vmem:[#allocation84_spill] sm:$0xff] %v14095_v34  ;;  %v14103_v29 = vpack.c.bf16 %v17885_v10, %v17884_v19  ;;  %v9832_v63 = vpack.c.bf16 %v13330_v7, %v13305_v31  ;;  %v17895_v10 = vand.u32 4294901760, %v14020_v12  ;;  %v17898_v8 = vld [vmem:[#allocation36_spill] sm:$0xff]  ;;  %v17901_v31 = vand.u32 4294901760, %v14052_v14 }
 0x215   :  { %v14109_v2 = vsub.f32 %v14014_v36, %v17887_v46  ;;  %v14117_v44 = vsub.f32 %v14025_v17, %v17889_v11  ;;  %v17892_v46 = vpack.c.bf16 %v13278_v55, %v13273_v43  ;;  %v17893_v11 = vld [vmem:[#allocation63_spill] sm:$0xff]  ;;  %9857 = vmatpush3.bf16.msra.mxu1 %v17898_v8  ;;  %v17899_v55 = vand.u32 4294901760, %v14050_v50 }
 0x216   :  { %17886 = vst [vmem:[#allocation85_spill] sm:$0xff] %v14103_v29  ;;  %v14122_v29 = vld [vmem:[#allocation5 + $0x5d0] sm:$0xff]  ;;  %v9834_v37 = vpack.c.bf16 %v17893_v11, %v13346_v4  ;;  %v14138_v19 = vpack.c.bf16 %v17896_v38, %v17895_v10  ;;  %v14149_v7 = vsub.f32 %v14052_v14, %v17901_v31  ;;  %v17905_v38 = vand.u32 4294901760, %v14038_v30  ;;  %v17908_v11 = vld [vmem:[#allocation35_spill] sm:$0xff] }
 0x217   :  { %17888 = vst [vmem:[#allocation86_spill] sm:$0xff] %v14109_v2  ;;  %17890 = vst [vmem:[#allocation87_spill] sm:$0xff] %v14117_v44  ;;  %9829 = vmatpush3.bf16.msra.mxu0 %v17892_v46  ;;  %v14144_v43 = vsub.f32 %v14050_v50, %v17899_v55  ;;  %v14151_v4 = vld [vmem:[#allocation5 + $0x550] sm:$0xff]  ;;  %v14153_v46 = vld [vmem:[#allocation5 + $0x558] sm:$0xff]  ;;  %9859 = vmatprep.subr.bf16.mxu1 %v17908_v11  ;;  %v17909_v55 = vand.u32 4294901760, %v13674_v18  ;;  %v9836_v17 = vpack.c.bf16 %v13384_v22, %v13376_v48 }
 0x218   :  { %17891 = vst [vmem:[#allocation88_spill] sm:$0xff] %v14122_v29  ;;  %17897 = vst [vmem:[#allocation90_spill] sm:$0xff] %v14138_v19  ;;  %9831 = vmatprep.subr.bf16.mxu0 %v9830_v16  ;;  %v17906_v16 = vand.u32 4294901760, %v14063_v58  ;;  %v17910_v19 = vand.u32 4294901760, %v14068_v41  ;;  %v14172_v36 = vld [vmem:[#allocation5 + $0x5e0] sm:$0xff]  ;;  %v17918_v18 = vand.u32 4294901760, %v14095_v34 }
 0x219   :  { %17900 = vst [vmem:[#allocation91_spill] sm:$0xff] %v14144_v43  ;;  %17902 = vst [vmem:[#allocation51_spill] sm:$0xff] %v14149_v7  ;;  %4425 = vmatprep.mubr.f32.mxu1 %v17909_v55  ;;  %v14184_v14 = vld [vmem:[#allocation5 + $0x560] sm:$0xff]  ;;  %9861 = vmatpush3.bf16.msra.mxu1 %v13750_v52  ;;  %v14202_v48 = vld [vmem:[#allocation5 + $0x568] sm:$0xff]  ;;  %v17923_v50 = vand.u32 4294901760, %v14117_v44  ;;  %v17927_v22 = vand.u32 4294901760, %v14132_v56 }
 0x21a   :  { %17903 = vst [vmem:[#allocation92_spill] sm:$0xff] %v14151_v4  ;;  %17904 = vst [vmem:[#allocation93_spill] sm:$0xff] %v14153_v46  ;;  %v14159_v10 = vpack.c.bf16 %v17906_v16, %v17905_v38  ;;  %v14167_v31 = vsub.f32 %v14068_v41, %v17910_v19  ;;  %v17913_v38 = vand.u32 4294901760, %v14081_v42  ;;  %v17920_v19 = vld [vmem:[#allocation58_spill] sm:$0xff]  ;;  %v17922_v41 = vand.u32 4294901760, %v14109_v2 }
 0x21b   :  { %17912 = vst [vmem:[#allocation53_spill] sm:$0xff] %v14172_v36  ;;  %17916 = vst [vmem:[#allocation60_spill] sm:$0xff] %v14184_v14  ;;  %9833 = vmatpush3.bf16.msra.mxu0 %v9832_v63  ;;  %v9838_v55 = vpack.c.bf16 %v17793_v35, %v17920_v19  ;;  %v9840_v63 = vpack.c.bf16 %v13444_v61, %v13434_v32  ;;  %v17926_v61 = vand.u32 4294901760, %v14122_v29  ;;  %v17929_v35 = vand.u32 4294901760, %v14151_v4 }
 0x21c   :  { %17907 = vst [vmem:[#allocation59_spill] sm:$0xff] %v14159_v10  ;;  %17911 = vst [vmem:[#allocation20_spill] sm:$0xff] %v14167_v31  ;;  %v14177_v16 = vsub.f32 %v14081_v42, %v17913_v38  ;;  %v14182_v10 = vld [vmem:[#allocation5 + $0x5e8] sm:$0xff]  ;;  %v17917_v38 = vand.u32 4294901760, %v14079_v5  ;;  %9835 = vmatprep.subr.bf16.mxu0 %v9834_v37  ;;  %v14208_v24 = vpack.c.bf16 %v17923_v50, %v17922_v41  ;;  %v14242_v50 = vld [vmem:[#allocation5 + $0x570] sm:$0xff]  ;;  %v17933_v37 = vand.u32 4294901760, %v14144_v43 }
 0x21d   :  { %17915 = vst [vmem:[#allocation56_spill] sm:$0xff] %v14182_v10  ;;  %17921 = vst [vmem:[#allocation64_spill] sm:$0xff] %v14202_v48  ;;  %v14218_v19 = vsub.f32 %v14122_v29, %v17926_v61  ;;  %v14223_v41 = vsub.f32 %v14132_v56, %v17927_v22  ;;  %v14232_v32 = vsub.f32 %v14151_v4, %v17929_v35  ;;  %v17930_v61 = vand.u32 4294901760, %v14153_v46  ;;  %v17936_v35 = vld [vmem:[#allocation12_spill] sm:$0xff]  ;;  %v17937_v4 = vld [vmem:[#allocation33_spill] sm:$0xff] }
 0x21e   :  { %17914 = vst [vmem:[#allocation55_spill] sm:$0xff] %v14177_v16  ;;  %v14194_v42 = vpack.c.bf16 %v17918_v18, %v17917_v38  ;;  %17924 = vst [vmem:[#allocation17_spill] sm:$0xff] %v14208_v24  ;;  %v17925_v18 = vld [vmem:[#allocation46_spill] sm:$0xff]  ;;  %v14227_v24 = vld [vmem:[#allocation5 + $0x5f0] sm:$0xff]  ;;  %v17942_v26 = vand.u32 4294901760, %v14167_v31  ;;  %v17943_v34 = vand.u32 4294901760, %v14177_v16 }
 0x21f   :  { %9863 = vmatprep.subr.bf16.mxu1 %v17925_v18  ;;  %17928 = vst [vmem:[#allocation16_spill] sm:$0xff] %v14227_v24  ;;  %9837 = vmatpush3.bf16.msra.mxu0 %v9836_v17  ;;  %v14237_v38 = vsub.f32 %v14153_v46, %v17930_v61  ;;  %17932 = vst [vmem:[#allocation45_spill] sm:$0xff] %v14242_v50  ;;  %v17934_v17 = vand.u32 4294901760, %v14149_v7  ;;  %v17938_v29 = vld [vmem:[#allocation41_spill] sm:$0xff]  ;;  %v17940_v46 = vld [vmem:[#allocation66_spill] sm:$0xff] }
 0x220   :  { %17919 = vst [vmem:[#allocation61_spill] sm:$0xff] %v14194_v42  ;;  %v14240_v42 = vld [vmem:[#allocation5 + $0x5f8] sm:$0xff]  ;;  %9839 = vmatprep.subr.bf16.mxu0 %v9838_v55  ;;  %9865 = vmatpush3.bf16.msra.mxu1 %v17936_v35  ;;  %v9842_v44 = vpack.c.bf16 %v17938_v29, %v17937_v4  ;;  %v14261_v43 = vpack.c.bf16 %v17943_v34, %v17942_v26  ;;  %v17946_v55 = vand.u32 4294901760, %v14172_v36  ;;  %v17948_v29 = vand.u32 4294901760, %v14182_v10  ;;  %v17952_v34 = vld [vmem:[#allocation31_spill] sm:$0xff] }
 0x221   :  { %17931 = vst [vmem:[#allocation26_spill] sm:$0xff] %v14240_v42  ;;  %v14248_v56 = vpack.c.bf16 %v17934_v17, %v17933_v37  ;;  %v17939_v61 = vld [vmem:[#allocation69_spill] sm:$0xff]  ;;  %v17958_v26 = vand.u32 4294901760, %v14227_v24 }
 0x222   :  { %v9844_v2 = vpack.c.bf16 %v17940_v46, %v17939_v61  ;;  %v14255_v22 = vld [vmem:[#allocation5 + $0x578] sm:$0xff]  ;;  %17944 = vst [vmem:[#allocation74_spill] sm:$0xff] %v14261_v43  ;;  %v14267_v37 = vsub.f32 %v14172_v36, %v17946_v55  ;;  %v14272_v4 = vsub.f32 %v14182_v10, %v17948_v29  ;;  %v17950_v46 = vand.u32 4294901760, %v14184_v14 }
 0x223   :  { %17935 = vst [vmem:[#allocation71_spill] sm:$0xff] %v14248_v56  ;;  %17941 = vst [vmem:[#allocation73_spill] sm:$0xff] %v14255_v22  ;;  %v17945_v7 = vld [vmem:[#allocation49_spill] sm:$0xff]  ;;  %9841 = vmatpush3.bf16.msra.mxu0 %v9840_v63  ;;  %v17951_v56 = vand.u32 4294901760, %v14202_v48  ;;  %v17953_v61 = vld [vmem:[#allocation62_spill] sm:$0xff]  ;;  %v17955_v55 = vand.u32 4294901760, %v14218_v19  ;;  %v9848_v10 = vpack.c.bf16 %v13554_v47, %v13544_v57 }
 0x224   :  { %9867 = vmatprep.subr.bf16.mxu1 %v17945_v7  ;;  %17947 = vst [vmem:[#allocation63_spill] sm:$0xff] %v14267_v37  ;;  %17949 = vst [vmem:[#allocation36_spill] sm:$0xff] %v14272_v4  ;;  %v14277_v17 = vsub.f32 %v14184_v14, %v17950_v46  ;;  %v16607_v46 = vand.u32 4294901760, %v14232_v32  ;;  %9843 = vmatprep.subr.bf16.mxu0 %v9842_v44  ;;  %v17954_v14 = vld [vmem:[#allocation77_spill] sm:$0xff]  ;;  %v17956_v63 = vand.u32 4294901760, %v14223_v41  ;;  %v16612_v47 = vand.u32 4294901760, %v14267_v37 }
 0x225   :  { %v14287_v29 = vsub.f32 %v14202_v48, %v17951_v56  ;;  %9869 = vmatpush3.bf16.msra.mxu1 %v17952_v34  ;;  %v9846_v43 = vpack.c.bf16 %v17954_v14, %v17953_v61  ;;  %v7762_v56 = vpop.f32.mrb[12].mxu0  ;;  %v14307_v44 = vsub.f32 %v14227_v24, %v17958_v26  ;;  %v17960_v14 = vand.u32 4294901760, %v14237_v38 }
 0x226   :  { %v14299_v36 = vpack.c.bf16 %v17956_v63, %v17955_v55  ;;  %9871 = vmatprep.subr.bf16.mxu1 %v13795_v25  ;;  %v7763_v48 = vpop.f32.mrb[13].mxu0  ;;  %v17962_v55 = vand.u32 4294901760, %v14240_v42  ;;  %v16611_v26 = vand.u32 4294901760, %v14272_v4 }
 0x227   :  { %17959 = vst [vmem:[#allocation58_spill] sm:$0xff] %v14307_v44  ;;  %v14313_v61 = vpack.c.bf16 %v17960_v14, %v16607_v46  ;;  %v7764_v24 = vadd.f32 %v7763_v48, %v7762_v56  ;;  %9845 = vmatpush3.bf16.msra.mxu0 %v9844_v2  ;;  %v17966_v14 = vand.u32 4294901760, %v14255_v22  ;;  %v17970_v56 = vld [vmem:[#allocation14_spill] sm:$0xff] }
 0x228   :  { %17957 = vst [vmem:[#allocation35_spill] sm:$0xff] %v14299_v36  ;;  %v14318_v63 = vsub.f32 %v14240_v42, %v17962_v55  ;;  %v17964_v36 = vand.u32 4294901760, %v14242_v50  ;;  %v16613_v55 = vand.u32 4294901760, %v14287_v29  ;;  %9847 = vmatprep.subr.bf16.mxu0 %v9846_v43  ;;  %v14341_v2 = vpack.c.bf16 %v16611_v26, %v16612_v47  ;;  %v17972_v42 = vld [vmem:[#allocation44_spill] sm:$0xff]  ;;  %v17973_v26 = vld [vmem:[#allocation15_spill] sm:$0xff] }
 0x229   :  { %17961 = vst [vmem:[#allocation46_spill] sm:$0xff] %v14313_v61  ;;  %v14330_v46 = vsub.f32 %v14255_v22, %v17966_v14  ;;  %v16616_v61 = vand.u32 4294901760, %v14277_v17  ;;  %9873 = vmatpush3.bf16.msra.mxu1 %v13816_v60  ;;  %v2229_v48 = vadd.f32 %v7764_v24, %v14001_v33  ;;  %v7797_v14 = vpop.f32.mrb[12].mxu1  ;;  %v16615_v22 = vand.u32 4294901760, %v14307_v44 }
 0x22a   :  { %17963 = vst [vmem:[#allocation12_spill] sm:$0xff] %v14318_v63  ;;  %v14323_v57 = vsub.f32 %v14242_v50, %v17964_v36  ;;  %v17968_v36 = vld [vmem:[#allocation43_spill] sm:$0xff]  ;;  %17969 = vst [vmem:[#allocation69_spill] sm:$0xff] %v14341_v2  ;;  %9875 = vmatprep.subr.bf16.mxu1 %v17970_v56  ;;  %v9852_v47 = vpack.c.bf16 %v17973_v26, %v17972_v42  ;;  %v17976_v26 = vld [vmem:[#allocation52_spill] sm:$0xff] }
 0x22b   :  { %17967 = vst [vmem:[#allocation41_spill] sm:$0xff] %v14330_v46  ;;  %v9850_v50 = vpack.c.bf16 %v17968_v36, %v13574_v15  ;;  %v14349_v43 = vpack.c.bf16 %v16613_v55, %v16616_v61  ;;  %v16614_v15 = vand.u32 4294901760, %v14318_v63  ;;  %9849 = vmatpush3.bf16.msra.mxu0 %v9848_v10  ;;  %v7798_v36 = vpop.f32.mrb[13].mxu1  ;;  %v16618_v33 = vand.u32 4294901760, %v14330_v46  ;;  %v17981_v61 = vld [vmem:[#allocation54_spill] sm:$0xff] }
 0x22c   :  { %17965 = vst [vmem:[#allocation33_spill] sm:$0xff] %v14323_v57  ;;  %v16619_v24 = vand.u32 4294901760, %v14323_v57  ;;  %v7799_v2 = vadd.f32 %v7798_v36, %v7797_v14  ;;  %v17978_v14 = vld [vmem:[#allocation21_spill] sm:$0xff]  ;;  %v17979_v36 = vld [vmem:[#allocation79_spill] sm:$0xff] }
 0x22d   :  { %17971 = vst [vmem:[#allocation66_spill] sm:$0xff] %v14349_v43  ;;  %9851 = vmatprep.subr.bf16.mxu0 %v9850_v50  ;;  %9877 = vmatpush3.bf16.msra.mxu1 %v13858_v62  ;;  %v14362_v55 = vpack.c.bf16 %v16614_v15, %v16615_v22  ;;  %v17977_v50 = vld [vmem:[#allocation76_spill] sm:$0xff]  ;;  %v17980_v15 = vld [vmem:[#allocation65_spill] sm:$0xff]  ;;  %v18033_v43 = vand.u32 4294901760, %v13980_v1 }
 0x22e   :  { %9879 = vmatprep.subr.bf16.mxu1 %v13869_v54  ;;  %v14369_v42 = vpack.c.bf16 %v16618_v33, %v16619_v24  ;;  %v2461_v10 = vadd.f32 %v7799_v2, %v2229_v48  ;;  %v346_v22 = vcombine.high %v17980_v15, %v17980_v15  ;;  %v17983_v2 = vand.u32 4294901760, %v17977_v50  ;;  %v17984_v48 = vld [vmem:[#allocation11_spill] sm:$0xff]  ;;  %v17987_v15 = vld [vmem:[#allocation22_spill] sm:$0xff]  ;;  %v18039_v1 = vld [vmem:[#allocation28_spill] sm:$0xff] }
 0x22f   :  { %17974 = vst [vmem:[#allocation49_spill] sm:$0xff] %v14362_v55  ;;  %9853 = vmatpush3.bf16.msra.mxu0 %v9852_v47  ;;  %v17982_v47 = vld [vmem:[#allocation18_spill] sm:$0xff] }
 0x230   :  { %17975 = vst [vmem:[#allocation31_spill] sm:$0xff] %v14369_v42  ;;  %9887 = vmatprep.subr.bf16.mxu0 %v17976_v26  ;;  %v14386_v26 = vrot.slane %v346_v22, %v17984_v48  ;;  %v17988_v22 = vld [vmem:[#allocation32_spill] sm:$0xff]  ;;  %v18031_v55 = vld [vmem:[#allocation42_spill] sm:$0xff] }
 0x231   :  { %9881 = vmatpush3.bf16.msra.mxu1 %v13876_v45 }
 0x232   :  { %9883 = vmatprep.subr.bf16.mxu1 %v13882_v59  ;;  %4321 = vmatmul.mubr.f32.vlgmr.msra.gmra.mrb[26].mxu0 %v17977_v50 }
 0x233   :  { %9889 = vmatpush3.bf16.msra.mxu0 %v17978_v14  ;;  %4595 = vmatprep.mubr.f32.mxu0 %v17979_v36  ;;  %v17985_v14 = vld [vmem:[#allocation57_spill] sm:$0xff] }
 0x234   :  { %9891 = vmatprep.subr.bf16.mxu0 %v17981_v61  ;;  %v17986_v61 = vld [vmem:[#allocation13_spill] sm:$0xff] }
 0x235   :  { %9885 = vmatpush3.bf16.msra.mxu1 %v13903_v3 }
 0x236   :  { %9919 = vmatprep.subr.bf16.mxu1 %v13698_v13  ;;  %v362_v13 = vcombine.high %v14386_v26, %v14386_v26 }
 0x237   :  { %9893 = vmatpush3.bf16.msra.mxu0 %v17982_v47  ;;  %v17992_v47 = vld [vmem:[#allocation34_spill] sm:$0xff] }
 0x238   :  { %4429 = vmatmul.mubr.f32.vlgmr.msra.gmra.mrb[26].mxu1 %v17983_v2  ;;  %9895 = vmatprep.subr.bf16.mxu0 %v17985_v14  ;;  %v14399_v50 = vand.u32 4294901760, %v362_v13  ;;  %v17993_v14 = vld [vmem:[#allocation29_spill] sm:$0xff] }
 0x239   :  { %9921 = vmatpush3.bf16.msra.mxu1 %v17898_v8  ;;  %4699 = vmatprep.mubr.f32.mxu1 %v17979_v36  ;;  %v17990_v8 = vld [vmem:[#allocation68_spill] sm:$0xff] }
 0x23a   :  { %9923 = vmatprep.subr.bf16.mxu1 %v17908_v11  ;;  %17989 = vst [vmem:[#allocation62_spill] sm:$0xff] %v14399_v50  ;;  %v17991_v11 = vld [vmem:[#allocation39_spill] sm:$0xff]  ;;  %v14406_v36 = vsub.f32 %v362_v13, %v14399_v50 }
 0x23b   :  { %9897 = vmatpush3.bf16.msra.mxu0 %v17986_v61  ;;  %v17994_v61 = vld [vmem:[#allocation72_spill] sm:$0xff] }
 0x23c   :  { %9899 = vmatprep.subr.bf16.mxu0 %v17987_v15  ;;  %v17996_v15 = vand.u32 4294901760, %v13957_v9 }
 0x23d   :  { %9925 = vmatpush3.bf16.msra.mxu1 %v13750_v52  ;;  %v7832_v52 = vpop.f32.mrb[14].mxu0 }
 0x23e   :  { %9927 = vmatprep.subr.bf16.mxu1 %v17925_v18  ;;  %v7833_v18 = vpop.f32.mrb[15].mxu0 }
 0x23f   :  { %9901 = vmatpush3.bf16.msra.mxu0 %v17988_v22  ;;  %v7834_v2 = vadd.f32 %v7833_v18, %v7832_v52  ;;  %v18000_v18 = vld [vmem:[#allocation24_spill] sm:$0xff] }
 0x240   :  { %9903 = vmatprep.subr.bf16.mxu0 %v17990_v8  ;;  %v17997_v8 = vld [vmem:[#allocation78_spill] sm:$0xff] }
 0x241   :  { %9929 = vmatpush3.bf16.msra.mxu1 %v17936_v35  ;;  %v16617_v35 = vand.u32 4294901760, %v14406_v36  ;;  %v2599_v22 = vadd.f32 %v7834_v2, %v2461_v10 }
 0x242   :  { %9931 = vmatprep.subr.bf16.mxu1 %v17945_v7  ;;  %v17995_v7 = vand.u32 4294901760, %v13949_v0 }
 0x243   :  { %9905 = vmatpush3.bf16.msra.mxu0 %v17991_v11  ;;  %v4805_v10 = vsub.f32 %v14406_v36, %v16617_v35 }
 0x244   :  { %9907 = vmatprep.subr.bf16.mxu0 %v17992_v47  ;;  %v4934_v13 = vsub.f32 %v13949_v0, %v17995_v7  ;;  %v17998_v47 = vld [vmem:[#allocation19_spill] sm:$0xff] }
 0x245   :  { %9933 = vmatpush3.bf16.msra.mxu1 %v17952_v34  ;;  %v4941_v34 = vsub.f32 %v13957_v9, %v17996_v15  ;;  %v17999_v52 = vand.u32 4294901760, %v17998_v47  ;;  %v18004_v47 = vand.u32 4294901760, %v13977_v49  ;;  %v4806_v33 = vand.u32 4294901760, %v4805_v10 }
 0x246   :  { %9935 = vmatprep.subr.bf16.mxu1 %v13795_v25  ;;  %v7867_v25 = vpop.f32.mrb[14].mxu1  ;;  %v4935_v15 = vand.u32 4294901760, %v4934_v13 }
 0x247   :  { %9909 = vmatpush3.bf16.msra.mxu0 %v17993_v14  ;;  %v7868_v11 = vpop.f32.mrb[15].mxu1  ;;  %v18001_v14 = vand.u32 4294901760, %v18000_v18  ;;  %v18005_v18 = vand.u32 4294901760, %v13990_v28 }
 0x248   :  { %9911 = vmatprep.subr.bf16.mxu0 %v17994_v61  ;;  %v18002_v61 = vand.u32 4294901760, %v13972_v39  ;;  %v7869_v2 = vadd.f32 %v7868_v11, %v7867_v25 }
 0x249   :  { %9937 = vmatpush3.bf16.msra.mxu1 %v13816_v60  ;;  %v14427_v60 = vpack.c.bf16 %v18001_v14, %v17999_v52  ;;  %v4829_v52 = vsub.f32 %v13977_v49, %v18004_v47  ;;  %v4948_v14 = vsub.f32 %v13990_v28, %v18005_v18  ;;  %v18009_v47 = vld [vmem:[#allocation25_spill] sm:$0xff]  ;;  %v18011_v18 = vand.u32 4294901760, %v13922_v6 }
 0x24a   :  { %9939 = vmatprep.subr.bf16.mxu1 %v17970_v56  ;;  %v4822_v7 = vsub.f32 %v13972_v39, %v18002_v61  ;;  %v18003_v56 = vld [vmem:[#allocation30_spill] sm:$0xff]  ;;  %v18006_v61 = vand.u32 4294901760, %v13995_v27  ;;  %v14447_v11 = vadd.f32 %v7869_v2, %v2599_v22  ;;  %v18013_v22 = vld [vmem:[#allocation27_spill] sm:$0xff] }
 0x24b   :  { %9913 = vmatpush3.bf16.msra.mxu0 %v17997_v8  ;;  %v4942_v8 = vand.u32 4294901760, %v4941_v34  ;;  %v18008_v34 = vand.u32 4294901760, %v14011_v21  ;;  %v18014_v2 = vand.u32 4294901760, %v18013_v22 }
 0x24c   :  { %9915 = vmatprep.subr.bf16.mxu0 %v18003_v56  ;;  %v4955_v25 = vsub.f32 %v13995_v27, %v18006_v61  ;;  %v18015_v61 = vld [vmem:[#allocation37_spill] sm:$0xff]  ;;  %v4823_v42 = vand.u32 4294901760, %v4822_v7 }
 0x24d   :  { %9941 = vmatpush3.bf16.msra.mxu1 %v13858_v62  ;;  %v18007_v62 = vand.u32 4294901760, %v14006_v53  ;;  %v4843_v56 = vsub.f32 %v14011_v21, %v18008_v34  ;;  %v9982_v34 = vpack.c.bf16 %v4942_v8, %v4935_v15  ;;  %v18020_v15 = vand.u32 4294901760, %v14038_v30 }
 0x24e   :  { %9943 = vmatprep.subr.bf16.mxu1 %v13869_v54  ;;  %v18010_v54 = vand.u32 4294901760, %v13920_v20  ;;  %v4949_v20 = vand.u32 4294901760, %v4948_v14  ;;  %v4956_v6 = vand.u32 4294901760, %v4955_v25  ;;  %v18024_v25 = vld [vmem:[#allocation70_spill] sm:$0xff] }
 0x24f   :  { %v4836_v13 = vsub.f32 %v14006_v53, %v18007_v62  ;;  %9917 = vmatpush3.bf16.msra.mxu0 %v18009_v47  ;;  %v18016_v62 = vand.u32 4294901760, %v18015_v61  ;;  %v4830_v47 = vand.u32 4294901760, %v4829_v52  ;;  %v4850_v7 = vsub.f32 %v14038_v30, %v18020_v15  ;;  %v18022_v52 = vld [vmem:[#allocation67_spill] sm:$0xff] }
 0x250   :  { %v14460_v35 = vpack.c.bf16 %v18011_v18, %v18010_v54  ;;  %9951 = vmatprep.subr.bf16.mxu0 %v14427_v60  ;;  %v18018_v54 = vand.u32 4294901760, %v14020_v12  ;;  %v18019_v18 = vand.u32 4294901760, %v14033_v40  ;;  %v18023_v14 = vand.u32 4294901760, %v18022_v52 }
 0x251   :  { %9945 = vmatpush3.bf16.msra.mxu1 %v13876_v45  ;;  %v14468_v24 = vpack.c.bf16 %v18016_v62, %v18014_v2  ;;  %v4837_v22 = vand.u32 4294901760, %v4836_v13  ;;  %v4844_v2 = vand.u32 4294901760, %v4843_v56  ;;  %v18025_v61 = vand.u32 4294901760, %v18024_v25  ;;  %v18035_v25 = vld [vmem:[#allocation84_spill] sm:$0xff] }
 0x252   :  { %18012 = vst [vmem:[#allocation77_spill] sm:$0xff] %v14460_v35  ;;  %9947 = vmatprep.subr.bf16.mxu1 %v13882_v59  ;;  %v4962_v10 = vsub.f32 %v14020_v12, %v18018_v54  ;;  %v4969_v45 = vsub.f32 %v14033_v40, %v18019_v18  ;;  %4597 = vmatmul.mubr.f32.vlgmr.msra.gmra.mrb[28].mxu0 %v13832_v51  ;;  %v18021_v59 = vand.u32 4294901760, %v14063_v58  ;;  %v18027_v54 = vld [vmem:[#allocation38_spill] sm:$0xff]  ;;  %v18029_v13 = vand.u32 4294901760, %v13961_v23 }
 0x253   :  { %18017 = vst [vmem:[#allocation43_spill] sm:$0xff] %v14468_v24  ;;  %9953 = vmatpush3.bf16.msra.mxu0 %v14460_v35  ;;  %v14489_v62 = vpack.c.bf16 %v18025_v61, %v18023_v14  ;;  %v18028_v18 = vand.u32 4294901760, %v18027_v54  ;;  %v18032_v15 = vand.u32 4294901760, %v18031_v55  ;;  %4807 = vmatprep.mubr.f32.mxu0 %v4806_v33  ;;  %v18034_v52 = vand.u32 4294901760, %v14079_v5  ;;  %v18037_v55 = vld [vmem:[#allocation48_spill] sm:$0xff] }
 0x254   :  { %v4857_v8 = vsub.f32 %v14063_v58, %v18021_v59  ;;  %9955 = vmatprep.subr.bf16.mxu0 %v14468_v24  ;;  %v9984_v59 = vpack.c.bf16 %v4830_v47, %v4823_v42  ;;  %v18036_v23 = vand.u32 4294901760, %v18035_v25  ;;  %v18038_v54 = vand.u32 4294901760, %v18037_v55  ;;  %v18041_v24 = vld [vmem:[#allocation86_spill] sm:$0xff] }
 0x255   :  { %18026 = vst [vmem:[#allocation14_spill] sm:$0xff] %v14489_v62  ;;  %v14495_v56 = vpack.c.bf16 %v18029_v13, %v18028_v18  ;;  %v14501_v48 = vpack.c.bf16 %v18033_v43, %v18032_v15  ;;  %9949 = vmatpush3.bf16.msra.mxu1 %v13903_v3  ;;  %v4976_v14 = vsub.f32 %v14079_v5, %v18034_v52  ;;  %v18040_v43 = vand.u32 4294901760, %v18039_v1 }
 0x256   :  { %v4983_v61 = vsub.f32 %v18035_v25, %v18036_v23  ;;  %9983 = vmatprep.subr.bf16.mxu1 %v9982_v34  ;;  %v9986_v33 = vpack.c.bf16 %v4956_v6, %v4949_v20  ;;  %v4963_v13 = vand.u32 4294901760, %v4962_v10  ;;  %v4970_v15 = vand.u32 4294901760, %v4969_v45  ;;  %v18043_v34 = vld [vmem:[#allocation87_spill] sm:$0xff] }
 0x257   :  { %18030 = vst [vmem:[#allocation44_spill] sm:$0xff] %v14495_v56  ;;  %v14515_v18 = vpack.c.bf16 %v18040_v43, %v18038_v54  ;;  %v9988_v3 = vpack.c.bf16 %v4844_v2, %v4837_v22  ;;  %v4851_v42 = vand.u32 4294901760, %v4850_v7  ;;  %v4858_v47 = vand.u32 4294901760, %v4857_v8  ;;  %9957 = vmatpush3.bf16.msra.mxu0 %v14489_v62  ;;  %v18045_v54 = vld [vmem:[#allocation91_spill] sm:$0xff]  ;;  %v18051_v43 = vld [vmem:[#allocation40_spill] sm:$0xff] }
 0x258   :  { %v18042_v35 = vand.u32 4294901760, %v18041_v24  ;;  %4701 = vmatmul.mubr.f32.vlgmr.msra.gmra.mrb[28].mxu1 %v13832_v51  ;;  %v18044_v23 = vand.u32 4294901760, %v18043_v34  ;;  %v18046_v1 = vand.u32 4294901760, %v18045_v54  ;;  %v18047_v6 = vld [vmem:[#allocation51_spill] sm:$0xff]  ;;  %9959 = vmatprep.subr.bf16.mxu0 %v14495_v56  ;;  %v4984_v22 = vand.u32 4294901760, %v4983_v61 }
 0x259   :  { %v18048_v10 = vand.u32 4294901760, %v18047_v6  ;;  %9985 = vmatpush3.bf16.msra.mxu1 %v9984_v59  ;;  %v18049_v2 = vand.u32 4294901760, %v14167_v31  ;;  %v18050_v7 = vand.u32 4294901760, %v14177_v16  ;;  %v18058_v59 = vld [vmem:[#allocation75_spill] sm:$0xff]  ;;  %5043 = vmatprep.mubr.f32.mxu1 %v14399_v50 }
 0x25a   :  { %v4864_v52 = vsub.f32 %v18041_v24, %v18042_v35  ;;  %v4871_v55 = vsub.f32 %v18043_v34, %v18044_v23  ;;  %v4990_v20 = vsub.f32 %v18045_v54, %v18046_v1  ;;  %v4977_v35 = vand.u32 4294901760, %v4976_v14  ;;  %9987 = vmatprep.subr.bf16.mxu1 %v9986_v33  ;;  %v18053_v1 = vld [vmem:[#allocation23_spill] sm:$0xff]  ;;  %v18062_v34 = vld [vmem:[#allocation82_spill] sm:$0xff] }
 0x25b   :  { %v4997_v45 = vsub.f32 %v18047_v6, %v18048_v10  ;;  %v4878_v51 = vsub.f32 %v14167_v31, %v18049_v2  ;;  %v4885_v8 = vsub.f32 %v14177_v16, %v18050_v7  ;;  %v18052_v23 = vand.u32 4294901760, %v18051_v43  ;;  %v18056_v10 = vld [vmem:[#allocation80_spill] sm:$0xff]  ;;  %v18060_v2 = vld [vmem:[#allocation50_spill] sm:$0xff]  ;;  %9961 = vmatpush3.bf16.msra.mxu0 %v14501_v48 }
 0x25c   :  { %v18054_v54 = vand.u32 4294901760, %v18053_v1  ;;  %v18057_v56 = vand.u32 4294901760, %v18056_v10  ;;  %v18059_v14 = vand.u32 4294901760, %v18058_v59  ;;  %v9990_v6 = vpack.c.bf16 %v4970_v15, %v4963_v13  ;;  %v18064_v16 = vld [vmem:[#allocation88_spill] sm:$0xff]  ;;  %9963 = vmatprep.subr.bf16.mxu0 %v14515_v18 }
 0x25d   :  { %v18061_v31 = vand.u32 4294901760, %v18060_v2  ;;  %v18063_v7 = vand.u32 4294901760, %v18062_v34  ;;  %v9992_v43 = vpack.c.bf16 %v4858_v47, %v4851_v42  ;;  %v18065_v1 = vand.u32 4294901760, %v18064_v16  ;;  %9989 = vmatpush3.bf16.msra.mxu1 %v9988_v3  ;;  %v18069_v42 = vld [vmem:[#allocation92_spill] sm:$0xff]  ;;  %v18071_v16 = vld [vmem:[#allocation93_spill] sm:$0xff] }
 0x25e   :  { %v14542_v62 = vpack.c.bf16 %v18054_v54, %v18052_v23  ;;  %v14548_v61 = vpack.c.bf16 %v18059_v14, %v18057_v56  ;;  %v18066_v54 = vld [vmem:[#allocation89_spill] sm:$0xff]  ;;  %v14564_v10 = vand.u32 4294901760, %v14386_v26  ;;  %v4865_v56 = vand.u32 4294901760, %v4864_v52  ;;  %9991 = vmatprep.subr.bf16.mxu1 %v9990_v6 }
 0x25f   :  { %v14555_v33 = vpack.c.bf16 %v18063_v7, %v18061_v31  ;;  %v18067_v23 = vand.u32 4294901760, %v18066_v54  ;;  %v4872_v13 = vand.u32 4294901760, %v4871_v55  ;;  %v4991_v15 = vand.u32 4294901760, %v4990_v20  ;;  %v18077_v54 = vld [vmem:[#allocation53_spill] sm:$0xff] }
 0x260   :  { %18055 = vst [vmem:[#allocation15_spill] sm:$0xff] %v14542_v62  ;;  %v4998_v59 = vand.u32 4294901760, %v4997_v45  ;;  %v9994_v31 = vpack.c.bf16 %v4984_v22, %v4977_v35  ;;  %v18070_v47 = vand.u32 4294901760, %v18069_v42  ;;  %v18072_v34 = vand.u32 4294901760, %v18071_v16  ;;  %9965 = vmatpush3.bf16.msra.mxu0 %v14542_v62 }
 0x261   :  { %v14561_v24 = vpack.c.bf16 %v18067_v23, %v18065_v1  ;;  %v4879_v2 = vand.u32 4294901760, %v4878_v51  ;;  %v4886_v7 = vand.u32 4294901760, %v4885_v8  ;;  %v18073_v1 = vand.u32 4294901760, %v14218_v19  ;;  %v18079_v8 = vld [vmem:[#allocation56_spill] sm:$0xff]  ;;  %9967 = vmatprep.subr.bf16.mxu0 %v14548_v61  ;;  %9993 = vmatpush3.bf16.msra.mxu1 %v9992_v43  ;;  %v7902_v43 = vpop.f32.mrb[16].mxu0 }
 0x262   :  { %v14572_v14 = vpack.c.bf16 %v18072_v34, %v18070_v47  ;;  %v18074_v55 = vand.u32 4294901760, %v14223_v41  ;;  %v18075_v3 = vand.u32 4294901760, %v14232_v32  ;;  %v18076_v35 = vand.u32 4294901760, %v14237_v38  ;;  %9995 = vmatprep.subr.bf16.mxu1 %v9994_v31 }
 0x263   :  { %18068 = vst [vmem:[#allocation52_spill] sm:$0xff] %v14561_v24  ;;  %v5004_v52 = vsub.f32 %v14218_v19, %v18073_v1  ;;  %v18078_v51 = vand.u32 4294901760, %v18077_v54  ;;  %v18080_v6 = vand.u32 4294901760, %v18079_v8  ;;  %v14594_v42 = vsub.f32 %v14386_v26, %v14564_v10 }
 0x264   :  { %v5011_v20 = vsub.f32 %v14223_v41, %v18074_v55  ;;  %v4892_v45 = vsub.f32 %v14232_v32, %v18075_v3  ;;  %v4899_v22 = vsub.f32 %v14237_v38, %v18076_v35  ;;  %v18081_v47 = vand.u32 4294901760, %v14267_v37  ;;  %v18083_v35 = vld [vmem:[#allocation60_spill] sm:$0xff]  ;;  %9969 = vmatpush3.bf16.msra.mxu0 %v14555_v33 }
 0x265   :  { %v14590_v23 = vpack.c.bf16 %v18080_v6, %v18078_v51  ;;  %v18082_v34 = vand.u32 4294901760, %v14272_v4  ;;  %v9996_v55 = vpack.c.bf16 %v4872_v13, %v4865_v56  ;;  %v9998_v3 = vpack.c.bf16 %v4998_v59, %v4991_v15  ;;  %v18085_v51 = vld [vmem:[#allocation64_spill] sm:$0xff]  ;;  %9971 = vmatprep.subr.bf16.mxu0 %v14561_v24 }
 0x266   :  { %v5018_v16 = vsub.f32 %v14267_v37, %v18081_v47  ;;  %v18084_v54 = vand.u32 4294901760, %v18083_v35  ;;  %v18086_v8 = vand.u32 4294901760, %v18085_v51  ;;  %v18087_v26 = vand.u32 4294901760, %v14277_v17  ;;  %v18088_v37 = vld [vmem:[#allocation16_spill] sm:$0xff] }
 0x267   :  { %v5025_v1 = vsub.f32 %v14272_v4, %v18082_v34  ;;  %v10000_v47 = vpack.c.bf16 %v4886_v7, %v4879_v2  ;;  %v18089_v34 = vand.u32 4294901760, %v18088_v37  ;;  %v18090_v4 = vld [vmem:[#allocation26_spill] sm:$0xff]  ;;  %v18092_v13 = vand.u32 4294901760, %v14287_v29  ;;  %9997 = vmatpush3.bf16.msra.mxu1 %v9996_v55  ;;  %v14671_v55 = vld [vmem:[#allocation5 + $0x610] sm:$0xff] }
 0x268   :  { %v14607_v6 = vpack.c.bf16 %v18086_v8, %v18084_v54  ;;  %v4906_v50 = vsub.f32 %v14277_v17, %v18087_v26  ;;  %v18091_v62 = vand.u32 4294901760, %v18090_v4  ;;  %v5005_v59 = vand.u32 4294901760, %v5004_v52  ;;  %v14622_v8 = vld [vmem:[#allocation5 + $0x680] sm:$0xff]  ;;  %v18096_v26 = vld [vmem:[#allocation45_spill] sm:$0xff]  ;;  %9999 = vmatprep.subr.bf16.mxu1 %v9998_v3  ;;  %9973 = vmatpush3.bf16.msra.mxu0 %v14572_v14  ;;  %18107 = vst [vmem:[#allocation18_spill] sm:$0xff] %v14671_v55 }
 0x269   :  { %v4913_v15 = vsub.f32 %v14287_v29, %v18092_v13  ;;  %v5012_v35 = vand.u32 4294901760, %v5011_v20  ;;  %v4893_v54 = vand.u32 4294901760, %v4892_v45  ;;  %v4900_v51 = vand.u32 4294901760, %v4899_v22  ;;  %18093 = vst [vmem:[#allocation76_spill] sm:$0xff] %v14622_v8  ;;  %v18098_v52 = vld [vmem:[#allocation73_spill] sm:$0xff]  ;;  %v14650_v22 = vld [vmem:[#allocation5 + $0x600] sm:$0xff]  ;;  %9975 = vmatprep.subr.bf16.mxu0 %v14590_v23 }
 0x26a   :  { %v14617_v56 = vpack.c.bf16 %v18091_v62, %v18089_v34  ;;  %v5019_v2 = vand.u32 4294901760, %v5018_v16  ;;  %v5026_v7 = vand.u32 4294901760, %v5025_v1  ;;  %v18094_v37 = vand.u32 4294901760, %v14307_v44  ;;  %v14628_v62 = vld [vmem:[#allocation5 + $0x688] sm:$0xff]  ;;  %18103 = vst [vmem:[#allocation79_spill] sm:$0xff] %v14650_v22  ;;  %v14666_v3 = vld [vmem:[#allocation5 + $0x698] sm:$0xff] }
 0x26b   :  { %18095 = vst [vmem:[#allocation21_spill] sm:$0xff] %v14628_v62  ;;  %v18097_v31 = vand.u32 4294901760, %v18096_v26  ;;  %v18099_v20 = vand.u32 4294901760, %v18098_v52  ;;  %v4907_v34 = vand.u32 4294901760, %v4906_v50  ;;  %v18100_v16 = vand.u32 4294901760, %v14318_v63  ;;  %v14652_v50 = vld [vmem:[#allocation5 + $0x608] sm:$0xff]  ;;  %10001 = vmatpush3.bf16.msra.mxu1 %v10000_v47 }
 0x26c   :  { %v5032_v4 = vsub.f32 %v14307_v44, %v18094_v37  ;;  %v4914_v13 = vand.u32 4294901760, %v4913_v15  ;;  %v18101_v37 = vand.u32 4294901760, %v14323_v57  ;;  %v18102_v52 = vand.u32 4294901760, %v14330_v46  ;;  %v14664_v44 = vld [vmem:[#allocation5 + $0x690] sm:$0xff]  ;;  %18106 = vst [vmem:[#allocation54_spill] sm:$0xff] %v14666_v3  ;;  %9977 = vmatpush3.bf16.msra.mxu0 %v14607_v6 }
 0x26d   :  { %v14635_v45 = vpack.c.bf16 %v18099_v20, %v18097_v31  ;;  %v5039_v1 = vsub.f32 %v14318_v63, %v18100_v16  ;;  %v10002_v16 = vpack.c.bf16 %v5012_v35, %v5005_v59  ;;  %v10004_v24 = vpack.c.bf16 %v4900_v51, %v4893_v54  ;;  %18105 = vst [vmem:[#allocation65_spill] sm:$0xff] %v14664_v44 }
 0x26e   :  { %v4920_v26 = vsub.f32 %v14323_v57, %v18101_v37  ;;  %v4927_v31 = vsub.f32 %v14330_v46, %v18102_v52  ;;  %v16646_v15 = vand.u32 4294901760, %v14628_v62  ;;  %v7903_v37 = vpop.f32.mrb[17].mxu0  ;;  %v18104_v57 = vand.u32 4294901760, %v14594_v42  ;;  %9979 = vmatprep.subr.bf16.mxu0 %v14617_v56 }
 0x26f   :  { %v10006_v20 = vpack.c.bf16 %v5026_v7, %v5019_v2  ;;  %v5033_v46 = vand.u32 4294901760, %v5032_v4  ;;  %v7904_v59 = vadd.f32 %v7903_v37, %v7902_v43  ;;  %v5040_v35 = vand.u32 4294901760, %v5039_v1  ;;  %v14681_v1 = vld [vmem:[#allocation5 + $0x6a0] sm:$0xff]  ;;  %10003 = vmatprep.subr.bf16.mxu1 %v10002_v16 }
 0x270   :  { %v14660_v52 = vsub.f32 %v14594_v42, %v18104_v57  ;;  %v16649_v54 = vand.u32 4294901760, %v14650_v22  ;;  %v14673_v57 = vld [vmem:[#allocation5 + $0x618] sm:$0xff]  ;;  %v10008_v2 = vpack.c.bf16 %v4914_v13, %v4907_v34  ;;  %v4921_v7 = vand.u32 4294901760, %v4920_v26  ;;  %18110 = vst [vmem:[#allocation13_spill] sm:$0xff] %v14681_v1  ;;  %v14691_v13 = vld [vmem:[#allocation5 + $0x6a8] sm:$0xff]  ;;  %v14693_v26 = vld [vmem:[#allocation5 + $0x620] sm:$0xff]  ;;  %10005 = vmatpush3.bf16.msra.mxu1 %v10004_v24  ;;  %9981 = vmatpush3.bf16.msra.mxu0 %v14635_v45 }
 0x271   :  { %18108 = vst [vmem:[#allocation57_spill] sm:$0xff] %v14673_v57  ;;  %v4928_v4 = vand.u32 4294901760, %v4927_v31  ;;  %v18109_v63 = vand.u32 4294901760, %v14622_v8  ;;  %v2875_v37 = vadd.f32 %v7904_v59, %v14447_v11  ;;  %v14687_v51 = vsub.f32 %v14628_v62, %v16646_v15  ;;  %18111 = vst [vmem:[#allocation22_spill] sm:$0xff] %v14693_v26  ;;  %10007 = vmatprep.subr.bf16.mxu1 %v10006_v20 }
 0x272   :  { %v4812_v31 = vand.u32 4294901760, %v14660_v52  ;;  %v10010_v47 = vpack.c.bf16 %v5040_v35, %v5033_v46  ;;  %v14704_v34 = vsub.f32 %v14650_v22, %v16649_v54  ;;  %v18112_v62 = vand.u32 4294901760, %v14652_v50  ;;  %v14717_v54 = vld [vmem:[#allocation5 + $0x6b0] sm:$0xff] }
 0x273   :  { %v14679_v43 = vsub.f32 %v14622_v8, %v18109_v63  ;;  %v7937_v63 = vpop.f32.mrb[16].mxu1  ;;  %v14712_v8 = vld [vmem:[#allocation5 + $0x628] sm:$0xff]  ;;  %v10012_v59 = vpack.c.bf16 %v4928_v4, %v4921_v7  ;;  %18114 = vst [vmem:[#allocation68_spill] sm:$0xff] %v14717_v54  ;;  %v18115_v22 = vand.u32 4294901760, %v14664_v44  ;;  %v18116_v11 = vand.u32 4294901760, %v14666_v3  ;;  %v14731_v4 = vld [vmem:[#allocation5 + $0x6b8] sm:$0xff] }
 0x274   :  { %v7938_v15 = vpop.f32.mrb[17].mxu1  ;;  %v14709_v52 = vsub.f32 %v14652_v50, %v18112_v62  ;;  %18113 = vst [vmem:[#allocation32_spill] sm:$0xff] %v14712_v8  ;;  %18117 = vst [vmem:[#allocation39_spill] sm:$0xff] %v14731_v4  ;;  %v18118_v20 = vand.u32 4294901760, %v14671_v55  ;;  %v18121_v7 = vand.u32 4294901760, %v14681_v1  ;;  %10009 = vmatpush3.bf16.msra.mxu1 %v10008_v2  ;;  %4813 = vmatmul.mubr.f32.vlgmr.msra.gmra.mrb[30].mxu0 %v4812_v31 }
 0x275   :  { %v7939_v16 = vadd.f32 %v7938_v15, %v7937_v63  ;;  %v14722_v62 = vsub.f32 %v14664_v44, %v18115_v22  ;;  %v14727_v15 = vsub.f32 %v14666_v3, %v18116_v11  ;;  %v18119_v22 = vand.u32 4294901760, %v14673_v57  ;;  %v14746_v3 = vld [vmem:[#allocation5 + $0x630] sm:$0xff]  ;;  %10011 = vmatprep.subr.bf16.mxu1 %v10010_v47  ;;  %5180 = vmatprep.mubr.f32.mxu0 %v14406_v36 }
 0x276   :  { %v14738_v35 = vsub.f32 %v14671_v55, %v18118_v20  ;;  %18120 = vst [vmem:[#allocation34_spill] sm:$0xff] %v14746_v3  ;;  %v14757_v55 = vld [vmem:[#allocation5 + $0x638] sm:$0xff]  ;;  %v18124_v11 = vand.u32 4294901760, %v14691_v13  ;;  %v18127_v24 = vand.u32 4294901760, %v14679_v43  ;;  %v18133_v20 = vand.u32 4294901760, %v14709_v52 }
 0x277   :  { %v14733_v63 = vadd.f32 %v7939_v16, %v2875_v37  ;;  %v14743_v46 = vsub.f32 %v14673_v57, %v18119_v22  ;;  %v14752_v37 = vsub.f32 %v14681_v1, %v18121_v7  ;;  %18122 = vst [vmem:[#allocation29_spill] sm:$0xff] %v14757_v55  ;;  %v18123_v22 = vpack.c.bf16 %v13957_v9, %v13949_v0  ;;  %v14800_v9 = vld [vmem:[#allocation5 + $0x640] sm:$0xff] }
 0x278   :  { %v14765_v57 = vsub.f32 %v14691_v13, %v18124_v11  ;;  %v18125_v7 = vand.u32 4294901760, %v14693_v26  ;;  %v18128_v1 = vand.u32 4294901760, %v14687_v51  ;;  %v14782_v11 = vld [vmem:[#allocation5 + $0x6c0] sm:$0xff]  ;;  %18137 = vst [vmem:[#allocation27_spill] sm:$0xff] %v14800_v9  ;;  %v10022_v31 = vpack.c.bf16 %v14033_v40, %v14020_v12  ;;  %10013 = vmatpush3.bf16.msra.mxu1 %v10012_v59 }
 0x279   :  { %10015 = vmatprep.subr.bf16.mxu0 %v18123_v22  ;;  %18130 = vst [vmem:[#allocation19_spill] sm:$0xff] %v14782_v11  ;;  %v14784_v22 = vld [vmem:[#allocation5 + $0x6c8] sm:$0xff]  ;;  %v18143_v0 = vand.u32 4294901760, %v14727_v15  ;;  %v18146_v40 = vand.u32 4294901760, %v14731_v4  ;;  %10047 = vmatprep.subr.bf16.mxu1 %v14427_v60  ;;  %v16657_v59 = vand.u32 4294901760, %v14752_v37 }
 0x27a   :  { %v14770_v16 = vsub.f32 %v14693_v26, %v18125_v7  ;;  %v14777_v44 = vpack.c.bf16 %v18128_v1, %v18127_v24  ;;  %18131 = vst [vmem:[#allocation24_spill] sm:$0xff] %v14784_v22  ;;  %v18132_v7 = vand.u32 4294901760, %v14704_v34  ;;  %v18135_v1 = vand.u32 4294901760, %v14712_v8 }
 0x27b   :  { %v18142_v24 = vand.u32 4294901760, %v14722_v62  ;;  %5045 = vmatmul.mubr.f32.vlgmr.msra.gmra.mrb[30].mxu1 %v14564_v10 }
 0x27c   :  { %18126 = vst [vmem:[#allocation72_spill] sm:$0xff] %v14770_v16  ;;  %18129 = vst [vmem:[#allocation78_spill] sm:$0xff] %v14777_v44  ;;  %v14790_v26 = vpack.c.bf16 %v18133_v20, %v18132_v7  ;;  %v14795_v47 = vsub.f32 %v14712_v8, %v18135_v1  ;;  %v18138_v44 = vpack.c.bf16 %v13977_v49, %v13972_v39  ;;  %v18139_v20 = vand.u32 4294901760, %v14717_v54  ;;  %v14813_v1 = vld [vmem:[#allocation5 + $0x648] sm:$0xff] }
 0x27d   :  { %18141 = vst [vmem:[#allocation67_spill] sm:$0xff] %v14813_v1  ;;  %v14819_v2 = vpack.c.bf16 %v18143_v0, %v18142_v24  ;;  %v18145_v49 = vpack.c.bf16 %v13995_v27, %v13990_v28  ;;  %v14827_v39 = vsub.f32 %v14731_v4, %v18146_v40  ;;  %v18151_v28 = vand.u32 4294901760, %v14746_v3  ;;  %v14864_v24 = vld [vmem:[#allocation5 + $0x6d8] sm:$0xff] }
 0x27e   :  { %18134 = vst [vmem:[#allocation30_spill] sm:$0xff] %v14790_v26  ;;  %18136 = vst [vmem:[#allocation25_spill] sm:$0xff] %v14795_v47  ;;  %10017 = vmatpush3.bf16.msra.mxu0 %v18138_v44  ;;  %v14811_v7 = vsub.f32 %v14717_v54, %v18139_v20  ;;  %v18148_v20 = vand.u32 4294901760, %v14738_v35  ;;  %v18149_v26 = vand.u32 4294901760, %v14743_v46  ;;  %v18152_v40 = vand.u32 4294901760, %v14757_v55  ;;  %v18180_v54 = vld [vmem:[#allocation51_spill] sm:$0xff] }
 0x27f   :  { %18144 = vst [vmem:[#allocation70_spill] sm:$0xff] %v14819_v2  ;;  %10019 = vmatprep.subr.bf16.mxu0 %v18145_v49  ;;  %18147 = vst [vmem:[#allocation38_spill] sm:$0xff] %v14827_v39  ;;  %v14841_v27 = vsub.f32 %v14746_v3, %v18151_v28  ;;  %v18154_v28 = vpack.c.bf16 %v14011_v21, %v14006_v53  ;;  %v10024_v49 = vpack.c.bf16 %v14063_v58, %v14038_v30  ;;  %v14916_v2 = vld [vmem:[#allocation5 + $0x660] sm:$0xff] }
 0x280   :  { %18140 = vst [vmem:[#allocation37_spill] sm:$0xff] %v14811_v7  ;;  %v14835_v0 = vpack.c.bf16 %v18149_v26, %v18148_v20  ;;  %v14849_v44 = vsub.f32 %v14757_v55, %v18152_v40  ;;  %v10026_v40 = vpack.c.bf16 %v18035_v25, %v14079_v5  ;;  %18155 = vst [vmem:[#allocation48_spill] sm:$0xff] %v14864_v24  ;;  %v18156_v26 = vand.u32 4294901760, %v14765_v57  ;;  %v18158_v20 = vld [vmem:[#allocation77_spill] sm:$0xff]  ;;  %v14904_v55 = vld [vmem:[#allocation5 + $0x6e0] sm:$0xff] }
 0x281   :  { %10049 = vmatpush3.bf16.msra.mxu1 %v18158_v20  ;;  %v18159_v21 = vand.u32 4294901760, %v14782_v11  ;;  %v18160_v30 = vand.u32 4294901760, %v14784_v22  ;;  %v14883_v5 = vld [vmem:[#allocation5 + $0x650] sm:$0xff]  ;;  %v14885_v25 = vld [vmem:[#allocation5 + $0x658] sm:$0xff]  ;;  %18169 = vst [vmem:[#allocation75_spill] sm:$0xff] %v14904_v55  ;;  %18172 = vst [vmem:[#allocation82_spill] sm:$0xff] %v14916_v2 }
 0x282   :  { %18150 = vst [vmem:[#allocation42_spill] sm:$0xff] %v14835_v0  ;;  %v14854_v0 = vld [vmem:[#allocation5 + $0x6d0] sm:$0xff]  ;;  %10021 = vmatpush3.bf16.msra.mxu0 %v18154_v28  ;;  %v14870_v12 = vpack.c.bf16 %v18156_v26, %v16657_v59  ;;  %18161 = vst [vmem:[#allocation40_spill] sm:$0xff] %v14883_v5  ;;  %v18163_v26 = vand.u32 4294901760, %v14770_v16  ;;  %v18166_v59 = vld [vmem:[#allocation43_spill] sm:$0xff]  ;;  %v18184_v4 = vand.u32 4294901760, %v14841_v27 }
 0x283   :  { %18153 = vst [vmem:[#allocation84_spill] sm:$0xff] %v14854_v0  ;;  %10023 = vmatprep.subr.bf16.mxu0 %v10022_v31  ;;  %v14876_v53 = vsub.f32 %v14782_v11, %v18159_v21  ;;  %v14881_v58 = vsub.f32 %v14784_v22, %v18160_v30  ;;  %18162 = vst [vmem:[#allocation23_spill] sm:$0xff] %v14885_v25  ;;  %v18164_v31 = vand.u32 4294901760, %v14795_v47  ;;  %10051 = vmatprep.subr.bf16.mxu1 %v18166_v59  ;;  %v18173_v22 = vld [vmem:[#allocation86_spill] sm:$0xff]  ;;  %v18174_v11 = vld [vmem:[#allocation87_spill] sm:$0xff] }
 0x284   :  { %18157 = vst [vmem:[#allocation28_spill] sm:$0xff] %v14870_v12  ;;  %v18167_v21 = vand.u32 4294901760, %v14406_v36  ;;  %v18168_v12 = vand.u32 4294901760, %v14800_v9  ;;  %v18176_v36 = vand.u32 4294901760, %v14827_v39  ;;  %v18182_v47 = vld [vmem:[#allocation55_spill] sm:$0xff]  ;;  %v18185_v3 = vand.u32 4294901760, %v14849_v44 }
 0x285   :  { %v14891_v28 = vpack.c.bf16 %v18164_v31, %v18163_v26  ;;  %v18170_v26 = vand.u32 4294901760, %v14813_v1 }
 0x286   :  { %5287 = vmatprep.mubr.f32.mxu1 %v18167_v21  ;;  %v14899_v30 = vsub.f32 %v14800_v9, %v18168_v12  ;;  %10025 = vmatpush3.bf16.msra.mxu0 %v10024_v49  ;;  %v10028_v9 = vpack.c.bf16 %v18174_v11, %v18173_v22  ;;  %v18178_v12 = vld [vmem:[#allocation14_spill] sm:$0xff]  ;;  %v18179_v21 = vld [vmem:[#allocation91_spill] sm:$0xff]  ;;  %v18181_v49 = vld [vmem:[#allocation20_spill] sm:$0xff]  ;;  %v14940_v39 = vpack.c.bf16 %v18185_v3, %v18184_v4  ;;  %v18190_v11 = vand.u32 4294901760, %v14864_v24 }
 0x287   :  { %18165 = vst [vmem:[#allocation80_spill] sm:$0xff] %v14891_v28  ;;  %v14909_v31 = vsub.f32 %v14813_v1, %v18170_v26  ;;  %v14914_v28 = vld [vmem:[#allocation5 + $0x6e8] sm:$0xff]  ;;  %v18175_v26 = vand.u32 4294901760, %v14811_v7  ;;  %10027 = vmatprep.subr.bf16.mxu0 %v10026_v40  ;;  %10053 = vmatpush3.bf16.msra.mxu1 %v18178_v12  ;;  %v10030_v8 = vpack.c.bf16 %v18180_v54, %v18179_v21  ;;  %v18188_v21 = vand.u32 4294901760, %v14854_v0  ;;  %v14974_v4 = vld [vmem:[#allocation5 + $0x670] sm:$0xff] }
 0x288   :  { %18171 = vst [vmem:[#allocation50_spill] sm:$0xff] %v14914_v28  ;;  %v10032_v16 = vpack.c.bf16 %v18182_v47, %v18181_v49  ;;  %v14934_v22 = vld [vmem:[#allocation5 + $0x668] sm:$0xff]  ;;  %18186 = vst [vmem:[#allocation92_spill] sm:$0xff] %v14940_v39  ;;  %v14955_v3 = vsub.f32 %v14864_v24, %v18190_v11  ;;  %v14959_v39 = vld [vmem:[#allocation5 + $0x6f0] sm:$0xff]  ;;  %v18193_v54 = vand.u32 4294901760, %v14883_v5  ;;  %v18199_v40 = vand.u32 4294901760, %v14876_v53 }
 0x289   :  { %v14926_v1 = vpack.c.bf16 %v18176_v36, %v18175_v26  ;;  %18183 = vst [vmem:[#allocation89_spill] sm:$0xff] %v14934_v22  ;;  %v18187_v36 = vld [vmem:[#allocation44_spill] sm:$0xff]  ;;  %v14950_v49 = vsub.f32 %v14854_v0, %v18188_v21  ;;  %18192 = vst [vmem:[#allocation56_spill] sm:$0xff] %v14959_v39  ;;  %v18195_v21 = vand.u32 4294901760, %v14885_v25  ;;  %v14987_v11 = vld [vmem:[#allocation5 + $0x678] sm:$0xff] }
 0x28a   :  { %10055 = vmatprep.subr.bf16.mxu1 %v18187_v36  ;;  %18191 = vst [vmem:[#allocation53_spill] sm:$0xff] %v14955_v3  ;;  %10029 = vmatpush3.bf16.msra.mxu0 %v10028_v9  ;;  %v14964_v47 = vsub.f32 %v14883_v5, %v18193_v54  ;;  %18198 = vst [vmem:[#allocation26_spill] sm:$0xff] %v14974_v4  ;;  %v18200_v9 = vand.u32 4294901760, %v14881_v58  ;;  %v10034_v54 = vpack.c.bf16 %v14223_v41, %v14218_v19 }
 0x28b   :  { %18177 = vst [vmem:[#allocation88_spill] sm:$0xff] %v14926_v1  ;;  %18189 = vst [vmem:[#allocation93_spill] sm:$0xff] %v14950_v49  ;;  %v14969_v26 = vsub.f32 %v14885_v25, %v18195_v21  ;;  %v14972_v1 = vld [vmem:[#allocation5 + $0x6f8] sm:$0xff]  ;;  %10031 = vmatprep.subr.bf16.mxu0 %v10030_v8  ;;  %10057 = vmatpush3.bf16.msra.mxu1 %v14501_v48  ;;  %v10036_v21 = vpack.c.bf16 %v14237_v38, %v14232_v32  ;;  %v18203_v25 = vand.u32 4294901760, %v14899_v30 }
 0x28c   :  { %18194 = vst [vmem:[#allocation60_spill] sm:$0xff] %v14964_v47  ;;  %18197 = vst [vmem:[#allocation16_spill] sm:$0xff] %v14972_v1  ;;  %v14980_v24 = vpack.c.bf16 %v18200_v9, %v18199_v40  ;;  %v18204_v5 = vand.u32 4294901760, %v14909_v31  ;;  %10059 = vmatprep.subr.bf16.mxu1 %v14515_v18  ;;  %v18206_v8 = vand.u32 4294901760, %v14904_v55  ;;  %v18208_v19 = vand.u32 4294901760, %v14914_v28  ;;  %v18213_v9 = vld [vmem:[#allocation63_spill] sm:$0xff] }
 0x28d   :  { %18196 = vst [vmem:[#allocation64_spill] sm:$0xff] %v14969_v26  ;;  %18202 = vst [vmem:[#allocation73_spill] sm:$0xff] %v14987_v11  ;;  %v18210_v38 = vand.u32 4294901760, %v14916_v2 }
 0x28e   :  { %18201 = vst [vmem:[#allocation45_spill] sm:$0xff] %v14980_v24  ;;  %v14993_v0 = vpack.c.bf16 %v18204_v5, %v18203_v25  ;;  %v14999_v40 = vsub.f32 %v14904_v55, %v18206_v8  ;;  %v15004_v41 = vsub.f32 %v14914_v28, %v18208_v19  ;;  %10033 = vmatpush3.bf16.msra.mxu0 %v10032_v16  ;;  %v18211_v24 = vand.u32 4294901760, %v14934_v22  ;;  %v18212_v25 = vld [vmem:[#allocation15_spill] sm:$0xff] }
 0x28f   :  { %v15009_v32 = vsub.f32 %v14916_v2, %v18210_v38  ;;  %v16682_v38 = vand.u32 4294901760, %v14964_v47  ;;  %10035 = vmatprep.subr.bf16.mxu0 %v10034_v54  ;;  %10061 = vmatpush3.bf16.msra.mxu1 %v18212_v25  ;;  %v18214_v2 = vld [vmem:[#allocation36_spill] sm:$0xff]  ;;  %v18215_v8 = vand.u32 4294901760, %v14950_v49  ;;  %v18216_v16 = vand.u32 4294901760, %v14955_v3 }
 0x290   :  { %18205 = vst [vmem:[#allocation77_spill] sm:$0xff] %v14993_v0  ;;  %18207 = vst [vmem:[#allocation43_spill] sm:$0xff] %v14999_v40  ;;  %v15019_v19 = vsub.f32 %v14934_v22, %v18211_v24  ;;  %v10038_v0 = vpack.c.bf16 %v18214_v2, %v18213_v9  ;;  %v7972_v24 = vpop.f32.mrb[18].mxu0  ;;  %10063 = vmatprep.subr.bf16.mxu1 %v14548_v61  ;;  %v10040_v28 = vpack.c.bf16 %v14287_v29, %v14277_v17 }
 0x291   :  { %18209 = vst [vmem:[#allocation86_spill] sm:$0xff] %v15004_v41  ;;  %v15031_v55 = vpack.c.bf16 %v18216_v16, %v18215_v8  ;;  %v18218_v5 = vand.u32 4294901760, %v14959_v39  ;;  %v18219_v2 = vand.u32 4294901760, %v14969_v26  ;;  %v7973_v22 = vpop.f32.mrb[19].mxu0  ;;  %v18221_v8 = vand.u32 4294901760, %v14972_v1 }
 0x292   :  { %v16689_v29 = vand.u32 4294901760, %v14999_v40  ;;  %10037 = vmatpush3.bf16.msra.mxu0 %v10036_v21 }
 0x293   :  { %18217 = vst [vmem:[#allocation87_spill] sm:$0xff] %v15031_v55  ;;  %v15039_v54 = vsub.f32 %v14959_v39, %v18218_v5  ;;  %v15045_v9 = vpack.c.bf16 %v18219_v2, %v16682_v38  ;;  %v15050_v16 = vsub.f32 %v14972_v1, %v18221_v8  ;;  %v18223_v55 = vand.u32 4294901760, %v14974_v4  ;;  %10039 = vmatprep.subr.bf16.mxu0 %v10038_v0 }
 0x294   :  { %v16688_v5 = vand.u32 4294901760, %v15004_v41  ;;  %v7974_v39 = vadd.f32 %v7973_v22, %v7972_v24  ;;  %v18225_v2 = vand.u32 4294901760, %v14987_v11  ;;  %v16690_v8 = vand.u32 4294901760, %v15019_v19  ;;  %10065 = vmatpush3.bf16.msra.mxu1 %v14555_v33  ;;  %v18230_v24 = vld [vmem:[#allocation52_spill] sm:$0xff]  ;;  %v18232_v41 = vld [vmem:[#allocation33_spill] sm:$0xff] }
 0x295   :  { %18220 = vst [vmem:[#allocation14_spill] sm:$0xff] %v15045_v9  ;;  %18222 = vst [vmem:[#allocation91_spill] sm:$0xff] %v15050_v16  ;;  %v15055_v17 = vsub.f32 %v14974_v4, %v18223_v55  ;;  %v16696_v9 = vand.u32 4294901760, %v15009_v32  ;;  %v18227_v55 = vld [vmem:[#allocation58_spill] sm:$0xff]  ;;  %v18228_v4 = vld [vmem:[#allocation12_spill] sm:$0xff]  ;;  %10067 = vmatprep.subr.bf16.mxu1 %v18230_v24 }
 0x296   :  { %v15062_v38 = vsub.f32 %v14987_v11, %v18225_v2  ;;  %v10042_v1 = vpack.c.bf16 %v18228_v4, %v18227_v55  ;;  %v15073_v22 = vpack.c.bf16 %v16688_v5, %v16689_v29  ;;  %v3091_v21 = vadd.f32 %v7974_v39, %v14733_v63  ;;  %v8007_v2 = vpop.f32.mrb[18].mxu1  ;;  %10041 = vmatpush3.bf16.msra.mxu0 %v10040_v28  ;;  %v18233_v5 = vld [vmem:[#allocation41_spill] sm:$0xff] }
 0x297   :  { %18224 = vst [vmem:[#allocation51_spill] sm:$0xff] %v15055_v17  ;;  %v15081_v0 = vpack.c.bf16 %v16690_v8, %v16696_v9  ;;  %v16694_v11 = vand.u32 4294901760, %v15039_v54  ;;  %v16693_v4 = vand.u32 4294901760, %v15050_v16  ;;  %v8008_v55 = vpop.f32.mrb[19].mxu1  ;;  %v10044_v29 = vpack.c.bf16 %v18233_v5, %v18232_v41  ;;  %v18236_v5 = vld [vmem:[#allocation47_spill] sm:$0xff] }
 0x298   :  { %18226 = vst [vmem:[#allocation20_spill] sm:$0xff] %v15062_v38  ;;  %18229 = vst [vmem:[#allocation55_spill] sm:$0xff] %v15073_v22  ;;  %v16692_v63 = vand.u32 4294901760, %v15055_v17  ;;  %v16691_v39 = vand.u32 4294901760, %v15062_v38  ;;  %v8009_v22 = vadd.f32 %v8008_v55, %v8007_v2  ;;  %10043 = vmatprep.subr.bf16.mxu0 %v10042_v1  ;;  %10069 = vmatpush3.bf16.msra.mxu1 %v14572_v14  ;;  %v18237_v1 = vld [vmem:[#allocation81_spill] sm:$0xff]  ;;  %v18238_v2 = vld [vmem:[#allocation62_spill] sm:$0xff] }
 0x299   :  { %18231 = vst [vmem:[#allocation44_spill] sm:$0xff] %v15081_v0  ;;  %v15094_v8 = vpack.c.bf16 %v16693_v4, %v16694_v11  ;;  %10071 = vmatprep.subr.bf16.mxu1 %v14590_v23  ;;  %v18239_v55 = vld [vmem:[#allocation83_spill] sm:$0xff]  ;;  %v18263_v11 = vld [vmem:[#allocation49_spill] sm:$0xff] }
 0x29a   :  { %v15101_v28 = vpack.c.bf16 %v16691_v39, %v16692_v63  ;;  %v3323_v41 = vadd.f32 %v8009_v22, %v3091_v21  ;;  %10045 = vmatpush3.bf16.msra.mxu0 %v10044_v29  ;;  %v15111_v39 = vld [vmem:[#allocation2 + $0x18] sm:$0xff]  ;;  %v18242_v22 = vand.u32 4294901760, %v14594_v42  ;;  %v18243_v21 = vld [vmem:[#allocation11_spill] sm:$0xff] }
 0x29b   :  { %18234 = vst [vmem:[#allocation15_spill] sm:$0xff] %v15094_v8  ;;  %10079 = vmatprep.subr.bf16.mxu0 %v18236_v5  ;;  %18240 = vst [vmem:[#allocation36_spill] sm:$0xff] %v15111_v39  ;;  %v18241_v29 = vld [vmem:[#allocation85_spill] sm:$0xff]  ;;  %v15119_v5 = vrot.slane %v15111_v39, %v18243_v21  ;;  %v18270_v9 = vld [vmem:[#allocation31_spill] sm:$0xff] }
 0x29c   :  { %18235 = vst [vmem:[#allocation63_spill] sm:$0xff] %v15101_v28  ;;  %10073 = vmatpush3.bf16.msra.mxu1 %v14607_v6  ;;  %v18271_v28 = vand.u32 4294901760, %v14738_v35  ;;  %v18298_v21 = vld [vmem:[#allocation68_spill] sm:$0xff] }
 0x29d   :  { %10075 = vmatprep.subr.bf16.mxu1 %v14617_v56  ;;  %5183 = vmatmul.mubr.f32.vlgmr.msra.gmra.mrb[32].mxu0 %v14594_v42  ;;  %v18247_v42 = vld [vmem:[#allocation17_spill] sm:$0xff]  ;;  %v18299_v39 = vand.u32 4294901760, %v18298_v21 }
 0x29e   :  { %10081 = vmatpush3.bf16.msra.mxu0 %v18237_v1  ;;  %5457 = vmatprep.mubr.f32.mxu0 %v18238_v2  ;;  %v18244_v1 = vld [vmem:[#allocation90_spill] sm:$0xff] }
 0x29f   :  { %10083 = vmatprep.subr.bf16.mxu0 %v18239_v55  ;;  %v18245_v55 = vld [vmem:[#allocation59_spill] sm:$0xff] }
 0x2a0   :  { %10077 = vmatpush3.bf16.msra.mxu1 %v14635_v45 }
 0x2a1   :  { %10111 = vmatprep.subr.bf16.mxu1 %v14427_v60  ;;  %v378_v60 = vcombine.high %v15119_v5, %v15119_v5 }
 0x2a2   :  { %10085 = vmatpush3.bf16.msra.mxu0 %v18241_v29  ;;  %v18246_v29 = vld [vmem:[#allocation61_spill] sm:$0xff] }
 0x2a3   :  { %5291 = vmatmul.mubr.f32.vlgmr.msra.gmra.mrb[32].mxu1 %v18242_v22  ;;  %10087 = vmatprep.subr.bf16.mxu0 %v18244_v1  ;;  %v15132_v22 = vand.u32 4294901760, %v378_v60  ;;  %v18251_v1 = vld [vmem:[#allocation35_spill] sm:$0xff] }
 0x2a4   :  { %10113 = vmatpush3.bf16.msra.mxu1 %v18158_v20  ;;  %5561 = vmatprep.mubr.f32.mxu1 %v18238_v2  ;;  %v18249_v20 = vld [vmem:[#allocation71_spill] sm:$0xff] }
 0x2a5   :  { %10115 = vmatprep.subr.bf16.mxu1 %v18166_v59  ;;  %18248 = vst [vmem:[#allocation58_spill] sm:$0xff] %v15132_v22  ;;  %v18250_v59 = vld [vmem:[#allocation74_spill] sm:$0xff]  ;;  %v15139_v2 = vsub.f32 %v378_v60, %v15132_v22  ;;  %v18254_v60 = vand.u32 4294901760, %v14679_v43 }
 0x2a6   :  { %10089 = vmatpush3.bf16.msra.mxu0 %v18245_v55 }
 0x2a7   :  { %10091 = vmatprep.subr.bf16.mxu0 %v18246_v29  ;;  %v18252_v29 = vld [vmem:[#allocation46_spill] sm:$0xff] }
 0x2a8   :  { %10117 = vmatpush3.bf16.msra.mxu1 %v18178_v12  ;;  %v8042_v12 = vpop.f32.mrb[20].mxu0 }
 0x2a9   :  { %10119 = vmatprep.subr.bf16.mxu1 %v18187_v36  ;;  %v8043_v36 = vpop.f32.mrb[21].mxu0 }
 0x2aa   :  { %10093 = vmatpush3.bf16.msra.mxu0 %v18247_v42  ;;  %v8044_v55 = vadd.f32 %v8043_v36, %v8042_v12  ;;  %v18253_v42 = vld [vmem:[#allocation69_spill] sm:$0xff]  ;;  %v18257_v36 = vld [vmem:[#allocation66_spill] sm:$0xff] }
 0x2ab   :  { %10095 = vmatprep.subr.bf16.mxu0 %v18249_v20  ;;  %v18255_v20 = vand.u32 4294901760, %v14687_v51 }
 0x2ac   :  { %10121 = vmatpush3.bf16.msra.mxu1 %v14501_v48  ;;  %v16695_v48 = vand.u32 4294901760, %v15139_v2 }
 0x2ad   :  { %10123 = vmatprep.subr.bf16.mxu1 %v14515_v18  ;;  %v3461_v18 = vadd.f32 %v8044_v55, %v3323_v41  ;;  %v18260_v55 = vld [vmem:[#allocation21_spill] sm:$0xff] }
 0x2ae   :  { %10097 = vmatpush3.bf16.msra.mxu0 %v18250_v59  ;;  %v8077_v59 = vpop.f32.mrb[20].mxu1 }
 0x2af   :  { %10099 = vmatprep.subr.bf16.mxu0 %v18251_v1  ;;  %v18256_v1 = vand.u32 4294901760, %v14704_v34 }
 0x2b0   :  { %10125 = vmatpush3.bf16.msra.mxu1 %v18212_v25  ;;  %v5796_v25 = vsub.f32 %v14679_v43, %v18254_v60  ;;  %v18262_v60 = vand.u32 4294901760, %v14709_v52 }
 0x2b1   :  { %10127 = vmatprep.subr.bf16.mxu1 %v14548_v61  ;;  %v5803_v61 = vsub.f32 %v14687_v51, %v18255_v20  ;;  %v5684_v12 = vsub.f32 %v14704_v34, %v18256_v1  ;;  %v5667_v20 = vsub.f32 %v15139_v2, %v16695_v48  ;;  %v18264_v1 = vand.u32 4294901760, %v14722_v62  ;;  %v18266_v48 = vld [vmem:[#allocation79_spill] sm:$0xff] }
 0x2b2   :  { %10101 = vmatpush3.bf16.msra.mxu0 %v18252_v29  ;;  %v8078_v29 = vpop.f32.mrb[21].mxu1  ;;  %v5691_v63 = vsub.f32 %v14709_v52, %v18262_v60 }
 0x2b3   :  { %10103 = vmatprep.subr.bf16.mxu0 %v18253_v42  ;;  %v8079_v4 = vadd.f32 %v8078_v29, %v8077_v59  ;;  %v18267_v59 = vand.u32 4294901760, %v18266_v48 }
 0x2b4   :  { %10129 = vmatpush3.bf16.msra.mxu1 %v14555_v33  ;;  %v18258_v33 = vld [vmem:[#allocation76_spill] sm:$0xff] }
 0x2b5   :  { %10131 = vmatprep.subr.bf16.mxu1 %v18230_v24  ;;  %v18259_v41 = vand.u32 4294901760, %v18258_v33  ;;  %v18261_v24 = vand.u32 4294901760, %v18260_v55  ;;  %v18265_v33 = vand.u32 4294901760, %v14727_v15  ;;  %v5797_v55 = vand.u32 4294901760, %v5796_v25 }
 0x2b6   :  { %10105 = vmatpush3.bf16.msra.mxu0 %v18257_v36  ;;  %v5810_v36 = vsub.f32 %v14722_v62, %v18264_v1  ;;  %v15180_v60 = vadd.f32 %v8079_v4, %v3461_v18  ;;  %v5692_v1 = vand.u32 4294901760, %v5691_v63  ;;  %v5668_v4 = vand.u32 4294901760, %v5667_v20  ;;  %v18275_v18 = vld [vmem:[#allocation54_spill] sm:$0xff] }
 0x2b7   :  { %v15163_v42 = vpack.c.bf16 %v18261_v24, %v18259_v41  ;;  %10107 = vmatprep.subr.bf16.mxu0 %v18263_v11  ;;  %v5817_v41 = vsub.f32 %v14727_v15, %v18265_v33  ;;  %v5804_v24 = vand.u32 4294901760, %v5803_v61  ;;  %v18268_v11 = vand.u32 4294901760, %v14652_v50  ;;  %v18273_v50 = vld [vmem:[#allocation65_spill] sm:$0xff] }
 0x2b8   :  { %10133 = vmatpush3.bf16.msra.mxu1 %v14572_v14  ;;  %v5685_v14 = vand.u32 4294901760, %v5684_v12  ;;  %v5698_v33 = vsub.f32 %v14738_v35, %v18271_v28  ;;  %v18274_v48 = vand.u32 4294901760, %v18273_v50  ;;  %v18276_v61 = vand.u32 4294901760, %v18275_v18  ;;  %v18282_v18 = vld [vmem:[#allocation57_spill] sm:$0xff] }
 0x2b9   :  { %10135 = vmatprep.subr.bf16.mxu1 %v14590_v23  ;;  %v15186_v29 = vpack.c.bf16 %v18268_v11, %v18267_v59  ;;  %v18272_v23 = vand.u32 4294901760, %v14743_v46  ;;  %v5818_v63 = vand.u32 4294901760, %v5817_v41  ;;  %v10174_v28 = vpack.c.bf16 %v5804_v24, %v5797_v55 }
 0x2ba   :  { %10109 = vmatpush3.bf16.msra.mxu0 %v18270_v9  ;;  %v15201_v12 = vpack.c.bf16 %v18276_v61, %v18274_v48  ;;  %v5811_v9 = vand.u32 4294901760, %v5810_v36  ;;  %v18278_v59 = vand.u32 4294901760, %v14752_v37  ;;  %v18279_v20 = vand.u32 4294901760, %v14765_v57 }
 0x2bb   :  { %18269 = vst [vmem:[#allocation12_spill] sm:$0xff] %v15186_v29  ;;  %v5705_v25 = vsub.f32 %v14743_v46, %v18272_v23  ;;  %10143 = vmatprep.subr.bf16.mxu0 %v15163_v42  ;;  %v18283_v48 = vand.u32 4294901760, %v18282_v18  ;;  %v18286_v41 = vand.u32 4294901760, %v14691_v13  ;;  %v10176_v24 = vpack.c.bf16 %v5692_v1, %v5685_v14 }
 0x2bc   :  { %10137 = vmatpush3.bf16.msra.mxu1 %v14607_v6  ;;  %18277 = vst [vmem:[#allocation52_spill] sm:$0xff] %v15201_v12  ;;  %v5824_v11 = vsub.f32 %v14752_v37, %v18278_v59  ;;  %v5831_v23 = vsub.f32 %v14765_v57, %v18279_v20  ;;  %v18280_v6 = vld [vmem:[#allocation18_spill] sm:$0xff]  ;;  %v5699_v59 = vand.u32 4294901760, %v5698_v33  ;;  %v10178_v20 = vpack.c.bf16 %v5818_v63, %v5811_v9  ;;  %v18296_v63 = vld [vmem:[#allocation32_spill] sm:$0xff] }
 0x2bd   :  { %10139 = vmatprep.subr.bf16.mxu1 %v14617_v56  ;;  %5459 = vmatmul.mubr.f32.vlgmr.msra.gmra.mrb[34].mxu0 %v14564_v10  ;;  %v18281_v50 = vand.u32 4294901760, %v18280_v6  ;;  %v18284_v56 = vld [vmem:[#allocation13_spill] sm:$0xff]  ;;  %v5706_v8 = vand.u32 4294901760, %v5705_v25  ;;  %v18287_v6 = vld [vmem:[#allocation72_spill] sm:$0xff]  ;;  %v18291_v14 = vand.u32 4294901760, %v14811_v7  ;;  %v18292_v33 = vld [vmem:[#allocation38_spill] sm:$0xff] }
 0x2be   :  { %10145 = vmatpush3.bf16.msra.mxu0 %v15186_v29  ;;  %v18285_v36 = vand.u32 4294901760, %v18284_v56  ;;  %5669 = vmatprep.mubr.f32.mxu0 %v5668_v4  ;;  %v5825_v13 = vand.u32 4294901760, %v5824_v11  ;;  %v18293_v25 = vand.u32 4294901760, %v18292_v33  ;;  %v18294_v4 = vld [vmem:[#allocation22_spill] sm:$0xff]  ;;  %v18305_v29 = vld [vmem:[#allocation29_spill] sm:$0xff] }
 0x2bf   :  { %v15215_v61 = vpack.c.bf16 %v18283_v48, %v18281_v50  ;;  %10147 = vmatprep.subr.bf16.mxu0 %v15201_v12  ;;  %v18288_v50 = vand.u32 4294901760, %v18287_v6  ;;  %v18289_v48 = vld [vmem:[#allocation25_spill] sm:$0xff]  ;;  %v5838_v1 = vsub.f32 %v14811_v7, %v18291_v14  ;;  %v18295_v9 = vand.u32 4294901760, %v18294_v4 }
 0x2c0   :  { %v15222_v55 = vpack.c.bf16 %v18286_v41, %v18285_v36  ;;  %10141 = vmatpush3.bf16.msra.mxu1 %v14635_v45  ;;  %v18290_v0 = vand.u32 4294901760, %v18289_v48  ;;  %v5832_v36 = vand.u32 4294901760, %v5831_v23  ;;  %v5845_v45 = vsub.f32 %v18292_v33, %v18293_v25  ;;  %v18303_v23 = vld [vmem:[#allocation34_spill] sm:$0xff]  ;;  %v18310_v33 = vld [vmem:[#allocation24_spill] sm:$0xff] }
 0x2c1   :  { %v5712_v18 = vsub.f32 %v18287_v6, %v18288_v50  ;;  %10175 = vmatprep.subr.bf16.mxu1 %v10174_v28  ;;  %v18297_v41 = vand.u32 4294901760, %v18296_v63  ;;  %v18304_v12 = vand.u32 4294901760, %v18303_v23  ;;  %v18306_v14 = vand.u32 4294901760, %v18305_v29  ;;  %v18318_v23 = vld [vmem:[#allocation67_spill] sm:$0xff] }
 0x2c2   :  { %v5719_v56 = vsub.f32 %v18289_v48, %v18290_v0  ;;  %v18300_v0 = vld [vmem:[#allocation39_spill] sm:$0xff]  ;;  %v18311_v4 = vand.u32 4294901760, %v18310_v33  ;;  %10149 = vmatpush3.bf16.msra.mxu0 %v15215_v61  ;;  %v10180_v21 = vpack.c.bf16 %v5706_v8, %v5699_v59  ;;  %v18313_v63 = vand.u32 4294901760, %v14849_v44 }
 0x2c3   :  { %v15242_v50 = vpack.c.bf16 %v18297_v41, %v18295_v9  ;;  %v18301_v28 = vand.u32 4294901760, %v18300_v0  ;;  %v15254_v7 = vpack.c.bf16 %v18306_v14, %v18304_v12  ;;  %v18308_v48 = vld [vmem:[#allocation19_spill] sm:$0xff]  ;;  %5563 = vmatmul.mubr.f32.vlgmr.msra.gmra.mrb[34].mxu1 %v14564_v10  ;;  %10151 = vmatprep.subr.bf16.mxu0 %v15222_v55  ;;  %v5713_v12 = vand.u32 4294901760, %v5712_v18  ;;  %v18320_v18 = vld [vmem:[#allocation84_spill] sm:$0xff] }
 0x2c4   :  { %v18309_v25 = vand.u32 4294901760, %v18308_v48  ;;  %v5733_v29 = vsub.f32 %v14849_v44, %v18313_v63  ;;  %10177 = vmatpush3.bf16.msra.mxu1 %v10176_v24  ;;  %v5720_v48 = vand.u32 4294901760, %v5719_v56  ;;  %v18314_v33 = vand.u32 4294901760, %v14876_v53  ;;  %v18316_v0 = vld [vmem:[#allocation27_spill] sm:$0xff]  ;;  %5905 = vmatprep.mubr.f32.mxu1 %v15132_v22 }
 0x2c5   :  { %v15248_v11 = vpack.c.bf16 %v18301_v28, %v18299_v39  ;;  %18307 = vst [vmem:[#allocation41_spill] sm:$0xff] %v15254_v7  ;;  %v18312_v39 = vand.u32 4294901760, %v14841_v27  ;;  %v18315_v10 = vand.u32 4294901760, %v14881_v58  ;;  %10179 = vmatprep.subr.bf16.mxu1 %v10178_v20  ;;  %v10182_v59 = vpack.c.bf16 %v5832_v36, %v5825_v13 }
 0x2c6   :  { %v15260_v6 = vpack.c.bf16 %v18311_v4, %v18309_v25  ;;  %v5852_v41 = vsub.f32 %v14876_v53, %v18314_v33  ;;  %v18317_v28 = vand.u32 4294901760, %v18316_v0  ;;  %v18319_v14 = vand.u32 4294901760, %v18318_v23  ;;  %10153 = vmatpush3.bf16.msra.mxu0 %v15242_v50 }
 0x2c7   :  { %18302 = vst [vmem:[#allocation33_spill] sm:$0xff] %v15248_v11  ;;  %v5726_v9 = vsub.f32 %v14841_v27, %v18312_v39  ;;  %v5859_v8 = vsub.f32 %v14881_v58, %v18315_v10  ;;  %v5839_v4 = vand.u32 4294901760, %v5838_v1  ;;  %v5846_v24 = vand.u32 4294901760, %v5845_v45  ;;  %v18322_v39 = vld [vmem:[#allocation48_spill] sm:$0xff]  ;;  %10155 = vmatprep.subr.bf16.mxu0 %v15248_v11 }
 0x2c8   :  { %v15281_v25 = vpack.c.bf16 %v18319_v14, %v18317_v28  ;;  %v18321_v56 = vand.u32 4294901760, %v18320_v18  ;;  %v18323_v63 = vand.u32 4294901760, %v18322_v39  ;;  %v18325_v10 = vand.u32 4294901760, %v14899_v30  ;;  %10181 = vmatpush3.bf16.msra.mxu1 %v10180_v21 }
 0x2c9   :  { %v18326_v13 = vand.u32 4294901760, %v14909_v31  ;;  %v15297_v0 = vand.u32 4294901760, %v15119_v5  ;;  %v5727_v1 = vand.u32 4294901760, %v5726_v9  ;;  %v5734_v45 = vand.u32 4294901760, %v5733_v29  ;;  %10183 = vmatprep.subr.bf16.mxu1 %v10182_v59 }
 0x2ca   :  { %v15288_v33 = vpack.c.bf16 %v18323_v63, %v18321_v56  ;;  %v5740_v20 = vsub.f32 %v14899_v30, %v18325_v10  ;;  %v18327_v28 = vand.u32 4294901760, %v14950_v49  ;;  %v18328_v14 = vand.u32 4294901760, %v14955_v3  ;;  %10157 = vmatpush3.bf16.msra.mxu0 %v15254_v7  ;;  %v18347_v7 = vld [vmem:[#allocation56_spill] sm:$0xff] }
 0x2cb   :  { %v5747_v36 = vsub.f32 %v14909_v31, %v18326_v13  ;;  %v10184_v56 = vpack.c.bf16 %v5720_v48, %v5713_v12  ;;  %v5853_v39 = vand.u32 4294901760, %v5852_v41  ;;  %v5860_v63 = vand.u32 4294901760, %v5859_v8  ;;  %v18334_v12 = vld [vmem:[#allocation40_spill] sm:$0xff]  ;;  %v18336_v41 = vld [vmem:[#allocation23_spill] sm:$0xff]  ;;  %10159 = vmatprep.subr.bf16.mxu0 %v15260_v6 }
 0x2cc   :  { %18324 = vst [vmem:[#allocation47_spill] sm:$0xff] %v15288_v33  ;;  %v5866_v23 = vsub.f32 %v14950_v49, %v18327_v28  ;;  %v5873_v18 = vsub.f32 %v14955_v3, %v18328_v14  ;;  %v18329_v10 = vand.u32 4294901760, %v14964_v47  ;;  %v10186_v9 = vpack.c.bf16 %v5846_v24, %v5839_v4  ;;  %v18332_v3 = vld [vmem:[#allocation86_spill] sm:$0xff] }
 0x2cd   :  { %v18330_v29 = vand.u32 4294901760, %v14969_v26  ;;  %v18331_v22 = vand.u32 4294901760, %v14999_v40  ;;  %v18333_v11 = vand.u32 4294901760, %v18332_v3  ;;  %v18335_v48 = vand.u32 4294901760, %v18334_v12  ;;  %10185 = vmatpush3.bf16.msra.mxu1 %v10184_v56 }
 0x2ce   :  { %v5754_v13 = vsub.f32 %v14964_v47, %v18329_v10  ;;  %v18337_v8 = vand.u32 4294901760, %v18336_v41  ;;  %v5741_v59 = vand.u32 4294901760, %v5740_v20  ;;  %v5748_v4 = vand.u32 4294901760, %v5747_v36  ;;  %v18343_v36 = vld [vmem:[#allocation82_spill] sm:$0xff]  ;;  %v18345_v41 = vld [vmem:[#allocation89_spill] sm:$0xff]  ;;  %10187 = vmatprep.subr.bf16.mxu1 %v10186_v9  ;;  %v15361_v9 = vld [vmem:[#allocation5 + $0x788] sm:$0xff]  ;;  %10161 = vmatpush3.bf16.msra.mxu0 %v15281_v25 }
 0x2cf   :  { %v5761_v28 = vsub.f32 %v14969_v26, %v18330_v29  ;;  %v5880_v14 = vsub.f32 %v14999_v40, %v18331_v22  ;;  %v5887_v21 = vsub.f32 %v18332_v3, %v18333_v11  ;;  %v15327_v24 = vsub.f32 %v15119_v5, %v15297_v0  ;;  %v18339_v22 = vld [vmem:[#allocation75_spill] sm:$0xff]  ;;  %v18341_v40 = vld [vmem:[#allocation50_spill] sm:$0xff]  ;;  %18355 = vst [vmem:[#allocation83_spill] sm:$0xff] %v15361_v9 }
 0x2d0   :  { %v15323_v49 = vpack.c.bf16 %v18337_v8, %v18335_v48  ;;  %v10188_v10 = vpack.c.bf16 %v5734_v45, %v5727_v1  ;;  %v18340_v29 = vand.u32 4294901760, %v18339_v22  ;;  %v18342_v26 = vand.u32 4294901760, %v18341_v40  ;;  %v18349_v45 = vld [vmem:[#allocation16_spill] sm:$0xff]  ;;  %10163 = vmatprep.subr.bf16.mxu0 %v15288_v33 }
 0x2d1   :  { %18338 = vst [vmem:[#allocation81_spill] sm:$0xff] %v15327_v24  ;;  %v5867_v12 = vand.u32 4294901760, %v5866_v23  ;;  %v5874_v3 = vand.u32 4294901760, %v5873_v18  ;;  %v10190_v20 = vpack.c.bf16 %v5860_v63, %v5853_v39  ;;  %v18344_v48 = vand.u32 4294901760, %v18343_v36  ;;  %v15352_v63 = vld [vmem:[#allocation5 + $0x780] sm:$0xff]  ;;  %v15397_v33 = vld [vmem:[#allocation5 + $0x790] sm:$0xff] }
 0x2d2   :  { %v15334_v11 = vpack.c.bf16 %v18342_v26, %v18340_v29  ;;  %v18346_v5 = vand.u32 4294901760, %v18345_v41  ;;  %v18348_v1 = vand.u32 4294901760, %v18347_v7  ;;  %v18350_v22 = vand.u32 4294901760, %v18349_v45  ;;  %18352 = vst [vmem:[#allocation62_spill] sm:$0xff] %v15352_v63  ;;  %10189 = vmatpush3.bf16.msra.mxu1 %v10188_v10  ;;  %18364 = vst [vmem:[#allocation85_spill] sm:$0xff] %v15397_v33  ;;  %10165 = vmatpush3.bf16.msra.mxu0 %v15323_v49 }
 0x2d3   :  { %v5755_v26 = vand.u32 4294901760, %v5754_v13  ;;  %v5762_v40 = vand.u32 4294901760, %v5761_v28  ;;  %v5881_v23 = vand.u32 4294901760, %v5880_v14  ;;  %v5888_v18 = vand.u32 4294901760, %v5887_v21  ;;  %v18356_v14 = vld [vmem:[#allocation26_spill] sm:$0xff]  ;;  %10191 = vmatprep.subr.bf16.mxu1 %v10190_v20 }
 0x2d4   :  { %v15341_v8 = vpack.c.bf16 %v18346_v5, %v18344_v48  ;;  %v15347_v47 = vpack.c.bf16 %v18350_v22, %v18348_v1  ;;  %v18351_v56 = vand.u32 4294901760, %v15009_v32  ;;  %v10192_v29 = vpack.c.bf16 %v5748_v4, %v5741_v59  ;;  %v18358_v5 = vld [vmem:[#allocation73_spill] sm:$0xff]  ;;  %10167 = vmatprep.subr.bf16.mxu0 %v15334_v11 }
 0x2d5   :  { %v18353_v7 = vand.u32 4294901760, %v15019_v19  ;;  %v18354_v41 = vand.u32 4294901760, %v15039_v54  ;;  %v10194_v28 = vpack.c.bf16 %v5874_v3, %v5867_v12  ;;  %v18357_v21 = vand.u32 4294901760, %v18356_v14 }
 0x2d6   :  { %v5768_v39 = vsub.f32 %v15009_v32, %v18351_v56  ;;  %v18359_v1 = vand.u32 4294901760, %v18358_v5  ;;  %v18360_v45 = vand.u32 4294901760, %v15050_v16  ;;  %v18361_v3 = vand.u32 4294901760, %v15055_v17  ;;  %v15387_v5 = vld [vmem:[#allocation5 + $0x708] sm:$0xff]  ;;  %10193 = vmatpush3.bf16.msra.mxu1 %v10192_v29  ;;  %10169 = vmatpush3.bf16.msra.mxu0 %v15341_v8 }
 0x2d7   :  { %v5775_v48 = vsub.f32 %v15019_v19, %v18353_v7  ;;  %v5894_v13 = vsub.f32 %v15039_v54, %v18354_v41  ;;  %v18362_v7 = vand.u32 4294901760, %v15062_v38  ;;  %v10196_v10 = vpack.c.bf16 %v5762_v40, %v5755_v26  ;;  %10195 = vmatprep.subr.bf16.mxu1 %v10194_v28  ;;  %10171 = vmatprep.subr.bf16.mxu0 %v15347_v47 }
 0x2d8   :  { %v15368_v59 = vpack.c.bf16 %v18359_v1, %v18357_v21  ;;  %v5901_v22 = vsub.f32 %v15050_v16, %v18360_v45  ;;  %v5782_v12 = vsub.f32 %v15055_v17, %v18361_v3  ;;  %v15385_v21 = vld [vmem:[#allocation5 + $0x700] sm:$0xff]  ;;  %v8112_v1 = vpop.f32.mrb[22].mxu0  ;;  %v10198_v45 = vpack.c.bf16 %v5888_v18, %v5881_v23  ;;  %v15399_v16 = vld [vmem:[#allocation5 + $0x798] sm:$0xff]  ;;  %v15404_v18 = vld [vmem:[#allocation5 + $0x710] sm:$0xff] }
 0x2d9   :  { %v5789_v41 = vsub.f32 %v15062_v38, %v18362_v7  ;;  %v5769_v4 = vand.u32 4294901760, %v5768_v39  ;;  %v16724_v56 = vand.u32 4294901760, %v15361_v9  ;;  %v8113_v36 = vpop.f32.mrb[23].mxu0  ;;  %v18363_v3 = vand.u32 4294901760, %v15327_v24  ;;  %18365 = vst [vmem:[#allocation90_spill] sm:$0xff] %v15399_v16  ;;  %18366 = vst [vmem:[#allocation59_spill] sm:$0xff] %v15404_v18 }
 0x2da   :  { %v5776_v7 = vand.u32 4294901760, %v5775_v48  ;;  %v5895_v38 = vand.u32 4294901760, %v5894_v13  ;;  %v8114_v20 = vadd.f32 %v8113_v36, %v8112_v1  ;;  %v5902_v26 = vand.u32 4294901760, %v5901_v22  ;;  %v15406_v39 = vld [vmem:[#allocation5 + $0x718] sm:$0xff]  ;;  %v15416_v1 = vld [vmem:[#allocation5 + $0x7a0] sm:$0xff]  ;;  %10197 = vmatpush3.bf16.msra.mxu1 %v10196_v10  ;;  %10173 = vmatpush3.bf16.msra.mxu0 %v15368_v59 }
 0x2db   :  { %v15393_v17 = vsub.f32 %v15327_v24, %v18363_v3  ;;  %18367 = vst [vmem:[#allocation61_spill] sm:$0xff] %v15406_v39  ;;  %v5783_v48 = vand.u32 4294901760, %v5782_v12  ;;  %v5790_v13 = vand.u32 4294901760, %v5789_v41  ;;  %v18368_v36 = vand.u32 4294901760, %v15352_v63  ;;  %18369 = vst [vmem:[#allocation17_spill] sm:$0xff] %v15416_v1  ;;  %v15426_v41 = vld [vmem:[#allocation5 + $0x7a8] sm:$0xff]  ;;  %10199 = vmatprep.subr.bf16.mxu1 %v10198_v45 }
 0x2dc   :  { %v3737_v14 = vadd.f32 %v8114_v20, %v15180_v60  ;;  %v15422_v23 = vsub.f32 %v15361_v9, %v16724_v56  ;;  %v15428_v3 = vld [vmem:[#allocation5 + $0x720] sm:$0xff]  ;;  %v10202_v56 = vpack.c.bf16 %v5902_v26, %v5895_v38  ;;  %v18371_v29 = vand.u32 4294901760, %v15385_v21 }
 0x2dd   :  { %v15414_v22 = vsub.f32 %v15352_v63, %v18368_v36  ;;  %18370 = vst [vmem:[#allocation71_spill] sm:$0xff] %v15428_v3  ;;  %v8147_v36 = vpop.f32.mrb[22].mxu1  ;;  %v5674_v40 = vand.u32 4294901760, %v15393_v17  ;;  %v10200_v63 = vpack.c.bf16 %v5776_v7, %v5769_v4  ;;  %v18372_v9 = vand.u32 4294901760, %v15387_v5  ;;  %v15445_v4 = vld [vmem:[#allocation5 + $0x728] sm:$0xff] }
 0x2de   :  { %v8148_v20 = vpop.f32.mrb[23].mxu1  ;;  %v15437_v12 = vsub.f32 %v15385_v21, %v18371_v29  ;;  %18373 = vst [vmem:[#allocation74_spill] sm:$0xff] %v15445_v4  ;;  %v10204_v28 = vpack.c.bf16 %v5790_v13, %v5783_v48  ;;  %v15450_v29 = vld [vmem:[#allocation5 + $0x7b0] sm:$0xff]  ;;  %v18375_v60 = vand.u32 4294901760, %v15397_v33  ;;  %v18376_v17 = vand.u32 4294901760, %v15399_v16  ;;  %v15464_v13 = vld [vmem:[#allocation5 + $0x7b8] sm:$0xff] }
 0x2df   :  { %v15442_v24 = vsub.f32 %v15387_v5, %v18372_v9  ;;  %v8149_v7 = vadd.f32 %v8148_v20, %v8147_v36  ;;  %18374 = vst [vmem:[#allocation35_spill] sm:$0xff] %v15450_v29  ;;  %18377 = vst [vmem:[#allocation46_spill] sm:$0xff] %v15464_v13  ;;  %v18378_v45 = vand.u32 4294901760, %v15404_v18  ;;  %v18381_v48 = vand.u32 4294901760, %v15416_v1  ;;  %10201 = vmatpush3.bf16.msra.mxu1 %v10200_v63 }
 0x2e0   :  { %v15455_v9 = vsub.f32 %v15397_v33, %v18375_v60  ;;  %v15460_v36 = vsub.f32 %v15399_v16, %v18376_v17  ;;  %v18379_v60 = vand.u32 4294901760, %v15406_v39  ;;  %v15479_v16 = vld [vmem:[#allocation5 + $0x730] sm:$0xff]  ;;  %v18384_v17 = vand.u32 4294901760, %v15426_v41  ;;  %10203 = vmatprep.subr.bf16.mxu1 %v10202_v56  ;;  %5675 = vmatmul.mubr.f32.vlgmr.msra.gmra.mrb[36].mxu0 %v5674_v40 }
 0x2e1   :  { %v15466_v20 = vadd.f32 %v8149_v7, %v3737_v14  ;;  %v15471_v26 = vsub.f32 %v15404_v18, %v18378_v45  ;;  %18380 = vst [vmem:[#allocation69_spill] sm:$0xff] %v15479_v16  ;;  %v15485_v14 = vsub.f32 %v15416_v1, %v18381_v48  ;;  %v15490_v18 = vld [vmem:[#allocation5 + $0x738] sm:$0xff]  ;;  %v18385_v48 = vand.u32 4294901760, %v15428_v3  ;;  %6042 = vmatprep.mubr.f32.mxu0 %v15139_v2 }
 0x2e2   :  { %v15476_v38 = vsub.f32 %v15406_v39, %v18379_v60  ;;  %18382 = vst [vmem:[#allocation66_spill] sm:$0xff] %v15490_v18  ;;  %v18383_v60 = vpack.c.bf16 %v14687_v51, %v14679_v43  ;;  %v15498_v39 = vsub.f32 %v15426_v41, %v18384_v17  ;;  %v18386_v10 = vand.u32 4294901760, %v15414_v22  ;;  %v15515_v17 = vld [vmem:[#allocation5 + $0x7c0] sm:$0xff] }
 0x2e3   :  { %v15503_v7 = vsub.f32 %v15428_v3, %v18385_v48  ;;  %v18387_v1 = vand.u32 4294901760, %v15422_v23  ;;  %18389 = vst [vmem:[#allocation21_spill] sm:$0xff] %v15515_v17  ;;  %v18391_v48 = vand.u32 4294901760, %v15437_v12  ;;  %v18392_v45 = vand.u32 4294901760, %v15442_v24  ;;  %v15533_v51 = vld [vmem:[#allocation5 + $0x740] sm:$0xff]  ;;  %10205 = vmatpush3.bf16.msra.mxu1 %v10204_v28 }
 0x2e4   :  { %10207 = vmatprep.subr.bf16.mxu0 %v18383_v60  ;;  %v15517_v60 = vld [vmem:[#allocation5 + $0x7c8] sm:$0xff]  ;;  %18395 = vst [vmem:[#allocation31_spill] sm:$0xff] %v15533_v51  ;;  %v10214_v40 = vpack.c.bf16 %v14765_v57, %v14752_v37  ;;  %v18400_v43 = vand.u32 4294901760, %v15460_v36  ;;  %v18403_v57 = vand.u32 4294901760, %v15464_v13  ;;  %10239 = vmatprep.subr.bf16.mxu1 %v15163_v42  ;;  %v18419_v37 = vand.u32 4294901760, %v15498_v39 }
 0x2e5   :  { %v15510_v33 = vpack.c.bf16 %v18387_v1, %v18386_v10  ;;  %18390 = vst [vmem:[#allocation49_spill] sm:$0xff] %v15517_v60  ;;  %v15523_v3 = vpack.c.bf16 %v18392_v45, %v18391_v48  ;;  %v18394_v1 = vand.u32 4294901760, %v15445_v4  ;;  %v18397_v45 = vand.u32 4294901760, %v15450_v29 }
 0x2e6   :  { %v18399_v10 = vand.u32 4294901760, %v15455_v9  ;;  %5907 = vmatmul.mubr.f32.vlgmr.msra.gmra.mrb[36].mxu1 %v15297_v0 }
 0x2e7   :  { %18388 = vst [vmem:[#allocation76_spill] sm:$0xff] %v15510_v33  ;;  %18393 = vst [vmem:[#allocation79_spill] sm:$0xff] %v15523_v3  ;;  %v15528_v56 = vsub.f32 %v15445_v4, %v18394_v1  ;;  %v18396_v33 = vpack.c.bf16 %v14709_v52, %v14704_v34  ;;  %v15544_v48 = vsub.f32 %v15450_v29, %v18397_v45  ;;  %v15546_v1 = vld [vmem:[#allocation5 + $0x748] sm:$0xff]  ;;  %v18404_v45 = vand.u32 4294901760, %v15471_v26  ;;  %v15637_v4 = vld [vmem:[#allocation5 + $0x7e0] sm:$0xff] }
 0x2e8   :  { %18398 = vst [vmem:[#allocation65_spill] sm:$0xff] %v15546_v1  ;;  %v15552_v63 = vpack.c.bf16 %v18400_v43, %v18399_v10  ;;  %v18402_v34 = vpack.c.bf16 %v14727_v15, %v14722_v62  ;;  %v15560_v52 = vsub.f32 %v15464_v13, %v18403_v57  ;;  %v18405_v3 = vand.u32 4294901760, %v15476_v38  ;;  %v18414_v10 = vld [vmem:[#allocation25_spill] sm:$0xff]  ;;  %v18421_v13 = vld [vmem:[#allocation12_spill] sm:$0xff]  ;;  %18434 = vst [vmem:[#allocation27_spill] sm:$0xff] %v15637_v4 }
 0x2e9   :  { %10209 = vmatpush3.bf16.msra.mxu0 %v18396_v33  ;;  %v18407_v62 = vand.u32 4294901760, %v15479_v16  ;;  %v18409_v57 = vand.u32 4294901760, %v15490_v18  ;;  %10241 = vmatpush3.bf16.msra.mxu1 %v18421_v13  ;;  %v10220_v29 = vpack.c.bf16 %v14849_v44, %v14841_v27  ;;  %v15667_v27 = vld [vmem:[#allocation5 + $0x768] sm:$0xff]  ;;  %v15692_v44 = vld [vmem:[#allocation5 + $0x7f0] sm:$0xff] }
 0x2ea   :  { %18401 = vst [vmem:[#allocation54_spill] sm:$0xff] %v15552_v63  ;;  %10211 = vmatprep.subr.bf16.mxu0 %v18402_v34  ;;  %v15568_v43 = vpack.c.bf16 %v18405_v3, %v18404_v45  ;;  %v18413_v34 = vld [vmem:[#allocation72_spill] sm:$0xff]  ;;  %v18415_v63 = vld [vmem:[#allocation37_spill] sm:$0xff]  ;;  %v18418_v3 = vand.u32 4294901760, %v15485_v14  ;;  %18442 = vst [vmem:[#allocation23_spill] sm:$0xff] %v15667_v27 }
 0x2eb   :  { %v15574_v15 = vsub.f32 %v15479_v16, %v18407_v62  ;;  %v15582_v33 = vsub.f32 %v15490_v18, %v18409_v57  ;;  %v18412_v62 = vpack.c.bf16 %v14743_v46, %v14738_v35  ;;  %v10216_v28 = vpack.c.bf16 %v18414_v10, %v18413_v34  ;;  %v18416_v57 = vld [vmem:[#allocation38_spill] sm:$0xff]  ;;  %v15616_v34 = vld [vmem:[#allocation5 + $0x750] sm:$0xff]  ;;  %18447 = vst [vmem:[#allocation50_spill] sm:$0xff] %v15692_v44 }
 0x2ec   :  { %18406 = vst [vmem:[#allocation18_spill] sm:$0xff] %v15568_v43  ;;  %v15587_v43 = vld [vmem:[#allocation5 + $0x7d0] sm:$0xff]  ;;  %v10218_v18 = vpack.c.bf16 %v18416_v57, %v18415_v63  ;;  %v15597_v16 = vld [vmem:[#allocation5 + $0x7d8] sm:$0xff]  ;;  %v15603_v45 = vpack.c.bf16 %v18419_v37, %v18418_v3  ;;  %v18422_v46 = vand.u32 4294901760, %v15515_v17  ;;  %v18424_v10 = vand.u32 4294901760, %v15517_v60  ;;  %18426 = vst [vmem:[#allocation29_spill] sm:$0xff] %v15616_v34 }
 0x2ed   :  { %18408 = vst [vmem:[#allocation57_spill] sm:$0xff] %v15574_v15  ;;  %18410 = vst [vmem:[#allocation13_spill] sm:$0xff] %v15582_v33  ;;  %10213 = vmatpush3.bf16.msra.mxu0 %v18412_v62  ;;  %v15618_v62 = vld [vmem:[#allocation5 + $0x758] sm:$0xff]  ;;  %v18428_v37 = vand.u32 4294901760, %v15503_v7  ;;  %v18431_v57 = vld [vmem:[#allocation52_spill] sm:$0xff] }
 0x2ee   :  { %18411 = vst [vmem:[#allocation22_spill] sm:$0xff] %v15587_v43  ;;  %18417 = vst [vmem:[#allocation32_spill] sm:$0xff] %v15597_v16  ;;  %10215 = vmatprep.subr.bf16.mxu0 %v10214_v40  ;;  %v15609_v35 = vsub.f32 %v15515_v17, %v18422_v46  ;;  %v15614_v63 = vsub.f32 %v15517_v60, %v18424_v10  ;;  %v18429_v40 = vand.u32 4294901760, %v15528_v56  ;;  %10243 = vmatprep.subr.bf16.mxu1 %v18431_v57  ;;  %v15649_v60 = vld [vmem:[#allocation5 + $0x760] sm:$0xff] }
 0x2ef   :  { %18420 = vst [vmem:[#allocation68_spill] sm:$0xff] %v15603_v45  ;;  %18427 = vst [vmem:[#allocation19_spill] sm:$0xff] %v15618_v62  ;;  %v18432_v46 = vand.u32 4294901760, %v15139_v2  ;;  %v18433_v45 = vand.u32 4294901760, %v15533_v51  ;;  %v18440_v2 = vand.u32 4294901760, %v15560_v52  ;;  %10245 = vmatpush3.bf16.msra.mxu1 %v15215_v61 }
 0x2f0   :  { %18423 = vst [vmem:[#allocation39_spill] sm:$0xff] %v15609_v35  ;;  %18425 = vst [vmem:[#allocation34_spill] sm:$0xff] %v15614_v63  ;;  %v15624_v3 = vpack.c.bf16 %v18429_v40, %v18428_v37  ;;  %v18435_v37 = vand.u32 4294901760, %v15546_v1  ;;  %10247 = vmatprep.subr.bf16.mxu1 %v15222_v55 }
 0x2f1   :  { %6149 = vmatprep.mubr.f32.mxu1 %v18432_v46  ;;  %v15632_v10 = vsub.f32 %v15533_v51, %v18433_v45  ;;  %v16743_v46 = vand.u32 4294901760, %v15574_v15  ;;  %18438 = vst [vmem:[#allocation48_spill] sm:$0xff] %v15649_v60  ;;  %10217 = vmatpush3.bf16.msra.mxu0 %v10216_v28  ;;  %v10222_v45 = vpack.c.bf16 %v14881_v58, %v14876_v53  ;;  %v18443_v51 = vand.u32 4294901760, %v15582_v33 }
 0x2f2   :  { %18430 = vst [vmem:[#allocation24_spill] sm:$0xff] %v15624_v3  ;;  %v15642_v40 = vsub.f32 %v15546_v1, %v18435_v37  ;;  %v15647_v3 = vld [vmem:[#allocation5 + $0x7e8] sm:$0xff]  ;;  %v18439_v37 = vand.u32 4294901760, %v15544_v48  ;;  %10219 = vmatprep.subr.bf16.mxu0 %v10218_v18  ;;  %v10224_v28 = vpack.c.bf16 %v14909_v31, %v14899_v30  ;;  %v18445_v30 = vand.u32 4294901760, %v15587_v43 }
 0x2f3   :  { %18437 = vst [vmem:[#allocation84_spill] sm:$0xff] %v15647_v3  ;;  %v15673_v17 = vpack.c.bf16 %v18443_v51, %v16743_v46  ;;  %v18448_v53 = vand.u32 4294901760, %v15616_v34  ;;  %v15707_v46 = vld [vmem:[#allocation5 + $0x770] sm:$0xff]  ;;  %v18454_v18 = vand.u32 4294901760, %v15609_v35  ;;  %10249 = vmatpush3.bf16.msra.mxu1 %v15242_v50  ;;  %v18462_v33 = vand.u32 4294901760, %v15632_v10 }
 0x2f4   :  { %18436 = vst [vmem:[#allocation67_spill] sm:$0xff] %v15642_v40  ;;  %v15659_v1 = vpack.c.bf16 %v18440_v2, %v18439_v37  ;;  %v15683_v31 = vsub.f32 %v15587_v43, %v18445_v30  ;;  %v18446_v37 = vand.u32 4294901760, %v15597_v16  ;;  %v18450_v30 = vand.u32 4294901760, %v15618_v62  ;;  %18453 = vst [vmem:[#allocation16_spill] sm:$0xff] %v15707_v46 }
 0x2f5   :  { %18444 = vst [vmem:[#allocation75_spill] sm:$0xff] %v15673_v17  ;;  %10221 = vmatpush3.bf16.msra.mxu0 %v10220_v29  ;;  %v15697_v58 = vsub.f32 %v15616_v34, %v18448_v53  ;;  %v15705_v17 = vld [vmem:[#allocation5 + $0x7f8] sm:$0xff]  ;;  %v18455_v29 = vand.u32 4294901760, %v15614_v63  ;;  %v18463_v15 = vand.u32 4294901760, %v15642_v40 }
 0x2f6   :  { %18441 = vst [vmem:[#allocation40_spill] sm:$0xff] %v15659_v1  ;;  %v15688_v51 = vsub.f32 %v15597_v16, %v18446_v37  ;;  %v15702_v2 = vsub.f32 %v15618_v62, %v18450_v30  ;;  %18452 = vst [vmem:[#allocation56_spill] sm:$0xff] %v15705_v17  ;;  %10223 = vmatprep.subr.bf16.mxu0 %v10222_v45  ;;  %v18457_v53 = vld [vmem:[#allocation93_spill] sm:$0xff]  ;;  %v18459_v30 = vld [vmem:[#allocation60_spill] sm:$0xff]  ;;  %v18466_v45 = vand.u32 4294901760, %v15637_v4 }
 0x2f7   :  { %18449 = vst [vmem:[#allocation82_spill] sm:$0xff] %v15697_v58  ;;  %v15713_v1 = vpack.c.bf16 %v18455_v29, %v18454_v18  ;;  %v18458_v34 = vld [vmem:[#allocation53_spill] sm:$0xff]  ;;  %v18460_v62 = vld [vmem:[#allocation64_spill] sm:$0xff]  ;;  %v15726_v35 = vpack.c.bf16 %v18463_v15, %v18462_v33  ;;  %v18476_v33 = vand.u32 4294901760, %v15692_v44 }
 0x2f8   :  { %18451 = vst [vmem:[#allocation89_spill] sm:$0xff] %v15702_v2  ;;  %v10226_v16 = vpack.c.bf16 %v18458_v34, %v18457_v53  ;;  %v10228_v43 = vpack.c.bf16 %v18460_v62, %v18459_v30  ;;  %v15720_v37 = vld [vmem:[#allocation5 + $0x778] sm:$0xff]  ;;  %v15732_v18 = vsub.f32 %v15637_v4, %v18466_v45  ;;  %v18467_v34 = vand.u32 4294901760, %v15647_v3  ;;  %v18471_v30 = vld [vmem:[#allocation43_spill] sm:$0xff] }
 0x2f9   :  { %18456 = vst [vmem:[#allocation26_spill] sm:$0xff] %v15713_v1  ;;  %18461 = vst [vmem:[#allocation73_spill] sm:$0xff] %v15720_v37  ;;  %v18465_v63 = vld [vmem:[#allocation33_spill] sm:$0xff]  ;;  %v18468_v62 = vand.u32 4294901760, %v15649_v60  ;;  %10225 = vmatpush3.bf16.msra.mxu0 %v10224_v28  ;;  %v18469_v1 = vand.u32 4294901760, %v15667_v27  ;;  %v18473_v45 = vand.u32 4294901760, %v15683_v31 }
 0x2fa   :  { %18464 = vst [vmem:[#allocation72_spill] sm:$0xff] %v15726_v35  ;;  %10251 = vmatprep.subr.bf16.mxu1 %v18465_v63  ;;  %v15737_v29 = vsub.f32 %v15647_v3, %v18467_v34  ;;  %10227 = vmatprep.subr.bf16.mxu0 %v10226_v16  ;;  %v18470_v15 = vld [vmem:[#allocation41_spill] sm:$0xff]  ;;  %v18474_v28 = vand.u32 4294901760, %v15688_v51  ;;  %v10232_v3 = vpack.c.bf16 %v15019_v19, %v15009_v32  ;;  %v16766_v19 = vand.u32 4294901760, %v15732_v18 }
 0x2fb   :  { %v15742_v53 = vsub.f32 %v15649_v60, %v18468_v62  ;;  %v15752_v34 = vsub.f32 %v15667_v27, %v18469_v1  ;;  %v16761_v62 = vand.u32 4294901760, %v15697_v58  ;;  %10253 = vmatpush3.bf16.msra.mxu1 %v18470_v15  ;;  %v18472_v60 = vld [vmem:[#allocation86_spill] sm:$0xff]  ;;  %v8182_v1 = vpop.f32.mrb[24].mxu0  ;;  %v15772_v16 = vsub.f32 %v15692_v44, %v18476_v33 }
 0x2fc   :  { %v10230_v35 = vpack.c.bf16 %v18472_v60, %v18471_v30  ;;  %v15764_v4 = vpack.c.bf16 %v18474_v28, %v18473_v45  ;;  %10255 = vmatprep.subr.bf16.mxu1 %v15260_v6  ;;  %v18478_v60 = vand.u32 4294901760, %v15702_v2  ;;  %v8183_v27 = vpop.f32.mrb[25].mxu0  ;;  %v18480_v45 = vand.u32 4294901760, %v15705_v17 }
 0x2fd   :  { %18477 = vst [vmem:[#allocation37_spill] sm:$0xff] %v15772_v16  ;;  %v16765_v33 = vand.u32 4294901760, %v15737_v29  ;;  %v8184_v44 = vadd.f32 %v8183_v27, %v8182_v1  ;;  %10229 = vmatpush3.bf16.msra.mxu0 %v10228_v43  ;;  %v18485_v1 = vld [vmem:[#allocation47_spill] sm:$0xff] }
 0x2fe   :  { %18475 = vst [vmem:[#allocation25_spill] sm:$0xff] %v15764_v4  ;;  %v15778_v30 = vpack.c.bf16 %v18478_v60, %v16761_v62  ;;  %v15783_v28 = vsub.f32 %v15705_v17, %v18480_v45  ;;  %v18481_v4 = vand.u32 4294901760, %v15707_v46  ;;  %v18482_v60 = vand.u32 4294901760, %v15720_v37  ;;  %10231 = vmatprep.subr.bf16.mxu0 %v10230_v35  ;;  %v18487_v17 = vld [vmem:[#allocation51_spill] sm:$0xff] }
 0x2ff   :  { %v16767_v45 = vand.u32 4294901760, %v15752_v34  ;;  %10257 = vmatpush3.bf16.msra.mxu1 %v15281_v25  ;;  %v15806_v43 = vpack.c.bf16 %v16765_v33, %v16766_v19  ;;  %v3953_v27 = vadd.f32 %v8184_v44, %v15466_v20  ;;  %v18488_v33 = vld [vmem:[#allocation20_spill] sm:$0xff] }
 0x300   :  { %18479 = vst [vmem:[#allocation38_spill] sm:$0xff] %v15778_v30  ;;  %v15788_v32 = vsub.f32 %v15707_v46, %v18481_v4  ;;  %v15795_v62 = vsub.f32 %v15720_v37, %v18482_v60  ;;  %v16770_v30 = vand.u32 4294901760, %v15742_v53  ;;  %v18483_v4 = vld [vmem:[#allocation91_spill] sm:$0xff]  ;;  %10259 = vmatprep.subr.bf16.mxu1 %v18485_v1  ;;  %v8217_v60 = vpop.f32.mrb[24].mxu1  ;;  %v16769_v37 = vand.u32 4294901760, %v15772_v16 }
 0x301   :  { %v10234_v46 = vpack.c.bf16 %v18483_v4, %v15039_v54  ;;  %18484 = vst [vmem:[#allocation12_spill] sm:$0xff] %v15806_v43  ;;  %v16768_v54 = vand.u32 4294901760, %v15783_v28  ;;  %10233 = vmatpush3.bf16.msra.mxu0 %v10232_v3  ;;  %v8218_v4 = vpop.f32.mrb[25].mxu1  ;;  %v10236_v19 = vpack.c.bf16 %v18488_v33, %v18487_v17  ;;  %v18491_v33 = vld [vmem:[#allocation78_spill] sm:$0xff] }
 0x302   :  { %v15814_v35 = vpack.c.bf16 %v16767_v45, %v16770_v30  ;;  %v16773_v20 = vand.u32 4294901760, %v15788_v32  ;;  %v16772_v44 = vand.u32 4294901760, %v15795_v62  ;;  %v8219_v43 = vadd.f32 %v8218_v4, %v8217_v60  ;;  %v18493_v60 = vld [vmem:[#allocation30_spill] sm:$0xff] }
 0x303   :  { %10235 = vmatprep.subr.bf16.mxu0 %v10234_v46  ;;  %10261 = vmatpush3.bf16.msra.mxu1 %v15323_v49  ;;  %v15827_v45 = vpack.c.bf16 %v16768_v54, %v16769_v37  ;;  %v18492_v46 = vld [vmem:[#allocation81_spill] sm:$0xff]  ;;  %v18494_v4 = vld [vmem:[#allocation58_spill] sm:$0xff]  ;;  %v18495_v54 = vld [vmem:[#allocation36_spill] sm:$0xff] }
 0x304   :  { %18486 = vst [vmem:[#allocation52_spill] sm:$0xff] %v15814_v35  ;;  %10263 = vmatprep.subr.bf16.mxu1 %v15334_v11  ;;  %v15834_v17 = vpack.c.bf16 %v16772_v44, %v16773_v20  ;;  %v4185_v3 = vadd.f32 %v8219_v43, %v3953_v27  ;;  %v363_v37 = vcombine.high %v18495_v54, %v18495_v54  ;;  %v18496_v30 = vld [vmem:[#allocation70_spill] sm:$0xff]  ;;  %v18498_v43 = vand.u32 4294901760, %v18492_v46  ;;  %v18499_v27 = vld [vmem:[#allocation11_spill] sm:$0xff]  ;;  %v18502_v54 = vld [vmem:[#allocation88_spill] sm:$0xff] }
 0x305   :  { %18489 = vst [vmem:[#allocation93_spill] sm:$0xff] %v15827_v45  ;;  %10237 = vmatpush3.bf16.msra.mxu0 %v10236_v19  ;;  %v18497_v19 = vld [vmem:[#allocation42_spill] sm:$0xff] }
 0x306   :  { %18490 = vst [vmem:[#allocation53_spill] sm:$0xff] %v15834_v17  ;;  %10271 = vmatprep.subr.bf16.mxu0 %v18491_v33  ;;  %v15851_v33 = vrot.slane %v363_v37, %v18499_v27  ;;  %v18503_v37 = vld [vmem:[#allocation92_spill] sm:$0xff]  ;;  %v18508_v27 = vld [vmem:[#allocation14_spill] sm:$0xff]  ;;  %v18537_v17 = vand.u32 4294901760, %v15503_v7 }
 0x307   :  { %10265 = vmatpush3.bf16.msra.mxu1 %v15341_v8 }
 0x308   :  { %10267 = vmatprep.subr.bf16.mxu1 %v15347_v47  ;;  %6045 = vmatmul.mubr.f32.vlgmr.msra.gmra.mrb[38].mxu0 %v18492_v46 }
 0x309   :  { %10273 = vmatpush3.bf16.msra.mxu0 %v18493_v60  ;;  %6319 = vmatprep.mubr.f32.mxu0 %v18494_v4  ;;  %v18500_v60 = vld [vmem:[#allocation28_spill] sm:$0xff] }
 0x30a   :  { %10275 = vmatprep.subr.bf16.mxu0 %v18496_v30  ;;  %v18501_v30 = vld [vmem:[#allocation80_spill] sm:$0xff] }
 0x30b   :  { %10269 = vmatpush3.bf16.msra.mxu1 %v15368_v59 }
 0x30c   :  { %10303 = vmatprep.subr.bf16.mxu1 %v15163_v42  ;;  %v379_v42 = vcombine.high %v15851_v33, %v15851_v33 }
 0x30d   :  { %10277 = vmatpush3.bf16.msra.mxu0 %v18497_v19  ;;  %v18507_v19 = vld [vmem:[#allocation87_spill] sm:$0xff] }
 0x30e   :  { %6153 = vmatmul.mubr.f32.vlgmr.msra.gmra.mrb[38].mxu1 %v18498_v43  ;;  %10279 = vmatprep.subr.bf16.mxu0 %v18500_v60  ;;  %v15864_v46 = vand.u32 4294901760, %v379_v42  ;;  %v18509_v60 = vld [vmem:[#allocation55_spill] sm:$0xff] }
 0x30f   :  { %10305 = vmatpush3.bf16.msra.mxu1 %v18421_v13  ;;  %6423 = vmatprep.mubr.f32.mxu1 %v18494_v4  ;;  %v18505_v13 = vld [vmem:[#allocation45_spill] sm:$0xff] }
 0x310   :  { %10307 = vmatprep.subr.bf16.mxu1 %v18431_v57  ;;  %18504 = vst [vmem:[#allocation60_spill] sm:$0xff] %v15864_v46  ;;  %v18506_v57 = vld [vmem:[#allocation77_spill] sm:$0xff]  ;;  %v15871_v4 = vsub.f32 %v379_v42, %v15864_v46  ;;  %v18511_v42 = vand.u32 4294901760, %v15422_v23 }
 0x311   :  { %10281 = vmatpush3.bf16.msra.mxu0 %v18501_v30  ;;  %v18510_v30 = vand.u32 4294901760, %v15414_v22 }
 0x312   :  { %10283 = vmatprep.subr.bf16.mxu0 %v18502_v54  ;;  %v8287_v54 = vpop.f32.mrb[26].mxu1 }
 0x313   :  { %10309 = vmatpush3.bf16.msra.mxu1 %v15215_v61  ;;  %v8252_v61 = vpop.f32.mrb[26].mxu0 }
 0x314   :  { %10311 = vmatprep.subr.bf16.mxu1 %v15222_v55  ;;  %v8253_v55 = vpop.f32.mrb[27].mxu0 }
 0x315   :  { %10285 = vmatpush3.bf16.msra.mxu0 %v18503_v37  ;;  %v8254_v43 = vadd.f32 %v8253_v55, %v8252_v61  ;;  %v18512_v37 = vld [vmem:[#allocation44_spill] sm:$0xff]  ;;  %v18515_v61 = vld [vmem:[#allocation83_spill] sm:$0xff] }
 0x316   :  { %10287 = vmatprep.subr.bf16.mxu0 %v18505_v13  ;;  %v8288_v13 = vpop.f32.mrb[27].mxu1  ;;  %v18516_v55 = vand.u32 4294901760, %v18515_v61 }
 0x317   :  { %10313 = vmatpush3.bf16.msra.mxu1 %v15242_v50  ;;  %v16771_v50 = vand.u32 4294901760, %v15871_v4 }
 0x318   :  { %10315 = vmatprep.subr.bf16.mxu1 %v18465_v63  ;;  %v4323_v63 = vadd.f32 %v8254_v43, %v4185_v3  ;;  %v8289_v3 = vadd.f32 %v8288_v13, %v8287_v54  ;;  %v18517_v43 = vld [vmem:[#allocation15_spill] sm:$0xff]  ;;  %v18521_v13 = vand.u32 4294901760, %v15460_v36 }
 0x319   :  { %10289 = vmatpush3.bf16.msra.mxu0 %v18506_v57  ;;  %v18513_v57 = vld [vmem:[#allocation62_spill] sm:$0xff] }
 0x31a   :  { %10291 = vmatprep.subr.bf16.mxu0 %v18507_v19  ;;  %v18514_v19 = vand.u32 4294901760, %v18513_v57  ;;  %v15912_v61 = vadd.f32 %v8289_v3, %v4323_v63  ;;  %v18530_v63 = vand.u32 4294901760, %v15476_v38 }
 0x31b   :  { %10317 = vmatpush3.bf16.msra.mxu1 %v18470_v15  ;;  %v6658_v15 = vsub.f32 %v15414_v22, %v18510_v30  ;;  %v18519_v30 = vand.u32 4294901760, %v15442_v24 }
 0x31c   :  { %10319 = vmatprep.subr.bf16.mxu1 %v15260_v6  ;;  %v6665_v6 = vsub.f32 %v15422_v23, %v18511_v42 }
 0x31d   :  { %10293 = vmatpush3.bf16.msra.mxu0 %v18508_v27  ;;  %v18518_v27 = vand.u32 4294901760, %v15437_v12  ;;  %v6553_v42 = vsub.f32 %v15442_v24, %v18519_v30  ;;  %v18524_v30 = vld [vmem:[#allocation63_spill] sm:$0xff] }
 0x31e   :  { %10295 = vmatprep.subr.bf16.mxu0 %v18509_v60  ;;  %v6666_v57 = vand.u32 4294901760, %v6665_v6  ;;  %v18527_v6 = vld [vmem:[#allocation90_spill] sm:$0xff] }
 0x31f   :  { %10321 = vmatpush3.bf16.msra.mxu1 %v15281_v25  ;;  %v15892_v25 = vpack.c.bf16 %v18516_v55, %v18514_v19  ;;  %v6546_v60 = vsub.f32 %v15437_v12, %v18518_v27  ;;  %v18520_v19 = vand.u32 4294901760, %v15455_v9  ;;  %v18522_v55 = vand.u32 4294901760, %v15385_v21 }
 0x320   :  { %10323 = vmatprep.subr.bf16.mxu1 %v18485_v1  ;;  %v6529_v1 = vsub.f32 %v15871_v4, %v16771_v50  ;;  %v18528_v50 = vand.u32 4294901760, %v18527_v6  ;;  %v6567_v21 = vsub.f32 %v15476_v38, %v18530_v63 }
 0x321   :  { %10297 = vmatpush3.bf16.msra.mxu0 %v18512_v37  ;;  %v6659_v37 = vand.u32 4294901760, %v6658_v15  ;;  %v6672_v54 = vsub.f32 %v15455_v9, %v18520_v19  ;;  %v18529_v19 = vand.u32 4294901760, %v15471_v26 }
 0x322   :  { %10299 = vmatprep.subr.bf16.mxu0 %v18517_v43  ;;  %v18523_v43 = vand.u32 4294901760, %v15387_v5  ;;  %v6530_v3 = vand.u32 4294901760, %v6529_v1  ;;  %v6547_v5 = vand.u32 4294901760, %v6546_v60  ;;  %v18533_v1 = vld [vmem:[#allocation59_spill] sm:$0xff]  ;;  %v6568_v20 = vand.u32 4294901760, %v6567_v21 }
 0x323   :  { %10325 = vmatpush3.bf16.msra.mxu1 %v15323_v49  ;;  %v6679_v49 = vsub.f32 %v15460_v36, %v18521_v13  ;;  %v6560_v13 = vsub.f32 %v15471_v26, %v18529_v19  ;;  %v6673_v6 = vand.u32 4294901760, %v6672_v54  ;;  %v18534_v63 = vand.u32 4294901760, %v18533_v1 }
 0x324   :  { %10327 = vmatprep.subr.bf16.mxu1 %v15334_v11  ;;  %v15918_v27 = vpack.c.bf16 %v18523_v43, %v18522_v55  ;;  %v18525_v11 = vld [vmem:[#allocation85_spill] sm:$0xff]  ;;  %v6554_v55 = vand.u32 4294901760, %v6553_v42  ;;  %v18531_v43 = vand.u32 4294901760, %v15485_v14 }
 0x325   :  { %10301 = vmatpush3.bf16.msra.mxu0 %v18524_v30  ;;  %v18526_v15 = vand.u32 4294901760, %v18525_v11  ;;  %v18532_v30 = vand.u32 4294901760, %v15498_v39  ;;  %v6680_v19 = vand.u32 4294901760, %v6679_v49  ;;  %v18541_v49 = vand.u32 4294901760, %v15426_v41 }
 0x326   :  { %10335 = vmatprep.subr.bf16.mxu0 %v15892_v25 }
 0x327   :  { %v15925_v44 = vpack.c.bf16 %v18528_v50, %v18526_v15  ;;  %10329 = vmatpush3.bf16.msra.mxu1 %v15341_v8  ;;  %v6686_v50 = vsub.f32 %v15485_v14, %v18531_v43  ;;  %v6693_v11 = vsub.f32 %v15498_v39, %v18532_v30  ;;  %v10366_v15 = vpack.c.bf16 %v6666_v57, %v6659_v37  ;;  %v18535_v8 = vld [vmem:[#allocation61_spill] sm:$0xff] }
 0x328   :  { %10331 = vmatprep.subr.bf16.mxu1 %v15347_v47  ;;  %6321 = vmatmul.mubr.f32.vlgmr.msra.gmra.mrb[40].mxu0 %v15297_v0  ;;  %v18536_v60 = vand.u32 4294901760, %v18535_v8  ;;  %v6561_v43 = vand.u32 4294901760, %v6560_v13  ;;  %v6574_v30 = vsub.f32 %v15503_v7, %v18537_v17  ;;  %v18538_v47 = vand.u32 4294901760, %v15528_v56  ;;  %v18539_v57 = vld [vmem:[#allocation17_spill] sm:$0xff] }
 0x329   :  { %10337 = vmatpush3.bf16.msra.mxu0 %v15918_v27  ;;  %6531 = vmatprep.mubr.f32.mxu0 %v6530_v3  ;;  %v18540_v54 = vand.u32 4294901760, %v18539_v57  ;;  %v10368_v13 = vpack.c.bf16 %v6554_v55, %v6547_v5  ;;  %v6687_v21 = vand.u32 4294901760, %v6686_v50  ;;  %v10370_v17 = vpack.c.bf16 %v6680_v19, %v6673_v6  ;;  %v18547_v57 = vld [vmem:[#allocation74_spill] sm:$0xff]  ;;  %v18550_v5 = vld [vmem:[#allocation35_spill] sm:$0xff] }
 0x32a   :  { %v15947_v42 = vpack.c.bf16 %v18536_v60, %v18534_v63  ;;  %v6581_v37 = vsub.f32 %v15528_v56, %v18538_v47  ;;  %10339 = vmatprep.subr.bf16.mxu0 %v15925_v44  ;;  %v6694_v63 = vand.u32 4294901760, %v6693_v11  ;;  %v18543_v8 = vand.u32 4294901760, %v15544_v48  ;;  %v18552_v50 = vld [vmem:[#allocation46_spill] sm:$0xff] }
 0x32b   :  { %10333 = vmatpush3.bf16.msra.mxu1 %v15368_v59  ;;  %v15962_v1 = vpack.c.bf16 %v18541_v49, %v18540_v54  ;;  %v18544_v3 = vand.u32 4294901760, %v15560_v52  ;;  %v18545_v59 = vld [vmem:[#allocation71_spill] sm:$0xff]  ;;  %v18548_v35 = vand.u32 4294901760, %v18547_v57  ;;  %v18551_v55 = vand.u32 4294901760, %v18550_v5 }
 0x32c   :  { %10367 = vmatprep.subr.bf16.mxu1 %v10366_v15  ;;  %v6700_v60 = vsub.f32 %v15544_v48, %v18543_v8  ;;  %v18546_v45 = vand.u32 4294901760, %v18545_v59  ;;  %v18553_v11 = vand.u32 4294901760, %v18552_v50  ;;  %v10372_v6 = vpack.c.bf16 %v6568_v20, %v6561_v43  ;;  %v18555_v8 = vld [vmem:[#allocation57_spill] sm:$0xff]  ;;  %v18561_v43 = vld [vmem:[#allocation34_spill] sm:$0xff] }
 0x32d   :  { %18542 = vst [vmem:[#allocation64_spill] sm:$0xff] %v15962_v1  ;;  %v6707_v47 = vsub.f32 %v15560_v52, %v18544_v3  ;;  %10341 = vmatpush3.bf16.msra.mxu0 %v15947_v42  ;;  %v6575_v19 = vand.u32 4294901760, %v6574_v30  ;;  %v6582_v54 = vand.u32 4294901760, %v6581_v37  ;;  %v10374_v49 = vpack.c.bf16 %v6694_v63, %v6687_v21  ;;  %v18557_v3 = vld [vmem:[#allocation13_spill] sm:$0xff]  ;;  %v18565_v63 = vld [vmem:[#allocation66_spill] sm:$0xff] }
 0x32e   :  { %v15974_v41 = vpack.c.bf16 %v18548_v35, %v18546_v45  ;;  %6425 = vmatmul.mubr.f32.vlgmr.msra.gmra.mrb[40].mxu1 %v15297_v0  ;;  %v15982_v15 = vpack.c.bf16 %v18553_v11, %v18551_v55  ;;  %10343 = vmatprep.subr.bf16.mxu0 %v15962_v1  ;;  %v18556_v45 = vand.u32 4294901760, %v18555_v8  ;;  %v18558_v59 = vand.u32 4294901760, %v18557_v3  ;;  %v18559_v55 = vld [vmem:[#allocation39_spill] sm:$0xff] }
 0x32f   :  { %10369 = vmatpush3.bf16.msra.mxu1 %v10368_v13  ;;  %v6701_v57 = vand.u32 4294901760, %v6700_v60  ;;  %v6708_v5 = vand.u32 4294901760, %v6707_v47  ;;  %v18560_v50 = vand.u32 4294901760, %v18559_v55  ;;  %v18562_v30 = vand.u32 4294901760, %v18561_v43  ;;  %6767 = vmatprep.mubr.f32.mxu1 %v15864_v46  ;;  %v18563_v13 = vld [vmem:[#allocation69_spill] sm:$0xff] }
 0x330   :  { %18549 = vst [vmem:[#allocation33_spill] sm:$0xff] %v15974_v41  ;;  %18554 = vst [vmem:[#allocation41_spill] sm:$0xff] %v15982_v15  ;;  %v6588_v35 = vsub.f32 %v18555_v8, %v18556_v45  ;;  %v6595_v0 = vsub.f32 %v18557_v3, %v18558_v59  ;;  %10371 = vmatprep.subr.bf16.mxu1 %v10370_v17  ;;  %v18564_v21 = vand.u32 4294901760, %v18563_v13  ;;  %v18566_v11 = vand.u32 4294901760, %v18565_v63  ;;  %v18568_v17 = vld [vmem:[#allocation21_spill] sm:$0xff] }
 0x331   :  { %v6714_v20 = vsub.f32 %v18559_v55, %v18560_v50  ;;  %v6721_v37 = vsub.f32 %v18561_v43, %v18562_v30  ;;  %10345 = vmatpush3.bf16.msra.mxu0 %v15974_v41  ;;  %v18569_v60 = vand.u32 4294901760, %v18568_v17  ;;  %v18570_v47 = vld [vmem:[#allocation49_spill] sm:$0xff]  ;;  %v10376_v50 = vpack.c.bf16 %v6582_v54, %v6575_v19 }
 0x332   :  { %v16002_v45 = vpack.c.bf16 %v18566_v11, %v18564_v21  ;;  %v18571_v59 = vand.u32 4294901760, %v18570_v47  ;;  %v18573_v55 = vand.u32 4294901760, %v15632_v10  ;;  %v18574_v46 = vand.u32 4294901760, %v15642_v40  ;;  %10347 = vmatprep.subr.bf16.mxu0 %v15982_v15 }
 0x333   :  { %10373 = vmatpush3.bf16.msra.mxu1 %v10372_v6  ;;  %v6589_v21 = vand.u32 4294901760, %v6588_v35  ;;  %v6596_v63 = vand.u32 4294901760, %v6595_v0  ;;  %v18575_v11 = vand.u32 4294901760, %v15683_v31  ;;  %v10378_v54 = vpack.c.bf16 %v6708_v5, %v6701_v57 }
 0x334   :  { %18567 = vst [vmem:[#allocation43_spill] sm:$0xff] %v16002_v45  ;;  %v16009_v1 = vpack.c.bf16 %v18571_v59, %v18569_v60  ;;  %v6602_v30 = vsub.f32 %v15632_v10, %v18573_v55  ;;  %v6609_v13 = vsub.f32 %v15642_v40, %v18574_v46  ;;  %v18576_v60 = vand.u32 4294901760, %v15688_v51  ;;  %10375 = vmatprep.subr.bf16.mxu1 %v10374_v49  ;;  %v18577_v59 = vld [vmem:[#allocation31_spill] sm:$0xff]  ;;  %v18579_v46 = vld [vmem:[#allocation65_spill] sm:$0xff] }
 0x335   :  { %v6728_v17 = vsub.f32 %v15683_v31, %v18575_v11  ;;  %v6715_v55 = vand.u32 4294901760, %v6714_v20  ;;  %v6722_v47 = vand.u32 4294901760, %v6721_v37  ;;  %v18578_v41 = vand.u32 4294901760, %v18577_v59  ;;  %10349 = vmatpush3.bf16.msra.mxu0 %v16002_v45  ;;  %v18585_v20 = vld [vmem:[#allocation32_spill] sm:$0xff] }
 0x336   :  { %18572 = vst [vmem:[#allocation86_spill] sm:$0xff] %v16009_v1  ;;  %v6735_v19 = vsub.f32 %v15688_v51, %v18576_v60  ;;  %v18580_v40 = vand.u32 4294901760, %v18579_v46  ;;  %v16031_v6 = vand.u32 4294901760, %v15851_v33  ;;  %v6603_v35 = vand.u32 4294901760, %v6602_v30  ;;  %10351 = vmatprep.subr.bf16.mxu0 %v16009_v1 }
 0x337   :  { %v6610_v0 = vand.u32 4294901760, %v6609_v13  ;;  %v18581_v11 = vand.u32 4294901760, %v15697_v58  ;;  %v18582_v57 = vand.u32 4294901760, %v15702_v2  ;;  %10377 = vmatpush3.bf16.msra.mxu1 %v10376_v50  ;;  %v18586_v37 = vand.u32 4294901760, %v18585_v20  ;;  %v18590_v50 = vld [vmem:[#allocation29_spill] sm:$0xff] }
 0x338   :  { %v16028_v15 = vpack.c.bf16 %v18580_v40, %v18578_v41  ;;  %v18583_v40 = vld [vmem:[#allocation22_spill] sm:$0xff]  ;;  %v10380_v59 = vpack.c.bf16 %v6596_v63, %v6589_v21  ;;  %v6729_v30 = vand.u32 4294901760, %v6728_v17  ;;  %v6736_v13 = vand.u32 4294901760, %v6735_v19  ;;  %10379 = vmatprep.subr.bf16.mxu1 %v10378_v54  ;;  %v18594_v63 = vld [vmem:[#allocation27_spill] sm:$0xff]  ;;  %v18596_v19 = vld [vmem:[#allocation84_spill] sm:$0xff] }
 0x339   :  { %v6616_v49 = vsub.f32 %v15697_v58, %v18581_v11  ;;  %v6623_v5 = vsub.f32 %v15702_v2, %v18582_v57  ;;  %v18584_v41 = vand.u32 4294901760, %v18583_v40  ;;  %v10382_v46 = vpack.c.bf16 %v6722_v47, %v6715_v55  ;;  %v18592_v40 = vld [vmem:[#allocation19_spill] sm:$0xff] }
 0x33a   :  { %v18588_v11 = vand.u32 4294901760, %v15732_v18  ;;  %v18589_v57 = vand.u32 4294901760, %v15737_v29  ;;  %v18591_v2 = vand.u32 4294901760, %v18590_v50  ;;  %v18593_v58 = vand.u32 4294901760, %v18592_v40  ;;  %10353 = vmatpush3.bf16.msra.mxu0 %v16028_v15  ;;  %v8322_v50 = vpop.f32.mrb[28].mxu0 }
 0x33b   :  { %v16045_v60 = vpack.c.bf16 %v18586_v37, %v18584_v41  ;;  %v16061_v21 = vsub.f32 %v15851_v33, %v16031_v6  ;;  %v18595_v17 = vand.u32 4294901760, %v18594_v63  ;;  %v18597_v54 = vand.u32 4294901760, %v18596_v19  ;;  %10381 = vmatpush3.bf16.msra.mxu1 %v10380_v59  ;;  %v8323_v59 = vpop.f32.mrb[29].mxu0 }
 0x33c   :  { %v6742_v45 = vsub.f32 %v15732_v18, %v18588_v11  ;;  %v6749_v1 = vsub.f32 %v15737_v29, %v18589_v57  ;;  %v16057_v20 = vpack.c.bf16 %v18593_v58, %v18591_v2  ;;  %v10384_v47 = vpack.c.bf16 %v6610_v0, %v6603_v35  ;;  %10383 = vmatprep.subr.bf16.mxu1 %v10382_v46 }
 0x33d   :  { %18587 = vst [vmem:[#allocation91_spill] sm:$0xff] %v16045_v60  ;;  %v16068_v55 = vpack.c.bf16 %v18597_v54, %v18595_v17  ;;  %v6617_v41 = vand.u32 4294901760, %v6616_v49  ;;  %v6624_v37 = vand.u32 4294901760, %v6623_v5  ;;  %10355 = vmatprep.subr.bf16.mxu0 %v16045_v60  ;;  %v10386_v2 = vpack.c.bf16 %v6736_v13, %v6729_v30  ;;  %v18603_v17 = vld [vmem:[#allocation48_spill] sm:$0xff]  ;;  %v18605_v54 = vld [vmem:[#allocation23_spill] sm:$0xff] }
 0x33e   :  { %v18599_v58 = vand.u32 4294901760, %v15742_v53  ;;  %v18600_v11 = vand.u32 4294901760, %v15752_v34  ;;  %v6743_v40 = vand.u32 4294901760, %v6742_v45  ;;  %v6750_v63 = vand.u32 4294901760, %v6749_v1  ;;  %10357 = vmatpush3.bf16.msra.mxu0 %v16057_v20  ;;  %v18607_v1 = vld [vmem:[#allocation50_spill] sm:$0xff] }
 0x33f   :  { %18598 = vst [vmem:[#allocation47_spill] sm:$0xff] %v16068_v55  ;;  %v18601_v35 = vand.u32 4294901760, %v15772_v16  ;;  %v18602_v49 = vand.u32 4294901760, %v15783_v28  ;;  %v6534_v30 = vand.u32 4294901760, %v16061_v21  ;;  %v8324_v13 = vadd.f32 %v8323_v59, %v8322_v50  ;;  %10359 = vmatprep.subr.bf16.mxu0 %v16068_v55  ;;  %10385 = vmatpush3.bf16.msra.mxu1 %v10384_v47 }
 0x340   :  { %v6630_v33 = vsub.f32 %v15742_v53, %v18599_v58  ;;  %v6637_v57 = vsub.f32 %v15752_v34, %v18600_v11  ;;  %v18604_v19 = vand.u32 4294901760, %v18603_v17  ;;  %v18606_v46 = vand.u32 4294901760, %v18605_v54  ;;  %v18609_v11 = vld [vmem:[#allocation56_spill] sm:$0xff]  ;;  %10387 = vmatprep.subr.bf16.mxu1 %v10386_v2 }
 0x341   :  { %v6756_v0 = vsub.f32 %v15772_v16, %v18601_v35  ;;  %v6763_v5 = vsub.f32 %v15783_v28, %v18602_v49  ;;  %v18608_v58 = vand.u32 4294901760, %v18607_v1  ;;  %v18610_v35 = vand.u32 4294901760, %v18609_v11 }
 0x342   :  { %v16089_v45 = vpack.c.bf16 %v18606_v46, %v18604_v19  ;;  %v10388_v16 = vpack.c.bf16 %v6624_v37, %v6617_v41  ;;  %v6631_v49 = vand.u32 4294901760, %v6630_v33  ;;  %v6638_v50 = vand.u32 4294901760, %v6637_v57  ;;  %v8357_v41 = vpop.f32.mrb[28].mxu1  ;;  %v18613_v33 = vld [vmem:[#allocation16_spill] sm:$0xff] }
 0x343   :  { %v16095_v60 = vpack.c.bf16 %v18610_v35, %v18608_v58  ;;  %v18611_v59 = vand.u32 4294901760, %v15788_v32  ;;  %v18612_v54 = vand.u32 4294901760, %v15795_v62  ;;  %v4599_v46 = vadd.f32 %v8324_v13, %v15912_v61  ;;  %v8358_v37 = vpop.f32.mrb[29].mxu1  ;;  %v18615_v35 = vld [vmem:[#allocation73_spill] sm:$0xff] }
 0x344   :  { %v10390_v1 = vpack.c.bf16 %v6750_v63, %v6743_v40  ;;  %v6757_v58 = vand.u32 4294901760, %v6756_v0  ;;  %v6764_v11 = vand.u32 4294901760, %v6763_v5  ;;  %v6535_v47 = vsub.f32 %v16061_v21, %v6534_v30  ;;  %10361 = vmatpush3.bf16.msra.mxu0 %v16089_v45  ;;  %10389 = vmatpush3.bf16.msra.mxu1 %v10388_v16 }
 0x345   :  { %v6644_v17 = vsub.f32 %v15788_v32, %v18611_v59  ;;  %v6651_v19 = vsub.f32 %v15795_v62, %v18612_v54  ;;  %v18614_v57 = vand.u32 4294901760, %v18613_v33  ;;  %v18616_v59 = vand.u32 4294901760, %v18615_v35  ;;  %10363 = vmatprep.subr.bf16.mxu0 %v16095_v60  ;;  %v18635_v35 = vld [vmem:[#allocation68_spill] sm:$0xff] }
 0x346   :  { %v10398_v61 = vpack.c.bf16 %v15422_v23, %v15414_v22  ;;  %v8359_v2 = vadd.f32 %v8358_v37, %v8357_v41  ;;  %v10392_v40 = vpack.c.bf16 %v6638_v50, %v6631_v49  ;;  %10391 = vmatprep.subr.bf16.mxu1 %v10390_v1  ;;  %v10394_v5 = vpack.c.bf16 %v6764_v11, %v6757_v58  ;;  %v18628_v11 = vld [vmem:[#allocation91_spill] sm:$0xff]  ;;  %v18630_v37 = vld [vmem:[#allocation76_spill] sm:$0xff] }
 0x347   :  { %v16113_v55 = vpack.c.bf16 %v18616_v59, %v18614_v57  ;;  %v6645_v63 = vand.u32 4294901760, %v6644_v17  ;;  %v6652_v0 = vand.u32 4294901760, %v6651_v19  ;;  %v6536_v54 = vand.u32 4294901760, %v6535_v47  ;;  %v8392_v17 = vpop.f32.mrb[30].mxu0  ;;  %v18632_v57 = vld [vmem:[#allocation60_spill] sm:$0xff] }
 0x348   :  { %v4703_v13 = vadd.f32 %v8359_v2, %v4599_v46  ;;  %v10400_v33 = vpack.c.bf16 %v15442_v24, %v15437_v12  ;;  %10393 = vmatpush3.bf16.msra.mxu1 %v10392_v40  ;;  %v10402_v23 = vpack.c.bf16 %v15460_v36, %v15455_v9  ;;  %v10404_v16 = vpack.c.bf16 %v15476_v38, %v15471_v26  ;;  %v18618_v26 = vld [vmem:[#allocation39_spill] sm:$0xff]  ;;  %v18619_v36 = vld [vmem:[#allocation64_spill] sm:$0xff]  ;;  %v8393_v19 = vpop.f32.mrb[31].mxu0  ;;  %v18642_v40 = vld [vmem:[#allocation38_spill] sm:$0xff] }
 0x349   :  { %10365 = vmatpush3.bf16.msra.mxu0 %v16113_v55  ;;  %v10396_v22 = vpack.c.bf16 %v6652_v0, %v6645_v63  ;;  %10395 = vmatprep.subr.bf16.mxu1 %v10394_v5  ;;  %v10406_v49 = vpack.c.bf16 %v15498_v39, %v15485_v14  ;;  %v10408_v24 = vpack.c.bf16 %v15528_v56, %v15503_v7  ;;  %v18617_v38 = vand.u32 4294901760, %v15871_v4  ;;  %v18620_v14 = vld [vmem:[#allocation67_spill] sm:$0xff]  ;;  %v18621_v56 = vld [vmem:[#allocation33_spill] sm:$0xff]  ;;  %v18636_v59 = vld [vmem:[#allocation24_spill] sm:$0xff] }
 0x34a   :  { %10399 = vmatprep.subr.bf16.mxu0 %v10398_v61  ;;  %v10410_v12 = vpack.c.bf16 %v15560_v52, %v15544_v48  ;;  %v10412_v39 = vpack.c.bf16 %v18557_v3, %v18555_v8  ;;  %v10414_v9 = vpack.c.bf16 %v18561_v43, %v18618_v26  ;;  %v10416_v7 = vpack.c.bf16 %v18620_v14, %v15632_v10  ;;  %v18622_v52 = vld [vmem:[#allocation41_spill] sm:$0xff]  ;;  %v18625_v43 = vld [vmem:[#allocation43_spill] sm:$0xff]  ;;  %v18626_v10 = vld [vmem:[#allocation86_spill] sm:$0xff] }
 0x34b   :  { %v10418_v48 = vpack.c.bf16 %v15688_v51, %v15683_v31  ;;  %v18624_v8 = vld [vmem:[#allocation89_spill] sm:$0xff]  ;;  %v10422_v50 = vpack.c.bf16 %v15737_v29, %v15732_v18  ;;  %v8394_v46 = vadd.f32 %v8393_v19, %v8392_v17  ;;  %v10424_v31 = vpack.c.bf16 %v15752_v34, %v15742_v53  ;;  %v18629_v53 = vld [vmem:[#allocation47_spill] sm:$0xff]  ;;  %v18637_v61 = vld [vmem:[#allocation40_spill] sm:$0xff] }
 0x34c   :  { %6537 = vmatmul.mubr.f32.vlgmr.msra.gmra.mrb[42].mxu0 %v6536_v54  ;;  %10397 = vmatpush3.bf16.msra.mxu1 %v10396_v22  ;;  %v18627_v51 = vld [vmem:[#allocation37_spill] sm:$0xff]  ;;  %v10428_v29 = vpack.c.bf16 %v15795_v62, %v15788_v32  ;;  %v18633_v62 = vld [vmem:[#allocation54_spill] sm:$0xff]  ;;  %v18643_v63 = vld [vmem:[#allocation12_spill] sm:$0xff] }
 0x34d   :  { %10401 = vmatpush3.bf16.msra.mxu0 %v10400_v33  ;;  %6904 = vmatprep.mubr.f32.mxu0 %v15871_v4  ;;  %v18623_v4 = vld [vmem:[#allocation82_spill] sm:$0xff]  ;;  %v10426_v1 = vpack.c.bf16 %v15783_v28, %v18627_v51  ;;  %v4815_v58 = vadd.f32 %v8394_v46, %v4703_v13  ;;  %v18631_v28 = vld [vmem:[#allocation79_spill] sm:$0xff]  ;;  %v18644_v13 = vld [vmem:[#allocation52_spill] sm:$0xff] }
 0x34e   :  { %10403 = vmatprep.subr.bf16.mxu0 %v10402_v23  ;;  %10431 = vmatprep.subr.bf16.mxu1 %v15892_v25  ;;  %v10420_v3 = vpack.c.bf16 %v18624_v8, %v18623_v4  ;;  %v8427_v41 = vpop.f32.mrb[30].mxu1  ;;  %v18634_v32 = vld [vmem:[#allocation18_spill] sm:$0xff]  ;;  %v18645_v23 = vld [vmem:[#allocation93_spill] sm:$0xff] }
 0x34f   :  { %6769 = vmatmul.mubr.f32.vlgmr.msra.gmra.mrb[42].mxu1 %v16031_v6  ;;  %v8428_v18 = vpop.f32.mrb[31].mxu1 }
 0x350   :  { %10433 = vmatpush3.bf16.msra.mxu1 %v15918_v27  ;;  %7011 = vmatprep.mubr.f32.mxu1 %v18617_v38  ;;  %v8429_v47 = vadd.f32 %v8428_v18, %v8427_v41 }
 0x351   :  { %10405 = vmatpush3.bf16.msra.mxu0 %v10404_v16  ;;  %10435 = vmatprep.subr.bf16.mxu1 %v15925_v44  ;;  %v18646_v16 = vld [vmem:[#allocation53_spill] sm:$0xff] }
 0x352   :  { %10407 = vmatprep.subr.bf16.mxu0 %v10406_v49  ;;  %v5047_v34 = vadd.f32 %v8429_v47, %v4815_v58 }
 0x354   :  { %10437 = vmatpush3.bf16.msra.mxu1 %v15947_v42 }
 0x355   :  { %10409 = vmatpush3.bf16.msra.mxu0 %v10408_v24  ;;  %10439 = vmatprep.subr.bf16.mxu1 %v18619_v36 }
 0x356   :  { %10411 = vmatprep.subr.bf16.mxu0 %v10410_v12 }
 0x358   :  { %10441 = vmatpush3.bf16.msra.mxu1 %v18621_v56 }
 0x359   :  { %10413 = vmatpush3.bf16.msra.mxu0 %v10412_v39  ;;  %10443 = vmatprep.subr.bf16.mxu1 %v18622_v52 }
 0x35a   :  { %10415 = vmatprep.subr.bf16.mxu0 %v10414_v9 }
 0x35c   :  { %10445 = vmatpush3.bf16.msra.mxu1 %v18625_v43 }
 0x35d   :  { %10417 = vmatpush3.bf16.msra.mxu0 %v10416_v7  ;;  %10447 = vmatprep.subr.bf16.mxu1 %v18626_v10 }
 0x35e   :  { %10419 = vmatprep.subr.bf16.mxu0 %v10418_v48 }
 0x360   :  { %10449 = vmatpush3.bf16.msra.mxu1 %v16028_v15 }
 0x361   :  { %10421 = vmatpush3.bf16.msra.mxu0 %v10420_v3  ;;  %10451 = vmatprep.subr.bf16.mxu1 %v18628_v11 }
 0x362   :  { %10423 = vmatprep.subr.bf16.mxu0 %v10422_v50 }
 0x364   :  { %10453 = vmatpush3.bf16.msra.mxu1 %v16057_v20 }
 0x365   :  { %10425 = vmatpush3.bf16.msra.mxu0 %v10424_v31  ;;  %10455 = vmatprep.subr.bf16.mxu1 %v18629_v53 }
 0x366   :  { %10427 = vmatprep.subr.bf16.mxu0 %v10426_v1 }
 0x368   :  { %10457 = vmatpush3.bf16.msra.mxu1 %v16089_v45 }
 0x369   :  { %10429 = vmatpush3.bf16.msra.mxu0 %v10428_v29  ;;  %10459 = vmatprep.subr.bf16.mxu1 %v16095_v60 }
 0x36a   :  { %10463 = vmatprep.subr.bf16.mxu0 %v18630_v37 }
 0x36c   :  { %6907 = vmatmul.mubr.f32.vlgmr.msra.gmra.mrb[44].mxu0 %v16061_v21  ;;  %10461 = vmatpush3.bf16.msra.mxu1 %v16113_v55  ;;  %v18639_v21 = vld [vmem:[#allocation26_spill] sm:$0xff] }
 0x36d   :  { %10465 = vmatpush3.bf16.msra.mxu0 %v18631_v28  ;;  %7181 = vmatprep.mubr.f32.mxu0 %v18632_v57 }
 0x36e   :  { %10467 = vmatprep.subr.bf16.mxu0 %v18633_v62  ;;  %10495 = vmatprep.subr.bf16.mxu1 %v15892_v25  ;;  %v18638_v25 = vld [vmem:[#allocation75_spill] sm:$0xff] }
 0x36f   :  { %7015 = vmatmul.mubr.f32.vlgmr.msra.gmra.mrb[44].mxu1 %v6534_v30 }
 0x370   :  { %10497 = vmatpush3.bf16.msra.mxu1 %v15918_v27  ;;  %7285 = vmatprep.mubr.f32.mxu1 %v18632_v57  ;;  %v18640_v27 = vld [vmem:[#allocation72_spill] sm:$0xff]  ;;  %v8462_v30 = vpop.f32.mrb[32].mxu0 }
 0x371   :  { %10469 = vmatpush3.bf16.msra.mxu0 %v18634_v32  ;;  %10499 = vmatprep.subr.bf16.mxu1 %v15925_v44  ;;  %v18641_v44 = vld [vmem:[#allocation25_spill] sm:$0xff] }
 0x372   :  { %10471 = vmatprep.subr.bf16.mxu0 %v18635_v35 }
 0x374   :  { %10501 = vmatpush3.bf16.msra.mxu1 %v15947_v42  ;;  %v8463_v42 = vpop.f32.mrb[33].mxu0 }
 0x375   :  { %10473 = vmatpush3.bf16.msra.mxu0 %v18636_v59  ;;  %10503 = vmatprep.subr.bf16.mxu1 %v18619_v36  ;;  %v8464_v2 = vadd.f32 %v8463_v42, %v8462_v30 }
 0x376   :  { %10475 = vmatprep.subr.bf16.mxu0 %v18637_v61  ;;  %v8497_v5 = vpop.f32.mrb[32].mxu1 }
 0x377   :  { %v5185_v0 = vadd.f32 %v8464_v2, %v5047_v34  ;;  %v8498_v54 = vpop.f32.mrb[33].mxu1 }
 0x378   :  { %10505 = vmatpush3.bf16.msra.mxu1 %v18621_v56  ;;  %v8499_v33 = vadd.f32 %v8498_v54, %v8497_v5 }
 0x379   :  { %10477 = vmatpush3.bf16.msra.mxu0 %v18638_v25  ;;  %10507 = vmatprep.subr.bf16.mxu1 %v18622_v52 }
 0x37a   :  { %10479 = vmatprep.subr.bf16.mxu0 %v18639_v21  ;;  %v5293_v22 = vadd.f32 %v8499_v33, %v5185_v0 }
 0x37c   :  { %10509 = vmatpush3.bf16.msra.mxu1 %v18625_v43 }
 0x37d   :  { %10481 = vmatpush3.bf16.msra.mxu0 %v18640_v27  ;;  %10511 = vmatprep.subr.bf16.mxu1 %v18626_v10 }
 0x37e   :  { %10483 = vmatprep.subr.bf16.mxu0 %v18641_v44 }
 0x380   :  { %10513 = vmatpush3.bf16.msra.mxu1 %v16028_v15 }
 0x381   :  { %10485 = vmatpush3.bf16.msra.mxu0 %v18642_v40  ;;  %10515 = vmatprep.subr.bf16.mxu1 %v18628_v11 }
 0x382   :  { %10487 = vmatprep.subr.bf16.mxu0 %v18643_v63 }
 0x384   :  { %10517 = vmatpush3.bf16.msra.mxu1 %v16057_v20 }
 0x385   :  { %10489 = vmatpush3.bf16.msra.mxu0 %v18644_v13  ;;  %10519 = vmatprep.subr.bf16.mxu1 %v18629_v53 }
 0x386   :  { %10491 = vmatprep.subr.bf16.mxu0 %v18645_v23 }
 0x388   :  { %10521 = vmatpush3.bf16.msra.mxu1 %v16089_v45 }
 0x389   :  { %10493 = vmatpush3.bf16.msra.mxu0 %v18646_v16  ;;  %10523 = vmatprep.subr.bf16.mxu1 %v16095_v60 }
 0x38c   :  { %7183 = vmatmul.mubr.f32.vlgmr.msra.gmra.mrb[46].mxu0 %v16031_v6  ;;  %10525 = vmatpush3.bf16.msra.mxu1 %v16113_v55 }
 0x38f   :  { %7287 = vmatmul.mubr.f32.vlgmr.msra.gmra.mrb[46].mxu1 %v16031_v6 }
 0x390   :  { %v8532_v15 = vpop.f32.mrb[34].mxu0 }
 0x391   :  { %v8533_v49 = vpop.f32.mrb[35].mxu0 }
 0x392   :  { %v8534_v24 = vadd.f32 %v8533_v49, %v8532_v15 }
 0x394   :  { %v5461_v12 = vadd.f32 %v8534_v24, %v5293_v22 }
 0x396   :  { %v8567_v20 = vpop.f32.mrb[34].mxu1 }
 0x397   :  { %v8568_v38 = vpop.f32.mrb[35].mxu1 }
 0x398   :  { %v8569_v39 = vadd.f32 %v8568_v38, %v8567_v20 }
 0x39a   :  { %v5565_v26 = vadd.f32 %v8569_v39, %v5461_v12 }
 0x3b3   :  { %v8602_v9 = vpop.f32.mrb[36].mxu0 }
 0x3b4   :  { %v8603_v36 = vpop.f32.mrb[37].mxu0 }
 0x3b5   :  { %v8604_v14 = vadd.f32 %v8603_v36, %v8602_v9 }
 0x3b7   :  { %v5677_v45 = vadd.f32 %v8604_v14, %v5565_v26 }
 0x3b9   :  { %v8637_v7 = vpop.f32.mrb[36].mxu1 }
 0x3ba   :  { %v8638_v60 = vpop.f32.mrb[37].mxu1 }
 0x3bb   :  { %v8639_v56 = vadd.f32 %v8638_v60, %v8637_v7 }
 0x3bd   :  { %v5909_v48 = vadd.f32 %v8639_v56, %v5677_v45 }
 0x3db   :  { %v8672_v52 = vpop.f32.mrb[38].mxu0 }
 0x3dc   :  { %v8673_v55 = vpop.f32.mrb[39].mxu0 }
 0x3dd   :  { %v8674_v4 = vadd.f32 %v8673_v55, %v8672_v52 }
 0x3df   :  { %v6047_v6 = vadd.f32 %v8674_v4, %v5909_v48 }
 0x3e1   :  { %v8707_v8 = vpop.f32.mrb[38].mxu1 }
 0x3e2   :  { %v8708_v3 = vpop.f32.mrb[39].mxu1 }
 0x3e3   :  { %v8709_v43 = vadd.f32 %v8708_v3, %v8707_v8 }
 0x3e5   :  { %v6155_v50 = vadd.f32 %v8709_v43, %v6047_v6 }
 0x3fb   :  { %v8742_v17 = vpop.f32.mrb[40].mxu0 }
 0x3fc   :  { %v8743_v10 = vpop.f32.mrb[41].mxu0 }
 0x3fd   :  { %v8744_v19 = vadd.f32 %v8743_v10, %v8742_v17 }
 0x3ff   :  { %v6323_v46 = vadd.f32 %v8744_v19, %v6155_v50 }
 0x401   :  { %v8777_v31 = vpop.f32.mrb[40].mxu1 }
 0x402   :  { %v8778_v51 = vpop.f32.mrb[41].mxu1 }
 0x403   :  { %v8779_v1 = vadd.f32 %v8778_v51, %v8777_v31 }
 0x405   :  { %v6427_v58 = vadd.f32 %v8779_v1, %v6323_v46 }
 0x41f   :  { %v8812_v11 = vpop.f32.mrb[42].mxu0 }
 0x420   :  { %v8813_v41 = vpop.f32.mrb[43].mxu0 }
 0x421   :  { %v8814_v18 = vadd.f32 %v8813_v41, %v8812_v11 }
 0x422   :  { %v8847_v47 = vpop.f32.mrb[42].mxu1 }
 0x423   :  { %v6539_v29 = vadd.f32 %v8814_v18, %v6427_v58  ;;  %v8848_v53 = vpop.f32.mrb[43].mxu1 }
 0x424   :  { %v8849_v34 = vadd.f32 %v8848_v53, %v8847_v47 }
 0x426   :  { %v6771_v37 = vadd.f32 %v8849_v34, %v6539_v29 }
 0x43f   :  { %v8882_v28 = vpop.f32.mrb[44].mxu0 }
 0x440   :  { %v8883_v57 = vpop.f32.mrb[45].mxu0 }
 0x441   :  { %v8884_v62 = vadd.f32 %v8883_v57, %v8882_v28 }
 0x442   :  { %v8917_v35 = vpop.f32.mrb[44].mxu1 }
 0x443   :  { %v6909_v32 = vadd.f32 %v8884_v62, %v6771_v37  ;;  %v8918_v59 = vpop.f32.mrb[45].mxu1 }
 0x444   :  { %v8919_v61 = vadd.f32 %v8918_v59, %v8917_v35 }
 0x446   :  { %v7017_v25 = vadd.f32 %v8919_v61, %v6909_v32 }
 0x45f   :  { %v8952_v21 = vpop.f32.mrb[46].mxu0 }
 0x460   :  { %v8953_v27 = vpop.f32.mrb[47].mxu0 }
 0x461   :  { %v8954_v44 = vadd.f32 %v8953_v27, %v8952_v21 }
 0x462   :  { %v8987_v42 = vpop.f32.mrb[46].mxu1 }
 0x463   :  { %v7185_v30 = vadd.f32 %v8954_v44, %v7017_v25  ;;  %v8988_v2 = vpop.f32.mrb[47].mxu1 }
 0x464   :  { %v8989_v40 = vadd.f32 %v8988_v2, %v8987_v42 }
 0x466   :  { %v7289_v63 = vadd.f32 %v8989_v40, %v7185_v30 }
 0x468   :  { %7292 = vst [vmem:[#allocation7] sm:$0x3] %v7289_v63 }
 0x469   :  { %10591 = shalt.err (!%p10588_p6)
}
 0x46a   :  { %s10592_s15 = scalar_lea.hbm %s16223_s3, 32 }
 0x46b   :  { %p10593_p7 = scmp.ne.s32.totalorder %s16223_s3, %s10592_s15  ;;  %p10596_p8 = scmp.lt.u32.totalorder %s10592_s15, %s16223_s3 }
 0x46d   :  { %p10598_p9 = pnand %p10596_p8, %p10593_p7 }
 0x46f   :  { %10601 = shalt.err (!%p10598_p9)
}
 0x470   :  { %7302 = dma.vmem_to_hbm [thread:$0]  %s7300_s11, 32, %s16223_s3, [#allocation4]  }
 0x471   :  { %10606 = dma.done.wait [#allocation4], 32  }
 0x472   :  { %10607 = vsyncadd [#allocation4], 4294967264 }
 0x473   :  { %7306 = vsyncpa [#allocation3], 1 }
 0x474   :  { %7307 = vsyncpa [#allocation6], 1 }
 0x475   :  { %7308 = vsyncpa [#allocation4], 1 }

</bundles_post_ra>
